<compile_context>
chip_gen: v5e
topology: v5e:2x2
jax: 0.10.0
libtpu: 0.0.40
codegen_flags: <defaults>
</compile_context>

<pallas_src>
import jax
import jax.numpy as jnp
from jax import lax
from jax.experimental import pallas as pl
from jax.experimental.pallas import tpu as pltpu

_REF_PREC = lax.Precision.HIGHEST   # used only by the pure-JAX reference
_PAD = 128                          # aligned zero-border width for conv tap scratches


# ----------------------------------------------------------------------------- kernel

def _cols5(ref):
    """Unpack a (C, 5) per-channel parameter block into five (C, 1) columns."""
    return tuple(ref[:, k:k + 1] for k in range(5))


def afib_kernel(pq_ref, w1_ref, v1_ref,
                w2_ref, v2_ref, sel2_ref,
                w3_ref, v3_ref, sel3_ref,
                fc1_ref, fcv_ref, fc2w_ref, fc2b_ref,
                o_ref,
                ypad2, apad2, ypad3, apad3, y3flat):
    """Whole AfibDetector forward (eval mode) for one batch element."""
    f32 = jnp.float32

    # ---- block 1: Conv(1->8, 3x3, stride 2) + bias + ReLU + BN + MaxPool2x2 + BN ----
    # pq_ref columns are pool-quadrant major (4 x 1024), so the pool is a max over
    # four aligned lane chunks.  Cin == 1 -> the conv is 9 broadcasted FMAs (exact f32).
    cb1, s1a, b1a, s1b, b1b = _cols5(v1_ref)
    m1 = None
    for q in range(4):
        qs = q * 1024
        acc = jnp.zeros((8, 1024), f32)
        for t in range(9):
            acc = acc + w1_ref[:, t:t + 1] * pq_ref[0, t:t + 1, qs:qs + 1024]
        aq = jnp.maximum(acc + cb1, 0.0) * s1a + b1a          # bias + ReLU + BN(pre-pool)
        m1 = aq if m1 is None else jnp.maximum(m1, aq)        # 2x2 max pool
    y1 = m1 * s1b + b1b                                       # BN(post-pool); (8, 32*32)

    # ---- block 2: Conv(8->16, 3x3) + bias + ReLU + (Dropout2d=id) + BN + Pool + BN ----
    H2, N2 = 32, 1024
    ypad2[:, 0:_PAD] = jnp.zeros((8, _PAD), f32)
    ypad2[:, _PAD + N2:_PAD + N2 + _PAD] = jnp.zeros((8, _PAD), f32)
    ypad2[:, _PAD:_PAD + N2] = y1
    col2 = lax.broadcasted_iota(jnp.int32, (1, N2), 1) & (H2 - 1)
    mL2, mR2 = col2 >= 1, col2 < (H2 - 1)
    cb2, s2a, b2a, s2b, b2b = _cols5(v2_ref)
    acc2 = jnp.zeros((16, N2), f32)
    for dh in range(3):
        for dw in range(3):
            t = dh * 3 + dw
            off = _PAD + (dh - 1) * H2 + (dw - 1)
            tap = ypad2[:, off:off + N2]                      # (8, 1024) shifted window
            if dw == 0:
                tap = jnp.where(mL2, tap, 0.0)
            elif dw == 2:
                tap = jnp.where(mR2, tap, 0.0)
            acc2 = acc2 + jnp.dot(w2_ref[:, t * 8:(t + 1) * 8], tap,
                                  preferred_element_type=f32)
    a2 = jnp.maximum(acc2 + cb2, 0.0) * s2a + b2a             # (16, 1024) pre-pool
    apad2[:, N2:N2 + _PAD] = jnp.zeros((16, _PAD), f32)
    apad2[:, 0:N2] = a2
    tv2 = jnp.maximum(jnp.maximum(a2, apad2[:, 1:N2 + 1]),
                      jnp.maximum(apad2[:, H2:N2 + H2], apad2[:, H2 + 1:N2 + H2 + 1]))
    y2 = jnp.dot(tv2, sel2_ref[...], preferred_element_type=f32) * s2b + b2b   # (16, 256)

    # ---- block 3: Conv(16->32, 3x3) + bias + ReLU + BN + Pool + BN ----
    H3, N3 = 16, 256
    ypad3[:, 0:_PAD] = jnp.zeros((16, _PAD), f32)
    ypad3[:, _PAD + N3:_PAD + N3 + _PAD] = jnp.zeros((16, _PAD), f32)
    ypad3[:, _PAD:_PAD + N3] = y2
    col3 = lax.broadcasted_iota(jnp.int32, (1, N3), 1) & (H3 - 1)
    mL3, mR3 = col3 >= 1, col3 < (H3 - 1)
    cb3, s3a, b3a, s3b, b3b = _cols5(v3_ref)
    acc3 = jnp.zeros((32, N3), f32)
    for dh in range(3):
        for dw in range(3):
            t = dh * 3 + dw
            off = _PAD + (dh - 1) * H3 + (dw - 1)
            tap = ypad3[:, off:off + N3]                      # (16, 256)
            if dw == 0:
                tap = jnp.where(mL3, tap, 0.0)
            elif dw == 2:
                tap = jnp.where(mR3, tap, 0.0)
            acc3 = acc3 + jnp.dot(w3_ref[:, t * 16:(t + 1) * 16], tap,
                                  preferred_element_type=f32)
    a3 = jnp.maximum(acc3 + cb3, 0.0) * s3a + b3a             # (32, 256) pre-pool
    apad3[:, N3:N3 + _PAD] = jnp.zeros((32, _PAD), f32)
    apad3[:, 0:N3] = a3
    tv3 = jnp.maximum(jnp.maximum(a3, apad3[:, 1:N3 + 1]),
                      jnp.maximum(apad3[:, H3:N3 + H3], apad3[:, H3 + 1:N3 + H3 + 1]))
    y3 = jnp.dot(tv3, sel3_ref[...], preferred_element_type=f32) * s3b + b3b   # (32, 64)

    # ---- flatten (torch NCHW view order: c*64 + i*8 + j) + Linear+ReLU+BN1d+Linear ----
    for c in range(32):
        y3flat[:, c * 64:(c + 1) * 64] = y3[c:c + 1, :]
    h = jnp.dot(y3flat[...], fc1_ref[...], preferred_element_type=f32)          # (1, 256)
    h = jnp.maximum(h + fcv_ref[0:1, :], 0.0) * fcv_ref[1:2, :] + fcv_ref[2:3, :]
    # Dropout(p=0.5) is identity at inference.
    o_ref[0] = jnp.dot(h, fc2w_ref[...], preferred_element_type=f32) + fc2b_ref[...]


# ----------------------------------------------------------------------------- wrappers

def _pool_select(w):
    """(w*w, (w//2)**2) 0/1 matrix: column (I, J) selects flat position (2I, 2J)."""
    hp = w // 2
    ii, jj = jnp.meshgrid(jnp.arange(hp), jnp.arange(hp), indexing="ij")
    rows = (2 * ii * w + 2 * jj).reshape(-1)
    cols = (ii * hp + jj).reshape(-1)
    return jnp.zeros((w * w, hp * hp), jnp.float32).at[rows, cols].set(1.0)


def prepare_params(p):
    """One-time repack of PyTorch-style params into kernel-ready layouts."""
    f32 = jnp.float32
    return {
        "w1r": p["w1"].reshape(8, 9),
        "v1": jnp.stack([p["b1"], p["bn1a"][0], p["bn1a"][1],
                         p["bn1b"][0], p["bn1b"][1]], axis=1),
        "w2r": jnp.transpose(p["w2"], (0, 2, 3, 1)).reshape(16, 72),
        "v2": jnp.stack([p["b2"], p["bn2a"][0], p["bn2a"][1],
                         p["bn2b"][0], p["bn2b"][1]], axis=1),
        "sel2": _pool_select(32),                               # (1024, 256)
        "w3r": jnp.transpose(p["w3"], (0, 2, 3, 1)).reshape(32, 144),
        "v3": jnp.stack([p["b3"], p["bn3a"][0], p["bn3a"][1],
                         p["bn3b"][0], p["bn3b"][1]], axis=1),
        "sel3": _pool_select(16),                               # (256, 64)
        "fc1wt": jnp.transpose(p["fc1w"]),                      # (2048, 256)
        "fcv": jnp.stack([p["fc1b"], p["bnf"][0], p["bnf"][1]], axis=0),
        "fc2wt": jnp.zeros((256, 128), f32).at[:, :2].set(jnp.transpose(p["fc2w"])),
        "fc2b": jnp.zeros((1, 128), f32).at[0, :2].set(p["fc2b"]),
    }


def _conv1_patches(x):
    """(B,1,128,128) -> (B, 9, 4*1024) im2col for the stride-2 conv1.

    Columns are 2x2-pool-quadrant major; within a quadrant: the 32x32 pooled
    output positions in row-major order.
    """
    B = x.shape[0]
    xp = jnp.pad(x[:, 0], ((0, 0), (1, 1), (1, 1)))             # (B, 130, 130)
    quads = []
    for qi in range(2):
        for qj in range(2):
            taps = []
            for dh in range(3):
                for dw in range(3):
                    r0, c0 = 2 * qi + dh, 2 * qj + dw
                    s = xp[:, r0:r0 + 125:4, c0:c0 + 125:4]     # (B, 32, 32)
                    taps.append(s.reshape(B, 1024))
            quads.append(jnp.stack(taps, axis=1))               # (B, 9, 1024)
    return jnp.concatenate(quads, axis=2)                       # (B, 9, 4096)


def afib_forward(x, kp):
    """AfibDetector.forward (eval mode); x: (B,1,128,128) float32 -> (B, 2)."""
    B = x.shape[0]
    pq1 = _conv1_patches(x)

    def wspec(shape):
        return pl.BlockSpec(shape, lambda b: (0,) * len(shape))

    out = pl.pallas_call(
        afib_kernel,
        out_shape=jax.ShapeDtypeStruct((B, 1, 128), jnp.float32),
        grid=(B,),
        in_specs=[
            pl.BlockSpec((1, 9, 4096), lambda b: (b, 0, 0)),
            wspec((8, 9)), wspec((8, 5)),
            wspec((16, 72)), wspec((16, 5)), wspec((1024, 256)),
            wspec((32, 144)), wspec((32, 5)), wspec((256, 64)),
            wspec((2048, 256)), wspec((3, 256)), wspec((256, 128)), wspec((1, 128)),
        ],
        out_specs=pl.BlockSpec((1, 1, 128), lambda b: (b, 0, 0)),
        scratch_shapes=[
            pltpu.VMEM((8, 2 * _PAD + 1024), jnp.float32),   # zero-bordered y1
            pltpu.VMEM((16, 1024 + _PAD), jnp.float32),      # pre-pool act2
            pltpu.VMEM((16, 2 * _PAD + 256), jnp.float32),   # zero-bordered y2
            pltpu.VMEM((32, 256 + _PAD), jnp.float32),       # pre-pool act3
            pltpu.VMEM((1, 2048), jnp.float32),              # flattened conv3 output
        ],
        compiler_params=pltpu.CompilerParams(
            dimension_semantics=("parallel",)),
    )(pq1, kp["w1r"], kp["v1"], kp["w2r"], kp["v2"], kp["sel2"],
      kp["w3r"], kp["v3"], kp["sel3"], kp["fc1wt"], kp["fcv"],
      kp["fc2wt"], kp["fc2b"])
    return out[:, 0, :2]


# ----------------------------------------------------------------------------- params / ref

def fold_bn(gamma, beta, rmean, rvar, eps=1e-5):
    scale = gamma / jnp.sqrt(rvar + eps)
    return scale, beta - rmean * scale


def init_bn(key, c):
    k1, k2, k3, k4 = jax.random.split(key, 4)
    gamma = jax.random.uniform(k1, (c,), jnp.float32, 0.5, 1.5)
    beta = 0.1 * jax.random.normal(k2, (c,), jnp.float32)
    rmean = 0.1 * jax.random.normal(k3, (c,), jnp.float32)
    rvar = jax.random.uniform(k4, (c,), jnp.float32, 0.5, 1.5)
    return fold_bn(gamma, beta, rmean, rvar)


def init_params(key):
    ks = jax.random.split(key, 16)
    n = lambda k, s, sc=0.1: sc * jax.random.normal(k, s, jnp.float32)
    return {
        "w1": n(ks[0], (8, 1, 3, 3)),   "b1": n(ks[1], (8,)),
        "bn1a": init_bn(ks[2], 8),      "bn1b": init_bn(ks[3], 8),
        "w2": n(ks[4], (16, 8, 3, 3)),  "b2": n(ks[5], (16,)),
        "bn2a": init_bn(ks[6], 16),     "bn2b": init_bn(ks[7], 16),
        "w3": n(ks[8], (32, 16, 3, 3)), "b3": n(ks[9], (32,)),
        "bn3a": init_bn(ks[10], 32),    "bn3b": init_bn(ks[11], 32),
        "fc1w": n(ks[12], (256, 2048), 0.05), "fc1b": n(ks[13], (256,)),
        "bnf": init_bn(ks[14], 256),
        "fc2w": n(ks[15], (2, 256)),    "fc2b": jnp.zeros((2,), jnp.float32),
    }


def reference_forward(x, p):
    """Plain-JAX mirror of the PyTorch forward (eval mode), NCHW throughout."""
    def conv(x, w, b, stride):
        y = lax.conv_general_dilated(
            x, w, (stride, stride), ((1, 1), (1, 1)),
            dimension_numbers=("NCHW", "OIHW", "NCHW"), precision=_REF_PREC)
        return y + b[None, :, None, None]

    def bn(x, sb):
        s, bb = sb
        return x * s[None, :, None, None] + bb[None, :, None, None]

    def pool(x):
        return lax.reduce_window(x, -jnp.inf, lax.max,
                                 (1, 1, 2, 2), (1, 1, 2, 2), "VALID")

    x = bn(pool(bn(jax.nn.relu(conv(x, p["w1"], p["b1"], 2)), p["bn1a"])), p["bn1b"])
    x = bn(pool(bn(jax.nn.relu(conv(x, p["w2"], p["b2"], 1)), p["bn2a"])), p["bn2b"])
    x = bn(pool(bn(jax.nn.relu(conv(x, p["w3"], p["b3"], 1)), p["bn3a"])), p["bn3b"])
    B = x.shape[0]
    x = x.reshape(B, -1)
    h = jax.nn.relu(jnp.dot(x, p["fc1w"].T, precision=_REF_PREC) + p["fc1b"])
    h = h * p["bnf"][0] + p["bnf"][1]
    return jnp.dot(h, p["fc2w"].T, precision=_REF_PREC) + p["fc2b"]


# ----------------------------------------------------------------------------- main

if __name__ == "__main__":
    params = init_params(jax.random.PRNGKey(42))
    kparams = prepare_params(params)         # one-time weight repack (offline)
    # Input spatial size 128x128 is dictated by fc1 = Linear(8*8*32, 256).
    x = jax.random.normal(jax.random.PRNGKey(0), (2, 1, 128, 128), jnp.float32)

    fwd = jax.jit(afib_forward)
    out = fwd(x, kparams)
    jax.block_until_ready(out)

    ref = reference_forward(x, params)
    assert out.shape == (2, 2), out.shape
    # Kernel matmuls run at DEFAULT MXU precision (bf16 operands, f32 accumulate);
    # reference runs at HIGHEST, hence the relaxed tolerance.
    assert bool(jnp.allclose(out, ref, rtol=2e-2, atol=2e-2)), (out, ref)
    print("KERNEL_OK")
</pallas_src>

<mosaic_0001>
module attributes {stable_mosaic.version = 11 : i64} {
  func.func @afib_kernel(%arg0: i32, %arg1: memref<1x9x4096xf32, #tpu.memory_space<vmem>>, %arg2: memref<8x9xf32, #tpu.memory_space<vmem>>, %arg3: memref<8x5xf32, #tpu.memory_space<vmem>>, %arg4: memref<16x72xf32, #tpu.memory_space<vmem>>, %arg5: memref<16x5xf32, #tpu.memory_space<vmem>>, %arg6: memref<1024x256xf32, #tpu.memory_space<vmem>>, %arg7: memref<32x144xf32, #tpu.memory_space<vmem>>, %arg8: memref<32x5xf32, #tpu.memory_space<vmem>>, %arg9: memref<256x64xf32, #tpu.memory_space<vmem>>, %arg10: memref<2048x256xf32, #tpu.memory_space<vmem>>, %arg11: memref<3x256xf32, #tpu.memory_space<vmem>>, %arg12: memref<256x128xf32, #tpu.memory_space<vmem>>, %arg13: memref<1x128xf32, #tpu.memory_space<vmem>>, %arg14: memref<1x1x128xf32, #tpu.memory_space<vmem>>, %arg15: memref<8x1280xf32, #tpu.memory_space<vmem>>, %arg16: memref<16x1152xf32, #tpu.memory_space<vmem>>, %arg17: memref<16x512xf32, #tpu.memory_space<vmem>>, %arg18: memref<32x384xf32, #tpu.memory_space<vmem>>, %arg19: memref<1x2048xf32, #tpu.memory_space<vmem>>) attributes {dimension_semantics = [#tpu.dimension_semantics<parallel>], iteration_bounds = array<i64: 2>, scalar_prefetch = 0 : i64, scratch_operands = 5 : i64, tpu.core_type = #tpu.core_type<tc>, window_params = [{transform_indices = @transform_0, window_bounds = array<i64: 1, 9, 4096>}, {pipeline_mode = #tpu.pipeline_mode<synchronous>, transform_indices = @transform_1, window_bounds = array<i64: 8, 9>}, {pipeline_mode = #tpu.pipeline_mode<synchronous>, transform_indices = @transform_2, window_bounds = array<i64: 8, 5>}, {pipeline_mode = #tpu.pipeline_mode<synchronous>, transform_indices = @transform_3, window_bounds = array<i64: 16, 72>}, {pipeline_mode = #tpu.pipeline_mode<synchronous>, transform_indices = @transform_4, window_bounds = array<i64: 16, 5>}, {pipeline_mode = #tpu.pipeline_mode<synchronous>, transform_indices = @transform_5, window_bounds = array<i64: 1024, 256>}, {pipeline_mode = #tpu.pipeline_mode<synchronous>, transform_indices = @transform_6, window_bounds = array<i64: 32, 144>}, {pipeline_mode = #tpu.pipeline_mode<synchronous>, transform_indices = @transform_7, window_bounds = array<i64: 32, 5>}, {pipeline_mode = #tpu.pipeline_mode<synchronous>, transform_indices = @transform_8, window_bounds = array<i64: 256, 64>}, {pipeline_mode = #tpu.pipeline_mode<synchronous>, transform_indices = @transform_9, window_bounds = array<i64: 2048, 256>}, {pipeline_mode = #tpu.pipeline_mode<synchronous>, transform_indices = @transform_10, window_bounds = array<i64: 3, 256>}, {pipeline_mode = #tpu.pipeline_mode<synchronous>, transform_indices = @transform_11, window_bounds = array<i64: 256, 128>}, {pipeline_mode = #tpu.pipeline_mode<synchronous>, transform_indices = @transform_12, window_bounds = array<i64: 1, 128>}, {transform_indices = @transform_13, window_bounds = array<i64: 1, 1, 128>}]} {
    %c0 = arith.constant 0 : index
    %c0_0 = arith.constant 0 : index
    %0 = vector.load %arg3[%c0, %c0_0] : memref<8x5xf32, #tpu.memory_space<vmem>>, vector<8x1xf32>
    %c0_1 = arith.constant 0 : index
    %c1 = arith.constant 1 : index
    %1 = vector.load %arg3[%c0_1, %c1] : memref<8x5xf32, #tpu.memory_space<vmem>>, vector<8x1xf32>
    %c0_2 = arith.constant 0 : index
    %c2 = arith.constant 2 : index
    %2 = vector.load %arg3[%c0_2, %c2] : memref<8x5xf32, #tpu.memory_space<vmem>>, vector<8x1xf32>
    %c0_3 = arith.constant 0 : index
    %c3 = arith.constant 3 : index
    %3 = vector.load %arg3[%c0_3, %c3] : memref<8x5xf32, #tpu.memory_space<vmem>>, vector<8x1xf32>
    %c0_4 = arith.constant 0 : index
    %c4 = arith.constant 4 : index
    %4 = vector.load %arg3[%c0_4, %c4] : memref<8x5xf32, #tpu.memory_space<vmem>>, vector<8x1xf32>
    %cst = arith.constant 0.000000e+00 : f32
    %5 = vector.broadcast %cst : f32 to vector<8x1024xf32>
    %c0_5 = arith.constant 0 : index
    %c0_6 = arith.constant 0 : index
    %6 = vector.load %arg2[%c0_5, %c0_6] : memref<8x9xf32, #tpu.memory_space<vmem>>, vector<8x1xf32>
    %c0_7 = arith.constant 0 : index
    %c0_8 = arith.constant 0 : index
    %c0_9 = arith.constant 0 : index
    %7 = vector.load %arg1[%c0_7, %c0_8, %c0_9] : memref<1x9x4096xf32, #tpu.memory_space<vmem>>, vector<1x1x1024xf32>
    %8 = vector.shape_cast %7 : vector<1x1x1024xf32> to vector<1x1024xf32>
    %9 = vector.broadcast %6 : vector<8x1xf32> to vector<8x1024xf32>
    %10 = vector.broadcast %8 : vector<1x1024xf32> to vector<8x1024xf32>
    %11 = arith.mulf %9, %10 : vector<8x1024xf32>
    %12 = arith.addf %5, %11 : vector<8x1024xf32>
    %c0_10 = arith.constant 0 : index
    %c1_11 = arith.constant 1 : index
    %13 = vector.load %arg2[%c0_10, %c1_11] : memref<8x9xf32, #tpu.memory_space<vmem>>, vector<8x1xf32>
    %c0_12 = arith.constant 0 : index
    %c1_13 = arith.constant 1 : index
    %c0_14 = arith.constant 0 : index
    %14 = vector.load %arg1[%c0_12, %c1_13, %c0_14] : memref<1x9x4096xf32, #tpu.memory_space<vmem>>, vector<1x1x1024xf32>
    %15 = vector.shape_cast %14 : vector<1x1x1024xf32> to vector<1x1024xf32>
    %16 = vector.broadcast %13 : vector<8x1xf32> to vector<8x1024xf32>
    %17 = vector.broadcast %15 : vector<1x1024xf32> to vector<8x1024xf32>
    %18 = arith.mulf %16, %17 : vector<8x1024xf32>
    %19 = arith.addf %12, %18 : vector<8x1024xf32>
    %c0_15 = arith.constant 0 : index
    %c2_16 = arith.constant 2 : index
    %20 = vector.load %arg2[%c0_15, %c2_16] : memref<8x9xf32, #tpu.memory_space<vmem>>, vector<8x1xf32>
    %c0_17 = arith.constant 0 : index
    %c2_18 = arith.constant 2 : index
    %c0_19 = arith.constant 0 : index
    %21 = vector.load %arg1[%c0_17, %c2_18, %c0_19] : memref<1x9x4096xf32, #tpu.memory_space<vmem>>, vector<1x1x1024xf32>
    %22 = vector.shape_cast %21 : vector<1x1x1024xf32> to vector<1x1024xf32>
    %23 = vector.broadcast %20 : vector<8x1xf32> to vector<8x1024xf32>
    %24 = vector.broadcast %22 : vector<1x1024xf32> to vector<8x1024xf32>
    %25 = arith.mulf %23, %24 : vector<8x1024xf32>
    %26 = arith.addf %19, %25 : vector<8x1024xf32>
    %c0_20 = arith.constant 0 : index
    %c3_21 = arith.constant 3 : index
    %27 = vector.load %arg2[%c0_20, %c3_21] : memref<8x9xf32, #tpu.memory_space<vmem>>, vector<8x1xf32>
    %c0_22 = arith.constant 0 : index
    %c3_23 = arith.constant 3 : index
    %c0_24 = arith.constant 0 : index
    %28 = vector.load %arg1[%c0_22, %c3_23, %c0_24] : memref<1x9x4096xf32, #tpu.memory_space<vmem>>, vector<1x1x1024xf32>
    %29 = vector.shape_cast %28 : vector<1x1x1024xf32> to vector<1x1024xf32>
    %30 = vector.broadcast %27 : vector<8x1xf32> to vector<8x1024xf32>
    %31 = vector.broadcast %29 : vector<1x1024xf32> to vector<8x1024xf32>
    %32 = arith.mulf %30, %31 : vector<8x1024xf32>
    %33 = arith.addf %26, %32 : vector<8x1024xf32>
    %c0_25 = arith.constant 0 : index
    %c4_26 = arith.constant 4 : index
    %34 = vector.load %arg2[%c0_25, %c4_26] : memref<8x9xf32, #tpu.memory_space<vmem>>, vector<8x1xf32>
    %c0_27 = arith.constant 0 : index
    %c4_28 = arith.constant 4 : index
    %c0_29 = arith.constant 0 : index
    %35 = vector.load %arg1[%c0_27, %c4_28, %c0_29] : memref<1x9x4096xf32, #tpu.memory_space<vmem>>, vector<1x1x1024xf32>
    %36 = vector.shape_cast %35 : vector<1x1x1024xf32> to vector<1x1024xf32>
    %37 = vector.broadcast %34 : vector<8x1xf32> to vector<8x1024xf32>
    %38 = vector.broadcast %36 : vector<1x1024xf32> to vector<8x1024xf32>
    %39 = arith.mulf %37, %38 : vector<8x1024xf32>
    %40 = arith.addf %33, %39 : vector<8x1024xf32>
    %c0_30 = arith.constant 0 : index
    %c5 = arith.constant 5 : index
    %41 = vector.load %arg2[%c0_30, %c5] : memref<8x9xf32, #tpu.memory_space<vmem>>, vector<8x1xf32>
    %c0_31 = arith.constant 0 : index
    %c5_32 = arith.constant 5 : index
    %c0_33 = arith.constant 0 : index
    %42 = vector.load %arg1[%c0_31, %c5_32, %c0_33] : memref<1x9x4096xf32, #tpu.memory_space<vmem>>, vector<1x1x1024xf32>
    %43 = vector.shape_cast %42 : vector<1x1x1024xf32> to vector<1x1024xf32>
    %44 = vector.broadcast %41 : vector<8x1xf32> to vector<8x1024xf32>
    %45 = vector.broadcast %43 : vector<1x1024xf32> to vector<8x1024xf32>
    %46 = arith.mulf %44, %45 : vector<8x1024xf32>
    %47 = arith.addf %40, %46 : vector<8x1024xf32>
    %c0_34 = arith.constant 0 : index
    %c6 = arith.constant 6 : index
    %48 = vector.load %arg2[%c0_34, %c6] : memref<8x9xf32, #tpu.memory_space<vmem>>, vector<8x1xf32>
    %c0_35 = arith.constant 0 : index
    %c6_36 = arith.constant 6 : index
    %c0_37 = arith.constant 0 : index
    %49 = vector.load %arg1[%c0_35, %c6_36, %c0_37] : memref<1x9x4096xf32, #tpu.memory_space<vmem>>, vector<1x1x1024xf32>
    %50 = vector.shape_cast %49 : vector<1x1x1024xf32> to vector<1x1024xf32>
    %51 = vector.broadcast %48 : vector<8x1xf32> to vector<8x1024xf32>
    %52 = vector.broadcast %50 : vector<1x1024xf32> to vector<8x1024xf32>
    %53 = arith.mulf %51, %52 : vector<8x1024xf32>
    %54 = arith.addf %47, %53 : vector<8x1024xf32>
    %c0_38 = arith.constant 0 : index
    %c7 = arith.constant 7 : index
    %55 = vector.load %arg2[%c0_38, %c7] : memref<8x9xf32, #tpu.memory_space<vmem>>, vector<8x1xf32>
    %c0_39 = arith.constant 0 : index
    %c7_40 = arith.constant 7 : index
    %c0_41 = arith.constant 0 : index
    %56 = vector.load %arg1[%c0_39, %c7_40, %c0_41] : memref<1x9x4096xf32, #tpu.memory_space<vmem>>, vector<1x1x1024xf32>
    %57 = vector.shape_cast %56 : vector<1x1x1024xf32> to vector<1x1024xf32>
    %58 = vector.broadcast %55 : vector<8x1xf32> to vector<8x1024xf32>
    %59 = vector.broadcast %57 : vector<1x1024xf32> to vector<8x1024xf32>
    %60 = arith.mulf %58, %59 : vector<8x1024xf32>
    %61 = arith.addf %54, %60 : vector<8x1024xf32>
    %c0_42 = arith.constant 0 : index
    %c8 = arith.constant 8 : index
    %62 = vector.load %arg2[%c0_42, %c8] : memref<8x9xf32, #tpu.memory_space<vmem>>, vector<8x1xf32>
    %c0_43 = arith.constant 0 : index
    %c8_44 = arith.constant 8 : index
    %c0_45 = arith.constant 0 : index
    %63 = vector.load %arg1[%c0_43, %c8_44, %c0_45] : memref<1x9x4096xf32, #tpu.memory_space<vmem>>, vector<1x1x1024xf32>
    %64 = vector.shape_cast %63 : vector<1x1x1024xf32> to vector<1x1024xf32>
    %65 = vector.broadcast %62 : vector<8x1xf32> to vector<8x1024xf32>
    %66 = vector.broadcast %64 : vector<1x1024xf32> to vector<8x1024xf32>
    %67 = arith.mulf %65, %66 : vector<8x1024xf32>
    %68 = arith.addf %61, %67 : vector<8x1024xf32>
    %69 = vector.broadcast %0 : vector<8x1xf32> to vector<8x1024xf32>
    %70 = arith.addf %68, %69 : vector<8x1024xf32>
    %cst_46 = arith.constant 0.000000e+00 : f32
    %71 = vector.broadcast %cst_46 : f32 to vector<8x1024xf32>
    %72 = arith.maximumf %70, %71 : vector<8x1024xf32>
    %73 = vector.broadcast %1 : vector<8x1xf32> to vector<8x1024xf32>
    %74 = arith.mulf %72, %73 : vector<8x1024xf32>
    %75 = vector.broadcast %2 : vector<8x1xf32> to vector<8x1024xf32>
    %76 = arith.addf %74, %75 : vector<8x1024xf32>
    %cst_47 = arith.constant 0.000000e+00 : f32
    %77 = vector.broadcast %cst_47 : f32 to vector<8x1024xf32>
    %c0_48 = arith.constant 0 : index
    %c0_49 = arith.constant 0 : index
    %78 = vector.load %arg2[%c0_48, %c0_49] : memref<8x9xf32, #tpu.memory_space<vmem>>, vector<8x1xf32>
    %c0_50 = arith.constant 0 : index
    %c0_51 = arith.constant 0 : index
    %c1024 = arith.constant 1024 : index
    %79 = vector.load %arg1[%c0_50, %c0_51, %c1024] : memref<1x9x4096xf32, #tpu.memory_space<vmem>>, vector<1x1x1024xf32>
    %80 = vector.shape_cast %79 : vector<1x1x1024xf32> to vector<1x1024xf32>
    %81 = vector.broadcast %78 : vector<8x1xf32> to vector<8x1024xf32>
    %82 = vector.broadcast %80 : vector<1x1024xf32> to vector<8x1024xf32>
    %83 = arith.mulf %81, %82 : vector<8x1024xf32>
    %84 = arith.addf %77, %83 : vector<8x1024xf32>
    %c0_52 = arith.constant 0 : index
    %c1_53 = arith.constant 1 : index
    %85 = vector.load %arg2[%c0_52, %c1_53] : memref<8x9xf32, #tpu.memory_space<vmem>>, vector<8x1xf32>
    %c0_54 = arith.constant 0 : index
    %c1_55 = arith.constant 1 : index
    %c1024_56 = arith.constant 1024 : index
    %86 = vector.load %arg1[%c0_54, %c1_55, %c1024_56] : memref<1x9x4096xf32, #tpu.memory_space<vmem>>, vector<1x1x1024xf32>
    %87 = vector.shape_cast %86 : vector<1x1x1024xf32> to vector<1x1024xf32>
    %88 = vector.broadcast %85 : vector<8x1xf32> to vector<8x1024xf32>
    %89 = vector.broadcast %87 : vector<1x1024xf32> to vector<8x1024xf32>
    %90 = arith.mulf %88, %89 : vector<8x1024xf32>
    %91 = arith.addf %84, %90 : vector<8x1024xf32>
    %c0_57 = arith.constant 0 : index
    %c2_58 = arith.constant 2 : index
    %92 = vector.load %arg2[%c0_57, %c2_58] : memref<8x9xf32, #tpu.memory_space<vmem>>, vector<8x1xf32>
    %c0_59 = arith.constant 0 : index
    %c2_60 = arith.constant 2 : index
    %c1024_61 = arith.constant 1024 : index
    %93 = vector.load %arg1[%c0_59, %c2_60, %c1024_61] : memref<1x9x4096xf32, #tpu.memory_space<vmem>>, vector<1x1x1024xf32>
    %94 = vector.shape_cast %93 : vector<1x1x1024xf32> to vector<1x1024xf32>
    %95 = vector.broadcast %92 : vector<8x1xf32> to vector<8x1024xf32>
    %96 = vector.broadcast %94 : vector<1x1024xf32> to vector<8x1024xf32>
    %97 = arith.mulf %95, %96 : vector<8x1024xf32>
    %98 = arith.addf %91, %97 : vector<8x1024xf32>
    %c0_62 = arith.constant 0 : index
    %c3_63 = arith.constant 3 : index
    %99 = vector.load %arg2[%c0_62, %c3_63] : memref<8x9xf32, #tpu.memory_space<vmem>>, vector<8x1xf32>
    %c0_64 = arith.constant 0 : index
    %c3_65 = arith.constant 3 : index
    %c1024_66 = arith.constant 1024 : index
    %100 = vector.load %arg1[%c0_64, %c3_65, %c1024_66] : memref<1x9x4096xf32, #tpu.memory_space<vmem>>, vector<1x1x1024xf32>
    %101 = vector.shape_cast %100 : vector<1x1x1024xf32> to vector<1x1024xf32>
    %102 = vector.broadcast %99 : vector<8x1xf32> to vector<8x1024xf32>
    %103 = vector.broadcast %101 : vector<1x1024xf32> to vector<8x1024xf32>
    %104 = arith.mulf %102, %103 : vector<8x1024xf32>
    %105 = arith.addf %98, %104 : vector<8x1024xf32>
    %c0_67 = arith.constant 0 : index
    %c4_68 = arith.constant 4 : index
    %106 = vector.load %arg2[%c0_67, %c4_68] : memref<8x9xf32, #tpu.memory_space<vmem>>, vector<8x1xf32>
    %c0_69 = arith.constant 0 : index
    %c4_70 = arith.constant 4 : index
    %c1024_71 = arith.constant 1024 : index
    %107 = vector.load %arg1[%c0_69, %c4_70, %c1024_71] : memref<1x9x4096xf32, #tpu.memory_space<vmem>>, vector<1x1x1024xf32>
    %108 = vector.shape_cast %107 : vector<1x1x1024xf32> to vector<1x1024xf32>
    %109 = vector.broadcast %106 : vector<8x1xf32> to vector<8x1024xf32>
    %110 = vector.broadcast %108 : vector<1x1024xf32> to vector<8x1024xf32>
    %111 = arith.mulf %109, %110 : vector<8x1024xf32>
    %112 = arith.addf %105, %111 : vector<8x1024xf32>
    %c0_72 = arith.constant 0 : index
    %c5_73 = arith.constant 5 : index
    %113 = vector.load %arg2[%c0_72, %c5_73] : memref<8x9xf32, #tpu.memory_space<vmem>>, vector<8x1xf32>
    %c0_74 = arith.constant 0 : index
    %c5_75 = arith.constant 5 : index
    %c1024_76 = arith.constant 1024 : index
    %114 = vector.load %arg1[%c0_74, %c5_75, %c1024_76] : memref<1x9x4096xf32, #tpu.memory_space<vmem>>, vector<1x1x1024xf32>
    %115 = vector.shape_cast %114 : vector<1x1x1024xf32> to vector<1x1024xf32>
    %116 = vector.broadcast %113 : vector<8x1xf32> to vector<8x1024xf32>
    %117 = vector.broadcast %115 : vector<1x1024xf32> to vector<8x1024xf32>
    %118 = arith.mulf %116, %117 : vector<8x1024xf32>
    %119 = arith.addf %112, %118 : vector<8x1024xf32>
    %c0_77 = arith.constant 0 : index
    %c6_78 = arith.constant 6 : index
    %120 = vector.load %arg2[%c0_77, %c6_78] : memref<8x9xf32, #tpu.memory_space<vmem>>, vector<8x1xf32>
    %c0_79 = arith.constant 0 : index
    %c6_80 = arith.constant 6 : index
    %c1024_81 = arith.constant 1024 : index
    %121 = vector.load %arg1[%c0_79, %c6_80, %c1024_81] : memref<1x9x4096xf32, #tpu.memory_space<vmem>>, vector<1x1x1024xf32>
    %122 = vector.shape_cast %121 : vector<1x1x1024xf32> to vector<1x1024xf32>
    %123 = vector.broadcast %120 : vector<8x1xf32> to vector<8x1024xf32>
    %124 = vector.broadcast %122 : vector<1x1024xf32> to vector<8x1024xf32>
    %125 = arith.mulf %123, %124 : vector<8x1024xf32>
    %126 = arith.addf %119, %125 : vector<8x1024xf32>
    %c0_82 = arith.constant 0 : index
    %c7_83 = arith.constant 7 : index
    %127 = vector.load %arg2[%c0_82, %c7_83] : memref<8x9xf32, #tpu.memory_space<vmem>>, vector<8x1xf32>
    %c0_84 = arith.constant 0 : index
    %c7_85 = arith.constant 7 : index
    %c1024_86 = arith.constant 1024 : index
    %128 = vector.load %arg1[%c0_84, %c7_85, %c1024_86] : memref<1x9x4096xf32, #tpu.memory_space<vmem>>, vector<1x1x1024xf32>
    %129 = vector.shape_cast %128 : vector<1x1x1024xf32> to vector<1x1024xf32>
    %130 = vector.broadcast %127 : vector<8x1xf32> to vector<8x1024xf32>
    %131 = vector.broadcast %129 : vector<1x1024xf32> to vector<8x1024xf32>
    %132 = arith.mulf %130, %131 : vector<8x1024xf32>
    %133 = arith.addf %126, %132 : vector<8x1024xf32>
    %c0_87 = arith.constant 0 : index
    %c8_88 = arith.constant 8 : index
    %134 = vector.load %arg2[%c0_87, %c8_88] : memref<8x9xf32, #tpu.memory_space<vmem>>, vector<8x1xf32>
    %c0_89 = arith.constant 0 : index
    %c8_90 = arith.constant 8 : index
    %c1024_91 = arith.constant 1024 : index
    %135 = vector.load %arg1[%c0_89, %c8_90, %c1024_91] : memref<1x9x4096xf32, #tpu.memory_space<vmem>>, vector<1x1x1024xf32>
    %136 = vector.shape_cast %135 : vector<1x1x1024xf32> to vector<1x1024xf32>
    %137 = vector.broadcast %134 : vector<8x1xf32> to vector<8x1024xf32>
    %138 = vector.broadcast %136 : vector<1x1024xf32> to vector<8x1024xf32>
    %139 = arith.mulf %137, %138 : vector<8x1024xf32>
    %140 = arith.addf %133, %139 : vector<8x1024xf32>
    %141 = vector.broadcast %0 : vector<8x1xf32> to vector<8x1024xf32>
    %142 = arith.addf %140, %141 : vector<8x1024xf32>
    %cst_92 = arith.constant 0.000000e+00 : f32
    %143 = vector.broadcast %cst_92 : f32 to vector<8x1024xf32>
    %144 = arith.maximumf %142, %143 : vector<8x1024xf32>
    %145 = vector.broadcast %1 : vector<8x1xf32> to vector<8x1024xf32>
    %146 = arith.mulf %144, %145 : vector<8x1024xf32>
    %147 = vector.broadcast %2 : vector<8x1xf32> to vector<8x1024xf32>
    %148 = arith.addf %146, %147 : vector<8x1024xf32>
    %149 = arith.maximumf %76, %148 : vector<8x1024xf32>
    %cst_93 = arith.constant 0.000000e+00 : f32
    %150 = vector.broadcast %cst_93 : f32 to vector<8x1024xf32>
    %c0_94 = arith.constant 0 : index
    %c0_95 = arith.constant 0 : index
    %151 = vector.load %arg2[%c0_94, %c0_95] : memref<8x9xf32, #tpu.memory_space<vmem>>, vector<8x1xf32>
    %c0_96 = arith.constant 0 : index
    %c0_97 = arith.constant 0 : index
    %c2048 = arith.constant 2048 : index
    %152 = vector.load %arg1[%c0_96, %c0_97, %c2048] : memref<1x9x4096xf32, #tpu.memory_space<vmem>>, vector<1x1x1024xf32>
    %153 = vector.shape_cast %152 : vector<1x1x1024xf32> to vector<1x1024xf32>
    %154 = vector.broadcast %151 : vector<8x1xf32> to vector<8x1024xf32>
    %155 = vector.broadcast %153 : vector<1x1024xf32> to vector<8x1024xf32>
    %156 = arith.mulf %154, %155 : vector<8x1024xf32>
    %157 = arith.addf %150, %156 : vector<8x1024xf32>
    %c0_98 = arith.constant 0 : index
    %c1_99 = arith.constant 1 : index
    %158 = vector.load %arg2[%c0_98, %c1_99] : memref<8x9xf32, #tpu.memory_space<vmem>>, vector<8x1xf32>
    %c0_100 = arith.constant 0 : index
    %c1_101 = arith.constant 1 : index
    %c2048_102 = arith.constant 2048 : index
    %159 = vector.load %arg1[%c0_100, %c1_101, %c2048_102] : memref<1x9x4096xf32, #tpu.memory_space<vmem>>, vector<1x1x1024xf32>
    %160 = vector.shape_cast %159 : vector<1x1x1024xf32> to vector<1x1024xf32>
    %161 = vector.broadcast %158 : vector<8x1xf32> to vector<8x1024xf32>
    %162 = vector.broadcast %160 : vector<1x1024xf32> to vector<8x1024xf32>
    %163 = arith.mulf %161, %162 : vector<8x1024xf32>
    %164 = arith.addf %157, %163 : vector<8x1024xf32>
    %c0_103 = arith.constant 0 : index
    %c2_104 = arith.constant 2 : index
    %165 = vector.load %arg2[%c0_103, %c2_104] : memref<8x9xf32, #tpu.memory_space<vmem>>, vector<8x1xf32>
    %c0_105 = arith.constant 0 : index
    %c2_106 = arith.constant 2 : index
    %c2048_107 = arith.constant 2048 : index
    %166 = vector.load %arg1[%c0_105, %c2_106, %c2048_107] : memref<1x9x4096xf32, #tpu.memory_space<vmem>>, vector<1x1x1024xf32>
    %167 = vector.shape_cast %166 : vector<1x1x1024xf32> to vector<1x1024xf32>
    %168 = vector.broadcast %165 : vector<8x1xf32> to vector<8x1024xf32>
    %169 = vector.broadcast %167 : vector<1x1024xf32> to vector<8x1024xf32>
    %170 = arith.mulf %168, %169 : vector<8x1024xf32>
    %171 = arith.addf %164, %170 : vector<8x1024xf32>
    %c0_108 = arith.constant 0 : index
    %c3_109 = arith.constant 3 : index
    %172 = vector.load %arg2[%c0_108, %c3_109] : memref<8x9xf32, #tpu.memory_space<vmem>>, vector<8x1xf32>
    %c0_110 = arith.constant 0 : index
    %c3_111 = arith.constant 3 : index
    %c2048_112 = arith.constant 2048 : index
    %173 = vector.load %arg1[%c0_110, %c3_111, %c2048_112] : memref<1x9x4096xf32, #tpu.memory_space<vmem>>, vector<1x1x1024xf32>
    %174 = vector.shape_cast %173 : vector<1x1x1024xf32> to vector<1x1024xf32>
    %175 = vector.broadcast %172 : vector<8x1xf32> to vector<8x1024xf32>
    %176 = vector.broadcast %174 : vector<1x1024xf32> to vector<8x1024xf32>
    %177 = arith.mulf %175, %176 : vector<8x1024xf32>
    %178 = arith.addf %171, %177 : vector<8x1024xf32>
    %c0_113 = arith.constant 0 : index
    %c4_114 = arith.constant 4 : index
    %179 = vector.load %arg2[%c0_113, %c4_114] : memref<8x9xf32, #tpu.memory_space<vmem>>, vector<8x1xf32>
    %c0_115 = arith.constant 0 : index
    %c4_116 = arith.constant 4 : index
    %c2048_117 = arith.constant 2048 : index
    %180 = vector.load %arg1[%c0_115, %c4_116, %c2048_117] : memref<1x9x4096xf32, #tpu.memory_space<vmem>>, vector<1x1x1024xf32>
    %181 = vector.shape_cast %180 : vector<1x1x1024xf32> to vector<1x1024xf32>
    %182 = vector.broadcast %179 : vector<8x1xf32> to vector<8x1024xf32>
    %183 = vector.broadcast %181 : vector<1x1024xf32> to vector<8x1024xf32>
    %184 = arith.mulf %182, %183 : vector<8x1024xf32>
    %185 = arith.addf %178, %184 : vector<8x1024xf32>
    %c0_118 = arith.constant 0 : index
    %c5_119 = arith.constant 5 : index
    %186 = vector.load %arg2[%c0_118, %c5_119] : memref<8x9xf32, #tpu.memory_space<vmem>>, vector<8x1xf32>
    %c0_120 = arith.constant 0 : index
    %c5_121 = arith.constant 5 : index
    %c2048_122 = arith.constant 2048 : index
    %187 = vector.load %arg1[%c0_120, %c5_121, %c2048_122] : memref<1x9x4096xf32, #tpu.memory_space<vmem>>, vector<1x1x1024xf32>
    %188 = vector.shape_cast %187 : vector<1x1x1024xf32> to vector<1x1024xf32>
    %189 = vector.broadcast %186 : vector<8x1xf32> to vector<8x1024xf32>
    %190 = vector.broadcast %188 : vector<1x1024xf32> to vector<8x1024xf32>
    %191 = arith.mulf %189, %190 : vector<8x1024xf32>
    %192 = arith.addf %185, %191 : vector<8x1024xf32>
    %c0_123 = arith.constant 0 : index
    %c6_124 = arith.constant 6 : index
    %193 = vector.load %arg2[%c0_123, %c6_124] : memref<8x9xf32, #tpu.memory_space<vmem>>, vector<8x1xf32>
    %c0_125 = arith.constant 0 : index
    %c6_126 = arith.constant 6 : index
    %c2048_127 = arith.constant 2048 : index
    %194 = vector.load %arg1[%c0_125, %c6_126, %c2048_127] : memref<1x9x4096xf32, #tpu.memory_space<vmem>>, vector<1x1x1024xf32>
    %195 = vector.shape_cast %194 : vector<1x1x1024xf32> to vector<1x1024xf32>
    %196 = vector.broadcast %193 : vector<8x1xf32> to vector<8x1024xf32>
    %197 = vector.broadcast %195 : vector<1x1024xf32> to vector<8x1024xf32>
    %198 = arith.mulf %196, %197 : vector<8x1024xf32>
    %199 = arith.addf %192, %198 : vector<8x1024xf32>
    %c0_128 = arith.constant 0 : index
    %c7_129 = arith.constant 7 : index
    %200 = vector.load %arg2[%c0_128, %c7_129] : memref<8x9xf32, #tpu.memory_space<vmem>>, vector<8x1xf32>
    %c0_130 = arith.constant 0 : index
    %c7_131 = arith.constant 7 : index
    %c2048_132 = arith.constant 2048 : index
    %201 = vector.load %arg1[%c0_130, %c7_131, %c2048_132] : memref<1x9x4096xf32, #tpu.memory_space<vmem>>, vector<1x1x1024xf32>
    %202 = vector.shape_cast %201 : vector<1x1x1024xf32> to vector<1x1024xf32>
    %203 = vector.broadcast %200 : vector<8x1xf32> to vector<8x1024xf32>
    %204 = vector.broadcast %202 : vector<1x1024xf32> to vector<8x1024xf32>
    %205 = arith.mulf %203, %204 : vector<8x1024xf32>
    %206 = arith.addf %199, %205 : vector<8x1024xf32>
    %c0_133 = arith.constant 0 : index
    %c8_134 = arith.constant 8 : index
    %207 = vector.load %arg2[%c0_133, %c8_134] : memref<8x9xf32, #tpu.memory_space<vmem>>, vector<8x1xf32>
    %c0_135 = arith.constant 0 : index
    %c8_136 = arith.constant 8 : index
    %c2048_137 = arith.constant 2048 : index
    %208 = vector.load %arg1[%c0_135, %c8_136, %c2048_137] : memref<1x9x4096xf32, #tpu.memory_space<vmem>>, vector<1x1x1024xf32>
    %209 = vector.shape_cast %208 : vector<1x1x1024xf32> to vector<1x1024xf32>
    %210 = vector.broadcast %207 : vector<8x1xf32> to vector<8x1024xf32>
    %211 = vector.broadcast %209 : vector<1x1024xf32> to vector<8x1024xf32>
    %212 = arith.mulf %210, %211 : vector<8x1024xf32>
    %213 = arith.addf %206, %212 : vector<8x1024xf32>
    %214 = vector.broadcast %0 : vector<8x1xf32> to vector<8x1024xf32>
    %215 = arith.addf %213, %214 : vector<8x1024xf32>
    %cst_138 = arith.constant 0.000000e+00 : f32
    %216 = vector.broadcast %cst_138 : f32 to vector<8x1024xf32>
    %217 = arith.maximumf %215, %216 : vector<8x1024xf32>
    %218 = vector.broadcast %1 : vector<8x1xf32> to vector<8x1024xf32>
    %219 = arith.mulf %217, %218 : vector<8x1024xf32>
    %220 = vector.broadcast %2 : vector<8x1xf32> to vector<8x1024xf32>
    %221 = arith.addf %219, %220 : vector<8x1024xf32>
    %222 = arith.maximumf %149, %221 : vector<8x1024xf32>
    %cst_139 = arith.constant 0.000000e+00 : f32
    %223 = vector.broadcast %cst_139 : f32 to vector<8x1024xf32>
    %c0_140 = arith.constant 0 : index
    %c0_141 = arith.constant 0 : index
    %224 = vector.load %arg2[%c0_140, %c0_141] : memref<8x9xf32, #tpu.memory_space<vmem>>, vector<8x1xf32>
    %c0_142 = arith.constant 0 : index
    %c0_143 = arith.constant 0 : index
    %c3072 = arith.constant 3072 : index
    %225 = vector.load %arg1[%c0_142, %c0_143, %c3072] : memref<1x9x4096xf32, #tpu.memory_space<vmem>>, vector<1x1x1024xf32>
    %226 = vector.shape_cast %225 : vector<1x1x1024xf32> to vector<1x1024xf32>
    %227 = vector.broadcast %224 : vector<8x1xf32> to vector<8x1024xf32>
    %228 = vector.broadcast %226 : vector<1x1024xf32> to vector<8x1024xf32>
    %229 = arith.mulf %227, %228 : vector<8x1024xf32>
    %230 = arith.addf %223, %229 : vector<8x1024xf32>
    %c0_144 = arith.constant 0 : index
    %c1_145 = arith.constant 1 : index
    %231 = vector.load %arg2[%c0_144, %c1_145] : memref<8x9xf32, #tpu.memory_space<vmem>>, vector<8x1xf32>
    %c0_146 = arith.constant 0 : index
    %c1_147 = arith.constant 1 : index
    %c3072_148 = arith.constant 3072 : index
    %232 = vector.load %arg1[%c0_146, %c1_147, %c3072_148] : memref<1x9x4096xf32, #tpu.memory_space<vmem>>, vector<1x1x1024xf32>
    %233 = vector.shape_cast %232 : vector<1x1x1024xf32> to vector<1x1024xf32>
    %234 = vector.broadcast %231 : vector<8x1xf32> to vector<8x1024xf32>
    %235 = vector.broadcast %233 : vector<1x1024xf32> to vector<8x1024xf32>
    %236 = arith.mulf %234, %235 : vector<8x1024xf32>
    %237 = arith.addf %230, %236 : vector<8x1024xf32>
    %c0_149 = arith.constant 0 : index
    %c2_150 = arith.constant 2 : index
    %238 = vector.load %arg2[%c0_149, %c2_150] : memref<8x9xf32, #tpu.memory_space<vmem>>, vector<8x1xf32>
    %c0_151 = arith.constant 0 : index
    %c2_152 = arith.constant 2 : index
    %c3072_153 = arith.constant 3072 : index
    %239 = vector.load %arg1[%c0_151, %c2_152, %c3072_153] : memref<1x9x4096xf32, #tpu.memory_space<vmem>>, vector<1x1x1024xf32>
    %240 = vector.shape_cast %239 : vector<1x1x1024xf32> to vector<1x1024xf32>
    %241 = vector.broadcast %238 : vector<8x1xf32> to vector<8x1024xf32>
    %242 = vector.broadcast %240 : vector<1x1024xf32> to vector<8x1024xf32>
    %243 = arith.mulf %241, %242 : vector<8x1024xf32>
    %244 = arith.addf %237, %243 : vector<8x1024xf32>
    %c0_154 = arith.constant 0 : index
    %c3_155 = arith.constant 3 : index
    %245 = vector.load %arg2[%c0_154, %c3_155] : memref<8x9xf32, #tpu.memory_space<vmem>>, vector<8x1xf32>
    %c0_156 = arith.constant 0 : index
    %c3_157 = arith.constant 3 : index
    %c3072_158 = arith.constant 3072 : index
    %246 = vector.load %arg1[%c0_156, %c3_157, %c3072_158] : memref<1x9x4096xf32, #tpu.memory_space<vmem>>, vector<1x1x1024xf32>
    %247 = vector.shape_cast %246 : vector<1x1x1024xf32> to vector<1x1024xf32>
    %248 = vector.broadcast %245 : vector<8x1xf32> to vector<8x1024xf32>
    %249 = vector.broadcast %247 : vector<1x1024xf32> to vector<8x1024xf32>
    %250 = arith.mulf %248, %249 : vector<8x1024xf32>
    %251 = arith.addf %244, %250 : vector<8x1024xf32>
    %c0_159 = arith.constant 0 : index
    %c4_160 = arith.constant 4 : index
    %252 = vector.load %arg2[%c0_159, %c4_160] : memref<8x9xf32, #tpu.memory_space<vmem>>, vector<8x1xf32>
    %c0_161 = arith.constant 0 : index
    %c4_162 = arith.constant 4 : index
    %c3072_163 = arith.constant 3072 : index
    %253 = vector.load %arg1[%c0_161, %c4_162, %c3072_163] : memref<1x9x4096xf32, #tpu.memory_space<vmem>>, vector<1x1x1024xf32>
    %254 = vector.shape_cast %253 : vector<1x1x1024xf32> to vector<1x1024xf32>
    %255 = vector.broadcast %252 : vector<8x1xf32> to vector<8x1024xf32>
    %256 = vector.broadcast %254 : vector<1x1024xf32> to vector<8x1024xf32>
    %257 = arith.mulf %255, %256 : vector<8x1024xf32>
    %258 = arith.addf %251, %257 : vector<8x1024xf32>
    %c0_164 = arith.constant 0 : index
    %c5_165 = arith.constant 5 : index
    %259 = vector.load %arg2[%c0_164, %c5_165] : memref<8x9xf32, #tpu.memory_space<vmem>>, vector<8x1xf32>
    %c0_166 = arith.constant 0 : index
    %c5_167 = arith.constant 5 : index
    %c3072_168 = arith.constant 3072 : index
    %260 = vector.load %arg1[%c0_166, %c5_167, %c3072_168] : memref<1x9x4096xf32, #tpu.memory_space<vmem>>, vector<1x1x1024xf32>
    %261 = vector.shape_cast %260 : vector<1x1x1024xf32> to vector<1x1024xf32>
    %262 = vector.broadcast %259 : vector<8x1xf32> to vector<8x1024xf32>
    %263 = vector.broadcast %261 : vector<1x1024xf32> to vector<8x1024xf32>
    %264 = arith.mulf %262, %263 : vector<8x1024xf32>
    %265 = arith.addf %258, %264 : vector<8x1024xf32>
    %c0_169 = arith.constant 0 : index
    %c6_170 = arith.constant 6 : index
    %266 = vector.load %arg2[%c0_169, %c6_170] : memref<8x9xf32, #tpu.memory_space<vmem>>, vector<8x1xf32>
    %c0_171 = arith.constant 0 : index
    %c6_172 = arith.constant 6 : index
    %c3072_173 = arith.constant 3072 : index
    %267 = vector.load %arg1[%c0_171, %c6_172, %c3072_173] : memref<1x9x4096xf32, #tpu.memory_space<vmem>>, vector<1x1x1024xf32>
    %268 = vector.shape_cast %267 : vector<1x1x1024xf32> to vector<1x1024xf32>
    %269 = vector.broadcast %266 : vector<8x1xf32> to vector<8x1024xf32>
    %270 = vector.broadcast %268 : vector<1x1024xf32> to vector<8x1024xf32>
    %271 = arith.mulf %269, %270 : vector<8x1024xf32>
    %272 = arith.addf %265, %271 : vector<8x1024xf32>
    %c0_174 = arith.constant 0 : index
    %c7_175 = arith.constant 7 : index
    %273 = vector.load %arg2[%c0_174, %c7_175] : memref<8x9xf32, #tpu.memory_space<vmem>>, vector<8x1xf32>
    %c0_176 = arith.constant 0 : index
    %c7_177 = arith.constant 7 : index
    %c3072_178 = arith.constant 3072 : index
    %274 = vector.load %arg1[%c0_176, %c7_177, %c3072_178] : memref<1x9x4096xf32, #tpu.memory_space<vmem>>, vector<1x1x1024xf32>
    %275 = vector.shape_cast %274 : vector<1x1x1024xf32> to vector<1x1024xf32>
    %276 = vector.broadcast %273 : vector<8x1xf32> to vector<8x1024xf32>
    %277 = vector.broadcast %275 : vector<1x1024xf32> to vector<8x1024xf32>
    %278 = arith.mulf %276, %277 : vector<8x1024xf32>
    %279 = arith.addf %272, %278 : vector<8x1024xf32>
    %c0_179 = arith.constant 0 : index
    %c8_180 = arith.constant 8 : index
    %280 = vector.load %arg2[%c0_179, %c8_180] : memref<8x9xf32, #tpu.memory_space<vmem>>, vector<8x1xf32>
    %c0_181 = arith.constant 0 : index
    %c8_182 = arith.constant 8 : index
    %c3072_183 = arith.constant 3072 : index
    %281 = vector.load %arg1[%c0_181, %c8_182, %c3072_183] : memref<1x9x4096xf32, #tpu.memory_space<vmem>>, vector<1x1x1024xf32>
    %282 = vector.shape_cast %281 : vector<1x1x1024xf32> to vector<1x1024xf32>
    %283 = vector.broadcast %280 : vector<8x1xf32> to vector<8x1024xf32>
    %284 = vector.broadcast %282 : vector<1x1024xf32> to vector<8x1024xf32>
    %285 = arith.mulf %283, %284 : vector<8x1024xf32>
    %286 = arith.addf %279, %285 : vector<8x1024xf32>
    %287 = vector.broadcast %0 : vector<8x1xf32> to vector<8x1024xf32>
    %288 = arith.addf %286, %287 : vector<8x1024xf32>
    %cst_184 = arith.constant 0.000000e+00 : f32
    %289 = vector.broadcast %cst_184 : f32 to vector<8x1024xf32>
    %290 = arith.maximumf %288, %289 : vector<8x1024xf32>
    %291 = vector.broadcast %1 : vector<8x1xf32> to vector<8x1024xf32>
    %292 = arith.mulf %290, %291 : vector<8x1024xf32>
    %293 = vector.broadcast %2 : vector<8x1xf32> to vector<8x1024xf32>
    %294 = arith.addf %292, %293 : vector<8x1024xf32>
    %295 = arith.maximumf %222, %294 : vector<8x1024xf32>
    %296 = vector.broadcast %3 : vector<8x1xf32> to vector<8x1024xf32>
    %297 = arith.mulf %295, %296 : vector<8x1024xf32>
    %298 = vector.broadcast %4 : vector<8x1xf32> to vector<8x1024xf32>
    %299 = arith.addf %297, %298 : vector<8x1024xf32>
    %cst_185 = arith.constant 0.000000e+00 : f32
    %300 = vector.broadcast %cst_185 : f32 to vector<8x128xf32>
    %c0_186 = arith.constant 0 : index
    %c0_187 = arith.constant 0 : index
    %301 = vector.load %arg15[%c0_186, %c0_187] : memref<8x1280xf32, #tpu.memory_space<vmem>>, vector<8x128xf32>
    tpu.vector_store %arg15[%c0_186, %c0_187], %300 {strides = array<i32>} : memref<8x1280xf32, #tpu.memory_space<vmem>>, vector<8x128xf32>,
    %cst_188 = arith.constant 0.000000e+00 : f32
    %302 = vector.broadcast %cst_188 : f32 to vector<8x128xf32>
    %c0_189 = arith.constant 0 : index
    %c1152 = arith.constant 1152 : index
    %303 = vector.load %arg15[%c0_189, %c1152] : memref<8x1280xf32, #tpu.memory_space<vmem>>, vector<8x128xf32>
    tpu.vector_store %arg15[%c0_189, %c1152], %302 {strides = array<i32>} : memref<8x1280xf32, #tpu.memory_space<vmem>>, vector<8x128xf32>,
    %c0_190 = arith.constant 0 : index
    %c128 = arith.constant 128 : index
    %304 = vector.load %arg15[%c0_190, %c128] : memref<8x1280xf32, #tpu.memory_space<vmem>>, vector<8x1024xf32>
    tpu.vector_store %arg15[%c0_190, %c128], %299 {strides = array<i32>} : memref<8x1280xf32, #tpu.memory_space<vmem>>, vector<8x1024xf32>,
    %305 = tpu.iota {dimensions = array<i32: 1>} : vector<1x1024xi32>
    %c31_i32 = arith.constant 31 : i32
    %306 = vector.broadcast %c31_i32 : i32 to vector<1x1024xi32>
    %307 = arith.andi %305, %306 : vector<1x1024xi32>
    %c1_i32 = arith.constant 1 : i32
    %308 = vector.broadcast %c1_i32 : i32 to vector<1x1024xi32>
    %309 = arith.cmpi sge, %307, %308 : vector<1x1024xi32>
    %c31_i32_191 = arith.constant 31 : i32
    %310 = vector.broadcast %c31_i32_191 : i32 to vector<1x1024xi32>
    %311 = arith.cmpi slt, %307, %310 : vector<1x1024xi32>
    %c0_192 = arith.constant 0 : index
    %c0_193 = arith.constant 0 : index
    %312 = vector.load %arg5[%c0_192, %c0_193] : memref<16x5xf32, #tpu.memory_space<vmem>>, vector<16x1xf32>
    %c0_194 = arith.constant 0 : index
    %c1_195 = arith.constant 1 : index
    %313 = vector.load %arg5[%c0_194, %c1_195] : memref<16x5xf32, #tpu.memory_space<vmem>>, vector<16x1xf32>
    %c0_196 = arith.constant 0 : index
    %c2_197 = arith.constant 2 : index
    %314 = vector.load %arg5[%c0_196, %c2_197] : memref<16x5xf32, #tpu.memory_space<vmem>>, vector<16x1xf32>
    %c0_198 = arith.constant 0 : index
    %c3_199 = arith.constant 3 : index
    %315 = vector.load %arg5[%c0_198, %c3_199] : memref<16x5xf32, #tpu.memory_space<vmem>>, vector<16x1xf32>
    %c0_200 = arith.constant 0 : index
    %c4_201 = arith.constant 4 : index
    %316 = vector.load %arg5[%c0_200, %c4_201] : memref<16x5xf32, #tpu.memory_space<vmem>>, vector<16x1xf32>
    %cst_202 = arith.constant 0.000000e+00 : f32
    %317 = vector.broadcast %cst_202 : f32 to vector<16x1024xf32>
    %c0_203 = arith.constant 0 : index
    %c95 = arith.constant 95 : index
    %318 = vector.load %arg15[%c0_203, %c95] : memref<8x1280xf32, #tpu.memory_space<vmem>>, vector<8x1024xf32>
    %cst_204 = arith.constant 0.000000e+00 : f32
    %319 = vector.shape_cast %309 : vector<1x1024xi1> to vector<1x1024xi1>
    %320 = vector.broadcast %319 : vector<1x1024xi1> to vector<8x1024xi1>
    %321 = vector.broadcast %cst_204 : f32 to vector<8x1024xf32>
    %322 = arith.select %320, %318, %321 : vector<8x1024xi1>, vector<8x1024xf32>
    %c0_205 = arith.constant 0 : index
    %c0_206 = arith.constant 0 : index
    %323 = vector.load %arg4[%c0_205, %c0_206] : memref<16x72xf32, #tpu.memory_space<vmem>>, vector<16x8xf32>
    %cst_207 = arith.constant dense<0.000000e+00> : vector<16x1024xf32>
    %324 = tpu.matmul %323, %322, %cst_207 {dimension_numbers = #tpu.dot_dimension_numbers<[1], [0], [0], [1], [0, 0, 1, 1], [], []>} : vector<16x8xf32>, vector<8x1024xf32>, vector<16x1024xf32> -> vector<16x1024xf32>
    %325 = arith.addf %317, %324 : vector<16x1024xf32>
    %c0_208 = arith.constant 0 : index
    %c96 = arith.constant 96 : index
    %326 = vector.load %arg15[%c0_208, %c96] : memref<8x1280xf32, #tpu.memory_space<vmem>>, vector<8x1024xf32>
    %c0_209 = arith.constant 0 : index
    %c8_210 = arith.constant 8 : index
    %327 = vector.load %arg4[%c0_209, %c8_210] : memref<16x72xf32, #tpu.memory_space<vmem>>, vector<16x8xf32>
    %cst_211 = arith.constant dense<0.000000e+00> : vector<16x1024xf32>
    %328 = tpu.matmul %327, %326, %cst_211 {dimension_numbers = #tpu.dot_dimension_numbers<[1], [0], [0], [1], [0, 0, 1, 1], [], []>} : vector<16x8xf32>, vector<8x1024xf32>, vector<16x1024xf32> -> vector<16x1024xf32>
    %329 = arith.addf %325, %328 : vector<16x1024xf32>
    %c0_212 = arith.constant 0 : index
    %c97 = arith.constant 97 : index
    %330 = vector.load %arg15[%c0_212, %c97] : memref<8x1280xf32, #tpu.memory_space<vmem>>, vector<8x1024xf32>
    %cst_213 = arith.constant 0.000000e+00 : f32
    %331 = vector.shape_cast %311 : vector<1x1024xi1> to vector<1x1024xi1>
    %332 = vector.broadcast %331 : vector<1x1024xi1> to vector<8x1024xi1>
    %333 = vector.broadcast %cst_213 : f32 to vector<8x1024xf32>
    %334 = arith.select %332, %330, %333 : vector<8x1024xi1>, vector<8x1024xf32>
    %c0_214 = arith.constant 0 : index
    %c16 = arith.constant 16 : index
    %335 = vector.load %arg4[%c0_214, %c16] : memref<16x72xf32, #tpu.memory_space<vmem>>, vector<16x8xf32>
    %cst_215 = arith.constant dense<0.000000e+00> : vector<16x1024xf32>
    %336 = tpu.matmul %335, %334, %cst_215 {dimension_numbers = #tpu.dot_dimension_numbers<[1], [0], [0], [1], [0, 0, 1, 1], [], []>} : vector<16x8xf32>, vector<8x1024xf32>, vector<16x1024xf32> -> vector<16x1024xf32>
    %337 = arith.addf %329, %336 : vector<16x1024xf32>
    %c0_216 = arith.constant 0 : index
    %c127 = arith.constant 127 : index
    %338 = vector.load %arg15[%c0_216, %c127] : memref<8x1280xf32, #tpu.memory_space<vmem>>, vector<8x1024xf32>
    %cst_217 = arith.constant 0.000000e+00 : f32
    %339 = vector.shape_cast %309 : vector<1x1024xi1> to vector<1x1024xi1>
    %340 = vector.broadcast %339 : vector<1x1024xi1> to vector<8x1024xi1>
    %341 = vector.broadcast %cst_217 : f32 to vector<8x1024xf32>
    %342 = arith.select %340, %338, %341 : vector<8x1024xi1>, vector<8x1024xf32>
    %c0_218 = arith.constant 0 : index
    %c24 = arith.constant 24 : index
    %343 = vector.load %arg4[%c0_218, %c24] : memref<16x72xf32, #tpu.memory_space<vmem>>, vector<16x8xf32>
    %cst_219 = arith.constant dense<0.000000e+00> : vector<16x1024xf32>
    %344 = tpu.matmul %343, %342, %cst_219 {dimension_numbers = #tpu.dot_dimension_numbers<[1], [0], [0], [1], [0, 0, 1, 1], [], []>} : vector<16x8xf32>, vector<8x1024xf32>, vector<16x1024xf32> -> vector<16x1024xf32>
    %345 = arith.addf %337, %344 : vector<16x1024xf32>
    %c0_220 = arith.constant 0 : index
    %c128_221 = arith.constant 128 : index
    %346 = vector.load %arg15[%c0_220, %c128_221] : memref<8x1280xf32, #tpu.memory_space<vmem>>, vector<8x1024xf32>
    %c0_222 = arith.constant 0 : index
    %c32 = arith.constant 32 : index
    %347 = vector.load %arg4[%c0_222, %c32] : memref<16x72xf32, #tpu.memory_space<vmem>>, vector<16x8xf32>
    %cst_223 = arith.constant dense<0.000000e+00> : vector<16x1024xf32>
    %348 = tpu.matmul %347, %346, %cst_223 {dimension_numbers = #tpu.dot_dimension_numbers<[1], [0], [0], [1], [0, 0, 1, 1], [], []>} : vector<16x8xf32>, vector<8x1024xf32>, vector<16x1024xf32> -> vector<16x1024xf32>
    %349 = arith.addf %345, %348 : vector<16x1024xf32>
    %c0_224 = arith.constant 0 : index
    %c129 = arith.constant 129 : index
    %350 = vector.load %arg15[%c0_224, %c129] : memref<8x1280xf32, #tpu.memory_space<vmem>>, vector<8x1024xf32>
    %cst_225 = arith.constant 0.000000e+00 : f32
    %351 = vector.shape_cast %311 : vector<1x1024xi1> to vector<1x1024xi1>
    %352 = vector.broadcast %351 : vector<1x1024xi1> to vector<8x1024xi1>
    %353 = vector.broadcast %cst_225 : f32 to vector<8x1024xf32>
    %354 = arith.select %352, %350, %353 : vector<8x1024xi1>, vector<8x1024xf32>
    %c0_226 = arith.constant 0 : index
    %c40 = arith.constant 40 : index
    %355 = vector.load %arg4[%c0_226, %c40] : memref<16x72xf32, #tpu.memory_space<vmem>>, vector<16x8xf32>
    %cst_227 = arith.constant dense<0.000000e+00> : vector<16x1024xf32>
    %356 = tpu.matmul %355, %354, %cst_227 {dimension_numbers = #tpu.dot_dimension_numbers<[1], [0], [0], [1], [0, 0, 1, 1], [], []>} : vector<16x8xf32>, vector<8x1024xf32>, vector<16x1024xf32> -> vector<16x1024xf32>
    %357 = arith.addf %349, %356 : vector<16x1024xf32>
    %c0_228 = arith.constant 0 : index
    %c159 = arith.constant 159 : index
    %358 = vector.load %arg15[%c0_228, %c159] : memref<8x1280xf32, #tpu.memory_space<vmem>>, vector<8x1024xf32>
    %cst_229 = arith.constant 0.000000e+00 : f32
    %359 = vector.shape_cast %309 : vector<1x1024xi1> to vector<1x1024xi1>
    %360 = vector.broadcast %359 : vector<1x1024xi1> to vector<8x1024xi1>
    %361 = vector.broadcast %cst_229 : f32 to vector<8x1024xf32>
    %362 = arith.select %360, %358, %361 : vector<8x1024xi1>, vector<8x1024xf32>
    %c0_230 = arith.constant 0 : index
    %c48 = arith.constant 48 : index
    %363 = vector.load %arg4[%c0_230, %c48] : memref<16x72xf32, #tpu.memory_space<vmem>>, vector<16x8xf32>
    %cst_231 = arith.constant dense<0.000000e+00> : vector<16x1024xf32>
    %364 = tpu.matmul %363, %362, %cst_231 {dimension_numbers = #tpu.dot_dimension_numbers<[1], [0], [0], [1], [0, 0, 1, 1], [], []>} : vector<16x8xf32>, vector<8x1024xf32>, vector<16x1024xf32> -> vector<16x1024xf32>
    %365 = arith.addf %357, %364 : vector<16x1024xf32>
    %c0_232 = arith.constant 0 : index
    %c160 = arith.constant 160 : index
    %366 = vector.load %arg15[%c0_232, %c160] : memref<8x1280xf32, #tpu.memory_space<vmem>>, vector<8x1024xf32>
    %c0_233 = arith.constant 0 : index
    %c56 = arith.constant 56 : index
    %367 = vector.load %arg4[%c0_233, %c56] : memref<16x72xf32, #tpu.memory_space<vmem>>, vector<16x8xf32>
    %cst_234 = arith.constant dense<0.000000e+00> : vector<16x1024xf32>
    %368 = tpu.matmul %367, %366, %cst_234 {dimension_numbers = #tpu.dot_dimension_numbers<[1], [0], [0], [1], [0, 0, 1, 1], [], []>} : vector<16x8xf32>, vector<8x1024xf32>, vector<16x1024xf32> -> vector<16x1024xf32>
    %369 = arith.addf %365, %368 : vector<16x1024xf32>
    %c0_235 = arith.constant 0 : index
    %c161 = arith.constant 161 : index
    %370 = vector.load %arg15[%c0_235, %c161] : memref<8x1280xf32, #tpu.memory_space<vmem>>, vector<8x1024xf32>
    %cst_236 = arith.constant 0.000000e+00 : f32
    %371 = vector.shape_cast %311 : vector<1x1024xi1> to vector<1x1024xi1>
    %372 = vector.broadcast %371 : vector<1x1024xi1> to vector<8x1024xi1>
    %373 = vector.broadcast %cst_236 : f32 to vector<8x1024xf32>
    %374 = arith.select %372, %370, %373 : vector<8x1024xi1>, vector<8x1024xf32>
    %c0_237 = arith.constant 0 : index
    %c64 = arith.constant 64 : index
    %375 = vector.load %arg4[%c0_237, %c64] : memref<16x72xf32, #tpu.memory_space<vmem>>, vector<16x8xf32>
    %cst_238 = arith.constant dense<0.000000e+00> : vector<16x1024xf32>
    %376 = tpu.matmul %375, %374, %cst_238 {dimension_numbers = #tpu.dot_dimension_numbers<[1], [0], [0], [1], [0, 0, 1, 1], [], []>} : vector<16x8xf32>, vector<8x1024xf32>, vector<16x1024xf32> -> vector<16x1024xf32>
    %377 = arith.addf %369, %376 : vector<16x1024xf32>
    %378 = vector.broadcast %312 : vector<16x1xf32> to vector<16x1024xf32>
    %379 = arith.addf %377, %378 : vector<16x1024xf32>
    %cst_239 = arith.constant 0.000000e+00 : f32
    %380 = vector.broadcast %cst_239 : f32 to vector<16x1024xf32>
    %381 = arith.maximumf %379, %380 : vector<16x1024xf32>
    %382 = vector.broadcast %313 : vector<16x1xf32> to vector<16x1024xf32>
    %383 = arith.mulf %381, %382 : vector<16x1024xf32>
    %384 = vector.broadcast %314 : vector<16x1xf32> to vector<16x1024xf32>
    %385 = arith.addf %383, %384 : vector<16x1024xf32>
    %cst_240 = arith.constant 0.000000e+00 : f32
    %386 = vector.broadcast %cst_240 : f32 to vector<16x128xf32>
    %c0_241 = arith.constant 0 : index
    %c1024_242 = arith.constant 1024 : index
    %387 = vector.load %arg16[%c0_241, %c1024_242] : memref<16x1152xf32, #tpu.memory_space<vmem>>, vector<16x128xf32>
    tpu.vector_store %arg16[%c0_241, %c1024_242], %386 {strides = array<i32>} : memref<16x1152xf32, #tpu.memory_space<vmem>>, vector<16x128xf32>,
    %c0_243 = arith.constant 0 : index
    %c0_244 = arith.constant 0 : index
    %388 = vector.load %arg16[%c0_243, %c0_244] : memref<16x1152xf32, #tpu.memory_space<vmem>>, vector<16x1024xf32>
    tpu.vector_store %arg16[%c0_243, %c0_244], %385 {strides = array<i32>} : memref<16x1152xf32, #tpu.memory_space<vmem>>, vector<16x1024xf32>,
    %c0_245 = arith.constant 0 : index
    %c1_246 = arith.constant 1 : index
    %389 = vector.load %arg16[%c0_245, %c1_246] : memref<16x1152xf32, #tpu.memory_space<vmem>>, vector<16x1024xf32>
    %390 = arith.maximumf %385, %389 : vector<16x1024xf32>
    %c0_247 = arith.constant 0 : index
    %c32_248 = arith.constant 32 : index
    %391 = vector.load %arg16[%c0_247, %c32_248] : memref<16x1152xf32, #tpu.memory_space<vmem>>, vector<16x1024xf32>
    %c0_249 = arith.constant 0 : index
    %c33 = arith.constant 33 : index
    %392 = vector.load %arg16[%c0_249, %c33] : memref<16x1152xf32, #tpu.memory_space<vmem>>, vector<16x1024xf32>
    %393 = arith.maximumf %391, %392 : vector<16x1024xf32>
    %394 = arith.maximumf %390, %393 : vector<16x1024xf32>
    %c0_250 = arith.constant 0 : index
    %c0_251 = arith.constant 0 : index
    %395 = vector.load %arg6[%c0_250, %c0_251] : memref<1024x256xf32, #tpu.memory_space<vmem>>, vector<1024x256xf32>
    %cst_252 = arith.constant dense<0.000000e+00> : vector<16x256xf32>
    %396 = tpu.matmul %394, %395, %cst_252 {dimension_numbers = #tpu.dot_dimension_numbers<[1], [0], [0], [1], [0, 0, 1, 1], [], []>} : vector<16x1024xf32>, vector<1024x256xf32>, vector<16x256xf32> -> vector<16x256xf32>
    %397 = vector.broadcast %315 : vector<16x1xf32> to vector<16x256xf32>
    %398 = arith.mulf %396, %397 : vector<16x256xf32>
    %399 = vector.broadcast %316 : vector<16x1xf32> to vector<16x256xf32>
    %400 = arith.addf %398, %399 : vector<16x256xf32>
    %cst_253 = arith.constant 0.000000e+00 : f32
    %401 = vector.broadcast %cst_253 : f32 to vector<16x128xf32>
    %c0_254 = arith.constant 0 : index
    %c0_255 = arith.constant 0 : index
    %402 = vector.load %arg17[%c0_254, %c0_255] : memref<16x512xf32, #tpu.memory_space<vmem>>, vector<16x128xf32>
    tpu.vector_store %arg17[%c0_254, %c0_255], %401 {strides = array<i32>} : memref<16x512xf32, #tpu.memory_space<vmem>>, vector<16x128xf32>,
    %cst_256 = arith.constant 0.000000e+00 : f32
    %403 = vector.broadcast %cst_256 : f32 to vector<16x128xf32>
    %c0_257 = arith.constant 0 : index
    %c384 = arith.constant 384 : index
    %404 = vector.load %arg17[%c0_257, %c384] : memref<16x512xf32, #tpu.memory_space<vmem>>, vector<16x128xf32>
    tpu.vector_store %arg17[%c0_257, %c384], %403 {strides = array<i32>} : memref<16x512xf32, #tpu.memory_space<vmem>>, vector<16x128xf32>,
    %c0_258 = arith.constant 0 : index
    %c128_259 = arith.constant 128 : index
    %405 = vector.load %arg17[%c0_258, %c128_259] : memref<16x512xf32, #tpu.memory_space<vmem>>, vector<16x256xf32>
    tpu.vector_store %arg17[%c0_258, %c128_259], %400 {strides = array<i32>} : memref<16x512xf32, #tpu.memory_space<vmem>>, vector<16x256xf32>,
    %406 = tpu.iota {dimensions = array<i32: 1>} : vector<1x256xi32>
    %c15_i32 = arith.constant 15 : i32
    %407 = vector.broadcast %c15_i32 : i32 to vector<1x256xi32>
    %408 = arith.andi %406, %407 : vector<1x256xi32>
    %c1_i32_260 = arith.constant 1 : i32
    %409 = vector.broadcast %c1_i32_260 : i32 to vector<1x256xi32>
    %410 = arith.cmpi sge, %408, %409 : vector<1x256xi32>
    %c15_i32_261 = arith.constant 15 : i32
    %411 = vector.broadcast %c15_i32_261 : i32 to vector<1x256xi32>
    %412 = arith.cmpi slt, %408, %411 : vector<1x256xi32>
    %c0_262 = arith.constant 0 : index
    %c0_263 = arith.constant 0 : index
    %413 = vector.load %arg8[%c0_262, %c0_263] : memref<32x5xf32, #tpu.memory_space<vmem>>, vector<32x1xf32>
    %c0_264 = arith.constant 0 : index
    %c1_265 = arith.constant 1 : index
    %414 = vector.load %arg8[%c0_264, %c1_265] : memref<32x5xf32, #tpu.memory_space<vmem>>, vector<32x1xf32>
    %c0_266 = arith.constant 0 : index
    %c2_267 = arith.constant 2 : index
    %415 = vector.load %arg8[%c0_266, %c2_267] : memref<32x5xf32, #tpu.memory_space<vmem>>, vector<32x1xf32>
    %c0_268 = arith.constant 0 : index
    %c3_269 = arith.constant 3 : index
    %416 = vector.load %arg8[%c0_268, %c3_269] : memref<32x5xf32, #tpu.memory_space<vmem>>, vector<32x1xf32>
    %c0_270 = arith.constant 0 : index
    %c4_271 = arith.constant 4 : index
    %417 = vector.load %arg8[%c0_270, %c4_271] : memref<32x5xf32, #tpu.memory_space<vmem>>, vector<32x1xf32>
    %cst_272 = arith.constant 0.000000e+00 : f32
    %418 = vector.broadcast %cst_272 : f32 to vector<32x256xf32>
    %c0_273 = arith.constant 0 : index
    %c111 = arith.constant 111 : index
    %419 = vector.load %arg17[%c0_273, %c111] : memref<16x512xf32, #tpu.memory_space<vmem>>, vector<16x256xf32>
    %cst_274 = arith.constant 0.000000e+00 : f32
    %420 = vector.shape_cast %410 : vector<1x256xi1> to vector<1x256xi1>
    %421 = vector.broadcast %420 : vector<1x256xi1> to vector<16x256xi1>
    %422 = vector.broadcast %cst_274 : f32 to vector<16x256xf32>
    %423 = arith.select %421, %419, %422 : vector<16x256xi1>, vector<16x256xf32>
    %c0_275 = arith.constant 0 : index
    %c0_276 = arith.constant 0 : index
    %424 = vector.load %arg7[%c0_275, %c0_276] : memref<32x144xf32, #tpu.memory_space<vmem>>, vector<32x16xf32>
    %cst_277 = arith.constant dense<0.000000e+00> : vector<32x256xf32>
    %425 = tpu.matmul %424, %423, %cst_277 {dimension_numbers = #tpu.dot_dimension_numbers<[1], [0], [0], [1], [0, 0, 1, 1], [], []>} : vector<32x16xf32>, vector<16x256xf32>, vector<32x256xf32> -> vector<32x256xf32>
    %426 = arith.addf %418, %425 : vector<32x256xf32>
    %c0_278 = arith.constant 0 : index
    %c112 = arith.constant 112 : index
    %427 = vector.load %arg17[%c0_278, %c112] : memref<16x512xf32, #tpu.memory_space<vmem>>, vector<16x256xf32>
    %c0_279 = arith.constant 0 : index
    %c16_280 = arith.constant 16 : index
    %428 = vector.load %arg7[%c0_279, %c16_280] : memref<32x144xf32, #tpu.memory_space<vmem>>, vector<32x16xf32>
    %cst_281 = arith.constant dense<0.000000e+00> : vector<32x256xf32>
    %429 = tpu.matmul %428, %427, %cst_281 {dimension_numbers = #tpu.dot_dimension_numbers<[1], [0], [0], [1], [0, 0, 1, 1], [], []>} : vector<32x16xf32>, vector<16x256xf32>, vector<32x256xf32> -> vector<32x256xf32>
    %430 = arith.addf %426, %429 : vector<32x256xf32>
    %c0_282 = arith.constant 0 : index
    %c113 = arith.constant 113 : index
    %431 = vector.load %arg17[%c0_282, %c113] : memref<16x512xf32, #tpu.memory_space<vmem>>, vector<16x256xf32>
    %cst_283 = arith.constant 0.000000e+00 : f32
    %432 = vector.shape_cast %412 : vector<1x256xi1> to vector<1x256xi1>
    %433 = vector.broadcast %432 : vector<1x256xi1> to vector<16x256xi1>
    %434 = vector.broadcast %cst_283 : f32 to vector<16x256xf32>
    %435 = arith.select %433, %431, %434 : vector<16x256xi1>, vector<16x256xf32>
    %c0_284 = arith.constant 0 : index
    %c32_285 = arith.constant 32 : index
    %436 = vector.load %arg7[%c0_284, %c32_285] : memref<32x144xf32, #tpu.memory_space<vmem>>, vector<32x16xf32>
    %cst_286 = arith.constant dense<0.000000e+00> : vector<32x256xf32>
    %437 = tpu.matmul %436, %435, %cst_286 {dimension_numbers = #tpu.dot_dimension_numbers<[1], [0], [0], [1], [0, 0, 1, 1], [], []>} : vector<32x16xf32>, vector<16x256xf32>, vector<32x256xf32> -> vector<32x256xf32>
    %438 = arith.addf %430, %437 : vector<32x256xf32>
    %c0_287 = arith.constant 0 : index
    %c127_288 = arith.constant 127 : index
    %439 = vector.load %arg17[%c0_287, %c127_288] : memref<16x512xf32, #tpu.memory_space<vmem>>, vector<16x256xf32>
    %cst_289 = arith.constant 0.000000e+00 : f32
    %440 = vector.shape_cast %410 : vector<1x256xi1> to vector<1x256xi1>
    %441 = vector.broadcast %440 : vector<1x256xi1> to vector<16x256xi1>
    %442 = vector.broadcast %cst_289 : f32 to vector<16x256xf32>
    %443 = arith.select %441, %439, %442 : vector<16x256xi1>, vector<16x256xf32>
    %c0_290 = arith.constant 0 : index
    %c48_291 = arith.constant 48 : index
    %444 = vector.load %arg7[%c0_290, %c48_291] : memref<32x144xf32, #tpu.memory_space<vmem>>, vector<32x16xf32>
    %cst_292 = arith.constant dense<0.000000e+00> : vector<32x256xf32>
    %445 = tpu.matmul %444, %443, %cst_292 {dimension_numbers = #tpu.dot_dimension_numbers<[1], [0], [0], [1], [0, 0, 1, 1], [], []>} : vector<32x16xf32>, vector<16x256xf32>, vector<32x256xf32> -> vector<32x256xf32>
    %446 = arith.addf %438, %445 : vector<32x256xf32>
    %c0_293 = arith.constant 0 : index
    %c128_294 = arith.constant 128 : index
    %447 = vector.load %arg17[%c0_293, %c128_294] : memref<16x512xf32, #tpu.memory_space<vmem>>, vector<16x256xf32>
    %c0_295 = arith.constant 0 : index
    %c64_296 = arith.constant 64 : index
    %448 = vector.load %arg7[%c0_295, %c64_296] : memref<32x144xf32, #tpu.memory_space<vmem>>, vector<32x16xf32>
    %cst_297 = arith.constant dense<0.000000e+00> : vector<32x256xf32>
    %449 = tpu.matmul %448, %447, %cst_297 {dimension_numbers = #tpu.dot_dimension_numbers<[1], [0], [0], [1], [0, 0, 1, 1], [], []>} : vector<32x16xf32>, vector<16x256xf32>, vector<32x256xf32> -> vector<32x256xf32>
    %450 = arith.addf %446, %449 : vector<32x256xf32>
    %c0_298 = arith.constant 0 : index
    %c129_299 = arith.constant 129 : index
    %451 = vector.load %arg17[%c0_298, %c129_299] : memref<16x512xf32, #tpu.memory_space<vmem>>, vector<16x256xf32>
    %cst_300 = arith.constant 0.000000e+00 : f32
    %452 = vector.shape_cast %412 : vector<1x256xi1> to vector<1x256xi1>
    %453 = vector.broadcast %452 : vector<1x256xi1> to vector<16x256xi1>
    %454 = vector.broadcast %cst_300 : f32 to vector<16x256xf32>
    %455 = arith.select %453, %451, %454 : vector<16x256xi1>, vector<16x256xf32>
    %c0_301 = arith.constant 0 : index
    %c80 = arith.constant 80 : index
    %456 = vector.load %arg7[%c0_301, %c80] : memref<32x144xf32, #tpu.memory_space<vmem>>, vector<32x16xf32>
    %cst_302 = arith.constant dense<0.000000e+00> : vector<32x256xf32>
    %457 = tpu.matmul %456, %455, %cst_302 {dimension_numbers = #tpu.dot_dimension_numbers<[1], [0], [0], [1], [0, 0, 1, 1], [], []>} : vector<32x16xf32>, vector<16x256xf32>, vector<32x256xf32> -> vector<32x256xf32>
    %458 = arith.addf %450, %457 : vector<32x256xf32>
    %c0_303 = arith.constant 0 : index
    %c143 = arith.constant 143 : index
    %459 = vector.load %arg17[%c0_303, %c143] : memref<16x512xf32, #tpu.memory_space<vmem>>, vector<16x256xf32>
    %cst_304 = arith.constant 0.000000e+00 : f32
    %460 = vector.shape_cast %410 : vector<1x256xi1> to vector<1x256xi1>
    %461 = vector.broadcast %460 : vector<1x256xi1> to vector<16x256xi1>
    %462 = vector.broadcast %cst_304 : f32 to vector<16x256xf32>
    %463 = arith.select %461, %459, %462 : vector<16x256xi1>, vector<16x256xf32>
    %c0_305 = arith.constant 0 : index
    %c96_306 = arith.constant 96 : index
    %464 = vector.load %arg7[%c0_305, %c96_306] : memref<32x144xf32, #tpu.memory_space<vmem>>, vector<32x16xf32>
    %cst_307 = arith.constant dense<0.000000e+00> : vector<32x256xf32>
    %465 = tpu.matmul %464, %463, %cst_307 {dimension_numbers = #tpu.dot_dimension_numbers<[1], [0], [0], [1], [0, 0, 1, 1], [], []>} : vector<32x16xf32>, vector<16x256xf32>, vector<32x256xf32> -> vector<32x256xf32>
    %466 = arith.addf %458, %465 : vector<32x256xf32>
    %c0_308 = arith.constant 0 : index
    %c144 = arith.constant 144 : index
    %467 = vector.load %arg17[%c0_308, %c144] : memref<16x512xf32, #tpu.memory_space<vmem>>, vector<16x256xf32>
    %c0_309 = arith.constant 0 : index
    %c112_310 = arith.constant 112 : index
    %468 = vector.load %arg7[%c0_309, %c112_310] : memref<32x144xf32, #tpu.memory_space<vmem>>, vector<32x16xf32>
    %cst_311 = arith.constant dense<0.000000e+00> : vector<32x256xf32>
    %469 = tpu.matmul %468, %467, %cst_311 {dimension_numbers = #tpu.dot_dimension_numbers<[1], [0], [0], [1], [0, 0, 1, 1], [], []>} : vector<32x16xf32>, vector<16x256xf32>, vector<32x256xf32> -> vector<32x256xf32>
    %470 = arith.addf %466, %469 : vector<32x256xf32>
    %c0_312 = arith.constant 0 : index
    %c145 = arith.constant 145 : index
    %471 = vector.load %arg17[%c0_312, %c145] : memref<16x512xf32, #tpu.memory_space<vmem>>, vector<16x256xf32>
    %cst_313 = arith.constant 0.000000e+00 : f32
    %472 = vector.shape_cast %412 : vector<1x256xi1> to vector<1x256xi1>
    %473 = vector.broadcast %472 : vector<1x256xi1> to vector<16x256xi1>
    %474 = vector.broadcast %cst_313 : f32 to vector<16x256xf32>
    %475 = arith.select %473, %471, %474 : vector<16x256xi1>, vector<16x256xf32>
    %c0_314 = arith.constant 0 : index
    %c128_315 = arith.constant 128 : index
    %476 = vector.load %arg7[%c0_314, %c128_315] : memref<32x144xf32, #tpu.memory_space<vmem>>, vector<32x16xf32>
    %cst_316 = arith.constant dense<0.000000e+00> : vector<32x256xf32>
    %477 = tpu.matmul %476, %475, %cst_316 {dimension_numbers = #tpu.dot_dimension_numbers<[1], [0], [0], [1], [0, 0, 1, 1], [], []>} : vector<32x16xf32>, vector<16x256xf32>, vector<32x256xf32> -> vector<32x256xf32>
    %478 = arith.addf %470, %477 : vector<32x256xf32>
    %479 = vector.broadcast %413 : vector<32x1xf32> to vector<32x256xf32>
    %480 = arith.addf %478, %479 : vector<32x256xf32>
    %cst_317 = arith.constant 0.000000e+00 : f32
    %481 = vector.broadcast %cst_317 : f32 to vector<32x256xf32>
    %482 = arith.maximumf %480, %481 : vector<32x256xf32>
    %483 = vector.broadcast %414 : vector<32x1xf32> to vector<32x256xf32>
    %484 = arith.mulf %482, %483 : vector<32x256xf32>
    %485 = vector.broadcast %415 : vector<32x1xf32> to vector<32x256xf32>
    %486 = arith.addf %484, %485 : vector<32x256xf32>
    %cst_318 = arith.constant 0.000000e+00 : f32
    %487 = vector.broadcast %cst_318 : f32 to vector<32x128xf32>
    %c0_319 = arith.constant 0 : index
    %c256 = arith.constant 256 : index
    %488 = vector.load %arg18[%c0_319, %c256] : memref<32x384xf32, #tpu.memory_space<vmem>>, vector<32x128xf32>
    tpu.vector_store %arg18[%c0_319, %c256], %487 {strides = array<i32>} : memref<32x384xf32, #tpu.memory_space<vmem>>, vector<32x128xf32>,
    %c0_320 = arith.constant 0 : index
    %c0_321 = arith.constant 0 : index
    %489 = vector.load %arg18[%c0_320, %c0_321] : memref<32x384xf32, #tpu.memory_space<vmem>>, vector<32x256xf32>
    tpu.vector_store %arg18[%c0_320, %c0_321], %486 {strides = array<i32>} : memref<32x384xf32, #tpu.memory_space<vmem>>, vector<32x256xf32>,
    %c0_322 = arith.constant 0 : index
    %c1_323 = arith.constant 1 : index
    %490 = vector.load %arg18[%c0_322, %c1_323] : memref<32x384xf32, #tpu.memory_space<vmem>>, vector<32x256xf32>
    %491 = arith.maximumf %486, %490 : vector<32x256xf32>
    %c0_324 = arith.constant 0 : index
    %c16_325 = arith.constant 16 : index
    %492 = vector.load %arg18[%c0_324, %c16_325] : memref<32x384xf32, #tpu.memory_space<vmem>>, vector<32x256xf32>
    %c0_326 = arith.constant 0 : index
    %c17 = arith.constant 17 : index
    %493 = vector.load %arg18[%c0_326, %c17] : memref<32x384xf32, #tpu.memory_space<vmem>>, vector<32x256xf32>
    %494 = arith.maximumf %492, %493 : vector<32x256xf32>
    %495 = arith.maximumf %491, %494 : vector<32x256xf32>
    %c0_327 = arith.constant 0 : index
    %c0_328 = arith.constant 0 : index
    %496 = vector.load %arg9[%c0_327, %c0_328] : memref<256x64xf32, #tpu.memory_space<vmem>>, vector<256x64xf32>
    %cst_329 = arith.constant dense<0.000000e+00> : vector<32x64xf32>
    %497 = tpu.matmul %495, %496, %cst_329 {dimension_numbers = #tpu.dot_dimension_numbers<[1], [0], [0], [1], [0, 0, 1, 1], [], []>} : vector<32x256xf32>, vector<256x64xf32>, vector<32x64xf32> -> vector<32x64xf32>
    %498 = vector.broadcast %416 : vector<32x1xf32> to vector<32x64xf32>
    %499 = arith.mulf %497, %498 : vector<32x64xf32>
    %500 = vector.broadcast %417 : vector<32x1xf32> to vector<32x64xf32>
    %501 = arith.addf %499, %500 : vector<32x64xf32>
    %502 = vector.extract_strided_slice %501 {offsets = [0, 0], sizes = [1, 64], strides = [1, 1]} : vector<32x64xf32> to vector<1x64xf32>
    %c0_330 = arith.constant 0 : index
    %c0_331 = arith.constant 0 : index
    %503 = vector.load %arg19[%c0_330, %c0_331] : memref<1x2048xf32, #tpu.memory_space<vmem>>, vector<1x64xf32>
    tpu.vector_store %arg19[%c0_330, %c0_331], %502 {strides = array<i32>} : memref<1x2048xf32, #tpu.memory_space<vmem>>, vector<1x64xf32>,
    %504 = vector.extract_strided_slice %501 {offsets = [1, 0], sizes = [1, 64], strides = [1, 1]} : vector<32x64xf32> to vector<1x64xf32>
    %c0_332 = arith.constant 0 : index
    %c64_333 = arith.constant 64 : index
    %505 = vector.load %arg19[%c0_332, %c64_333] : memref<1x2048xf32, #tpu.memory_space<vmem>>, vector<1x64xf32>
    tpu.vector_store %arg19[%c0_332, %c64_333], %504 {strides = array<i32>} : memref<1x2048xf32, #tpu.memory_space<vmem>>, vector<1x64xf32>,
    %506 = vector.extract_strided_slice %501 {offsets = [2, 0], sizes = [1, 64], strides = [1, 1]} : vector<32x64xf32> to vector<1x64xf32>
    %c0_334 = arith.constant 0 : index
    %c128_335 = arith.constant 128 : index
    %507 = vector.load %arg19[%c0_334, %c128_335] : memref<1x2048xf32, #tpu.memory_space<vmem>>, vector<1x64xf32>
    tpu.vector_store %arg19[%c0_334, %c128_335], %506 {strides = array<i32>} : memref<1x2048xf32, #tpu.memory_space<vmem>>, vector<1x64xf32>,
    %508 = vector.extract_strided_slice %501 {offsets = [3, 0], sizes = [1, 64], strides = [1, 1]} : vector<32x64xf32> to vector<1x64xf32>
    %c0_336 = arith.constant 0 : index
    %c192 = arith.constant 192 : index
    %509 = vector.load %arg19[%c0_336, %c192] : memref<1x2048xf32, #tpu.memory_space<vmem>>, vector<1x64xf32>
    tpu.vector_store %arg19[%c0_336, %c192], %508 {strides = array<i32>} : memref<1x2048xf32, #tpu.memory_space<vmem>>, vector<1x64xf32>,
    %510 = vector.extract_strided_slice %501 {offsets = [4, 0], sizes = [1, 64], strides = [1, 1]} : vector<32x64xf32> to vector<1x64xf32>
    %c0_337 = arith.constant 0 : index
    %c256_338 = arith.constant 256 : index
    %511 = vector.load %arg19[%c0_337, %c256_338] : memref<1x2048xf32, #tpu.memory_space<vmem>>, vector<1x64xf32>
    tpu.vector_store %arg19[%c0_337, %c256_338], %510 {strides = array<i32>} : memref<1x2048xf32, #tpu.memory_space<vmem>>, vector<1x64xf32>,
    %512 = vector.extract_strided_slice %501 {offsets = [5, 0], sizes = [1, 64], strides = [1, 1]} : vector<32x64xf32> to vector<1x64xf32>
    %c0_339 = arith.constant 0 : index
    %c320 = arith.constant 320 : index
    %513 = vector.load %arg19[%c0_339, %c320] : memref<1x2048xf32, #tpu.memory_space<vmem>>, vector<1x64xf32>
    tpu.vector_store %arg19[%c0_339, %c320], %512 {strides = array<i32>} : memref<1x2048xf32, #tpu.memory_space<vmem>>, vector<1x64xf32>,
    %514 = vector.extract_strided_slice %501 {offsets = [6, 0], sizes = [1, 64], strides = [1, 1]} : vector<32x64xf32> to vector<1x64xf32>
    %c0_340 = arith.constant 0 : index
    %c384_341 = arith.constant 384 : index
    %515 = vector.load %arg19[%c0_340, %c384_341] : memref<1x2048xf32, #tpu.memory_space<vmem>>, vector<1x64xf32>
    tpu.vector_store %arg19[%c0_340, %c384_341], %514 {strides = array<i32>} : memref<1x2048xf32, #tpu.memory_space<vmem>>, vector<1x64xf32>,
    %516 = vector.extract_strided_slice %501 {offsets = [7, 0], sizes = [1, 64], strides = [1, 1]} : vector<32x64xf32> to vector<1x64xf32>
    %c0_342 = arith.constant 0 : index
    %c448 = arith.constant 448 : index
    %517 = vector.load %arg19[%c0_342, %c448] : memref<1x2048xf32, #tpu.memory_space<vmem>>, vector<1x64xf32>
    tpu.vector_store %arg19[%c0_342, %c448], %516 {strides = array<i32>} : memref<1x2048xf32, #tpu.memory_space<vmem>>, vector<1x64xf32>,
    %518 = vector.extract_strided_slice %501 {offsets = [8, 0], sizes = [1, 64], strides = [1, 1]} : vector<32x64xf32> to vector<1x64xf32>
    %c0_343 = arith.constant 0 : index
    %c512 = arith.constant 512 : index
    %519 = vector.load %arg19[%c0_343, %c512] : memref<1x2048xf32, #tpu.memory_space<vmem>>, vector<1x64xf32>
    tpu.vector_store %arg19[%c0_343, %c512], %518 {strides = array<i32>} : memref<1x2048xf32, #tpu.memory_space<vmem>>, vector<1x64xf32>,
    %520 = vector.extract_strided_slice %501 {offsets = [9, 0], sizes = [1, 64], strides = [1, 1]} : vector<32x64xf32> to vector<1x64xf32>
    %c0_344 = arith.constant 0 : index
    %c576 = arith.constant 576 : index
    %521 = vector.load %arg19[%c0_344, %c576] : memref<1x2048xf32, #tpu.memory_space<vmem>>, vector<1x64xf32>
    tpu.vector_store %arg19[%c0_344, %c576], %520 {strides = array<i32>} : memref<1x2048xf32, #tpu.memory_space<vmem>>, vector<1x64xf32>,
    %522 = vector.extract_strided_slice %501 {offsets = [10, 0], sizes = [1, 64], strides = [1, 1]} : vector<32x64xf32> to vector<1x64xf32>
    %c0_345 = arith.constant 0 : index
    %c640 = arith.constant 640 : index
    %523 = vector.load %arg19[%c0_345, %c640] : memref<1x2048xf32, #tpu.memory_space<vmem>>, vector<1x64xf32>
    tpu.vector_store %arg19[%c0_345, %c640], %522 {strides = array<i32>} : memref<1x2048xf32, #tpu.memory_space<vmem>>, vector<1x64xf32>,
    %524 = vector.extract_strided_slice %501 {offsets = [11, 0], sizes = [1, 64], strides = [1, 1]} : vector<32x64xf32> to vector<1x64xf32>
    %c0_346 = arith.constant 0 : index
    %c704 = arith.constant 704 : index
    %525 = vector.load %arg19[%c0_346, %c704] : memref<1x2048xf32, #tpu.memory_space<vmem>>, vector<1x64xf32>
    tpu.vector_store %arg19[%c0_346, %c704], %524 {strides = array<i32>} : memref<1x2048xf32, #tpu.memory_space<vmem>>, vector<1x64xf32>,
    %526 = vector.extract_strided_slice %501 {offsets = [12, 0], sizes = [1, 64], strides = [1, 1]} : vector<32x64xf32> to vector<1x64xf32>
    %c0_347 = arith.constant 0 : index
    %c768 = arith.constant 768 : index
    %527 = vector.load %arg19[%c0_347, %c768] : memref<1x2048xf32, #tpu.memory_space<vmem>>, vector<1x64xf32>
    tpu.vector_store %arg19[%c0_347, %c768], %526 {strides = array<i32>} : memref<1x2048xf32, #tpu.memory_space<vmem>>, vector<1x64xf32>,
    %528 = vector.extract_strided_slice %501 {offsets = [13, 0], sizes = [1, 64], strides = [1, 1]} : vector<32x64xf32> to vector<1x64xf32>
    %c0_348 = arith.constant 0 : index
    %c832 = arith.constant 832 : index
    %529 = vector.load %arg19[%c0_348, %c832] : memref<1x2048xf32, #tpu.memory_space<vmem>>, vector<1x64xf32>
    tpu.vector_store %arg19[%c0_348, %c832], %528 {strides = array<i32>} : memref<1x2048xf32, #tpu.memory_space<vmem>>, vector<1x64xf32>,
    %530 = vector.extract_strided_slice %501 {offsets = [14, 0], sizes = [1, 64], strides = [1, 1]} : vector<32x64xf32> to vector<1x64xf32>
    %c0_349 = arith.constant 0 : index
    %c896 = arith.constant 896 : index
    %531 = vector.load %arg19[%c0_349, %c896] : memref<1x2048xf32, #tpu.memory_space<vmem>>, vector<1x64xf32>
    tpu.vector_store %arg19[%c0_349, %c896], %530 {strides = array<i32>} : memref<1x2048xf32, #tpu.memory_space<vmem>>, vector<1x64xf32>,
    %532 = vector.extract_strided_slice %501 {offsets = [15, 0], sizes = [1, 64], strides = [1, 1]} : vector<32x64xf32> to vector<1x64xf32>
    %c0_350 = arith.constant 0 : index
    %c960 = arith.constant 960 : index
    %533 = vector.load %arg19[%c0_350, %c960] : memref<1x2048xf32, #tpu.memory_space<vmem>>, vector<1x64xf32>
    tpu.vector_store %arg19[%c0_350, %c960], %532 {strides = array<i32>} : memref<1x2048xf32, #tpu.memory_space<vmem>>, vector<1x64xf32>,
    %534 = vector.extract_strided_slice %501 {offsets = [16, 0], sizes = [1, 64], strides = [1, 1]} : vector<32x64xf32> to vector<1x64xf32>
    %c0_351 = arith.constant 0 : index
    %c1024_352 = arith.constant 1024 : index
    %535 = vector.load %arg19[%c0_351, %c1024_352] : memref<1x2048xf32, #tpu.memory_space<vmem>>, vector<1x64xf32>
    tpu.vector_store %arg19[%c0_351, %c1024_352], %534 {strides = array<i32>} : memref<1x2048xf32, #tpu.memory_space<vmem>>, vector<1x64xf32>,
    %536 = vector.extract_strided_slice %501 {offsets = [17, 0], sizes = [1, 64], strides = [1, 1]} : vector<32x64xf32> to vector<1x64xf32>
    %c0_353 = arith.constant 0 : index
    %c1088 = arith.constant 1088 : index
    %537 = vector.load %arg19[%c0_353, %c1088] : memref<1x2048xf32, #tpu.memory_space<vmem>>, vector<1x64xf32>
    tpu.vector_store %arg19[%c0_353, %c1088], %536 {strides = array<i32>} : memref<1x2048xf32, #tpu.memory_space<vmem>>, vector<1x64xf32>,
    %538 = vector.extract_strided_slice %501 {offsets = [18, 0], sizes = [1, 64], strides = [1, 1]} : vector<32x64xf32> to vector<1x64xf32>
    %c0_354 = arith.constant 0 : index
    %c1152_355 = arith.constant 1152 : index
    %539 = vector.load %arg19[%c0_354, %c1152_355] : memref<1x2048xf32, #tpu.memory_space<vmem>>, vector<1x64xf32>
    tpu.vector_store %arg19[%c0_354, %c1152_355], %538 {strides = array<i32>} : memref<1x2048xf32, #tpu.memory_space<vmem>>, vector<1x64xf32>,
    %540 = vector.extract_strided_slice %501 {offsets = [19, 0], sizes = [1, 64], strides = [1, 1]} : vector<32x64xf32> to vector<1x64xf32>
    %c0_356 = arith.constant 0 : index
    %c1216 = arith.constant 1216 : index
    %541 = vector.load %arg19[%c0_356, %c1216] : memref<1x2048xf32, #tpu.memory_space<vmem>>, vector<1x64xf32>
    tpu.vector_store %arg19[%c0_356, %c1216], %540 {strides = array<i32>} : memref<1x2048xf32, #tpu.memory_space<vmem>>, vector<1x64xf32>,
    %542 = vector.extract_strided_slice %501 {offsets = [20, 0], sizes = [1, 64], strides = [1, 1]} : vector<32x64xf32> to vector<1x64xf32>
    %c0_357 = arith.constant 0 : index
    %c1280 = arith.constant 1280 : index
    %543 = vector.load %arg19[%c0_357, %c1280] : memref<1x2048xf32, #tpu.memory_space<vmem>>, vector<1x64xf32>
    tpu.vector_store %arg19[%c0_357, %c1280], %542 {strides = array<i32>} : memref<1x2048xf32, #tpu.memory_space<vmem>>, vector<1x64xf32>,
    %544 = vector.extract_strided_slice %501 {offsets = [21, 0], sizes = [1, 64], strides = [1, 1]} : vector<32x64xf32> to vector<1x64xf32>
    %c0_358 = arith.constant 0 : index
    %c1344 = arith.constant 1344 : index
    %545 = vector.load %arg19[%c0_358, %c1344] : memref<1x2048xf32, #tpu.memory_space<vmem>>, vector<1x64xf32>
    tpu.vector_store %arg19[%c0_358, %c1344], %544 {strides = array<i32>} : memref<1x2048xf32, #tpu.memory_space<vmem>>, vector<1x64xf32>,
    %546 = vector.extract_strided_slice %501 {offsets = [22, 0], sizes = [1, 64], strides = [1, 1]} : vector<32x64xf32> to vector<1x64xf32>
    %c0_359 = arith.constant 0 : index
    %c1408 = arith.constant 1408 : index
    %547 = vector.load %arg19[%c0_359, %c1408] : memref<1x2048xf32, #tpu.memory_space<vmem>>, vector<1x64xf32>
    tpu.vector_store %arg19[%c0_359, %c1408], %546 {strides = array<i32>} : memref<1x2048xf32, #tpu.memory_space<vmem>>, vector<1x64xf32>,
    %548 = vector.extract_strided_slice %501 {offsets = [23, 0], sizes = [1, 64], strides = [1, 1]} : vector<32x64xf32> to vector<1x64xf32>
    %c0_360 = arith.constant 0 : index
    %c1472 = arith.constant 1472 : index
    %549 = vector.load %arg19[%c0_360, %c1472] : memref<1x2048xf32, #tpu.memory_space<vmem>>, vector<1x64xf32>
    tpu.vector_store %arg19[%c0_360, %c1472], %548 {strides = array<i32>} : memref<1x2048xf32, #tpu.memory_space<vmem>>, vector<1x64xf32>,
    %550 = vector.extract_strided_slice %501 {offsets = [24, 0], sizes = [1, 64], strides = [1, 1]} : vector<32x64xf32> to vector<1x64xf32>
    %c0_361 = arith.constant 0 : index
    %c1536 = arith.constant 1536 : index
    %551 = vector.load %arg19[%c0_361, %c1536] : memref<1x2048xf32, #tpu.memory_space<vmem>>, vector<1x64xf32>
    tpu.vector_store %arg19[%c0_361, %c1536], %550 {strides = array<i32>} : memref<1x2048xf32, #tpu.memory_space<vmem>>, vector<1x64xf32>,
    %552 = vector.extract_strided_slice %501 {offsets = [25, 0], sizes = [1, 64], strides = [1, 1]} : vector<32x64xf32> to vector<1x64xf32>
    %c0_362 = arith.constant 0 : index
    %c1600 = arith.constant 1600 : index
    %553 = vector.load %arg19[%c0_362, %c1600] : memref<1x2048xf32, #tpu.memory_space<vmem>>, vector<1x64xf32>
    tpu.vector_store %arg19[%c0_362, %c1600], %552 {strides = array<i32>} : memref<1x2048xf32, #tpu.memory_space<vmem>>, vector<1x64xf32>,
    %554 = vector.extract_strided_slice %501 {offsets = [26, 0], sizes = [1, 64], strides = [1, 1]} : vector<32x64xf32> to vector<1x64xf32>
    %c0_363 = arith.constant 0 : index
    %c1664 = arith.constant 1664 : index
    %555 = vector.load %arg19[%c0_363, %c1664] : memref<1x2048xf32, #tpu.memory_space<vmem>>, vector<1x64xf32>
    tpu.vector_store %arg19[%c0_363, %c1664], %554 {strides = array<i32>} : memref<1x2048xf32, #tpu.memory_space<vmem>>, vector<1x64xf32>,
    %556 = vector.extract_strided_slice %501 {offsets = [27, 0], sizes = [1, 64], strides = [1, 1]} : vector<32x64xf32> to vector<1x64xf32>
    %c0_364 = arith.constant 0 : index
    %c1728 = arith.constant 1728 : index
    %557 = vector.load %arg19[%c0_364, %c1728] : memref<1x2048xf32, #tpu.memory_space<vmem>>, vector<1x64xf32>
    tpu.vector_store %arg19[%c0_364, %c1728], %556 {strides = array<i32>} : memref<1x2048xf32, #tpu.memory_space<vmem>>, vector<1x64xf32>,
    %558 = vector.extract_strided_slice %501 {offsets = [28, 0], sizes = [1, 64], strides = [1, 1]} : vector<32x64xf32> to vector<1x64xf32>
    %c0_365 = arith.constant 0 : index
    %c1792 = arith.constant 1792 : index
    %559 = vector.load %arg19[%c0_365, %c1792] : memref<1x2048xf32, #tpu.memory_space<vmem>>, vector<1x64xf32>
    tpu.vector_store %arg19[%c0_365, %c1792], %558 {strides = array<i32>} : memref<1x2048xf32, #tpu.memory_space<vmem>>, vector<1x64xf32>,
    %560 = vector.extract_strided_slice %501 {offsets = [29, 0], sizes = [1, 64], strides = [1, 1]} : vector<32x64xf32> to vector<1x64xf32>
    %c0_366 = arith.constant 0 : index
    %c1856 = arith.constant 1856 : index
    %561 = vector.load %arg19[%c0_366, %c1856] : memref<1x2048xf32, #tpu.memory_space<vmem>>, vector<1x64xf32>
    tpu.vector_store %arg19[%c0_366, %c1856], %560 {strides = array<i32>} : memref<1x2048xf32, #tpu.memory_space<vmem>>, vector<1x64xf32>,
    %562 = vector.extract_strided_slice %501 {offsets = [30, 0], sizes = [1, 64], strides = [1, 1]} : vector<32x64xf32> to vector<1x64xf32>
    %c0_367 = arith.constant 0 : index
    %c1920 = arith.constant 1920 : index
    %563 = vector.load %arg19[%c0_367, %c1920] : memref<1x2048xf32, #tpu.memory_space<vmem>>, vector<1x64xf32>
    tpu.vector_store %arg19[%c0_367, %c1920], %562 {strides = array<i32>} : memref<1x2048xf32, #tpu.memory_space<vmem>>, vector<1x64xf32>,
    %564 = vector.extract_strided_slice %501 {offsets = [31, 0], sizes = [1, 64], strides = [1, 1]} : vector<32x64xf32> to vector<1x64xf32>
    %c0_368 = arith.constant 0 : index
    %c1984 = arith.constant 1984 : index
    %565 = vector.load %arg19[%c0_368, %c1984] : memref<1x2048xf32, #tpu.memory_space<vmem>>, vector<1x64xf32>
    tpu.vector_store %arg19[%c0_368, %c1984], %564 {strides = array<i32>} : memref<1x2048xf32, #tpu.memory_space<vmem>>, vector<1x64xf32>,
    %c0_369 = arith.constant 0 : index
    %c0_370 = arith.constant 0 : index
    %566 = vector.load %arg19[%c0_369, %c0_370] : memref<1x2048xf32, #tpu.memory_space<vmem>>, vector<1x2048xf32>
    %c0_371 = arith.constant 0 : index
    %c0_372 = arith.constant 0 : index
    %567 = vector.load %arg10[%c0_371, %c0_372] : memref<2048x256xf32, #tpu.memory_space<vmem>>, vector<2048x256xf32>
    %cst_373 = arith.constant dense<0.000000e+00> : vector<1x256xf32>
    %568 = tpu.matmul %566, %567, %cst_373 {dimension_numbers = #tpu.dot_dimension_numbers<[1], [0], [0], [1], [0, 0, 1, 1], [], []>} : vector<1x2048xf32>, vector<2048x256xf32>, vector<1x256xf32> -> vector<1x256xf32>
    %c0_374 = arith.constant 0 : index
    %c0_375 = arith.constant 0 : index
    %569 = vector.load %arg11[%c0_374, %c0_375] : memref<3x256xf32, #tpu.memory_space<vmem>>, vector<1x256xf32>
    %570 = arith.addf %568, %569 : vector<1x256xf32>
    %cst_376 = arith.constant 0.000000e+00 : f32
    %571 = vector.broadcast %cst_376 : f32 to vector<1x256xf32>
    %572 = arith.maximumf %570, %571 : vector<1x256xf32>
    %c1_377 = arith.constant 1 : index
    %c0_378 = arith.constant 0 : index
    %573 = vector.load %arg11[%c1_377, %c0_378] : memref<3x256xf32, #tpu.memory_space<vmem>>, vector<1x256xf32>
    %574 = arith.mulf %572, %573 : vector<1x256xf32>
    %c2_379 = arith.constant 2 : index
    %c0_380 = arith.constant 0 : index
    %575 = vector.load %arg11[%c2_379, %c0_380] : memref<3x256xf32, #tpu.memory_space<vmem>>, vector<1x256xf32>
    %576 = arith.addf %574, %575 : vector<1x256xf32>
    %c0_381 = arith.constant 0 : index
    %c0_382 = arith.constant 0 : index
    %577 = vector.load %arg12[%c0_381, %c0_382] : memref<256x128xf32, #tpu.memory_space<vmem>>, vector<256x128xf32>
    %cst_383 = arith.constant dense<0.000000e+00> : vector<1x128xf32>
    %578 = tpu.matmul %576, %577, %cst_383 {dimension_numbers = #tpu.dot_dimension_numbers<[1], [0], [0], [1], [0, 0, 1, 1], [], []>} : vector<1x256xf32>, vector<256x128xf32>, vector<1x128xf32> -> vector<1x128xf32>
    %c0_384 = arith.constant 0 : index
    %c0_385 = arith.constant 0 : index
    %579 = vector.load %arg13[%c0_384, %c0_385] : memref<1x128xf32, #tpu.memory_space<vmem>>, vector<1x128xf32>
    %580 = arith.addf %578, %579 : vector<1x128xf32>
    %c0_386 = arith.constant 0 : index
    %c0_387 = arith.constant 0 : index
    %c0_388 = arith.constant 0 : index
    %581 = vector.load %arg14[%c0_386, %c0_387, %c0_388] : memref<1x1x128xf32, #tpu.memory_space<vmem>>, vector<1x1x128xf32>
    %582 = vector.shape_cast %581 : vector<1x1x128xf32> to vector<1x128xf32>
    %583 = vector.shape_cast %580 : vector<1x128xf32> to vector<1x1x128xf32>
    tpu.vector_store %arg14[%c0_386, %c0_387, %c0_388], %583 {strides = array<i32>} : memref<1x1x128xf32, #tpu.memory_space<vmem>>, vector<1x1x128xf32>,
    return
  }
  func.func @transform_0(%arg0: i32) -> (i32, i32, i32) {
    %c0_i32 = arith.constant 0 : i32
    %c0_i32_0 = arith.constant 0 : i32
    %c0_i32_1 = arith.constant 0 : i32
    return %arg0, %c0_i32, %c0_i32_0 : i32, i32, i32
  }
  func.func @transform_1(%arg0: i32) -> (i32, i32) {
    %c0_i32 = arith.constant 0 : i32
    %c0_i32_0 = arith.constant 0 : i32
    %c0_i32_1 = arith.constant 0 : i32
    return %c0_i32, %c0_i32_0 : i32, i32
  }
  func.func @transform_2(%arg0: i32) -> (i32, i32) {
    %c0_i32 = arith.constant 0 : i32
    %c0_i32_0 = arith.constant 0 : i32
    %c0_i32_1 = arith.constant 0 : i32
    return %c0_i32, %c0_i32_0 : i32, i32
  }
  func.func @transform_3(%arg0: i32) -> (i32, i32) {
    %c0_i32 = arith.constant 0 : i32
    %c0_i32_0 = arith.constant 0 : i32
    %c0_i32_1 = arith.constant 0 : i32
    return %c0_i32, %c0_i32_0 : i32, i32
  }
  func.func @transform_4(%arg0: i32) -> (i32, i32) {
    %c0_i32 = arith.constant 0 : i32
    %c0_i32_0 = arith.constant 0 : i32
    %c0_i32_1 = arith.constant 0 : i32
    return %c0_i32, %c0_i32_0 : i32, i32
  }
  func.func @transform_5(%arg0: i32) -> (i32, i32) {
    %c0_i32 = arith.constant 0 : i32
    %c0_i32_0 = arith.constant 0 : i32
    %c0_i32_1 = arith.constant 0 : i32
    return %c0_i32, %c0_i32_0 : i32, i32
  }
  func.func @transform_6(%arg0: i32) -> (i32, i32) {
    %c0_i32 = arith.constant 0 : i32
    %c0_i32_0 = arith.constant 0 : i32
    %c0_i32_1 = arith.constant 0 : i32
    return %c0_i32, %c0_i32_0 : i32, i32
  }
  func.func @transform_7(%arg0: i32) -> (i32, i32) {
    %c0_i32 = arith.constant 0 : i32
    %c0_i32_0 = arith.constant 0 : i32
    %c0_i32_1 = arith.constant 0 : i32
    return %c0_i32, %c0_i32_0 : i32, i32
  }
  func.func @transform_8(%arg0: i32) -> (i32, i32) {
    %c0_i32 = arith.constant 0 : i32
    %c0_i32_0 = arith.constant 0 : i32
    %c0_i32_1 = arith.constant 0 : i32
    return %c0_i32, %c0_i32_0 : i32, i32
  }
  func.func @transform_9(%arg0: i32) -> (i32, i32) {
    %c0_i32 = arith.constant 0 : i32
    %c0_i32_0 = arith.constant 0 : i32
    %c0_i32_1 = arith.constant 0 : i32
    return %c0_i32, %c0_i32_0 : i32, i32
  }
  func.func @transform_10(%arg0: i32) -> (i32, i32) {
    %c0_i32 = arith.constant 0 : i32
    %c0_i32_0 = arith.constant 0 : i32
    %c0_i32_1 = arith.constant 0 : i32
    return %c0_i32, %c0_i32_0 : i32, i32
  }
  func.func @transform_11(%arg0: i32) -> (i32, i32) {
    %c0_i32 = arith.constant 0 : i32
    %c0_i32_0 = arith.constant 0 : i32
    %c0_i32_1 = arith.constant 0 : i32
    return %c0_i32, %c0_i32_0 : i32, i32
  }
  func.func @transform_12(%arg0: i32) -> (i32, i32) {
    %c0_i32 = arith.constant 0 : i32
    %c0_i32_0 = arith.constant 0 : i32
    %c0_i32_1 = arith.constant 0 : i32
    return %c0_i32, %c0_i32_0 : i32, i32
  }
  func.func @transform_13(%arg0: i32) -> (i32, i32, i32) {
    %c0_i32 = arith.constant 0 : i32
    %c0_i32_0 = arith.constant 0 : i32
    %c0_i32_1 = arith.constant 0 : i32
    return %arg0, %c0_i32, %c0_i32_0 : i32, i32, i32
  }
}

</mosaic_0001>

<bundles_post_ra>
// kernel: afib_forward.1
= control target key start
LH: loop header
LB: loop body
LE: loop exit
PB: predicated region body
PF: predicated region fallthrough
CT: control target
= control target key end

     0   :  { %s15005_s0 = inlined_call_operand.vmem [shape: f32[2,9,4096], index: 0, kind: input, shape index: {}]   ;;  %s15006_s1 = inlined_call_operand.vmem [shape: f32[8,9], index: 1, kind: input, shape index: {}]   ;;  %s15007_s2 = inlined_call_operand.vmem [shape: f32[8,5], index: 2, kind: input, shape index: {}]   ;;  %s15008_s3 = inlined_call_operand.vmem [shape: f32[16,72], index: 3, kind: input, shape index: {}]   ;;  %s15009_s4 = inlined_call_operand.vmem [shape: f32[16,5], index: 4, kind: input, shape index: {}]   ;;  %s15010_s5 = inlined_call_operand.vmem [shape: f32[1024,256], index: 5, kind: input, shape index: {}]   ;;  %s15011_s6 = inlined_call_operand.vmem [shape: f32[32,144], index: 6, kind: input, shape index: {}]   ;;  %s15012_s7 = inlined_call_operand.vmem [shape: f32[32,5], index: 7, kind: input, shape index: {}]   ;;  %s15013_s8 = inlined_call_operand.vmem [shape: f32[256,64], index: 8, kind: input, shape index: {}]   ;;  %s15014_s9 = inlined_call_operand.vmem [shape: f32[2048,256], index: 9, kind: input, shape index: {}]   ;;  %s15015_s10 = inlined_call_operand.vmem [shape: f32[3,256], index: 10, kind: input, shape index: {}]   ;;  %s15016_s11 = inlined_call_operand.vmem [shape: f32[256,128], index: 11, kind: input, shape index: {}]   ;;  %s15017_s12 = inlined_call_operand.vmem [shape: f32[1,128], index: 12, kind: input, shape index: {}]   ;;  %s15018_s13 = inlined_call_operand.hbm [shape: f32[2,1,128], index: 13, kind: output, shape index: {}]  }
   0x1   :  { %15093 = sst [smem:[#allocation65_spill]] %s15005_s0 }
   0x2   :  { %15094 = sst [smem:[#allocation66_spill]] %s15006_s1 }
   0x3   :  { %15095 = sst [smem:[#allocation67_spill]] %s15007_s2 }
   0x4   :  { %15096 = sst [smem:[#allocation68_spill]] %s15008_s3 }
   0x5   :  { %15097 = sst [smem:[#allocation69_spill]] %s15009_s4 }
   0x6   :  { %18 = vsyncpa [#allocation8], 0 }
   0x7   :  { %20 = vsyncpa [#allocation8 + $0x1], 0  ;;  %s9035_s25 = smov 0   ;;  %s9037_s26 = smov 0  }
   0x8   :  { %s9039_s27 = smov 0   ;;  %s9041_s28 = smov 0  }
   0x9 LB: > { %s9056_s29 = sadd.s32 4294967295, %s8932_s28   ;;  %s8156_s30 = sadd.s32 4294967294, %s8932_s28   ;;  %s8932_s28 = sphi %s9041_s28, %s15531_s28   ;;  %s8928_s27 = sphi %s9039_s27, %s15530_s27   ;;  %s8924_s26 = sphi %s9037_s26, %s15529_s26   ;;  %s8920_s25 = sphi %s9035_s25, %s15528_s25  }
   0xa   : > { %s9060_s14 = sadd.s32 1, %s8932_s28   ;;  %s311_s15 = sadd.s32 1, %s8928_s27 }
   0xb   : > { %s308_s16 = ssub.s32 %s8932_s28, %s9060_s14  ;;  %p321_p0 = scmp.ne.s32.totalorder %s8928_s27, %s8924_s26 }
   0xc   : > { %p309_p1 = scmp.eq.s32.totalorder %s308_s16, 0  ;;  %p322_p2 = scmp.eq.s32.totalorder %s9056_s29, 1 }
   0xd   : > { %p327_p3 = scmp.ne.s32.totalorder %s8924_s26, %s8920_s25  ;;  %p328_p4 = scmp.eq.s32.totalorder %s8156_s30, 1 }
   0xe   : > { %s9071_s17 = scalar_select %p309_p1, %s8928_s27, %s311_s15  }
   0xf   : > { %p9073_p5 = por %p322_p2, %p321_p0  ;;  %p9077_p6 = por %p328_p4, %p327_p3 }
  0x10   : > { %p8159_p7 = scmp.ge.s32.totalorder %s8932_s28, 1  ;;  %p390_p8 = scmp.lt.s32.totalorder %s8932_s28, 3 }
  0x12   : > { %p391_p9 = pnand %p8159_p7, %p390_p8 }
  0x14   : > { %394 = sbr.rel (%p391_p9) target bundleno = 3078 (0xc06), region = 72 }
  0x19   : > { %s15100_s1 = sld [smem:[#allocation66_spill]]  ;;  %v15025_v1 = vmov 2   ;;  %v15021_v2 = vmov 0   ;;  %v15023_v3 = vmov 4   ;;  %v15027_v4 = vmov 3   ;;  %p433_p10 = scmp.lt.s32.totalorder %s9056_s29, 1 }
  0x1a   : > { %8597 = vset.pattern.permute.xlu1 %v15025_v1  ;;  %8595 = vset.pattern.permute.xlu0 %v15021_v2  ;;  %v15019_v5 = vmov 1   ;;  %v8939_v6 = vmov 5   ;;  %v8940_v7 = vmov 6   ;;  %v8941_v8 = vmov 8   ;;  %s15101_s2 = sld [smem:[#allocation67_spill]]  ;;  %s15071_s21 = smov 32  }
  0x1b   : > { %8599 = vset.pattern.permute.xlu2 %v15023_v3  ;;  %v8942_v9 = vmov 7   ;;  %s434_s24 = scalar_select %p433_p10, %s9056_s29, 1  ;;  %vm2145_vm0 = vcmask 261120   ;;  %vm15059_vm1 = vcmask 64512   ;;  %vm2094_vm2 = vcmask 269312  }
  0x1c   : > { %s15102_s0 = sld [smem:[#allocation65_spill]]  ;;  %s8945_s15 = smov 120   ;;  %vm15057_vm11 = vcmask 252928  }
  0x1d   : > { %s8524_s30 = sshll.u32 %s434_s24, 9  ;;  %s15199_s3 = sld [smem:[#allocation68_spill]] }
  0x1e   : > { %s8946_s16 = smov 33   ;;  %s15089_s22 = smov 112  }
  0x1f   : > { %v439_v0 = vld [vmem:[%s15100_s1] sm:$0xff]  ;;  %s15087_s23 = smov 1   ;;  %s8950_s24 = smov 104  }
  0x20   : > { %527 = vperm.xlu1 %8597, %v439_v0   ;;  %445 = vperm.xlu0 %8595, %v439_v0   ;;  %v438_v10 = vld [vmem:[%s15101_s2] sm:$0xff]  ;;  %s15330_s4 = sld [smem:[#allocation69_spill]]  ;;  %s8960_s1 = smov 16  }
  0x21   : > { %609 = vperm.xlu2 %8599, %v439_v0   ;;  %s15491_s2 = smov 1  }
  0x22   : > { %s9107_s20 = scalar_lea.vmem %s15102_s0, %s8524_s30  ;;  %s15081_s30 = smov 127  }
  0x23   : > { %v8164_v11 = vld [vmem:[%s9107_s20 + $0x2] ss:$8 sm:$0xf]  ;;  %v440_v13 = vld [vmem:[%s9107_s20] ss:$8 sm:$0xf] }
  0x24   : > { %v8165_v12 = vld [vmem:[%s9107_s20 + $0x2] ss:$8 sm:$0xf0]  ;;  %v441_v14 = vld [vmem:[%s9107_s20] ss:$8 sm:$0xf0] }
  0x25   : > { %v9113_v15 = vor.u32 %v8165_v12, %v8164_v11  ;;  %v9115_v16 = vor.u32 %v441_v14, %v440_v13  ;;  %v8162_v23 = vld [vmem:[%s9107_s20 + $0x1] ss:$8 sm:$0xf]  ;;  %v8178_v29 = vld [vmem:[%s9107_s20 + $0x40] ss:$8 sm:$0xf] }
  0x26   : > { %v8163_v24 = vld [vmem:[%s9107_s20 + $0x1] ss:$8 sm:$0xf0]  ;;  %v8179_v30 = vld [vmem:[%s9107_s20 + $0x40] ss:$8 sm:$0xf0] }
  0x27   : > { %v531_v17 = vperm.slane %v9113_v15, 0  ;;  %v532_v18 = vperm.slane %v9113_v15, 1  ;;  %v533_v19 = vperm.slane %v9113_v15, 2  ;;  %v534_v20 = vperm.slane %v9113_v15, 3  ;;  %s15498_s0 = smov 32  }
  0x28   : > { %8598 = vset.pattern.permute.xlu1 %v15027_v4  ;;  %8596 = vset.pattern.permute.xlu0 %v15019_v5  ;;  %v535_v21 = vperm.slane %v9113_v15, 4  ;;  %v536_v22 = vperm.slane %v9113_v15, 5  ;;  %v449_v25 = vperm.slane %v9115_v16, 0  ;;  %v450_v26 = vperm.slane %v9115_v16, 1 }
  0x29   : > { %568 = vperm.xlu1 %8598, %v439_v0   ;;  %486 = vperm.xlu0 %8596, %v439_v0   ;;  %v451_v27 = vperm.slane %v9115_v16, 2  ;;  %v537_v28 = vperm.slane %v9113_v15, 6  ;;  %v9131_v31 = vor.u32 %v8163_v24, %v8162_v23  ;;  %v8166_v32 = vld [vmem:[%s9107_s20 + $0x3] ss:$8 sm:$0xf]  ;;  %v452_v35 = vperm.slane %v9115_v16, 3 }
  0x2a   : > { %8600 = vset.pattern.permute.xlu2 %v8939_v6  ;;  %v8167_v33 = vld [vmem:[%s9107_s20 + $0x3] ss:$8 sm:$0xf0]  ;;  %v453_v36 = vperm.slane %v9115_v16, 4  ;;  %v454_v37 = vperm.slane %v9115_v16, 5  ;;  %v455_v38 = vperm.slane %v9115_v16, 6  ;;  %v9147_v44 = vor.u32 %v8179_v30, %v8178_v29 }
  0x2b   : > { %650 = vperm.xlu2 %8600, %v439_v0   ;;  %v8168_v39 = vld [vmem:[%s9107_s20 + $0x4] ss:$8 sm:$0xf]  ;;  %v456_v41 = vperm.slane %v9115_v16, 7  ;;  %v538_v42 = vperm.slane %v9113_v15, 7  ;;  %v9145_v43 = vor.u32 %v8167_v33, %v8166_v32  ;;  %v490_v45 = vperm.slane %v9131_v31, 0 }
  0x2c   : > { %v8169_v40 = vld [vmem:[%s9107_s20 + $0x4] ss:$8 sm:$0xf0]  ;;  %15104 = vst [vmem:[#allocation11_spill] sm:$0xff] %v9147_v44  ;;  %v491_v46 = vperm.slane %v9131_v31, 1  ;;  %v492_v47 = vperm.slane %v9131_v31, 2 }
  0x2d   : > { %v493_v48 = vperm.slane %v9131_v31, 3  ;;  %v607_v49 = vor.u32 %v8169_v40, %v8168_v39  ;;  %v8170_v50 = vld [vmem:[%s9107_s20 + $0x5] ss:$8 sm:$0xf]  ;;  %v494_v52 = vperm.slane %v9131_v31, 4  ;;  %v495_v53 = vperm.slane %v9131_v31, 5 }
  0x2e   : > { %v8171_v51 = vld [vmem:[%s9107_s20 + $0x5] ss:$8 sm:$0xf0]  ;;  %v496_v54 = vperm.slane %v9131_v31, 6 }
  0x2f   : > { %v648_v63 = vor.u32 %v8171_v51, %v8170_v50  ;;  %v614_v6 = vperm.slane %v607_v49, 1  ;;  %v619_v11 = vperm.slane %v607_v49, 6  ;;  %v620_v12 = vperm.slane %v607_v49, 7  ;;  %v8180_v30 = vld [vmem:[%s9107_s20 + $0x41] ss:$8 sm:$0xf] }
  0x30   : > { %v8181_v40 = vld [vmem:[%s9107_s20 + $0x41] ss:$8 sm:$0xf0]  ;;  %v8172_v59 = vld [vmem:[%s9107_s20 + $0x6] ss:$8 sm:$0xf] }
  0x31   : > { %8601 = vset.pattern.permute.xlu1 %v8940_v7  ;;  %8603 = vset.pattern.permute.xlu0 %v8941_v8  ;;  %v615_v7 = vperm.slane %v607_v49, 2  ;;  %v616_v8 = vperm.slane %v607_v49, 3  ;;  %v654_v32 = vperm.slane %v648_v63, 0  ;;  %v655_v33 = vperm.slane %v648_v63, 1 }
  0x32   : > { %691 = vperm.xlu1 %8601, %v439_v0   ;;  %773 = vperm.xlu0 %8603, %v439_v0   ;;  %v656_v39 = vperm.slane %v648_v63, 2  ;;  %v657_v58 = vperm.slane %v648_v63, 3  ;;  %v658_v57 = vperm.slane %v648_v63, 4  ;;  %v660_v29 = vperm.slane %v648_v63, 6 }
  0x33   : > { %8602 = vset.pattern.permute.xlu2 %v8942_v9  ;;  %v617_v9 = vperm.slane %v607_v49, 4  ;;  %v661_v24 = vperm.slane %v648_v63, 7  ;;  %v9205_v14 = vor.u32 %v8181_v40, %v8180_v30 }
  0x34   : > { %732 = vperm.xlu2 %8602, %v439_v0   ;;  %v613_v0 = vperm.slane %v607_v49, 0 }
  0x35   : > { %15106 = vst [vmem:[#allocation13_spill] sm:$0xff] %v9205_v14 }
  0x3a   : > { %8604 = vset.pattern.permute.xlu1 %v15021_v2  ;;  %8608 = vset.pattern.permute.xlu0 %v15023_v3  ;;  %v8175_v3 = vld [vmem:[%s9107_s20 + $0x7] ss:$8 sm:$0xf0] }
  0x3b   : > { %811 = vperm.xlu1 %8604, %v438_v10   ;;  %1986 = vperm.xlu0 %8608, %v438_v10  }
  0x3c   : > { %8605 = vset.pattern.permute.xlu2 %v15019_v5 }
  0x3d   : > { %831 = vperm.xlu2 %8605, %v438_v10  }
  0x43   : > { %8606 = vset.pattern.permute.xlu1 %v15025_v1  ;;  %8651 = vset.pattern.permute.xlu0 %v15025_v1 }
  0x44   : > { %843 = vperm.xlu1 %8606, %v438_v10  }
  0x45   : > { %8607 = vset.pattern.permute.xlu2 %v15027_v4 }
  0x46   : > { %1974 = vperm.xlu2 %8607, %v438_v10   ;;  %v618_v10 = vperm.slane %v607_v49, 5 }
  0x4c   : > { %8649 = vset.pattern.permute.xlu1 %v15021_v2  ;;  %v8174_v2 = vld [vmem:[%s9107_s20 + $0x7] ss:$8 sm:$0xf] }
  0x4d   : > { %v9202_v23 = vor.u32 %v8175_v3, %v8174_v2 }
  0x4e   : > { %8650 = vset.pattern.permute.xlu2 %v15019_v5 }
  0x4f   : > { %v737_v3 = vperm.slane %v9202_v23, 1 }
  0x7b   : > { %v9135_v34 = vpop.permute.xlu2 %609 }
  0x7c   : > { %15103 = vst [vmem:[#allocation10_spill] sm:$0xff] %v9135_v34  ;;  %v9175_v49 = vmul.f32 %v613_v0, %v9135_v34  ;;  %v9178_v50 = vmul.f32 %v614_v6, %v9135_v34  ;;  %v9181_v51 = vmul.f32 %v615_v7, %v9135_v34  ;;  %v9184_v5 = vmul.f32 %v616_v8, %v9135_v34  ;;  %v8173_v7 = vld [vmem:[%s9107_s20 + $0x6] ss:$8 sm:$0xf0] }
  0x7d   : > { %v9189_v1 = vmul.f32 %v617_v9, %v9135_v34  ;;  %v9192_v4 = vmul.f32 %v618_v10, %v9135_v34  ;;  %v9195_v0 = vmul.f32 %v619_v11, %v9135_v34  ;;  %v9198_v6 = vmul.f32 %v620_v12, %v9135_v34 }
  0x7e   : > { %v659_v8 = vperm.slane %v648_v63, 5  ;;  %v9207_v10 = vor.u32 %v8173_v7, %v8172_v59  ;;  %v736_v7 = vperm.slane %v9202_v23, 0 }
  0x85   : > { %v9166_v13 = vpop.permute.xlu2 %650 }
  0x86   : > { %15105 = vst [vmem:[#allocation12_spill] sm:$0xff] %v9166_v13  ;;  %v9213_v61 = vmul.f32 %v654_v32, %v9166_v13  ;;  %v9216_v60 = vmul.f32 %v655_v33, %v9166_v13  ;;  %v9219_v2 = vmul.f32 %v656_v39, %v9166_v13  ;;  %v9225_v59 = vmul.f32 %v657_v58, %v9166_v13 }
  0x87   : > { %v9228_v30 = vmul.f32 %v658_v57, %v9166_v13  ;;  %v9231_v40 = vmul.f32 %v659_v8, %v9166_v13  ;;  %v9234_v32 = vmul.f32 %v660_v29, %v9166_v13  ;;  %v9239_v39 = vmul.f32 %v661_v24, %v9166_v13 }
  0x8e   : > { %v9244_v62 = vpop.permute.xlu2 %732 }
  0x8f   : > { %v9261_v11 = vmul.f32 %v736_v7, %v9244_v62  ;;  %v9264_v24 = vmul.f32 %v737_v3, %v9244_v62 }
  0x91   : > { %15109 = vst [vmem:[#allocation16_spill] sm:$0xff] %v9261_v11 }
  0x92   : > { %v9222_v63 = vpop.permute.xlu0 %445  ;;  %v9236_v33 = vpop.permute.xlu1 %527  ;;  %15110 = vst [vmem:[#allocation17_spill] sm:$0xff] %v9264_v24 }
  0x93   : > { %15107 = vst [vmem:[#allocation14_spill] sm:$0xff] %v9222_v63  ;;  %v465_v56 = vmul.f32 %v449_v25, %v9222_v63  ;;  %v466_v9 = vmul.f32 %v450_v26, %v9222_v63  ;;  %v467_v29 = vmul.f32 %v451_v27, %v9222_v63  ;;  %v468_v7 = vmul.f32 %v452_v35, %v9222_v63 }
  0x94   : > { %15108 = vst [vmem:[#allocation15_spill] sm:$0xff] %v9236_v33  ;;  %v469_v3 = vmul.f32 %v453_v36, %v9222_v63  ;;  %v470_v25 = vmul.f32 %v454_v37, %v9222_v63  ;;  %v471_v26 = vmul.f32 %v455_v38, %v9222_v63  ;;  %v472_v27 = vmul.f32 %v456_v41, %v9222_v63 }
  0x95   : > { %v547_v35 = vmul.f32 %v531_v17, %v9236_v33  ;;  %v548_v36 = vmul.f32 %v532_v18, %v9236_v33  ;;  %v549_v37 = vmul.f32 %v533_v19, %v9236_v33  ;;  %v550_v38 = vmul.f32 %v534_v20, %v9236_v33 }
  0x96   : > { %v551_v16 = vmul.f32 %v535_v21, %v9236_v33  ;;  %v552_v17 = vmul.f32 %v536_v22, %v9236_v33  ;;  %v553_v18 = vmul.f32 %v537_v28, %v9236_v33  ;;  %v554_v19 = vmul.f32 %v538_v42, %v9236_v33 }
  0x9b   : > { %v9302_v12 = vpop.permute.xlu0 %486  ;;  %v9328_v41 = vpop.permute.xlu1 %568 }
  0x9c   : > { %15111 = vst [vmem:[#allocation18_spill] sm:$0xff] %v9302_v12  ;;  %v506_v20 = vmul.f32 %v490_v45, %v9302_v12  ;;  %v507_v21 = vmul.f32 %v491_v46, %v9302_v12  ;;  %v508_v22 = vmul.f32 %v492_v47, %v9302_v12  ;;  %v509_v28 = vmul.f32 %v493_v48, %v9302_v12 }
  0x9d   : > { %v510_v15 = vmul.f32 %v494_v52, %v9302_v12  ;;  %v511_v42 = vmul.f32 %v495_v53, %v9302_v12  ;;  %v512_v45 = vmul.f32 %v496_v54, %v9302_v12  ;;  %v15112_v46 = vperm.slane %v9131_v31, 7 }
  0x9e   : > { %v514_v8 = vadd.f32 %v506_v20, %v465_v56  ;;  %v515_v48 = vadd.f32 %v507_v21, %v466_v9  ;;  %v516_v57 = vadd.f32 %v508_v22, %v467_v29  ;;  %v517_v55 = vadd.f32 %v509_v28, %v468_v7 }
  0x9f   : > { %v513_v47 = vmul.f32 %v15112_v46, %v9302_v12  ;;  %v518_v58 = vadd.f32 %v510_v15, %v469_v3  ;;  %v519_v13 = vadd.f32 %v511_v42, %v470_v25  ;;  %v520_v34 = vadd.f32 %v512_v45, %v471_v26 }
  0xa0   : > { %v555_v33 = vadd.f32 %v547_v35, %v514_v8  ;;  %v556_v14 = vadd.f32 %v548_v36, %v515_v48  ;;  %v557_v44 = vadd.f32 %v549_v37, %v516_v57  ;;  %v558_v53 = vadd.f32 %v550_v38, %v517_v55 }
  0xa1   : > { %v521_v52 = vadd.f32 %v513_v47, %v472_v27  ;;  %v559_v63 = vadd.f32 %v551_v16, %v518_v58  ;;  %v560_v24 = vadd.f32 %v552_v17, %v519_v13  ;;  %v561_v54 = vadd.f32 %v553_v18, %v520_v34  ;;  %v8176_v17 = vld [vmem:[%s9107_s20 + $0x100] ss:$8 sm:$0xf] }
  0xa2   : > { %v15113_v31 = vperm.slane %v9145_v43, 0  ;;  %v15114_v9 = vperm.slane %v9145_v43, 1  ;;  %v15115_v8 = vperm.slane %v9145_v43, 2  ;;  %v15116_v55 = vperm.slane %v9145_v43, 3 }
  0xa3   : > { %v562_v11 = vadd.f32 %v554_v19, %v521_v52  ;;  %v15117_v34 = vperm.slane %v9145_v43, 4  ;;  %v15118_v57 = vperm.slane %v9145_v43, 5  ;;  %v15119_v25 = vperm.slane %v9145_v43, 6  ;;  %v8177_v18 = vld [vmem:[%s9107_s20 + $0x100] ss:$8 sm:$0xf0] }
  0xa4   : > { %v588_v56 = vmul.f32 %v15113_v31, %v9328_v41  ;;  %v589_v29 = vmul.f32 %v15114_v9, %v9328_v41  ;;  %v590_v7 = vmul.f32 %v15115_v8, %v9328_v41  ;;  %v591_v58 = vmul.f32 %v15116_v55, %v9328_v41 }
  0xa5   : > { %v592_v13 = vmul.f32 %v15117_v34, %v9328_v41  ;;  %v593_v3 = vmul.f32 %v15118_v57, %v9328_v41  ;;  %v594_v26 = vmul.f32 %v15119_v25, %v9328_v41  ;;  %v15120_v27 = vperm.slane %v9145_v43, 7  ;;  %v9372_v43 = vpop.permute.xlu1 %691 }
  0xa6   : > { %v596_v36 = vadd.f32 %v588_v56, %v555_v33  ;;  %v597_v37 = vadd.f32 %v589_v29, %v556_v14  ;;  %v598_v38 = vadd.f32 %v590_v7, %v557_v44  ;;  %v599_v16 = vadd.f32 %v591_v58, %v558_v53 }
  0xa7   : > { %v595_v35 = vmul.f32 %v15120_v27, %v9328_v41  ;;  %v600_v19 = vadd.f32 %v592_v13, %v559_v63  ;;  %v601_v20 = vadd.f32 %v593_v3, %v560_v24  ;;  %v602_v21 = vadd.f32 %v594_v26, %v561_v54  ;;  %v9416_v13 = vpop.permute.xlu0 %773 }
  0xa8   : > { %v637_v28 = vadd.f32 %v9175_v49, %v596_v36  ;;  %v638_v15 = vadd.f32 %v9178_v50, %v597_v37  ;;  %v639_v42 = vadd.f32 %v9181_v51, %v598_v38  ;;  %v640_v45 = vadd.f32 %v9184_v5, %v599_v16  ;;  %v15135_v16 = vld [vmem:[#allocation16_spill] sm:$0xff] }
  0xa9   : > { %v603_v22 = vadd.f32 %v595_v35, %v562_v11  ;;  %v641_v14 = vadd.f32 %v9189_v1, %v600_v19  ;;  %v15121_v44 = vperm.slane %v9202_v23, 2  ;;  %v15122_v63 = vperm.slane %v9202_v23, 3 }
  0xaa   : > { %v9381_v24 = vor.u32 %v8177_v18, %v8176_v17  ;;  %v642_v49 = vadd.f32 %v9192_v4, %v601_v20  ;;  %v643_v50 = vadd.f32 %v9195_v0, %v602_v21  ;;  %v678_v51 = vadd.f32 %v9213_v61, %v637_v28 }
  0xab   : > { %v754_v33 = vmul.f32 %v15121_v44, %v9244_v62  ;;  %v755_v11 = vmul.f32 %v15122_v63, %v9244_v62  ;;  %v644_v5 = vadd.f32 %v9198_v6, %v603_v22  ;;  %v679_v1 = vadd.f32 %v9216_v60, %v638_v15 }
  0xac   : > { %v680_v46 = vadd.f32 %v9219_v2, %v639_v42  ;;  %v681_v47 = vadd.f32 %v9225_v59, %v640_v45  ;;  %v15123_v48 = vperm.slane %v9202_v23, 4  ;;  %v15124_v53 = vperm.slane %v9207_v10, 0 }
  0xad   : > { %v15125_v0 = vperm.slane %v9207_v10, 1  ;;  %v15126_v61 = vperm.slane %v9207_v10, 2  ;;  %v15127_v2 = vperm.slane %v9207_v10, 3  ;;  %v682_v54 = vadd.f32 %v9228_v30, %v641_v14  ;;  %v15136_v14 = vld [vmem:[#allocation17_spill] sm:$0xff] }
  0xae   : > { %v756_v52 = vmul.f32 %v15123_v48, %v9244_v62  ;;  %v711_v4 = vmul.f32 %v15124_v53, %v9372_v43  ;;  %v15128_v31 = vperm.slane %v9202_v23, 5  ;;  %v15129_v9 = vperm.slane %v9202_v23, 6  ;;  %v15137_v48 = vld [vmem:[#allocation14_spill] sm:$0xff]  ;;  %v15138_v53 = vld [vmem:[#allocation11_spill] sm:$0xff] }
  0xaf   : > { %v712_v6 = vmul.f32 %v15125_v0, %v9372_v43  ;;  %v713_v60 = vmul.f32 %v15126_v61, %v9372_v43  ;;  %v714_v59 = vmul.f32 %v15127_v2, %v9372_v43  ;;  %v777_v8 = vperm.slane %v9381_v24, 0  ;;  %v15142_v61 = vld [vmem:[#allocation13_spill] sm:$0xff] }
  0xb0   : > { %v757_v56 = vmul.f32 %v15128_v31, %v9244_v62  ;;  %v758_v29 = vmul.f32 %v15129_v9, %v9244_v62  ;;  %v683_v7 = vadd.f32 %v9231_v40, %v642_v49  ;;  %v684_v55 = vadd.f32 %v9234_v32, %v643_v50 }
  0xb1   : > { %v685_v58 = vadd.f32 %v9239_v39, %v644_v5  ;;  %v719_v34 = vadd.f32 %v711_v4, %v678_v51  ;;  %v15130_v30 = vperm.slane %v9207_v10, 4  ;;  %v15131_v3 = vperm.slane %v9207_v10, 5 }
  0xb2   : > { %v15132_v26 = vperm.slane %v9207_v10, 6  ;;  %v15133_v40 = vperm.slane %v9207_v10, 7  ;;  %v720_v39 = vadd.f32 %v712_v6, %v679_v1  ;;  %v721_v35 = vadd.f32 %v713_v60, %v680_v46 }
  0xb3   : > { %v715_v57 = vmul.f32 %v15130_v30, %v9372_v43  ;;  %v716_v25 = vmul.f32 %v15131_v3, %v9372_v43  ;;  %v722_v36 = vadd.f32 %v714_v59, %v681_v47  ;;  %v15134_v37 = vperm.slane %v9202_v23, 7  ;;  %v9446_v47 = vpop.permute.xlu1 %811 }
  0xb4   : > { %v717_v27 = vmul.f32 %v15132_v26, %v9372_v43  ;;  %v718_v32 = vmul.f32 %v15133_v40, %v9372_v43  ;;  %v760_v17 = vadd.f32 %v15135_v16, %v719_v34  ;;  %v778_v18 = vperm.slane %v9381_v24, 1 }
  0xb5   : > { %v759_v38 = vmul.f32 %v15134_v37, %v9244_v62  ;;  %v779_v19 = vperm.slane %v9381_v24, 2  ;;  %v780_v20 = vperm.slane %v9381_v24, 3  ;;  %v781_v21 = vperm.slane %v9381_v24, 4 }
  0xb6   : > { %v782_v10 = vperm.slane %v9381_v24, 5  ;;  %v783_v22 = vperm.slane %v9381_v24, 6  ;;  %v793_v28 = vmul.f32 %v777_v8, %v9416_v13  ;;  %v723_v15 = vadd.f32 %v715_v57, %v682_v54 }
  0xb7   : > { %v724_v42 = vadd.f32 %v716_v25, %v683_v7  ;;  %v725_v23 = vadd.f32 %v717_v27, %v684_v55  ;;  %v726_v45 = vadd.f32 %v718_v32, %v685_v58  ;;  %v761_v44 = vadd.f32 %v15136_v14, %v720_v39 }
  0xb8   : > { %v762_v63 = vadd.f32 %v754_v33, %v721_v35  ;;  %v763_v49 = vadd.f32 %v755_v11, %v722_v36  ;;  %v784_v50 = vperm.slane %v9381_v24, 7  ;;  %v794_v5 = vmul.f32 %v778_v18, %v9416_v13 }
  0xb9   : > { %v795_v51 = vmul.f32 %v779_v19, %v9416_v13  ;;  %v796_v1 = vmul.f32 %v780_v20, %v9416_v13  ;;  %v801_v46 = vadd.f32 %v793_v28, %v760_v17  ;;  %v15139_v4 = vperm.slane %v15138_v53, 0  ;;  %v8183_v28 = vld [vmem:[%s9107_s20 + $0x42] ss:$8 sm:$0xf0] }
  0xba   : > { %v15140_v6 = vperm.slane %v15138_v53, 1  ;;  %v15141_v11 = vperm.slane %v15138_v53, 2  ;;  %v897_v60 = vperm.slane %v15142_v61, 1  ;;  %v764_v2 = vadd.f32 %v756_v52, %v723_v15 }
  0xbb   : > { %v875_v0 = vmul.f32 %v15139_v4, %v15137_v48  ;;  %v765_v59 = vadd.f32 %v757_v56, %v724_v42  ;;  %v766_v54 = vadd.f32 %v758_v29, %v725_v23  ;;  %v767_v31 = vadd.f32 %v759_v38, %v726_v45  ;;  %v8189_v4 = vld [vmem:[%s9107_s20 + $0x45] ss:$8 sm:$0xf0] }
  0xbc   : > { %v876_v33 = vmul.f32 %v15140_v6, %v15137_v48  ;;  %v877_v24 = vmul.f32 %v15141_v11, %v15137_v48  ;;  %v797_v9 = vmul.f32 %v781_v21, %v9416_v13  ;;  %v798_v8 = vmul.f32 %v782_v10, %v9416_v13 }
  0xbd   : > { %v799_v7 = vmul.f32 %v783_v22, %v9416_v13  ;;  %v800_v55 = vmul.f32 %v784_v50, %v9416_v13  ;;  %v802_v58 = vadd.f32 %v794_v5, %v761_v44  ;;  %v803_v34 = vadd.f32 %v795_v51, %v762_v63  ;;  %v8182_v22 = vld [vmem:[%s9107_s20 + $0x42] ss:$8 sm:$0xf]  ;;  %v8184_v44 = vld [vmem:[%s9107_s20 + $0x43] ss:$8 sm:$0xf] }
  0xbe   : > { %v804_v30 = vadd.f32 %v796_v1, %v763_v49  ;;  %v9463_v57 = vadd.f32 %v9446_v47, %v801_v46  ;;  %v15143_v52 = vperm.slane %v15138_v53, 3  ;;  %v15144_v29 = vperm.slane %v15138_v53, 4  ;;  %v8185_v63 = vld [vmem:[%s9107_s20 + $0x43] ss:$8 sm:$0xf0] }
  0xbf   : > { %v15145_v25 = vperm.slane %v15138_v53, 5  ;;  %v15146_v27 = vperm.slane %v15138_v53, 6  ;;  %v15147_v32 = vperm.slane %v15138_v53, 7  ;;  %v898_v35 = vperm.slane %v15142_v61, 2 }
  0xc0   : > { %v878_v56 = vmul.f32 %v15143_v52, %v15137_v48  ;;  %v879_v3 = vmul.f32 %v15144_v29, %v15137_v48  ;;  %v899_v36 = vperm.slane %v15142_v61, 3  ;;  %v900_v37 = vperm.slane %v15142_v61, 4  ;;  %v8186_v49 = vld [vmem:[%s9107_s20 + $0x44] ss:$8 sm:$0xf] }
  0xc1   : > { %v880_v26 = vmul.f32 %v15145_v25, %v15137_v48  ;;  %v881_v40 = vmul.f32 %v15146_v27, %v15137_v48  ;;  %v882_v39 = vmul.f32 %v15147_v32, %v15137_v48  ;;  %v9483_v38 = vadd.f32 %v797_v9, %v764_v2  ;;  %v8187_v50 = vld [vmem:[%s9107_s20 + $0x44] ss:$8 sm:$0xf0]  ;;  %v8188_v53 = vld [vmem:[%s9107_s20 + $0x45] ss:$8 sm:$0xf] }
  0xc2   : > { %v9485_v16 = vadd.f32 %v798_v8, %v765_v59  ;;  %v9487_v17 = vadd.f32 %v799_v7, %v766_v54  ;;  %v9489_v18 = vadd.f32 %v800_v55, %v767_v31  ;;  %v9492_v19 = vadd.f32 %v9446_v47, %v802_v58  ;;  %v8190_v59 = vld [vmem:[%s9107_s20 + $0x46] ss:$8 sm:$0xf] }
  0xc3   : > { %v9495_v20 = vadd.f32 %v9446_v47, %v803_v34  ;;  %v9498_v21 = vadd.f32 %v9446_v47, %v804_v30  ;;  %v822_v10 = vmax.f32 %v9463_v57, 0.0  ;;  %v901_v15 = vperm.slane %v15142_v61, 5  ;;  %v8191_v54 = vld [vmem:[%s9107_s20 + $0x46] ss:$8 sm:$0xf0] }
  0xc4   : > { %v902_v42 = vperm.slane %v15142_v61, 6  ;;  %v903_v23 = vperm.slane %v15142_v61, 7  ;;  %v15148_v45 = vperm.slane %v15142_v61, 0  ;;  %v913_v5 = vmul.f32 %v897_v60, %v9302_v12 }
  0xc5   : > { %v914_v51 = vmul.f32 %v898_v35, %v9302_v12  ;;  %v915_v1 = vmul.f32 %v899_v36, %v9302_v12  ;;  %v916_v46 = vmul.f32 %v900_v37, %v9302_v12  ;;  %v917_v6 = vmul.f32 %v901_v15, %v9302_v12 }
  0xc6   : > { %v912_v14 = vmul.f32 %v15148_v45, %v9302_v12  ;;  %v918_v11 = vmul.f32 %v902_v42, %v9302_v12  ;;  %v919_v61 = vmul.f32 %v903_v23, %v9302_v12  ;;  %v921_v31 = vadd.f32 %v913_v5, %v876_v33 }
  0xc7   : > { %v922_v9 = vadd.f32 %v914_v51, %v877_v24  ;;  %v923_v60 = vadd.f32 %v915_v1, %v878_v56  ;;  %v924_v8 = vadd.f32 %v916_v46, %v879_v3  ;;  %v925_v7 = vadd.f32 %v917_v6, %v880_v26  ;;  %v15149_v3 = vld [vmem:[#allocation15_spill] sm:$0xff] }
  0xc8   : > { %v920_v2 = vadd.f32 %v912_v14, %v875_v0  ;;  %v926_v55 = vadd.f32 %v918_v11, %v881_v40  ;;  %v927_v58 = vadd.f32 %v919_v61, %v882_v39  ;;  %v931_v34 = vor.u32 %v8183_v28, %v8182_v22 }
  0xc9   : > { %v968_v30 = vor.u32 %v8185_v63, %v8184_v44  ;;  %v9524_v52 = vor.u32 %v8187_v50, %v8186_v49  ;;  %v9526_v29 = vor.u32 %v8189_v4, %v8188_v53  ;;  %v9528_v25 = vor.u32 %v8191_v54, %v8190_v59 }
  0xca   : > { %v933_v27 = vperm.slane %v931_v34, 0  ;;  %v934_v32 = vperm.slane %v931_v34, 1  ;;  %v935_v0 = vperm.slane %v931_v34, 2  ;;  %v936_v35 = vperm.slane %v931_v34, 3 }
  0xcb   : > { %v937_v36 = vperm.slane %v931_v34, 4  ;;  %v938_v33 = vperm.slane %v931_v34, 5  ;;  %v939_v24 = vperm.slane %v931_v34, 6  ;;  %v940_v56 = vperm.slane %v931_v34, 7 }
  0xcc   : > { %v949_v26 = vmul.f32 %v933_v27, %v15149_v3  ;;  %v950_v40 = vmul.f32 %v934_v32, %v15149_v3  ;;  %v951_v39 = vmul.f32 %v935_v0, %v15149_v3  ;;  %v952_v37 = vmul.f32 %v936_v35, %v15149_v3 }
  0xcd   : > { %v953_v22 = vmul.f32 %v937_v36, %v15149_v3  ;;  %v954_v28 = vmul.f32 %v938_v33, %v15149_v3  ;;  %v955_v15 = vmul.f32 %v939_v24, %v15149_v3  ;;  %v956_v42 = vmul.f32 %v940_v56, %v15149_v3 }
  0xce   : > { %v957_v23 = vadd.f32 %v949_v26, %v920_v2  ;;  %v958_v45 = vadd.f32 %v950_v40, %v921_v31  ;;  %v959_v14 = vadd.f32 %v951_v39, %v922_v9  ;;  %v960_v44 = vadd.f32 %v952_v37, %v923_v60 }
  0xcf   : > { %v961_v63 = vadd.f32 %v953_v22, %v924_v8  ;;  %v962_v49 = vadd.f32 %v954_v28, %v925_v7  ;;  %v963_v50 = vadd.f32 %v955_v15, %v926_v55  ;;  %v964_v5 = vadd.f32 %v956_v42, %v927_v58  ;;  %v15150_v22 = vld [vmem:[#allocation10_spill] sm:$0xff] }
  0xd0   : > { %v970_v51 = vperm.slane %v968_v30, 0  ;;  %v971_v1 = vperm.slane %v968_v30, 1  ;;  %v972_v46 = vperm.slane %v968_v30, 2  ;;  %v973_v53 = vperm.slane %v968_v30, 3 }
  0xd1   : > { %v974_v4 = vperm.slane %v968_v30, 4  ;;  %v975_v6 = vperm.slane %v968_v30, 5  ;;  %v976_v11 = vperm.slane %v968_v30, 6  ;;  %v977_v61 = vperm.slane %v968_v30, 7 }
  0xd2   : > { %v986_v59 = vmul.f32 %v970_v51, %v9328_v41  ;;  %v987_v54 = vmul.f32 %v971_v1, %v9328_v41  ;;  %v988_v2 = vmul.f32 %v972_v46, %v9328_v41  ;;  %v989_v31 = vmul.f32 %v973_v53, %v9328_v41 }
  0xd3   : > { %v990_v9 = vmul.f32 %v974_v4, %v9328_v41  ;;  %v991_v60 = vmul.f32 %v975_v6, %v9328_v41  ;;  %v992_v8 = vmul.f32 %v976_v11, %v9328_v41  ;;  %v993_v7 = vmul.f32 %v977_v61, %v9328_v41 }
  0xd4   : > { %v994_v55 = vadd.f32 %v986_v59, %v957_v23  ;;  %v995_v58 = vadd.f32 %v987_v54, %v958_v45  ;;  %v996_v34 = vadd.f32 %v988_v2, %v959_v14  ;;  %v997_v30 = vadd.f32 %v989_v31, %v960_v44 }
  0xd5   : > { %v998_v27 = vadd.f32 %v990_v9, %v961_v63  ;;  %v999_v32 = vadd.f32 %v991_v60, %v962_v49  ;;  %v1000_v0 = vadd.f32 %v992_v8, %v963_v50  ;;  %v1001_v35 = vadd.f32 %v993_v7, %v964_v5  ;;  %v15151_v9 = vld [vmem:[#allocation12_spill] sm:$0xff] }
  0xd6   : > { %v1007_v36 = vperm.slane %v9524_v52, 0  ;;  %v1008_v33 = vperm.slane %v9524_v52, 1  ;;  %v1009_v24 = vperm.slane %v9524_v52, 2  ;;  %v1010_v56 = vperm.slane %v9524_v52, 3 }
  0xd7   : > { %v1011_v26 = vperm.slane %v9524_v52, 4  ;;  %v1012_v40 = vperm.slane %v9524_v52, 5  ;;  %v1013_v39 = vperm.slane %v9524_v52, 6  ;;  %v1014_v37 = vperm.slane %v9524_v52, 7 }
  0xd8   : > { %v1023_v28 = vmul.f32 %v1007_v36, %v15150_v22  ;;  %v1024_v15 = vmul.f32 %v1008_v33, %v15150_v22  ;;  %v1025_v42 = vmul.f32 %v1009_v24, %v15150_v22  ;;  %v1026_v23 = vmul.f32 %v1010_v56, %v15150_v22 }
  0xd9   : > { %v1027_v45 = vmul.f32 %v1011_v26, %v15150_v22  ;;  %v1028_v14 = vmul.f32 %v1012_v40, %v15150_v22  ;;  %v1029_v44 = vmul.f32 %v1013_v39, %v15150_v22  ;;  %v1030_v63 = vmul.f32 %v1014_v37, %v15150_v22 }
  0xda   : > { %v1031_v49 = vadd.f32 %v1023_v28, %v994_v55  ;;  %v1032_v50 = vadd.f32 %v1024_v15, %v995_v58  ;;  %v1033_v5 = vadd.f32 %v1025_v42, %v996_v34  ;;  %v1034_v52 = vadd.f32 %v1026_v23, %v997_v30 }
  0xdb   : > { %v1035_v51 = vadd.f32 %v1027_v45, %v998_v27  ;;  %v1036_v1 = vadd.f32 %v1028_v14, %v999_v32  ;;  %v1037_v46 = vadd.f32 %v1029_v44, %v1000_v0  ;;  %v1038_v53 = vadd.f32 %v1030_v63, %v1001_v35 }
  0xdc   : > { %v1044_v4 = vperm.slane %v9526_v29, 0  ;;  %v1045_v6 = vperm.slane %v9526_v29, 1  ;;  %v1046_v11 = vperm.slane %v9526_v29, 2  ;;  %v1047_v61 = vperm.slane %v9526_v29, 3 }
  0xdd   : > { %v1048_v59 = vperm.slane %v9526_v29, 4  ;;  %v1049_v54 = vperm.slane %v9526_v29, 5  ;;  %v1050_v2 = vperm.slane %v9526_v29, 6  ;;  %v1051_v31 = vperm.slane %v9526_v29, 7 }
  0xde   : > { %v1060_v60 = vmul.f32 %v1044_v4, %v15151_v9  ;;  %v1061_v8 = vmul.f32 %v1045_v6, %v15151_v9  ;;  %v1062_v7 = vmul.f32 %v1046_v11, %v15151_v9  ;;  %v1063_v55 = vmul.f32 %v1047_v61, %v15151_v9  ;;  %v8194_v6 = vld [vmem:[%s9107_s20 + $0x140] ss:$8 sm:$0xf] }
  0xdf   : > { %v1064_v58 = vmul.f32 %v1048_v59, %v15151_v9  ;;  %v1065_v34 = vmul.f32 %v1049_v54, %v15151_v9  ;;  %v1066_v30 = vmul.f32 %v1050_v2, %v15151_v9  ;;  %v1067_v27 = vmul.f32 %v1051_v31, %v15151_v9  ;;  %v8195_v11 = vld [vmem:[%s9107_s20 + $0x140] ss:$8 sm:$0xf0] }
  0xe0   : > { %v1068_v32 = vadd.f32 %v1060_v60, %v1031_v49  ;;  %v1069_v0 = vadd.f32 %v1061_v8, %v1032_v50  ;;  %v1070_v35 = vadd.f32 %v1062_v7, %v1033_v5  ;;  %v1071_v29 = vadd.f32 %v1063_v55, %v1034_v52 }
  0xe1   : > { %v1072_v36 = vadd.f32 %v1064_v58, %v1035_v51  ;;  %v1073_v33 = vadd.f32 %v1065_v34, %v1036_v1  ;;  %v1074_v24 = vadd.f32 %v1066_v30, %v1037_v46  ;;  %v1075_v56 = vadd.f32 %v1067_v27, %v1038_v53  ;;  %v8192_v51 = vld [vmem:[%s9107_s20 + $0x47] ss:$8 sm:$0xf] }
  0xe2   : > { %v1081_v26 = vperm.slane %v9528_v25, 0  ;;  %v1082_v40 = vperm.slane %v9528_v25, 1  ;;  %v1083_v39 = vperm.slane %v9528_v25, 2  ;;  %v1084_v37 = vperm.slane %v9528_v25, 3 }
  0xe3   : > { %v1085_v28 = vperm.slane %v9528_v25, 4  ;;  %v1086_v15 = vperm.slane %v9528_v25, 5  ;;  %v1087_v42 = vperm.slane %v9528_v25, 6  ;;  %v1088_v23 = vperm.slane %v9528_v25, 7 }
  0xe4   : > { %v1097_v45 = vmul.f32 %v1081_v26, %v9372_v43  ;;  %v1098_v14 = vmul.f32 %v1082_v40, %v9372_v43  ;;  %v1099_v44 = vmul.f32 %v1083_v39, %v9372_v43  ;;  %v1100_v63 = vmul.f32 %v1084_v37, %v9372_v43  ;;  %v8193_v1 = vld [vmem:[%s9107_s20 + $0x47] ss:$8 sm:$0xf0] }
  0xe5   : > { %v1101_v49 = vmul.f32 %v1085_v28, %v9372_v43  ;;  %v1102_v50 = vmul.f32 %v1086_v15, %v9372_v43  ;;  %v1103_v5 = vmul.f32 %v1087_v42, %v9372_v43  ;;  %v1104_v52 = vmul.f32 %v1088_v23, %v9372_v43 }
  0xe6   : > { %v9598_v25 = vadd.f32 %v9446_v47, %v9483_v38  ;;  %v9602_v46 = vadd.f32 %v9446_v47, %v9485_v16  ;;  %v9606_v53 = vadd.f32 %v9446_v47, %v9487_v17  ;;  %v9610_v4 = vadd.f32 %v9446_v47, %v9489_v18 }
  0xe7   : > { %v823_v61 = vmax.f32 %v9492_v19, 0.0  ;;  %v824_v59 = vmax.f32 %v9495_v20, 0.0  ;;  %v1105_v38 = vadd.f32 %v1097_v45, %v1068_v32  ;;  %v1106_v54 = vadd.f32 %v1098_v14, %v1069_v0 }
  0xe8   : > { %v1107_v2 = vadd.f32 %v1099_v44, %v1070_v35  ;;  %v1108_v31 = vadd.f32 %v1100_v63, %v1071_v29  ;;  %v1109_v16 = vadd.f32 %v1101_v49, %v1072_v36  ;;  %v1116_v60 = vor.u32 %v8193_v1, %v8192_v51  ;;  %v9624_v1 = vpop.permute.xlu2 %831 }
  0xe9   : > { %v1110_v8 = vadd.f32 %v1102_v50, %v1073_v33  ;;  %v1111_v7 = vadd.f32 %v1103_v5, %v1074_v24  ;;  %v1112_v17 = vadd.f32 %v1104_v52, %v1075_v56  ;;  %v1153_v55 = vor.u32 %v8195_v11, %v8194_v6 }
  0xea   : > { %v1118_v58 = vperm.slane %v1116_v60, 0  ;;  %v1119_v34 = vperm.slane %v1116_v60, 1  ;;  %v1120_v18 = vperm.slane %v1116_v60, 2  ;;  %v1121_v30 = vperm.slane %v1116_v60, 3 }
  0xeb   : > { %v1122_v27 = vperm.slane %v1116_v60, 4  ;;  %v1123_v26 = vperm.slane %v1116_v60, 5  ;;  %v1124_v40 = vperm.slane %v1116_v60, 6  ;;  %v1125_v19 = vperm.slane %v1116_v60, 7 }
  0xec   : > { %v1134_v20 = vmul.f32 %v1118_v58, %v9244_v62  ;;  %v1135_v32 = vmul.f32 %v1119_v34, %v9244_v62  ;;  %v1136_v0 = vmul.f32 %v1120_v18, %v9244_v62  ;;  %v1137_v35 = vmul.f32 %v1121_v30, %v9244_v62 }
  0xed   : > { %v1138_v29 = vmul.f32 %v1122_v27, %v9244_v62  ;;  %v1139_v36 = vmul.f32 %v1123_v26, %v9244_v62  ;;  %v1140_v33 = vmul.f32 %v1124_v40, %v9244_v62  ;;  %v1141_v24 = vmul.f32 %v1125_v19, %v9244_v62  ;;  %v9642_v27 = vpop.permute.xlu1 %843 }
  0xee   : > { %v1142_v56 = vadd.f32 %v1134_v20, %v1105_v38  ;;  %v1143_v39 = vadd.f32 %v1135_v32, %v1106_v54  ;;  %v1144_v37 = vadd.f32 %v1136_v0, %v1107_v2  ;;  %v1145_v28 = vadd.f32 %v1137_v35, %v1108_v31 }
  0xef   : > { %v1146_v15 = vadd.f32 %v1138_v29, %v1109_v16  ;;  %v1147_v42 = vadd.f32 %v1139_v36, %v1110_v8  ;;  %v1148_v23 = vadd.f32 %v1140_v33, %v1111_v7  ;;  %v1149_v45 = vadd.f32 %v1141_v24, %v1112_v17  ;;  %v8196_v29 = vld [vmem:[%s9107_s20 + $0x80] ss:$8 sm:$0xf] }
  0xf0   : > { %v1155_v14 = vperm.slane %v1153_v55, 0  ;;  %v1156_v44 = vperm.slane %v1153_v55, 1  ;;  %v1157_v63 = vperm.slane %v1153_v55, 2  ;;  %v1158_v49 = vperm.slane %v1153_v55, 3 }
  0xf1   : > { %v1159_v50 = vperm.slane %v1153_v55, 4  ;;  %v1160_v5 = vperm.slane %v1153_v55, 5  ;;  %v1161_v52 = vperm.slane %v1153_v55, 6  ;;  %v1162_v51 = vperm.slane %v1153_v55, 7 }
  0xf2   : > { %v1171_v6 = vmul.f32 %v1155_v14, %v9416_v13  ;;  %v1172_v11 = vmul.f32 %v1156_v44, %v9416_v13  ;;  %v1173_v38 = vmul.f32 %v1157_v63, %v9416_v13  ;;  %v1174_v54 = vmul.f32 %v1158_v49, %v9416_v13  ;;  %v8197_v36 = vld [vmem:[%s9107_s20 + $0x80] ss:$8 sm:$0xf0]  ;;  %v8198_v14 = vld [vmem:[%s9107_s20 + $0x81] ss:$8 sm:$0xf] }
  0xf3   : > { %v1175_v2 = vmul.f32 %v1159_v50, %v9416_v13  ;;  %v1176_v31 = vmul.f32 %v1160_v5, %v9416_v13  ;;  %v1177_v16 = vmul.f32 %v1161_v52, %v9416_v13  ;;  %v1178_v60 = vmul.f32 %v1162_v51, %v9416_v13  ;;  %v8199_v44 = vld [vmem:[%s9107_s20 + $0x81] ss:$8 sm:$0xf0] }
  0xf4   : > { %v825_v8 = vmax.f32 %v9498_v21, 0.0  ;;  %v826_v7 = vmax.f32 %v9598_v25, 0.0  ;;  %v827_v17 = vmax.f32 %v9602_v46, 0.0  ;;  %v828_v55 = vmax.f32 %v9606_v53, 0.0 }
  0xf5   : > { %v829_v58 = vmax.f32 %v9610_v4, 0.0  ;;  %v834_v34 = vmul.f32 %v9624_v1, %v822_v10  ;;  %v1179_v18 = vadd.f32 %v1171_v6, %v1142_v56  ;;  %v1180_v30 = vadd.f32 %v1172_v11, %v1143_v39 }
  0xf6   : > { %v835_v26 = vmul.f32 %v9624_v1, %v823_v61  ;;  %v836_v21 = vmul.f32 %v9624_v1, %v824_v59  ;;  %v1181_v25 = vadd.f32 %v1173_v38, %v1144_v37  ;;  %v1182_v46 = vadd.f32 %v1174_v54, %v1145_v28  ;;  %v8200_v37 = vld [vmem:[%s9107_s20 + $0x82] ss:$8 sm:$0xf]  ;;  %v8212_v54 = vld [vmem:[%s9107_s20 + $0x180] ss:$8 sm:$0xf] }
  0xf7   : > { %v1183_v40 = vadd.f32 %v1175_v2, %v1146_v15  ;;  %v1184_v53 = vadd.f32 %v1176_v31, %v1147_v42  ;;  %v1185_v19 = vadd.f32 %v1177_v16, %v1148_v23  ;;  %v1186_v4 = vadd.f32 %v1178_v60, %v1149_v45  ;;  %v8201_v28 = vld [vmem:[%s9107_s20 + $0x82] ss:$8 sm:$0xf0]  ;;  %v8213_v38 = vld [vmem:[%s9107_s20 + $0x180] ss:$8 sm:$0xf0] }
  0xf8   : > { %v837_v57 = vmul.f32 %v9624_v1, %v825_v8  ;;  %v838_v10 = vmul.f32 %v9624_v1, %v826_v7  ;;  %v839_v20 = vmul.f32 %v9624_v1, %v827_v17  ;;  %v840_v61 = vmul.f32 %v9624_v1, %v828_v55  ;;  %v8209_v7 = vld [vmem:[%s9107_s20 + $0x86] ss:$8 sm:$0xf0] }
  0xf9   : > { %v841_v32 = vmul.f32 %v9624_v1, %v829_v58  ;;  %v9652_v59 = vadd.f32 %v9642_v27, %v834_v34  ;;  %v1187_v0 = vadd.f32 %v1179_v18, %v9446_v47  ;;  %v1188_v35 = vadd.f32 %v1180_v30, %v9446_v47 }
  0xfa   : > { %v9659_v33 = vadd.f32 %v9642_v27, %v835_v26  ;;  %v9662_v24 = vadd.f32 %v9642_v27, %v836_v21  ;;  %v9665_v56 = vadd.f32 %v1181_v25, %v9446_v47  ;;  %v9668_v39 = vadd.f32 %v1182_v46, %v9446_v47 }
  0xfb   : > { %v9673_v15 = vadd.f32 %v1183_v40, %v9446_v47  ;;  %v9676_v42 = vadd.f32 %v1184_v53, %v9446_v47  ;;  %v9679_v23 = vadd.f32 %v1185_v19, %v9446_v47  ;;  %v9682_v45 = vadd.f32 %v1186_v4, %v9446_v47 }
  0xfc   : > { %v9687_v63 = vadd.f32 %v9642_v27, %v837_v57  ;;  %v9690_v49 = vadd.f32 %v9642_v27, %v838_v10  ;;  %v9693_v50 = vadd.f32 %v9642_v27, %v839_v20  ;;  %v1230_v5 = vor.u32 %v8197_v36, %v8196_v29 }
  0xfd   : > { %v9696_v52 = vadd.f32 %v9642_v27, %v840_v61  ;;  %v9699_v51 = vadd.f32 %v9642_v27, %v841_v32  ;;  %v1195_v6 = vmax.f32 %v1187_v0, 0.0  ;;  %v1196_v11 = vmax.f32 %v1188_v35, 0.0 }
  0xfe   : > { %15152 = vst [vmem:[#allocation16_spill] sm:$0xff] %v9687_v63  ;;  %v1267_v2 = vor.u32 %v8199_v44, %v8198_v14  ;;  %v9703_v31 = vor.u32 %v8201_v28, %v8200_v37  ;;  %v1232_v17 = vperm.slane %v1230_v5, 0  ;;  %v1233_v55 = vperm.slane %v1230_v5, 1 }
  0xff   : > { %15153 = vst [vmem:[#allocation17_spill] sm:$0xff] %v9690_v49  ;;  %v1234_v58 = vperm.slane %v1230_v5, 2  ;;  %v1235_v34 = vperm.slane %v1230_v5, 3  ;;  %v9710_v18 = vmul.f32 %v1195_v6, %v9624_v1  ;;  %v9713_v30 = vmul.f32 %v1196_v11, %v9624_v1 }
 0x100   : > { %15154 = vst [vmem:[#allocation11_spill] sm:$0xff] %v9693_v50  ;;  %v1236_v26 = vperm.slane %v1230_v5, 4  ;;  %v1237_v21 = vperm.slane %v1230_v5, 5  ;;  %v1238_v25 = vperm.slane %v1230_v5, 6  ;;  %v1239_v46 = vperm.slane %v1230_v5, 7 }
 0x101   : > { %15155 = vst [vmem:[#allocation13_spill] sm:$0xff] %v9696_v52  ;;  %v1248_v40 = vmul.f32 %v1232_v17, %v15137_v48  ;;  %v1249_v53 = vmul.f32 %v1233_v55, %v15137_v48  ;;  %v1250_v19 = vmul.f32 %v1234_v58, %v15137_v48  ;;  %v1251_v4 = vmul.f32 %v1235_v34, %v15137_v48 }
 0x102   : > { %15156 = vst [vmem:[#allocation15_spill] sm:$0xff] %v9699_v51  ;;  %v1252_v57 = vmul.f32 %v1236_v26, %v15137_v48  ;;  %v1253_v10 = vmul.f32 %v1237_v21, %v15137_v48  ;;  %v1269_v20 = vperm.slane %v1267_v2, 0  ;;  %v1270_v61 = vperm.slane %v1267_v2, 1 }
 0x103   : > { %v1271_v32 = vperm.slane %v1267_v2, 2  ;;  %v1272_v0 = vperm.slane %v1267_v2, 3  ;;  %v1273_v35 = vperm.slane %v1267_v2, 4  ;;  %v1274_v29 = vperm.slane %v1267_v2, 5 }
 0x104   : > { %v1275_v36 = vperm.slane %v1267_v2, 6  ;;  %v1276_v37 = vperm.slane %v1267_v2, 7  ;;  %v1285_v28 = vmul.f32 %v1269_v20, %v9302_v12  ;;  %v1286_v14 = vmul.f32 %v1270_v61, %v9302_v12 }
 0x105   : > { %v1287_v44 = vmul.f32 %v1271_v32, %v9302_v12  ;;  %v1288_v5 = vmul.f32 %v1272_v0, %v9302_v12  ;;  %v1254_v6 = vmul.f32 %v1238_v25, %v15137_v48  ;;  %v1255_v11 = vmul.f32 %v1239_v46, %v15137_v48 }
 0x106   : > { %v1289_v17 = vmul.f32 %v1273_v35, %v9302_v12  ;;  %v1290_v55 = vmul.f32 %v1274_v29, %v9302_v12  ;;  %v1291_v58 = vmul.f32 %v1275_v36, %v9302_v12  ;;  %v1292_v2 = vmul.f32 %v1276_v37, %v9302_v12  ;;  %v8204_v29 = vld [vmem:[%s9107_s20 + $0x84] ss:$8 sm:$0xf] }
 0x107   : > { %v1293_v34 = vadd.f32 %v1285_v28, %v1248_v40  ;;  %v1294_v26 = vadd.f32 %v1286_v14, %v1249_v53  ;;  %v1295_v21 = vadd.f32 %v1287_v44, %v1250_v19  ;;  %v1296_v20 = vadd.f32 %v1288_v5, %v1251_v4  ;;  %v8205_v36 = vld [vmem:[%s9107_s20 + $0x84] ss:$8 sm:$0xf0]  ;;  %v8206_v5 = vld [vmem:[%s9107_s20 + $0x85] ss:$8 sm:$0xf] }
 0x108   : > { %v1297_v61 = vadd.f32 %v1289_v17, %v1252_v57  ;;  %v1298_v25 = vadd.f32 %v1290_v55, %v1253_v10  ;;  %v1306_v46 = vperm.slane %v9703_v31, 0  ;;  %v1307_v32 = vperm.slane %v9703_v31, 1  ;;  %v8202_v57 = vld [vmem:[%s9107_s20 + $0x83] ss:$8 sm:$0xf] }
 0x109   : > { %v1308_v0 = vperm.slane %v9703_v31, 2  ;;  %v1309_v35 = vperm.slane %v9703_v31, 3  ;;  %v1310_v40 = vperm.slane %v9703_v31, 4  ;;  %v1311_v53 = vperm.slane %v9703_v31, 5 }
 0x10a   : > { %v1312_v19 = vperm.slane %v9703_v31, 6  ;;  %v1313_v4 = vperm.slane %v9703_v31, 7  ;;  %v8203_v10 = vld [vmem:[%s9107_s20 + $0x83] ss:$8 sm:$0xf0]  ;;  %v1299_v37 = vadd.f32 %v1291_v58, %v1254_v6  ;;  %v1300_v28 = vadd.f32 %v1292_v2, %v1255_v11 }
 0x10b   : > { %v1322_v14 = vmul.f32 %v1306_v46, %v15149_v3  ;;  %v1323_v44 = vmul.f32 %v1307_v32, %v15149_v3  ;;  %v8207_v17 = vld [vmem:[%s9107_s20 + $0x85] ss:$8 sm:$0xf0]  ;;  %v8208_v55 = vld [vmem:[%s9107_s20 + $0x86] ss:$8 sm:$0xf]  ;;  %v1324_v31 = vmul.f32 %v1308_v0, %v15149_v3  ;;  %v1325_v8 = vmul.f32 %v1309_v35, %v15149_v3 }
 0x10c   : > { %v1326_v60 = vmul.f32 %v1310_v40, %v15149_v3  ;;  %v1327_v16 = vmul.f32 %v1311_v53, %v15149_v3  ;;  %v8210_v6 = vld [vmem:[%s9107_s20 + $0x87] ss:$8 sm:$0xf]  ;;  %v1328_v58 = vmul.f32 %v1312_v19, %v15149_v3  ;;  %v1329_v2 = vmul.f32 %v1313_v4, %v15149_v3 }
 0x10d   : > { %v8211_v11 = vld [vmem:[%s9107_s20 + $0x87] ss:$8 sm:$0xf0]  ;;  %v1330_v46 = vadd.f32 %v1322_v14, %v1293_v34  ;;  %v1331_v32 = vadd.f32 %v1323_v44, %v1294_v26  ;;  %v1332_v12 = vadd.f32 %v1324_v31, %v1295_v21  ;;  %v1333_v48 = vadd.f32 %v1325_v8, %v1296_v20 }
 0x10e   : > { %v1334_v51 = vadd.f32 %v1326_v60, %v1297_v61  ;;  %v1335_v0 = vadd.f32 %v1327_v16, %v1298_v25  ;;  %v1336_v52 = vadd.f32 %v1328_v58, %v1299_v37  ;;  %v1337_v35 = vadd.f32 %v1329_v2, %v1300_v28 }
 0x10f   : > { %v1341_v50 = vor.u32 %v8203_v10, %v8202_v57  ;;  %v1378_v40 = vor.u32 %v8205_v36, %v8204_v29  ;;  %v9759_v49 = vor.u32 %v8207_v17, %v8206_v5  ;;  %v9761_v53 = vor.u32 %v8209_v7, %v8208_v55 }
 0x110   : > { %v9763_v63 = vor.u32 %v8211_v11, %v8210_v6  ;;  %v9765_v19 = vor.u32 %v8213_v38, %v8212_v54 }
 0x111   : > { %v1343_v34 = vperm.slane %v1341_v50, 0  ;;  %v1344_v26 = vperm.slane %v1341_v50, 1  ;;  %v1345_v4 = vperm.slane %v1341_v50, 2  ;;  %v1346_v14 = vperm.slane %v1341_v50, 3 }
 0x112   : > { %v1347_v21 = vperm.slane %v1341_v50, 4  ;;  %v1348_v8 = vperm.slane %v1341_v50, 5  ;;  %v1349_v60 = vperm.slane %v1341_v50, 6  ;;  %v1350_v16 = vperm.slane %v1341_v50, 7 }
 0x113   : > { %v1359_v20 = vmul.f32 %v1343_v34, %v9328_v41  ;;  %v1360_v61 = vmul.f32 %v1344_v26, %v9328_v41  ;;  %v1361_v25 = vmul.f32 %v1345_v4, %v9328_v41  ;;  %v1362_v7 = vmul.f32 %v1346_v14, %v9328_v41 }
 0x114   : > { %v1363_v57 = vmul.f32 %v1347_v21, %v9328_v41  ;;  %v1364_v38 = vmul.f32 %v1348_v8, %v9328_v41  ;;  %v1365_v54 = vmul.f32 %v1349_v60, %v9328_v41  ;;  %v1366_v10 = vmul.f32 %v1350_v16, %v9328_v41 }
 0x115   : > { %v1367_v29 = vadd.f32 %v1359_v20, %v1330_v46  ;;  %v1368_v36 = vadd.f32 %v1360_v61, %v1331_v32  ;;  %v1369_v37 = vadd.f32 %v1361_v25, %v1332_v12  ;;  %v1370_v50 = vadd.f32 %v1362_v7, %v1333_v48 }
 0x116   : > { %v1371_v28 = vadd.f32 %v1363_v57, %v1334_v51  ;;  %v1372_v44 = vadd.f32 %v1364_v38, %v1335_v0  ;;  %v1373_v5 = vadd.f32 %v1365_v54, %v1336_v52  ;;  %v1374_v17 = vadd.f32 %v1366_v10, %v1337_v35 }
 0x117   : > { %v1380_v55 = vperm.slane %v1378_v40, 0  ;;  %v1381_v31 = vperm.slane %v1378_v40, 1  ;;  %v1382_v6 = vperm.slane %v1378_v40, 2  ;;  %v1383_v11 = vperm.slane %v1378_v40, 3 }
 0x118   : > { %v1384_v58 = vperm.slane %v1378_v40, 4  ;;  %v1385_v2 = vperm.slane %v1378_v40, 5  ;;  %v1386_v34 = vperm.slane %v1378_v40, 6  ;;  %v1387_v26 = vperm.slane %v1378_v40, 7 }
 0x119   : > { %v1396_v4 = vmul.f32 %v1380_v55, %v15150_v22  ;;  %v1397_v14 = vmul.f32 %v1381_v31, %v15150_v22  ;;  %v1398_v46 = vmul.f32 %v1382_v6, %v15150_v22  ;;  %v1399_v12 = vmul.f32 %v1383_v11, %v15150_v22 }
 0x11a   : > { %v1400_v48 = vmul.f32 %v1384_v58, %v15150_v22  ;;  %v1401_v52 = vmul.f32 %v1385_v2, %v15150_v22  ;;  %v1402_v51 = vmul.f32 %v1386_v34, %v15150_v22  ;;  %v1403_v32 = vmul.f32 %v1387_v26, %v15150_v22 }
 0x11b   : > { %v1404_v0 = vadd.f32 %v1396_v4, %v1367_v29  ;;  %v1405_v35 = vadd.f32 %v1397_v14, %v1368_v36  ;;  %v1406_v21 = vadd.f32 %v1398_v46, %v1369_v37  ;;  %v1407_v40 = vadd.f32 %v1399_v12, %v1370_v50 }
 0x11c   : > { %v1408_v8 = vadd.f32 %v1400_v48, %v1371_v28  ;;  %v1409_v60 = vadd.f32 %v1401_v52, %v1372_v44  ;;  %v1410_v16 = vadd.f32 %v1402_v51, %v1373_v5  ;;  %v1411_v20 = vadd.f32 %v1403_v32, %v1374_v17 }
 0x11d   : > { %v1417_v61 = vperm.slane %v9759_v49, 0  ;;  %v1418_v25 = vperm.slane %v9759_v49, 1  ;;  %v1419_v7 = vperm.slane %v9759_v49, 2  ;;  %v1420_v57 = vperm.slane %v9759_v49, 3 }
 0x11e   : > { %v1421_v38 = vperm.slane %v9759_v49, 4  ;;  %v1422_v54 = vperm.slane %v9759_v49, 5  ;;  %v1423_v10 = vperm.slane %v9759_v49, 6  ;;  %v1424_v29 = vperm.slane %v9759_v49, 7 }
 0x11f   : > { %v1433_v36 = vmul.f32 %v1417_v61, %v15151_v9  ;;  %v1434_v37 = vmul.f32 %v1418_v25, %v15151_v9  ;;  %v1435_v50 = vmul.f32 %v1419_v7, %v15151_v9  ;;  %v1436_v28 = vmul.f32 %v1420_v57, %v15151_v9 }
 0x120   : > { %v1437_v44 = vmul.f32 %v1421_v38, %v15151_v9  ;;  %v1438_v5 = vmul.f32 %v1422_v54, %v15151_v9  ;;  %v1439_v17 = vmul.f32 %v1423_v10, %v15151_v9  ;;  %v1440_v55 = vmul.f32 %v1424_v29, %v15151_v9 }
 0x121   : > { %v1441_v31 = vadd.f32 %v1433_v36, %v1404_v0  ;;  %v1442_v6 = vadd.f32 %v1434_v37, %v1405_v35  ;;  %v1443_v11 = vadd.f32 %v1435_v50, %v1406_v21  ;;  %v1444_v49 = vadd.f32 %v1436_v28, %v1407_v40 }
 0x122   : > { %v1445_v58 = vadd.f32 %v1437_v44, %v1408_v8  ;;  %v1446_v2 = vadd.f32 %v1438_v5, %v1409_v60  ;;  %v1447_v34 = vadd.f32 %v1439_v17, %v1410_v16  ;;  %v1448_v26 = vadd.f32 %v1440_v55, %v1411_v20 }
 0x123   : > { %v1454_v4 = vperm.slane %v9761_v53, 0  ;;  %v1455_v14 = vperm.slane %v9761_v53, 1  ;;  %v1456_v46 = vperm.slane %v9761_v53, 2  ;;  %v1457_v12 = vperm.slane %v9761_v53, 3 }
 0x124   : > { %v1458_v48 = vperm.slane %v9761_v53, 4  ;;  %v1459_v52 = vperm.slane %v9761_v53, 5  ;;  %v1460_v51 = vperm.slane %v9761_v53, 6  ;;  %v1461_v32 = vperm.slane %v9761_v53, 7 }
 0x125   : > { %v1470_v0 = vmul.f32 %v1454_v4, %v9372_v43  ;;  %v1471_v35 = vmul.f32 %v1455_v14, %v9372_v43  ;;  %v1472_v21 = vmul.f32 %v1456_v46, %v9372_v43  ;;  %v1473_v40 = vmul.f32 %v1457_v12, %v9372_v43 }
 0x126   : > { %v1474_v8 = vmul.f32 %v1458_v48, %v9372_v43  ;;  %v1475_v60 = vmul.f32 %v1459_v52, %v9372_v43  ;;  %v1476_v16 = vmul.f32 %v1460_v51, %v9372_v43  ;;  %v1477_v20 = vmul.f32 %v1461_v32, %v9372_v43 }
 0x127   : > { %v1478_v61 = vadd.f32 %v1470_v0, %v1441_v31  ;;  %v1479_v25 = vadd.f32 %v1471_v35, %v1442_v6  ;;  %v1480_v7 = vadd.f32 %v1472_v21, %v1443_v11  ;;  %v1481_v53 = vadd.f32 %v1473_v40, %v1444_v49 }
 0x128   : > { %v1482_v57 = vadd.f32 %v1474_v8, %v1445_v58  ;;  %v1483_v38 = vadd.f32 %v1475_v60, %v1446_v2  ;;  %v1484_v54 = vadd.f32 %v1476_v16, %v1447_v34  ;;  %v1485_v10 = vadd.f32 %v1477_v20, %v1448_v26 }
 0x129   : > { %v1491_v29 = vperm.slane %v9763_v63, 0  ;;  %v1492_v36 = vperm.slane %v9763_v63, 1  ;;  %v1493_v37 = vperm.slane %v9763_v63, 2  ;;  %v1494_v50 = vperm.slane %v9763_v63, 3 }
 0x12a   : > { %v1495_v28 = vperm.slane %v9763_v63, 4  ;;  %v1496_v44 = vperm.slane %v9763_v63, 5  ;;  %v1497_v5 = vperm.slane %v9763_v63, 6  ;;  %v1498_v17 = vperm.slane %v9763_v63, 7 }
 0x12b   : > { %v1507_v55 = vmul.f32 %v1491_v29, %v9244_v62  ;;  %v1508_v31 = vmul.f32 %v1492_v36, %v9244_v62  ;;  %v1509_v6 = vmul.f32 %v1493_v37, %v9244_v62  ;;  %v1510_v11 = vmul.f32 %v1494_v50, %v9244_v62 }
 0x12c   : > { %v1511_v49 = vmul.f32 %v1495_v28, %v9244_v62  ;;  %v1512_v58 = vmul.f32 %v1496_v44, %v9244_v62  ;;  %v1513_v2 = vmul.f32 %v1497_v5, %v9244_v62  ;;  %v1514_v34 = vmul.f32 %v1498_v17, %v9244_v62 }
 0x12d   : > { %v1515_v26 = vadd.f32 %v1507_v55, %v1478_v61  ;;  %v1516_v4 = vadd.f32 %v1508_v31, %v1479_v25  ;;  %v1517_v14 = vadd.f32 %v1509_v6, %v1480_v7  ;;  %v1518_v63 = vadd.f32 %v1510_v11, %v1481_v53 }
 0x12e   : > { %v1519_v46 = vadd.f32 %v1511_v49, %v1482_v57  ;;  %v1520_v12 = vadd.f32 %v1512_v58, %v1483_v38  ;;  %v1521_v48 = vadd.f32 %v1513_v2, %v1484_v54  ;;  %v1522_v52 = vadd.f32 %v1514_v34, %v1485_v10 }
 0x12f   : > { %v1528_v51 = vperm.slane %v9765_v19, 0  ;;  %v1529_v32 = vperm.slane %v9765_v19, 1  ;;  %v1530_v0 = vperm.slane %v9765_v19, 2  ;;  %v1531_v35 = vperm.slane %v9765_v19, 3 }
 0x130   : > { %v1532_v21 = vperm.slane %v9765_v19, 4  ;;  %v1533_v40 = vperm.slane %v9765_v19, 5  ;;  %v1534_v8 = vperm.slane %v9765_v19, 6  ;;  %v1535_v60 = vperm.slane %v9765_v19, 7 }
 0x131   : > { %v1544_v16 = vmul.f32 %v1528_v51, %v9416_v13  ;;  %v1545_v20 = vmul.f32 %v1529_v32, %v9416_v13  ;;  %v1546_v61 = vmul.f32 %v1530_v0, %v9416_v13  ;;  %v1547_v25 = vmul.f32 %v1531_v35, %v9416_v13 }
 0x132   : > { %v1548_v7 = vmul.f32 %v1532_v21, %v9416_v13  ;;  %v1549_v53 = vmul.f32 %v1533_v40, %v9416_v13  ;;  %v1550_v57 = vmul.f32 %v1534_v8, %v9416_v13  ;;  %v1551_v38 = vmul.f32 %v1535_v60, %v9416_v13  ;;  %v15169_v60 = vld [vmem:[#allocation16_spill] sm:$0xff] }
 0x133   : > { %v15157_v54 = vmax.f32 %v9665_v56, 0.0  ;;  %v15158_v10 = vmax.f32 %v9668_v39, 0.0  ;;  %v15159_v36 = vmax.f32 %v9673_v15, 0.0  ;;  %v1552_v50 = vadd.f32 %v1544_v16, %v1515_v26  ;;  %v8226_v40 = vld [vmem:[%s9107_s20 + $0xc6] ss:$8 sm:$0xf] }
 0x134   : > { %v15160_v28 = vmax.f32 %v9676_v42, 0.0  ;;  %v15161_v5 = vmax.f32 %v9679_v23, 0.0  ;;  %v15162_v56 = vmax.f32 %v9682_v45, 0.0  ;;  %v9867_v39 = vadd.f32 %v9710_v18, %v9642_v27 }
 0x135   : > { %v1205_v19 = vmul.f32 %v15157_v54, %v9624_v1  ;;  %v1206_v29 = vmul.f32 %v15158_v10, %v9624_v1  ;;  %v1207_v37 = vmul.f32 %v15159_v36, %v9624_v1  ;;  %v1553_v31 = vadd.f32 %v1545_v20, %v1516_v4 }
 0x136   : > { %v1208_v44 = vmul.f32 %v15160_v28, %v9624_v1  ;;  %v1209_v17 = vmul.f32 %v15161_v5, %v9624_v1  ;;  %v1210_v55 = vmul.f32 %v15162_v56, %v9624_v1  ;;  %v1554_v15 = vadd.f32 %v1546_v61, %v1517_v14  ;;  %v8217_v56 = vld [vmem:[%s9107_s20 + $0xc1] ss:$8 sm:$0xf0] }
 0x137   : > { %v1555_v6 = vadd.f32 %v1547_v25, %v1518_v63  ;;  %v1556_v11 = vadd.f32 %v1548_v7, %v1519_v46  ;;  %v1557_v42 = vadd.f32 %v1549_v53, %v1520_v12  ;;  %v1558_v49 = vadd.f32 %v1550_v57, %v1521_v48  ;;  %v8214_v63 = vld [vmem:[%s9107_s20 + $0xc0] ss:$8 sm:$0xf] }
 0x138   : > { %v1559_v58 = vadd.f32 %v1551_v38, %v1522_v52  ;;  %v1560_v23 = vadd.f32 %v1552_v50, %v9446_v47  ;;  %v9872_v2 = vadd.f32 %v9713_v30, %v9642_v27  ;;  %v9875_v45 = vadd.f32 %v1205_v19, %v9642_v27  ;;  %v8215_v46 = vld [vmem:[%s9107_s20 + $0xc0] ss:$8 sm:$0xf0]  ;;  %v8227_v30 = vld [vmem:[%s9107_s20 + $0xc6] ss:$8 sm:$0xf0] }
 0x139   : > { %v9878_v18 = vadd.f32 %v1206_v29, %v9642_v27  ;;  %v9881_v34 = vadd.f32 %v1207_v37, %v9642_v27  ;;  %v9884_v26 = vadd.f32 %v1208_v44, %v9642_v27  ;;  %v9887_v4 = vadd.f32 %v1209_v17, %v9642_v27  ;;  %v8216_v17 = vld [vmem:[%s9107_s20 + $0xc1] ss:$8 sm:$0xf] }
 0x13a   : > { %v9890_v14 = vadd.f32 %v1210_v55, %v9642_v27  ;;  %v1561_v12 = vadd.f32 %v1553_v31, %v9446_v47  ;;  %v1562_v48 = vadd.f32 %v1554_v15, %v9446_v47  ;;  %v9899_v52 = vadd.f32 %v1555_v6, %v9446_v47  ;;  %v8218_v55 = vld [vmem:[%s9107_s20 + $0xc2] ss:$8 sm:$0xf] }
 0x13b   : > { %15163 = vst [vmem:[#allocation10_spill] sm:$0xff] %v9878_v18  ;;  %v9902_v51 = vadd.f32 %v1556_v11, %v9446_v47  ;;  %v9905_v32 = vadd.f32 %v1557_v42, %v9446_v47  ;;  %v9908_v0 = vadd.f32 %v1558_v49, %v9446_v47  ;;  %v9911_v35 = vadd.f32 %v1559_v58, %v9446_v47  ;;  %v8219_v31 = vld [vmem:[%s9107_s20 + $0xc2] ss:$8 sm:$0xf0] }
 0x13c   : > { %15164 = vst [vmem:[#allocation12_spill] sm:$0xff] %v9881_v34  ;;  %v1568_v21 = vmax.f32 %v1560_v23, 0.0  ;;  %v1603_v20 = vor.u32 %v8215_v46, %v8214_v63  ;;  %v1569_v10 = vmax.f32 %v1561_v12, 0.0  ;;  %v1570_v29 = vmax.f32 %v1562_v48, 0.0  ;;  %v15174_v44 = vld [vmem:[#allocation14_spill] sm:$0xff] }
 0x13d   : > { %15165 = vst [vmem:[#allocation19_spill] sm:$0xff] %v9884_v26  ;;  %v8220_v49 = vld [vmem:[%s9107_s20 + $0xc3] ss:$8 sm:$0xf]  ;;  %v1677_v26 = vor.u32 %v8219_v31, %v8218_v55  ;;  %v9967_v34 = vor.u32 %v8227_v30, %v8226_v40 }
 0x13e   : > { %15166 = vst [vmem:[#allocation20_spill] sm:$0xff] %v9887_v4  ;;  %v9933_v5 = vmul.f32 %v1568_v21, %v9624_v1  ;;  %v1605_v15 = vperm.slane %v1603_v20, 0  ;;  %v1606_v6 = vperm.slane %v1603_v20, 1  ;;  %v1607_v11 = vperm.slane %v1603_v20, 2  ;;  %v15175_v4 = vld [vmem:[#allocation18_spill] sm:$0xff] }
 0x13f   : > { %15167 = vst [vmem:[#allocation21_spill] sm:$0xff] %v9890_v14  ;;  %v1608_v42 = vperm.slane %v1603_v20, 3  ;;  %v8221_v58 = vld [vmem:[%s9107_s20 + $0xc3] ss:$8 sm:$0xf0]  ;;  %v1609_v48 = vperm.slane %v1603_v20, 4  ;;  %v9946_v19 = vmul.f32 %v1569_v10, %v9624_v1  ;;  %v9949_v38 = vmul.f32 %v1570_v29, %v9624_v1 }
 0x140   : > { %15168 = vst [vmem:[#allocation22_spill] sm:$0xff] %v9911_v35  ;;  %v8222_v23 = vld [vmem:[%s9107_s20 + $0xc4] ss:$8 sm:$0xf]  ;;  %v1610_v53 = vperm.slane %v1603_v20, 5  ;;  %v1611_v21 = vperm.slane %v1603_v20, 6  ;;  %v1621_v16 = vmul.f32 %v1605_v15, %v15174_v44  ;;  %v1622_v8 = vmul.f32 %v1606_v6, %v15174_v44 }
 0x141   : > { %v8223_v63 = vld [vmem:[%s9107_s20 + $0xc4] ss:$8 sm:$0xf0]  ;;  %v8224_v46 = vld [vmem:[%s9107_s20 + $0xc5] ss:$8 sm:$0xf]  ;;  %v1623_v28 = vmul.f32 %v1607_v11, %v15174_v44  ;;  %v1624_v50 = vmul.f32 %v1608_v42, %v15174_v44  ;;  %v1625_v37 = vmul.f32 %v1609_v48, %v15174_v44  ;;  %v1640_v29 = vor.u32 %v8217_v56, %v8216_v17 }
 0x142   : > { %v8225_v12 = vld [vmem:[%s9107_s20 + $0xc5] ss:$8 sm:$0xf0]  ;;  %v1612_v25 = vperm.slane %v1603_v20, 7  ;;  %v1626_v20 = vmul.f32 %v1610_v53, %v15174_v44  ;;  %v1627_v10 = vmul.f32 %v1611_v21, %v15174_v44  ;;  %v9961_v7 = vor.u32 %v8221_v58, %v8220_v49 }
 0x143   : > { %v9963_v15 = vor.u32 %v8223_v63, %v8222_v23  ;;  %v9965_v6 = vor.u32 %v8225_v12, %v8224_v46  ;;  %v1642_v11 = vperm.slane %v1640_v29, 0  ;;  %v1643_v42 = vperm.slane %v1640_v29, 1 }
 0x144   : > { %v1628_v36 = vmul.f32 %v1612_v25, %v15174_v44  ;;  %v1644_v61 = vperm.slane %v1640_v29, 2  ;;  %v1645_v48 = vperm.slane %v1640_v29, 3  ;;  %v1646_v14 = vperm.slane %v1640_v29, 4 }
 0x145   : > { %v1647_v53 = vperm.slane %v1640_v29, 5  ;;  %v1648_v54 = vperm.slane %v1640_v29, 6  ;;  %v1649_v21 = vperm.slane %v1640_v29, 7  ;;  %v1658_v25 = vmul.f32 %v1642_v11, %v15175_v4 }
 0x146   : > { %v1659_v44 = vmul.f32 %v1643_v42, %v15175_v4  ;;  %v1660_v17 = vmul.f32 %v1644_v61, %v15175_v4  ;;  %v1661_v56 = vmul.f32 %v1645_v48, %v15175_v4  ;;  %v1662_v55 = vmul.f32 %v1646_v14, %v15175_v4 }
 0x147   : > { %v1663_v30 = vmul.f32 %v1647_v53, %v15175_v4  ;;  %v1664_v40 = vmul.f32 %v1648_v54, %v15175_v4  ;;  %v1665_v31 = vmul.f32 %v1649_v21, %v15175_v4  ;;  %v1666_v49 = vadd.f32 %v1658_v25, %v1621_v16 }
 0x148   : > { %v1667_v58 = vadd.f32 %v1659_v44, %v1622_v8  ;;  %v1668_v23 = vadd.f32 %v1660_v17, %v1623_v28  ;;  %v1669_v63 = vadd.f32 %v1661_v56, %v1624_v50  ;;  %v1670_v46 = vadd.f32 %v1662_v55, %v1625_v37 }
 0x149   : > { %v1671_v12 = vadd.f32 %v1663_v30, %v1626_v20  ;;  %v1672_v29 = vadd.f32 %v1664_v40, %v1627_v10  ;;  %v1673_v11 = vadd.f32 %v1665_v31, %v1628_v36  ;;  %v1679_v42 = vperm.slane %v1677_v26, 0 }
 0x14a   : > { %v1680_v61 = vperm.slane %v1677_v26, 1  ;;  %v1681_v57 = vperm.slane %v1677_v26, 2  ;;  %v1682_v48 = vperm.slane %v1677_v26, 3  ;;  %v1683_v35 = vperm.slane %v1677_v26, 4 }
 0x14b   : > { %v1684_v14 = vperm.slane %v1677_v26, 5  ;;  %v1685_v18 = vperm.slane %v1677_v26, 6  ;;  %v1686_v53 = vperm.slane %v1677_v26, 7  ;;  %v1695_v54 = vmul.f32 %v1679_v42, %v15149_v3 }
 0x14c   : > { %v1696_v4 = vmul.f32 %v1680_v61, %v15149_v3  ;;  %v1697_v8 = vmul.f32 %v1681_v57, %v15149_v3  ;;  %v1698_v16 = vmul.f32 %v1682_v48, %v15149_v3  ;;  %v1699_v37 = vmul.f32 %v1683_v35, %v15149_v3 }
 0x14d   : > { %v1700_v36 = vmul.f32 %v1684_v14, %v15149_v3  ;;  %v1701_v50 = vmul.f32 %v1685_v18, %v15149_v3  ;;  %v1702_v28 = vmul.f32 %v1686_v53, %v15149_v3  ;;  %v1703_v20 = vadd.f32 %v1695_v54, %v1666_v49 }
 0x14e   : > { %v1704_v10 = vadd.f32 %v1696_v4, %v1667_v58  ;;  %v1705_v21 = vadd.f32 %v1697_v8, %v1668_v23  ;;  %v1706_v26 = vadd.f32 %v1698_v16, %v1669_v63  ;;  %v1707_v25 = vadd.f32 %v1699_v37, %v1670_v46 }
 0x14f   : > { %v1708_v44 = vadd.f32 %v1700_v36, %v1671_v12  ;;  %v1709_v17 = vadd.f32 %v1701_v50, %v1672_v29  ;;  %v1710_v56 = vadd.f32 %v1702_v28, %v1673_v11  ;;  %v1716_v57 = vperm.slane %v9961_v7, 0 }
 0x150   : > { %v1717_v55 = vperm.slane %v9961_v7, 1  ;;  %v1718_v35 = vperm.slane %v9961_v7, 2  ;;  %v1719_v30 = vperm.slane %v9961_v7, 3  ;;  %v1720_v18 = vperm.slane %v9961_v7, 4 }
 0x151   : > { %v1721_v3 = vperm.slane %v9961_v7, 5  ;;  %v1722_v40 = vperm.slane %v9961_v7, 6  ;;  %v1723_v31 = vperm.slane %v9961_v7, 7  ;;  %v1732_v49 = vmul.f32 %v1716_v57, %v9328_v41 }
 0x152   : > { %v1733_v58 = vmul.f32 %v1717_v55, %v9328_v41  ;;  %v1734_v23 = vmul.f32 %v1718_v35, %v9328_v41  ;;  %v1735_v63 = vmul.f32 %v1719_v30, %v9328_v41  ;;  %v1736_v46 = vmul.f32 %v1720_v18, %v9328_v41 }
 0x153   : > { %v1737_v12 = vmul.f32 %v1721_v3, %v9328_v41  ;;  %v1738_v29 = vmul.f32 %v1722_v40, %v9328_v41  ;;  %v1739_v11 = vmul.f32 %v1723_v31, %v9328_v41  ;;  %v1740_v42 = vadd.f32 %v1732_v49, %v1703_v20 }
 0x154   : > { %v1741_v61 = vadd.f32 %v1733_v58, %v1704_v10  ;;  %v1742_v48 = vadd.f32 %v1734_v23, %v1705_v21  ;;  %v1743_v7 = vadd.f32 %v1735_v63, %v1706_v26  ;;  %v1744_v14 = vadd.f32 %v1736_v46, %v1707_v25 }
 0x155   : > { %v1745_v53 = vadd.f32 %v1737_v12, %v1708_v44  ;;  %v1746_v54 = vadd.f32 %v1738_v29, %v1709_v17  ;;  %v1747_v4 = vadd.f32 %v1739_v11, %v1710_v56  ;;  %v1753_v8 = vperm.slane %v9963_v15, 0 }
 0x156   : > { %v1754_v16 = vperm.slane %v9963_v15, 1  ;;  %v1755_v37 = vperm.slane %v9963_v15, 2  ;;  %v1756_v36 = vperm.slane %v9963_v15, 3  ;;  %v1757_v50 = vperm.slane %v9963_v15, 4 }
 0x157   : > { %v1758_v41 = vperm.slane %v9963_v15, 5  ;;  %v1759_v28 = vperm.slane %v9963_v15, 6  ;;  %v1760_v20 = vperm.slane %v9963_v15, 7  ;;  %v1769_v10 = vmul.f32 %v1753_v8, %v15150_v22 }
 0x158   : > { %v1770_v21 = vmul.f32 %v1754_v16, %v15150_v22  ;;  %v1771_v26 = vmul.f32 %v1755_v37, %v15150_v22  ;;  %v1772_v25 = vmul.f32 %v1756_v36, %v15150_v22  ;;  %v1773_v44 = vmul.f32 %v1757_v50, %v15150_v22 }
 0x159   : > { %v1774_v17 = vmul.f32 %v1758_v41, %v15150_v22  ;;  %v1775_v56 = vmul.f32 %v1759_v28, %v15150_v22  ;;  %v1776_v57 = vmul.f32 %v1760_v20, %v15150_v22  ;;  %v1777_v55 = vadd.f32 %v1769_v10, %v1740_v42 }
 0x15a   : > { %v1778_v35 = vadd.f32 %v1770_v21, %v1741_v61  ;;  %v1779_v30 = vadd.f32 %v1771_v26, %v1742_v48  ;;  %v1780_v15 = vadd.f32 %v1772_v25, %v1743_v7  ;;  %v1781_v18 = vadd.f32 %v1773_v44, %v1744_v14 }
 0x15b   : > { %v1782_v3 = vadd.f32 %v1774_v17, %v1745_v53  ;;  %v1783_v40 = vadd.f32 %v1775_v56, %v1746_v54  ;;  %v1784_v31 = vadd.f32 %v1776_v57, %v1747_v4  ;;  %v1790_v49 = vperm.slane %v9965_v6, 0 }
 0x15c   : > { %v1791_v58 = vperm.slane %v9965_v6, 1  ;;  %v1792_v23 = vperm.slane %v9965_v6, 2  ;;  %v1793_v63 = vperm.slane %v9965_v6, 3  ;;  %v1794_v46 = vperm.slane %v9965_v6, 4 }
 0x15d   : > { %v1795_v22 = vperm.slane %v9965_v6, 5  ;;  %v1796_v12 = vperm.slane %v9965_v6, 6  ;;  %v1797_v29 = vperm.slane %v9965_v6, 7  ;;  %v1806_v11 = vmul.f32 %v1790_v49, %v15151_v9 }
 0x15e   : > { %v1807_v42 = vmul.f32 %v1791_v58, %v15151_v9  ;;  %v1808_v61 = vmul.f32 %v1792_v23, %v15151_v9  ;;  %v1809_v48 = vmul.f32 %v1793_v63, %v15151_v9  ;;  %v1810_v7 = vmul.f32 %v1794_v46, %v15151_v9 }
 0x15f   : > { %v1811_v14 = vmul.f32 %v1795_v22, %v15151_v9  ;;  %v1812_v53 = vmul.f32 %v1796_v12, %v15151_v9  ;;  %v1813_v54 = vmul.f32 %v1797_v29, %v15151_v9  ;;  %v1814_v4 = vadd.f32 %v1806_v11, %v1777_v55  ;;  %v8230_v22 = vld [vmem:[%s9107_s20 + $0x1c0] ss:$8 sm:$0xf] }
 0x160   : > { %v1815_v8 = vadd.f32 %v1807_v42, %v1778_v35  ;;  %v1816_v16 = vadd.f32 %v1808_v61, %v1779_v30  ;;  %v1817_v6 = vadd.f32 %v1809_v48, %v1780_v15  ;;  %v1818_v37 = vadd.f32 %v1810_v7, %v1781_v18  ;;  %v8231_v12 = vld [vmem:[%s9107_s20 + $0x1c0] ss:$8 sm:$0xf0] }
 0x161   : > { %v1819_v36 = vadd.f32 %v1811_v14, %v1782_v3  ;;  %v1820_v50 = vadd.f32 %v1812_v53, %v1783_v40  ;;  %v1821_v41 = vadd.f32 %v1813_v54, %v1784_v31  ;;  %v1827_v28 = vperm.slane %v9967_v34, 0  ;;  %v8228_v3 = vld [vmem:[%s9107_s20 + $0xc7] ss:$8 sm:$0xf] }
 0x162   : > { %v1828_v20 = vperm.slane %v9967_v34, 1  ;;  %v1829_v10 = vperm.slane %v9967_v34, 2  ;;  %v1830_v21 = vperm.slane %v9967_v34, 3  ;;  %v1831_v9 = vperm.slane %v9967_v34, 4 }
 0x163   : > { %v1832_v26 = vperm.slane %v9967_v34, 5  ;;  %v1833_v25 = vperm.slane %v9967_v34, 6  ;;  %v1834_v44 = vperm.slane %v9967_v34, 7  ;;  %v1843_v17 = vmul.f32 %v1827_v28, %v9372_v43  ;;  %v8229_v40 = vld [vmem:[%s9107_s20 + $0xc7] ss:$8 sm:$0xf0] }
 0x164   : > { %v1844_v56 = vmul.f32 %v1828_v20, %v9372_v43  ;;  %v1845_v57 = vmul.f32 %v1829_v10, %v9372_v43  ;;  %v1846_v55 = vmul.f32 %v1830_v21, %v9372_v43  ;;  %v1847_v35 = vmul.f32 %v1831_v9, %v9372_v43  ;;  %s8947_s20 = smov 31  }
 0x165   : > { %v1848_v30 = vmul.f32 %v1832_v26, %v9372_v43  ;;  %v1849_v15 = vmul.f32 %v1833_v25, %v9372_v43  ;;  %v1850_v18 = vmul.f32 %v1834_v44, %v9372_v43  ;;  %v15176_v34 = vmax.f32 %v9899_v52, 0.0 }
 0x166   : > { %v15177_v49 = vmax.f32 %v9902_v51, 0.0  ;;  %v15178_v23 = vmax.f32 %v9905_v32, 0.0  ;;  %v15179_v43 = vmax.f32 %v9908_v0, 0.0  ;;  %v10075_v52 = vadd.f32 %v9933_v5, %v9642_v27 }
 0x167   : > { %v10054_v31 = vmul.f32 %v15176_v34, %v9624_v1  ;;  %v10079_v51 = vadd.f32 %v9946_v19, %v9642_v27  ;;  %v1851_v29 = vadd.f32 %v1843_v17, %v1814_v4  ;;  %v1852_v11 = vadd.f32 %v1844_v56, %v1815_v8 }
 0x168   : > { %v10059_v58 = vmul.f32 %v15177_v49, %v9624_v1  ;;  %v10064_v63 = vmul.f32 %v15178_v23, %v9624_v1  ;;  %v10069_v46 = vmul.f32 %v15179_v43, %v9624_v1  ;;  %v1853_v32 = vadd.f32 %v1845_v57, %v1816_v16 }
 0x169   : > { %v1854_v42 = vadd.f32 %v1846_v55, %v1817_v6  ;;  %v1855_v61 = vadd.f32 %v1847_v35, %v1818_v37  ;;  %v1862_v48 = vor.u32 %v8229_v40, %v8228_v3  ;;  %v1856_v7 = vadd.f32 %v1848_v30, %v1819_v36 }
 0x16a   : > { %v1857_v0 = vadd.f32 %v1849_v15, %v1820_v50  ;;  %v1858_v14 = vadd.f32 %v1850_v18, %v1821_v41  ;;  %v1899_v53 = vor.u32 %v8231_v12, %v8230_v22 }
 0x16b   : > { %v1864_v54 = vperm.slane %v1862_v48, 0  ;;  %v1865_v28 = vperm.slane %v1862_v48, 1  ;;  %v1866_v20 = vperm.slane %v1862_v48, 2  ;;  %v1867_v10 = vperm.slane %v1862_v48, 3 }
 0x16c   : > { %v1868_v5 = vperm.slane %v1862_v48, 4  ;;  %v1869_v21 = vperm.slane %v1862_v48, 5  ;;  %v1870_v9 = vperm.slane %v1862_v48, 6  ;;  %v1871_v26 = vperm.slane %v1862_v48, 7 }
 0x16d   : > { %v1880_v19 = vmul.f32 %v1864_v54, %v9244_v62  ;;  %v1881_v4 = vmul.f32 %v1865_v28, %v9244_v62  ;;  %v1882_v8 = vmul.f32 %v1866_v20, %v9244_v62  ;;  %v1883_v16 = vmul.f32 %v1867_v10, %v9244_v62 }
 0x16e   : > { %v1884_v6 = vmul.f32 %v1868_v5, %v9244_v62  ;;  %v1885_v37 = vmul.f32 %v1869_v21, %v9244_v62  ;;  %v1886_v36 = vmul.f32 %v1870_v9, %v9244_v62  ;;  %v1887_v50 = vmul.f32 %v1871_v26, %v9244_v62 }
 0x16f   : > { %v1888_v41 = vadd.f32 %v1880_v19, %v1851_v29  ;;  %v1889_v25 = vadd.f32 %v1881_v4, %v1852_v11  ;;  %v1890_v44 = vadd.f32 %v1882_v8, %v1853_v32  ;;  %v1891_v17 = vadd.f32 %v1883_v16, %v1854_v42 }
 0x170   : > { %v1892_v56 = vadd.f32 %v1884_v6, %v1855_v61  ;;  %v1893_v57 = vadd.f32 %v1885_v37, %v1856_v7  ;;  %v1894_v55 = vadd.f32 %v1886_v36, %v1857_v0  ;;  %v1895_v35 = vadd.f32 %v1887_v50, %v1858_v14  ;;  %v15183_v50 = vld [vmem:[#allocation10_spill] sm:$0xff] }
 0x171   : > { %v1901_v30 = vperm.slane %v1899_v53, 0  ;;  %v1902_v15 = vperm.slane %v1899_v53, 1  ;;  %v1903_v18 = vperm.slane %v1899_v53, 2  ;;  %v1904_v3 = vperm.slane %v1899_v53, 3 }
 0x172   : > { %v1905_v40 = vperm.slane %v1899_v53, 4  ;;  %v1906_v34 = vperm.slane %v1899_v53, 5  ;;  %v1907_v49 = vperm.slane %v1899_v53, 6  ;;  %v1908_v23 = vperm.slane %v1899_v53, 7 }
 0x173   : > { %v1917_v43 = vmul.f32 %v1901_v30, %v9416_v13  ;;  %v1918_v62 = vmul.f32 %v1902_v15, %v9416_v13  ;;  %v1919_v22 = vmul.f32 %v1903_v18, %v9416_v13  ;;  %v1920_v12 = vmul.f32 %v1904_v3, %v9416_v13  ;;  %v1975_v15 = vpop.permute.xlu2 %1974 }
 0x174   : > { %v1921_v29 = vmul.f32 %v1905_v40, %v9416_v13  ;;  %v1922_v11 = vmul.f32 %v1906_v34, %v9416_v13  ;;  %v1923_v32 = vmul.f32 %v1907_v49, %v9416_v13  ;;  %v1924_v42 = vmul.f32 %v1908_v23, %v9416_v13 }
 0x175   : > { %v1925_v61 = vadd.f32 %v1917_v43, %v1888_v41  ;;  %v1926_v48 = vadd.f32 %v1918_v62, %v1889_v25  ;;  %v1927_v7 = vadd.f32 %v1919_v22, %v1890_v44  ;;  %v1928_v0 = vadd.f32 %v1920_v12, %v1891_v17  ;;  %v15185_v44 = vld [vmem:[#allocation22_spill] sm:$0xff]  ;;  %v15187_v62 = vld [vmem:[#allocation13_spill] sm:$0xff]  ;;  %v15188_v22 = vld [vmem:[#allocation20_spill] sm:$0xff] }
 0x176   : > { %v1586_v14 = vadd.f32 %v9949_v38, %v9642_v27  ;;  %v1587_v53 = vadd.f32 %v10054_v31, %v9642_v27  ;;  %v1931_v54 = vadd.f32 %v1923_v32, %v1894_v55  ;;  %v1932_v28 = vadd.f32 %v1924_v42, %v1895_v35  ;;  %v1987_v42 = vpop.permute.xlu0 %1986 }
 0x177   : > { %v1933_v20 = vadd.f32 %v1925_v61, %v9446_v47  ;;  %v1934_v10 = vadd.f32 %v1926_v48, %v9446_v47  ;;  %v1935_v5 = vadd.f32 %v1927_v7, %v9446_v47  ;;  %v1936_v13 = vadd.f32 %v1928_v0, %v9446_v47  ;;  %v15191_v0 = vld [vmem:[#allocation21_spill] sm:$0xff] }
 0x178   : > { %v15180_v21 = vmax.f32 %v9652_v59, %v9867_v39  ;;  %v15181_v38 = vmax.f32 %v9659_v33, %v9872_v2  ;;  %v1929_v26 = vadd.f32 %v1921_v29, %v1892_v56  ;;  %v1930_v19 = vadd.f32 %v1922_v11, %v1893_v57 }
 0x179   : > { %v1941_v4 = vmax.f32 %v1933_v20, 0.0  ;;  %v1942_v8 = vmax.f32 %v1934_v10, 0.0  ;;  %v1943_v16 = vmax.f32 %v1935_v5, 0.0  ;;  %v1944_v6 = vmax.f32 %v1936_v13, 0.0 }
 0x17a   : > { %v1592_v9 = vmax.f32 %v15180_v21, %v10075_v52  ;;  %v1593_v31 = vmax.f32 %v15181_v38, %v10079_v51  ;;  %v15182_v37 = vmax.f32 %v9662_v24, %v9875_v45  ;;  %v15184_v41 = vmax.f32 %v15169_v60, %v15183_v50  ;;  %v15193_v21 = vld [vmem:[#allocation17_spill] sm:$0xff] }
 0x17b   : > { %v1939_v39 = vadd.f32 %v1931_v54, %v9446_v47  ;;  %v1940_v52 = vadd.f32 %v1932_v28, %v9446_v47  ;;  %v1949_v33 = vmul.f32 %v1941_v4, %v9624_v1  ;;  %v1950_v2 = vmul.f32 %v1942_v8, %v9624_v1 }
 0x17c   : > { %v1594_v36 = vmax.f32 %v15182_v37, %v1586_v14  ;;  %v1595_v59 = vmax.f32 %v15184_v41, %v1587_v53  ;;  %v1951_v51 = vmul.f32 %v1943_v16, %v9624_v1  ;;  %v1952_v25 = vmul.f32 %v1944_v6, %v9624_v1 }
 0x17d   : > { %v15186_v24 = vmax.f32 %v15185_v44, 0.0  ;;  %v1588_v60 = vadd.f32 %v10059_v58, %v9642_v27  ;;  %v1937_v17 = vadd.f32 %v1929_v26, %v9446_v47  ;;  %v1938_v56 = vadd.f32 %v1930_v19, %v9446_v47  ;;  %v15196_v26 = vld [vmem:[#allocation11_spill] sm:$0xff] }
 0x17e   : > { %v1957_v57 = vadd.f32 %v1949_v33, %v9642_v27  ;;  %v1958_v55 = vadd.f32 %v1950_v2, %v9642_v27  ;;  %v1959_v35 = vadd.f32 %v1951_v51, %v9642_v27  ;;  %v1960_v30 = vadd.f32 %v1952_v25, %v9642_v27  ;;  %v15197_v19 = vld [vmem:[#allocation19_spill] sm:$0xff] }
 0x17f   : > { %v1583_v45 = vmul.f32 %v15186_v24, %v9624_v1  ;;  %v1589_v18 = vadd.f32 %v10064_v63, %v9642_v27  ;;  %v1590_v3 = vadd.f32 %v10069_v46, %v9642_v27  ;;  %v1947_v58 = vmax.f32 %v1939_v39, 0.0  ;;  %v15190_v46 = vld [vmem:[#allocation15_spill] sm:$0xff] }
 0x180   : > { %v1948_v40 = vmax.f32 %v1940_v52, 0.0  ;;  %v1965_v34 = vmax.f32 %v1592_v9, %v1957_v57  ;;  %v1966_v49 = vmax.f32 %v1593_v31, %v1958_v55  ;;  %v1967_v47 = vmax.f32 %v1594_v36, %v1959_v35  ;;  %v15194_v9 = vld [vmem:[#allocation12_spill] sm:$0xff] }
 0x181   : > { %v1968_v23 = vmax.f32 %v1595_v59, %v1960_v30  ;;  %v1591_v43 = vadd.f32 %v1583_v45, %v9642_v27  ;;  %v15189_v12 = vmax.f32 %v15187_v62, %v15188_v22  ;;  %v1945_v11 = vmax.f32 %v1937_v17, 0.0  ;;  %v10180_v25 = vld [vmem:[%s15199_s3 + $0x8] sm:$0xff]  ;;  %v10185_v45 = vld [vmem:[%s15199_s3] sm:$0xff]  ;;  %s8890_s3 = scalar_lea.hbm %s15018_s13, 2 }
 0x182   : > { %v1946_v32 = vmax.f32 %v1938_v56, 0.0  ;;  %v1977_v61 = vmul.f32 %v1975_v15, %v1965_v34  ;;  %v1978_v63 = vmul.f32 %v1975_v15, %v1966_v49  ;;  %v1979_v48 = vmul.f32 %v1975_v15, %v1967_v47 }
 0x183   : > { %v1598_v29 = vmax.f32 %v15189_v12, %v1590_v3  ;;  %v1980_v7 = vmul.f32 %v1975_v15, %v1968_v23  ;;  %v15192_v14 = vmax.f32 %v15190_v46, %v15191_v0  ;;  %v1955_v54 = vmul.f32 %v1947_v58, %v9624_v1 }
 0x184   : > { %v1956_v28 = vmul.f32 %v1948_v40, %v9624_v1  ;;  %v10149_v20 = vadd.f32 %v1987_v42, %v1977_v61  ;;  %v10151_v10 = vadd.f32 %v1987_v42, %v1978_v63  ;;  %v10153_v5 = vadd.f32 %v1987_v42, %v1979_v48 }
 0x185   : > { %v1599_v53 = vmax.f32 %v15192_v14, %v1591_v43  ;;  %v10155_v13 = vadd.f32 %v1987_v42, %v1980_v7  ;;  %v15195_v38 = vmax.f32 %v15193_v21, %v15194_v9  ;;  %v15198_v4 = vmax.f32 %v15196_v26, %v15197_v19 }
 0x186   : > { %v1953_v16 = vmul.f32 %v1945_v11, %v9624_v1  ;;  %v1954_v6 = vmul.f32 %v1946_v32, %v9624_v1  ;;  %v1963_v37 = vadd.f32 %v1955_v54, %v9642_v27  ;;  %v1964_v36 = vadd.f32 %v1956_v28, %v9642_v27  ;;  %2131 = vrot.lane.b32.xlu2 %v10151_v10, %s15071_s21 }
 0x187   : > { %v1596_v31 = vmax.f32 %v15195_v38, %v1588_v60  ;;  %v1597_v8 = vmax.f32 %v15198_v4, %v1589_v18  ;;  %v8614_v50 = vpack.i.bf16 %v10155_v13, %v10153_v5  ;;  %v15075_v41 = vmov 0.0  }
 0x188   : > { %v8609_v59 = vpack.i.bf16 %v10149_v20, %v15075_v41  ;;  %v1961_v39 = vadd.f32 %v1953_v16, %v9642_v27  ;;  %v1962_v52 = vadd.f32 %v1954_v6, %v9642_v27  ;;  %v1971_v1 = vmax.f32 %v1598_v29, %v1963_v37 }
 0x189   : > { %v1972_v33 = vmax.f32 %v1599_v53, %v1964_v36  ;;  %8615 = vrot.lane.b32.xlu0 %v8614_v50, %s15071_s21  ;;  %v15073_v32 = vlaneseq  ;;  %v15204_v37 = vmov 0 }
 0x18a   : > { %8610 = vrot.lane.b32.xlu1 %v8609_v59, %s15071_s21  ;;  %v1969_v2 = vmax.f32 %v1596_v31, %v1961_v39  ;;  %v1970_v51 = vmax.f32 %v1597_v8, %v1962_v52  ;;  %v1983_v44 = vmul.f32 %v1975_v15, %v1971_v1 }
 0x18b   : > { %v1984_v24 = vmul.f32 %v1975_v15, %v1972_v33  ;;  %v10277_v7 = vand.u32 127, %v15073_v32 }
 0x18c   : > { %v1981_v27 = vmul.f32 %v1975_v15, %v1969_v2  ;;  %v1982_v60 = vmul.f32 %v1975_v15, %v1970_v51  ;;  %v10188_v17 = vadd.f32 %v1987_v42, %v1983_v44 }
 0x18d   : > { %v10190_v56 = vadd.f32 %v1987_v42, %v1984_v24  ;;  %15200 = vst [vmem:[#allocation16_spill] sm:$0xff] %v10277_v7  ;;  %v10286_v46 = vadd.s32 256, %v10277_v7  ;;  %v10289_v53 = vadd.s32 128, %v10277_v7  ;;  %v10296_v21 = vadd.s32 640, %v10277_v7 }
 0x18e   : > { %2125 = vrot.lane.b32.xlu2 %v10180_v25, %s8945_s15  ;;  %v10194_v57 = vadd.f32 %v1987_v42, %v1981_v27  ;;  %v10196_v55 = vadd.f32 %v1987_v42, %v1982_v60  ;;  %v2016_v9 = vand.u32 31, %v10277_v7  ;;  %v10328_v36 = vadd.s32 384, %v10277_v7 }
 0x18f   : > { %v8624_v35 = vpack.i.bf16 %v10190_v56, %v10188_v17  ;;  %15201 = vst [vmem:[#allocation14_spill] sm:$0xff] %v10289_v53  ;;  %v2018_v4 = vand.u32 31, %v10286_v46  ;;  %v2017_v8 = vand.u32 31, %v10289_v53  ;;  %v2021_v16 = vand.u32 31, %v10296_v21 }
 0x190   : > { %v8619_v30 = vpack.i.bf16 %v10196_v55, %v10194_v57  ;;  %vm10323_vm4 = vcmp.ge.s32.totalorder %v2016_v9, 1  ;;  %v10331_v50 = vadd.s32 512, %v10277_v7  ;;  %v2019_v24 = vand.u32 31, %v10328_v36 }
 0x191   : > { %2076 = vrot.lane.b32.xlu0 %v15075_v41, %s8946_s16  ;;  %vm10317_vm3 = vcmp.ge.s32.totalorder %v2018_v4, 1  ;;  %v15205_v37 = vsel %vm10323_vm4, 4294967295, %v15204_v37  ;;  %vm10336_vm5 = vcmp.ge.s32.totalorder %v2017_v8, 1  ;;  %vm10349_vm6 = vcmp.ge.s32.totalorder %v2021_v16, 1 }
 0x192   : > { %2123 = vrot.lane.b32.xlu1 %v10185_v45, %s8945_s15  ;;  %s15091_s15 = smov 96   ;;  %v2020_v27 = vand.u32 31, %v10331_v50  ;;  %vm10375_vm7 = vcmp.ge.s32.totalorder %v2019_v24, 1  ;;  %vm10449_vm12 = vcmp.lt.s32.totalorder %v2016_v9, 31  ;;  %vm10455_vm13 = vcmp.lt.s32.totalorder %v2017_v8, 31 }
 0x193   : > { %v8639_v9 = vpack.i.bf16 %v10188_v17, %v10196_v55  ;;  %vm10484_vm14 = vcmp.lt.s32.totalorder %v2018_v4, 31  ;;  %vm10490_vm15 = vcmp.lt.s32.totalorder %v2019_v24, 31  ;;  %v8634_v46 = vpack.i.bf16 %v10194_v57, %v10155_v13 }
 0x194   : > { %vm10381_vm8 = vcmp.ge.s32.totalorder %v2020_v27, 1  ;;  %v15230_v24 = vmov 0 }
 0x196   : > { %8625 = vrot.lane.b32.xlu2 %v8624_v35, %s15071_s21 }
 0x199   : > { %2082 = vrot.lane.b32.xlu0 %v10153_v5, %s8946_s16 }
 0x19a   : > { %8620 = vrot.lane.b32.xlu1 %v8619_v30, %s15071_s21  ;;  %s15490_s21 = smov 112  }
 0x19e   : > { %2080 = vrot.lane.b32.xlu2 %v10151_v10, %s8946_s16 }
 0x1a1   : > { %2088 = vrot.lane.b32.xlu0 %v10196_v55, %s8946_s16 }
 0x1a2   : > { %2078 = vrot.lane.b32.xlu1 %v10149_v20, %s8946_s16 }
 0x1a6   : > { %2086 = vrot.lane.b32.xlu2 %v10194_v57, %s8946_s16 }
 0x1a9   : > { %2555 = vrot.lane.b32.xlu0 %v15075_v41, %s8947_s20 }
 0x1aa   : > { %2084 = vrot.lane.b32.xlu1 %v10155_v13, %s8946_s16 }
 0x1ae   : > { %2092 = vrot.lane.b32.xlu2 %v10190_v56, %s8946_s16 }
 0x1b1   : > { %2598 = vrot.lane.b32.xlu0 %v10185_v45, %s15089_s22 }
 0x1b2   : > { %2090 = vrot.lane.b32.xlu1 %v10188_v17, %s8946_s16  ;;  %s8953_s16 = smov 88  }
 0x1b6   : > { %2559 = vrot.lane.b32.xlu2 %v10151_v10, %s8947_s20 }
 0x1b9   : > { %2600 = vrot.lane.b32.xlu0 %v10180_v25, %s15089_s22  ;;  %s8964_s22 = smov 111  }
 0x1ba   : > { %2557 = vrot.lane.b32.xlu1 %v10149_v20, %s8947_s20 }
 0x1be   : > { %2563 = vrot.lane.b32.xlu2 %v10155_v13, %s8947_s20 }
 0x1c1   : > { %2569 = vrot.lane.b32.xlu0 %v10188_v17, %s8947_s20 }
 0x1c2   : > { %2561 = vrot.lane.b32.xlu1 %v10153_v5, %s8947_s20 }
 0x1c6   : > { %2567 = vrot.lane.b32.xlu2 %v10196_v55, %s8947_s20 }
 0x1c9   : > { %2808 = vrot.lane.b32.xlu0 %v10149_v20, %s15087_s23 }
 0x1ca   : > { %2565 = vrot.lane.b32.xlu1 %v10194_v57, %s8947_s20 }
 0x1ce   : > { %2806 = vrot.lane.b32.xlu2 %v15075_v41, %s15087_s23 }
 0x1d1   : > { %2812 = vrot.lane.b32.xlu0 %v10153_v5, %s15087_s23 }
 0x1d2   : > { %2571 = vrot.lane.b32.xlu1 %v10190_v56, %s8947_s20  ;;  %s8954_s20 = smov 97  }
 0x1d6   : > { %2849 = vrot.lane.b32.xlu2 %v10185_v45, %s8950_s24 }
 0x1d9   : > { %2816 = vrot.lane.b32.xlu0 %v10194_v57, %s15087_s23 }
 0x1da   : > { %2810 = vrot.lane.b32.xlu1 %v10151_v10, %s15087_s23 }
 0x1de   : > { %2851 = vrot.lane.b32.xlu2 %v10180_v25, %s8950_s24  ;;  %s15085_s24 = smov 80  }
 0x1e0   : > { %v2132_v15 = vpop.permute.xlu2 %2131 }
 0x1e1   : > { %2822 = vrot.lane.b32.xlu0 %v10190_v56, %s15087_s23 }
 0x1e2   : > { %2814 = vrot.lane.b32.xlu1 %v10155_v13, %s15087_s23 }
 0x1e6   : > { %2820 = vrot.lane.b32.xlu2 %v10188_v17, %s15087_s23 }
 0x1e8   : > { %v10249_v18 = vpop.permute.xlu2 %2125 }
 0x1e9   : > { %3283 = vrot.lane.b32.xlu0 %v10149_v20, %s15081_s30 }
 0x1ea   : > { %2818 = vrot.lane.b32.xlu1 %v10196_v55, %s15087_s23  ;;  %s15485_s23 = smov 96  }
 0x1ee   : > { %3059 = vrot.lane.b32.xlu2 %v10180_v25, %s15091_s15 }
 0x1f0   : > { %v8626_v3 = vpop.permute.xlu2 %8625 }
 0x1f1   : > { %3326 = vrot.lane.b32.xlu0 %v10185_v45, %s8953_s16  ;;  %v8628_v29 = vunpack.i.h.bf16 %v8626_v3  ;;  %v8627_v11 = vunpack.i.l.bf16 %v8626_v3  ;;  %v10389_v3 = vadd.s32 896, %v10277_v7 }
 0x1f2   : > { %3057 = vrot.lane.b32.xlu1 %v10185_v45, %s15091_s15 }
 0x1f3   : > { %v2153_v48 = vsel %vm2145_vm0, %v8627_v11, %v8628_v29 }
 0x1f6   : > { %3287 = vrot.lane.b32.xlu2 %v10153_v5, %s15081_s30 }
 0x1f8   : > { %v2081_v63 = vpop.permute.xlu2 %2080 }
 0x1f9   : > { %3328 = vrot.lane.b32.xlu0 %v10180_v25, %s8953_s16  ;;  %s8956_s16 = smov 72  }
 0x1fa   : > { %3285 = vrot.lane.b32.xlu1 %v10151_v10, %s15081_s30 }
 0x1fb   : > { %v8616_v58 = vpop.permute.xlu0 %8615 }
 0x1fc   : > { %v8611_v40 = vpop.permute.xlu1 %8610  ;;  %v8618_v34 = vunpack.i.h.bf16 %v8616_v58  ;;  %v8617_v49 = vunpack.i.l.bf16 %v8616_v58 }
 0x1fd   : > { %v8613_v47 = vunpack.i.h.bf16 %v8611_v40  ;;  %v8612_v23 = vunpack.i.l.bf16 %v8611_v40 }
 0x1fe   : > { %v2148_v22 = vsel %vm2145_vm0, %v2132_v15, %v8617_v49  ;;  %v2149_v12 = vsel %vm2145_vm0, %v8617_v49, %v8618_v34  ;;  %3291 = vrot.lane.b32.xlu2 %v10194_v57, %s15081_s30 }
 0x1ff   : > { %v2146_v43 = vsel %vm2145_vm0, %v8612_v23, %v8613_v47  ;;  %v2147_v62 = vsel %vm2145_vm0, %v8613_v47, %v2132_v15  ;;  %v10386_v15 = vadd.s32 768, %v10277_v7  ;;  %v2023_v23 = vand.u32 31, %v10389_v3 }
 0x200   : > { %2182 = vmatpush.msra.mxu2 %v2146_v43  ;;  %2205 = vmatpush.msra.mxu3 %v2147_v62  ;;  %v2087_v38 = vpop.permute.xlu2 %2086 }
 0x201   : > { %3297 = vrot.lane.b32.xlu0 %v10190_v56, %s15081_s30  ;;  %v2022_v47 = vand.u32 31, %v10386_v15  ;;  %vm10421_vm10 = vcmp.ge.s32.totalorder %v2023_v23, 1 }
 0x202   : > { %2228 = vmatpush.msrb.mxu2 %v2148_v22  ;;  %2251 = vmatpush.msrb.mxu3 %v2149_v12 }
 0x203   : > { %3289 = vrot.lane.b32.xlu1 %v10155_v13, %s15081_s30  ;;  %v2077_v42 = vpop.permute.xlu0 %2076  ;;  %vm10415_vm9 = vcmp.ge.s32.totalorder %v2022_v47, 1 }
 0x204   : > { %v10269_v61 = vpop.permute.xlu1 %2123 }
 0x205   : > { %8232 = vmatmul.msk.f32.vlgmr.msra.gmra.mxu2 %vm15059_vm1, %v10269_v61  ;;  %8234 = vmatmul.msk.f32.vlgmr.msra.gmra.mxu3 %vm15059_vm1, %v10269_v61 }
 0x206   : > { %2343 = vmatpush.msra.mxu3 %v2153_v48  ;;  %3295 = vrot.lane.b32.xlu2 %v10188_v17, %s15081_s30 }
 0x208   : > { %v2093_v60 = vpop.permute.xlu2 %2092 }
 0x209   : > { %3536 = vrot.lane.b32.xlu0 %v10151_v10, %s8954_s20 }
 0x20b   : > { %3293 = vrot.lane.b32.xlu1 %v10196_v55, %s15081_s30  ;;  %v2083_v0 = vpop.permute.xlu0 %2082 }
 0x20c   : > { %v8621_v14 = vpop.permute.xlu1 %8620  ;;  %v2097_v59 = vsel %vm2094_vm2, %v2081_v63, %v2083_v0 }
 0x20d   : > { %v8623_v54 = vunpack.i.h.bf16 %v8621_v14  ;;  %v8622_v28 = vunpack.i.l.bf16 %v8621_v14  ;;  %8233 = vmatmul.msk.f32.gmra.mxu2 %vm15059_vm1, %v10249_v18  ;;  %8235 = vmatmul.msk.f32.gmra.mxu3 %vm15059_vm1, %v10249_v18 }
 0x20e   : > { %3534 = vrot.lane.b32.xlu2 %v10149_v20, %s8954_s20 }
 0x20f   : > { %v2150_v31 = vsel %vm2145_vm0, %v8618_v34, %v8622_v28  ;;  %v2151_v26 = vsel %vm2145_vm0, %v8622_v28, %v8623_v54  ;;  %v2152_v19 = vsel %vm2145_vm0, %v8623_v54, %v8627_v11  ;;  %vm10516_vm0 = vcmp.lt.s32.totalorder %v2020_v27, 31 }
 0x210   : > { %2274 = vmatpush.msra.mxu0 %v2150_v31  ;;  %2297 = vmatpush.msra.mxu1 %v2151_v26  ;;  %v2560_v43 = vpop.permute.xlu2 %2559  ;;  %v15224_v31 = vmov 0  ;;  %v15232_v27 = vmov 0 }
 0x211   : > { %2320 = vmatpush.msra.mxu2 %v2152_v19  ;;  %8240 = vmatmul.msk.f32.vlgmr.msra.gmra.mxu0 %vm15059_vm1, %v10269_v61  ;;  %v15225_v31 = vsel %vm10490_vm15, 4294967295, %v15224_v31 }
 0x212   : > { %8242 = vmatmul.msk.f32.vlgmr.msra.gmra.mxu1 %vm15059_vm1, %v10269_v61  ;;  %3540 = vrot.lane.b32.xlu0 %v10155_v13, %s8954_s20 }
 0x213   : > { %3299 = vrot.lane.b32.xlu1 %v15075_v41, %s15081_s30  ;;  %v2089_v39 = vpop.permute.xlu0 %2088 }
 0x214   : > { %v2079_v52 = vpop.permute.xlu1 %2078  ;;  %v2100_v33 = vsel %vm2094_vm2, %v2087_v38, %v2089_v39 }
 0x215   : > { %8236 = vmatmul.msk.f32.vlgmr.msrb.gmra.mxu2 %vm15059_vm1, %v10269_v61  ;;  %8238 = vmatmul.msk.f32.vlgmr.msrb.gmra.mxu3 %vm15059_vm1, %v10269_v61  ;;  %v2095_v2 = vsel %vm2094_vm2, %v2077_v42, %v2079_v52  ;;  %v2096_v51 = vsel %vm2094_vm2, %v2079_v52, %v2081_v63 }
 0x216   : > { %8254 = vmatpush.msk.msrb.mxu2 %vm10317_vm3, %v2097_v59  ;;  %8248 = vmatpush.msk.msrb.mxu0 %vm10323_vm4, %v2095_v2 }
 0x217   : > { %8251 = vmatpush.msk.msrb.mxu1 %vm10336_vm5, %v2096_v51  ;;  %3577 = vrot.lane.b32.xlu2 %v10185_v45, %s15085_s24  ;;  %v8644_v51 = vpack.i.bf16 0.0, %v10190_v56 }
 0x218   : > { %v2564_v14 = vpop.permute.xlu2 %2563 }
 0x219   : > { %8263 = vmatpush.msk.msra.mxu1 %vm10349_vm6, %v2100_v33  ;;  %8241 = vmatmul.msk.f32.gmra.mxu0 %vm15059_vm1, %v10249_v18 }
 0x21a   : > { %8243 = vmatmul.msk.f32.gmra.mxu1 %vm15059_vm1, %v10249_v18  ;;  %3544 = vrot.lane.b32.xlu0 %v10196_v55, %s8954_s20 }
 0x21b   : > { %3538 = vrot.lane.b32.xlu1 %v10153_v5, %s8954_s20  ;;  %v2556_v58 = vpop.permute.xlu0 %2555 }
 0x21c   : > { %v2085_v40 = vpop.permute.xlu1 %2084 }
 0x21d   : > { %v2098_v34 = vsel %vm2094_vm2, %v2083_v0, %v2085_v40  ;;  %v2099_v49 = vsel %vm2094_vm2, %v2085_v40, %v2087_v38  ;;  %8237 = vmatmul.msk.f32.gmra.mxu2 %vm15059_vm1, %v10249_v18  ;;  %8239 = vmatmul.msk.f32.gmra.mxu3 %vm15059_vm1, %v10249_v18  ;;  %v8629_v38 = vpack.i.bf16 %v10151_v10, %v10149_v20 }
 0x21e   : > { %8257 = vmatpush.msk.msrb.mxu3 %vm10375_vm7, %v2098_v34  ;;  %8260 = vmatpush.msk.msra.mxu0 %vm10381_vm8, %v2099_v49 }
 0x21f   : > { %3579 = vrot.lane.b32.xlu2 %v10180_v25, %s15085_s24  ;;  %s15494_s24 = smov 127  }
 0x220   : > { %v2568_v4 = vpop.permute.xlu2 %2567 }
 0x221   : > { %8249 = vmatmul.msk.f32.vlgmr.msrb.gmra.mxu0 %vm15059_vm1, %v10185_v45 }
 0x222   : > { %8252 = vmatmul.msk.f32.vlgmr.msrb.gmra.mxu1 %vm15059_vm1, %v10185_v45  ;;  %3550 = vrot.lane.b32.xlu0 %v15075_v41, %s8954_s20 }
 0x223   : > { %3542 = vrot.lane.b32.xlu1 %v10194_v57, %s8954_s20  ;;  %v10425_v12 = vpop.permute.xlu0 %2598 }
 0x224   : > { %v2091_v29 = vpop.permute.xlu1 %2090 }
 0x225   : > { %v2101_v11 = vsel %vm2094_vm2, %v2089_v39, %v2091_v29  ;;  %v2102_v42 = vsel %vm2094_vm2, %v2091_v29, %v2093_v60  ;;  %8244 = vmatmul.msk.f32.vlgmr.msra.gmra.mxu2 %vm15059_vm1, %v10269_v61  ;;  %8246 = vmatmul.msk.f32.vlgmr.msra.gmra.mxu3 %vm15059_vm1, %v10269_v61  ;;  %vm10522_vm2 = vcmp.lt.s32.totalorder %v2021_v16, 31  ;;  %v15228_v39 = vmov 0 }
 0x226   : > { %8266 = vmatpush.msk.msra.mxu2 %vm10415_vm9, %v2101_v11  ;;  %8269 = vmatpush.msk.msra.mxu3 %vm10421_vm10, %v2102_v42  ;;  %v15229_v39 = vsel %vm10522_vm2, 4294967295, %v15228_v39 }
 0x227   : > { %3548 = vrot.lane.b32.xlu2 %v10190_v56, %s8954_s20 }
 0x228   : > { %v2807_v16 = vpop.permute.xlu2 %2806 }
 0x229   : > { %8250 = vmatmul.msk.f32.gmra.mxu0 %vm15059_vm1, %v10180_v25 }
 0x22a   : > { %8253 = vmatmul.msk.f32.gmra.mxu1 %vm15059_vm1, %v10180_v25  ;;  %3793 = vrot.lane.b32.xlu0 %v10153_v5, %s15091_s15 }
 0x22b   : > { %3546 = vrot.lane.b32.xlu1 %v10188_v17, %s8954_s20  ;;  %v10459_v48 = vpop.permute.xlu0 %2600  ;;  %s8957_s20 = smov 95  }
 0x22c   : > { %v2558_v0 = vpop.permute.xlu1 %2557 }
 0x22d   : > { %v2574_v54 = vsel %vm15057_vm11, %v2556_v58, %v2558_v0  ;;  %v2575_v28 = vsel %vm15057_vm11, %v2558_v0, %v2560_v43  ;;  %8245 = vmatmul.msk.f32.gmra.mxu2 %vm15059_vm1, %v10249_v18  ;;  %8247 = vmatmul.msk.f32.gmra.mxu3 %vm15059_vm1, %v10249_v18  ;;  %v15222_v18 = vmov 0 }
 0x22e   : > { %8272 = vmatpush.msk.msrb.mxu0 %vm10449_vm12, %v2574_v54  ;;  %8275 = vmatpush.msk.msrb.mxu1 %vm10455_vm13, %v2575_v28  ;;  %v15223_v18 = vsel %vm10484_vm14, 4294967295, %v15222_v18 }
 0x22f   : > { %3785 = vrot.lane.b32.xlu2 %v10185_v45, %s8956_s16 }
 0x231   : > { %8261 = vmatmul.msk.f32.vlgmr.msra.gmra.mxu0 %vm15059_vm1, %v10185_v45 }
 0x232   : > { %8264 = vmatmul.msk.f32.vlgmr.msra.gmra.mxu1 %vm15059_vm1, %v10185_v45  ;;  %8640 = vrot.lane.b32.xlu0 %v8639_v9, %s15091_s15 }
 0x233   : > { %8630 = vrot.lane.b32.xlu1 %v8629_v38, %s15091_s15  ;;  %v2570_v19 = vpop.permute.xlu0 %2569 }
 0x234   : > { %v2562_v26 = vpop.permute.xlu1 %2561 }
 0x235   : > { %v2576_v8 = vsel %vm15057_vm11, %v2560_v43, %v2562_v26  ;;  %v2577_v59 = vsel %vm15057_vm11, %v2562_v26, %v2564_v14  ;;  %8255 = vmatmul.msk.f32.vlgmr.msrb.gmra.mxu2 %vm15059_vm1, %v10185_v45  ;;  %8258 = vmatmul.msk.f32.vlgmr.msrb.gmra.mxu3 %vm15059_vm1, %v10185_v45 }
 0x236   : > { %8278 = vmatpush.msk.msrb.mxu2 %vm10484_vm14, %v2576_v8  ;;  %8281 = vmatpush.msk.msrb.mxu3 %vm10490_vm15, %v2577_v59  ;;  %vm15058_vm15 = vcmask 7168   ;;  %vm15236_vm14 = vcmask 64512  }
 0x237   : > { %8635 = vrot.lane.b32.xlu2 %v8634_v46, %s15091_s15 }
 0x239   : > { %8262 = vmatmul.msk.f32.gmra.mxu0 %vm15059_vm1, %v10180_v25 }
 0x23a   : > { %8265 = vmatmul.msk.f32.gmra.mxu1 %vm15059_vm1, %v10180_v25  ;;  %4030 = vrot.lane.b32.xlu0 %v10151_v10, %s8957_s20 }
 0x23b   : > { %3787 = vrot.lane.b32.xlu1 %v10180_v25, %s8956_s16  ;;  %v2809_v21 = vpop.permute.xlu0 %2808  ;;  %s15083_s16 = smov 64  }
 0x23c   : > { %v2566_v52 = vpop.permute.xlu1 %2565  ;;  %v2825_v50 = vsel %vm15058_vm15, %v2807_v16, %v2809_v21  ;;  %vm10556_vm15 = vcmp.lt.s32.totalorder %v2023_v23, 31 }
 0x23d   : > { %v2578_v33 = vsel %vm15057_vm11, %v2564_v14, %v2566_v52  ;;  %v2579_v2 = vsel %vm15057_vm11, %v2566_v52, %v2568_v4  ;;  %8256 = vmatmul.msk.f32.gmra.mxu2 %vm15059_vm1, %v10180_v25  ;;  %8259 = vmatmul.msk.f32.gmra.mxu3 %vm15059_vm1, %v10180_v25  ;;  %vm10550_vm11 = vcmp.lt.s32.totalorder %v2022_v47, 31  ;;  %v15233_v27 = vsel %vm10556_vm15, 4294967295, %v15232_v27 }
 0x23e   : > { %8284 = vmatpush.msk.msra.mxu0 %vm10516_vm0, %v2578_v33  ;;  %8287 = vmatpush.msk.msra.mxu1 %vm10522_vm2, %v2579_v2  ;;  %v15231_v24 = vsel %vm10550_vm11, 4294967295, %v15230_v24  ;;  %vm15237_vm2 = vmmov %vm15236_vm14 }
 0x23f   : > { %4028 = vrot.lane.b32.xlu2 %v10149_v20, %s8957_s20 }
 0x241   : > { %8273 = vmatmul.msk.f32.vlgmr.msrb.gmra.mxu0 %vm15059_vm1, %v10425_v12 }
 0x242   : > { %8276 = vmatmul.msk.f32.vlgmr.msrb.gmra.mxu1 %vm15059_vm1, %v10425_v12  ;;  %8296 = vmatpush.msk.msrb.mxu0 %vm10323_vm4, %v2825_v50  ;;  %vm15234_vm1 = vcmask 252928  }
 0x243   : > { %4034 = vrot.lane.b32.xlu0 %v10155_v13, %s8957_s20  ;;  %8645 = vrot.lane.b32.xlu1 %v8644_v51, %s15091_s15  ;;  %v2580_v58 = vsel %vm15234_vm1, %v2568_v4, %v2570_v19  ;;  %vm15235_vm4 = vmmov %vm15234_vm1  ;;  %v2813_v15 = vpop.permute.xlu0 %2812 }
 0x244   : > { %v2572_v60 = vpop.permute.xlu1 %2571  ;;  %vm15238_vm1 = vmmov %vm15237_vm2 }
 0x245   : > { %v2581_v40 = vsel %vm15235_vm4, %v2570_v19, %v2572_v60  ;;  %8267 = vmatmul.msk.f32.vlgmr.msra.gmra.mxu2 %vm15236_vm14, %v10185_v45  ;;  %8270 = vmatmul.msk.f32.vlgmr.msra.gmra.mxu3 %vm15237_vm2, %v10185_v45  ;;  %vm15239_vm4 = vmmov %vm15238_vm1  ;;  %vm15240_vm14 = vcmask 7168  }
 0x246   : > { %8290 = vmatpush.msk.msra.mxu2 %vm10550_vm11, %v2580_v58  ;;  %8293 = vmatpush.msk.msra.mxu3 %vm10556_vm15, %v2581_v40  ;;  %vm15241_vm2 = vmmov %vm15238_vm1 }
 0x247   : > { %4071 = vrot.lane.b32.xlu2 %v10185_v45, %s15083_s16  ;;  %vm15242_vm15 = vmmov %vm15238_vm1  ;;  %v10588_v45 = vpop.permute.xlu2 %2849 }
 0x248   : > { %vm15246_vm11 = vmmov %vm15238_vm1 }
 0x249   : > { %8274 = vmatmul.msk.f32.gmra.mxu0 %vm15238_vm1, %v10459_v48 }
 0x24a   : > { %8277 = vmatmul.msk.f32.gmra.mxu1 %vm15239_vm4, %v10459_v48  ;;  %vm15243_vm4 = vmmov %vm15238_vm1 }
 0x24b   : > { %4038 = vrot.lane.b32.xlu0 %v10196_v55, %s8957_s20  ;;  %4032 = vrot.lane.b32.xlu1 %v10153_v5, %s8957_s20  ;;  %v2817_v49 = vpop.permute.xlu0 %2816 }
 0x24c   : > { %v2811_v3 = vpop.permute.xlu1 %2810 }
 0x24d   : > { %v2826_v34 = vsel %vm15240_vm14, %v2809_v21, %v2811_v3  ;;  %8268 = vmatmul.msk.f32.gmra.mxu2 %vm15241_vm2, %v10180_v25  ;;  %8271 = vmatmul.msk.f32.gmra.mxu3 %vm15242_vm15, %v10180_v25  ;;  %vm15244_vm15 = vmmov %vm15240_vm14 }
 0x24e   : > { %8299 = vmatpush.msk.msrb.mxu1 %vm10336_vm5, %v2826_v34  ;;  %v2827_v23 = vsel %vm15244_vm15, %v2811_v3, %v2813_v15  ;;  %vm15245_vm2 = vmmov %vm15240_vm14 }
 0x24f   : > { %4073 = vrot.lane.b32.xlu2 %v10180_v25, %s15083_s16  ;;  %v10615_v29 = vpop.permute.xlu2 %2851  ;;  %vm15249_vm15 = vmmov %vm15245_vm2  ;;  %s15493_s16 = smov 64  }
 0x251   : > { %8285 = vmatmul.msk.f32.vlgmr.msra.gmra.mxu0 %vm15238_vm1, %v10425_v12 }
 0x252   : > { %8288 = vmatmul.msk.f32.vlgmr.msra.gmra.mxu1 %vm15243_vm4, %v10425_v12  ;;  %vm15247_vm4 = vmmov %vm15238_vm1 }
 0x253   : > { %4044 = vrot.lane.b32.xlu0 %v15075_v41, %s8957_s20  ;;  %4036 = vrot.lane.b32.xlu1 %v10194_v57, %s8957_s20  ;;  %v2823_v0 = vpop.permute.xlu0 %2822  ;;  %v15354_v41 = vmov 4  }
 0x254   : > { %v2815_v47 = vpop.permute.xlu1 %2814 }
 0x255   : > { %v2828_v43 = vsel %vm15240_vm14, %v2813_v15, %v2815_v47  ;;  %v2829_v25 = vsel %vm15245_vm2, %v2815_v47, %v2817_v49  ;;  %8279 = vmatmul.msk.f32.vlgmr.msrb.gmra.mxu2 %vm15246_vm11, %v10425_v12  ;;  %8282 = vmatmul.msk.f32.vlgmr.msrb.gmra.mxu3 %vm15238_vm1, %v10425_v12  ;;  %vm15248_vm11 = vmmov %vm15238_vm1 }
 0x256   : > { %8302 = vmatpush.msk.msrb.mxu2 %vm10317_vm3, %v2827_v23  ;;  %8305 = vmatpush.msk.msrb.mxu3 %vm10375_vm7, %v2828_v43  ;;  %vm15250_vm14 = vmmov %vm15238_vm1 }
 0x257   : > { %8308 = vmatpush.msk.msra.mxu0 %vm10381_vm8, %v2829_v25  ;;  %4042 = vrot.lane.b32.xlu2 %v10190_v56, %s8957_s20  ;;  %vm15251_vm2 = vmmov %vm15238_vm1  ;;  %v2821_v14 = vpop.permute.xlu2 %2820 }
 0x259   : > { %8286 = vmatmul.msk.f32.gmra.mxu0 %vm15247_vm4, %v10459_v48  ;;  %vm15252_vm4 = vmmov %vm15238_vm1 }
 0x25a   : > { %8289 = vmatmul.msk.f32.gmra.mxu1 %vm15248_vm11, %v10459_v48  ;;  %vm15253_vm11 = vmmov %vm15249_vm15 }
 0x25b   : > { %4040 = vrot.lane.b32.xlu1 %v10188_v17, %s8957_s20  ;;  %v2832_v54 = vsel %vm15253_vm11, %v2821_v14, %v2823_v0  ;;  %s8959_s20 = smov 17  }
 0x25c   : > { %v2819_v11 = vpop.permute.xlu1 %2818 }
 0x25d   : > { %v2830_v42 = vsel %vm15249_vm15, %v2817_v49, %v2819_v11  ;;  %8280 = vmatmul.msk.f32.gmra.mxu2 %vm15250_vm14, %v10459_v48  ;;  %8283 = vmatmul.msk.f32.gmra.mxu3 %vm15251_vm2, %v10459_v48  ;;  %vm15254_vm15 = vmmov %vm15253_vm11 }
 0x25e   : > { %8311 = vmatpush.msk.msra.mxu1 %vm10349_vm6, %v2830_v42  ;;  %v2831_v28 = vsel %vm15254_vm15, %v2819_v11, %v2821_v14  ;;  %vm15255_vm14 = vmmov %vm15238_vm1 }
 0x25f   : > { %vm15256_vm2 = vmmov %vm15238_vm1 }
 0x260   : > { %vm15258_vm11 = vmmov %vm15238_vm1 }
 0x261   : > { %8297 = vmatmul.msk.f32.vlgmr.msrb.gmra.mxu0 %vm15238_vm1, %v10588_v45  ;;  %vm15259_vm15 = vmmov %vm15238_vm1 }
 0x262   : > { %8300 = vmatmul.msk.f32.vlgmr.msrb.gmra.mxu1 %vm15252_vm4, %v10588_v45  ;;  %3080 = vmatpush.msrb.mxu0 %v10149_v20  ;;  %vm15257_vm4 = vmmov %vm15238_vm1  ;;  %v3284_v20 = vpop.permute.xlu0 %3283 }
 0x263   : > { %3103 = vmatpush.msrb.mxu1 %v10151_v10  ;;  %v10656_v10 = vpop.permute.xlu2 %3059 }
 0x264   : > { %v10642_v9 = vpop.permute.xlu1 %3057 }
 0x265   : > { %8291 = vmatmul.msk.f32.vlgmr.msra.gmra.mxu2 %vm15255_vm14, %v10425_v12  ;;  %8294 = vmatmul.msk.f32.vlgmr.msra.gmra.mxu3 %vm15256_vm2, %v10425_v12  ;;  %vm15260_vm14 = vmmov %vm15238_vm1 }
 0x266   : > { %8314 = vmatpush.msk.msra.mxu2 %vm10415_vm9, %v2831_v28  ;;  %8317 = vmatpush.msk.msra.mxu3 %vm10421_vm10, %v2832_v54  ;;  %vm15261_vm2 = vmmov %vm15238_vm1 }
 0x269   : > { %8298 = vmatmul.msk.f32.gmra.mxu0 %vm15238_vm1, %v10615_v29 }
 0x26a   : > { %8301 = vmatmul.msk.f32.gmra.mxu1 %vm15257_vm4, %v10615_v29  ;;  %vm15262_vm4 = vmmov %vm15238_vm1 }
 0x26b   : > { %v3288_v38 = vpop.permute.xlu2 %3287 }
 0x26c   : > { %v3286_v12 = vpop.permute.xlu1 %3285 }
 0x26d   : > { %8292 = vmatmul.msk.f32.gmra.mxu2 %vm15258_vm11, %v10459_v48  ;;  %8295 = vmatmul.msk.f32.gmra.mxu3 %vm15259_vm15, %v10459_v48  ;;  %v10670_v48 = vpop.permute.xlu0 %3326  ;;  %vm15263_vm11 = vmmov %vm15238_vm1 }
 0x26e   : > { %vm15264_vm15 = vmmov %vm15238_vm1 }
 0x271   : > { %8309 = vmatmul.msk.f32.vlgmr.msra.gmra.mxu0 %vm15260_vm14, %v10588_v45  ;;  %vm15265_vm14 = vmmov %vm15238_vm1 }
 0x272   : > { %8312 = vmatmul.msk.f32.vlgmr.msra.gmra.mxu1 %vm15261_vm2, %v10588_v45  ;;  %3172 = vmatpush.msra.mxu0 %v10194_v57  ;;  %vm15266_vm2 = vmmov %vm15238_vm1 }
 0x273   : > { %3195 = vmatpush.msra.mxu1 %v10196_v55  ;;  %v3292_v55 = vpop.permute.xlu2 %3291 }
 0x275   : > { %8303 = vmatmul.msk.f32.vlgmr.msrb.gmra.mxu2 %vm15238_vm1, %v10588_v45  ;;  %8306 = vmatmul.msk.f32.vlgmr.msrb.gmra.mxu3 %vm15262_vm4, %v10588_v45  ;;  %v3290_v26 = vpop.permute.xlu1 %3289  ;;  %vm15069_vm1 = vcmask 1039360   ;;  %vm15267_vm4 = vmmov %vm15266_vm2 }
 0x276   : > { %3126 = vmatpush.msrb.mxu2 %v10153_v5  ;;  %3149 = vmatpush.msrb.mxu3 %v10155_v13  ;;  %v10680_v5 = vpop.permute.xlu0 %3328  ;;  %v3302_v13 = vsel %vm15069_vm1, %v3284_v20, %v3286_v12  ;;  %v3303_v57 = vsel %vm15069_vm1, %v3286_v12, %v3288_v38  ;;  %v3304_v50 = vsel %vm15069_vm1, %v3288_v38, %v3290_v26 }
 0x277   : > { %v3305_v51 = vsel %vm15069_vm1, %v3290_v26, %v3292_v55 }
 0x279   : > { %8310 = vmatmul.msk.f32.gmra.mxu0 %vm15263_vm11, %v10615_v29  ;;  %vm15268_vm11 = vmmov %vm15266_vm2 }
 0x27a   : > { %8313 = vmatmul.msk.f32.gmra.mxu1 %vm15264_vm15, %v10615_v29  ;;  %vm15269_vm15 = vmmov %vm15266_vm2 }
 0x27d   : > { %8304 = vmatmul.msk.f32.gmra.mxu2 %vm15265_vm14, %v10615_v29  ;;  %8307 = vmatmul.msk.f32.gmra.mxu3 %vm15266_vm2, %v10615_v29  ;;  %v3294_v19 = vpop.permute.xlu1 %3293  ;;  %vm15270_vm14 = vmmov %vm15266_vm2 }
 0x27e   : > { %v3298_v46 = vpop.permute.xlu0 %3297  ;;  %v3306_v21 = vsel %vm15069_vm1, %v3292_v55, %v3294_v19 }
 0x281   : > { %8320 = vmatmul.msk.f32.vlgmr.msrb.gmra.mxu0 %vm15267_vm4, %v10642_v9  ;;  %vm15271_vm4 = vmmov %vm15266_vm2 }
 0x282   : > { %8322 = vmatmul.msk.f32.vlgmr.msrb.gmra.mxu1 %vm15268_vm11, %v10642_v9  ;;  %8336 = vmatpush.msk.msrb.mxu0 %vm10449_vm12, %v3302_v13  ;;  %vm15272_vm11 = vmmov %vm15266_vm2 }
 0x283   : > { %8339 = vmatpush.msk.msrb.mxu1 %vm10455_vm13, %v3303_v57 }
 0x285   : > { %8315 = vmatmul.msk.f32.vlgmr.msra.gmra.mxu2 %vm15269_vm15, %v10588_v45  ;;  %8318 = vmatmul.msk.f32.vlgmr.msra.gmra.mxu3 %vm15270_vm14, %v10588_v45  ;;  %vm15273_vm15 = vmmov %vm15266_vm2  ;;  %v3300_v4 = vpop.permute.xlu1 %3299 }
 0x286   : > { %3218 = vmatpush.msra.mxu2 %v10188_v17  ;;  %3241 = vmatpush.msra.mxu3 %v10190_v56  ;;  %v3296_v17 = vpop.permute.xlu2 %3295  ;;  %vm15274_vm14 = vmmov %vm15266_vm2  ;;  %v3537_v60 = vpop.permute.xlu0 %3536 }
 0x287   : > { %v3307_v16 = vsel %vm15069_vm1, %v3294_v19, %v3296_v17 }
 0x288   : > { %v10698_v8 = vpop.f32.mrf.mxu2  ;;  %v10700_v59 = vpop.f32.mrf.mxu3 }
 0x289   : > { %8321 = vmatmul.msk.f32.gmra.mxu0 %vm15266_vm2, %v10656_v10 }
 0x28a   : > { %8323 = vmatmul.msk.f32.gmra.mxu1 %vm15271_vm4, %v10656_v10  ;;  %vm15275_vm4 = vnez %v15229_v39 }
 0x28d   : > { %8316 = vmatmul.msk.f32.gmra.mxu2 %vm15272_vm11, %v10615_v29  ;;  %8319 = vmatmul.msk.f32.gmra.mxu3 %vm15273_vm15, %v10615_v29  ;;  %vm15276_vm11 = vmmov %vm15266_vm2  ;;  %v3539_v45 = vpop.permute.xlu1 %3538 }
 0x28e   : > { %v10710_v56 = vpop.f32.mrf.mxu0  ;;  %vm15277_vm15 = vmmov %vm15266_vm2  ;;  %v3535_v34 = vpop.permute.xlu2 %3534 }
 0x28f   : > { %v10712_v52 = vpop.f32.mrf.mxu1  ;;  %vm15281_vm1 = vmmov %vm15276_vm11  ;;  %v3541_v29 = vpop.permute.xlu0 %3540 }
 0x290   : > { %v10714_v33 = vpop.f32.mrf.mxu2  ;;  %v10716_v2 = vpop.f32.mrf.mxu3 }
 0x291   : > { %8328 = vmatmul.msk.f32.vlgmr.msra.gmra.mxu0 %vm15274_vm14, %v10642_v9  ;;  %vm15278_vm14 = vnez %v15223_v18 }
 0x292   : > { %8330 = vmatmul.msk.f32.vlgmr.msra.gmra.mxu1 %vm15266_vm2, %v10642_v9  ;;  %8348 = vmatpush.msk.msra.mxu0 %vm10516_vm0, %v3306_v21  ;;  %vm15279_vm2 = vnez %v15225_v31 }
 0x293   : > { %8351 = vmatpush.msk.msra.mxu1 %vm15275_vm4, %v3307_v16 }
 0x295   : > { %8324 = vmatmul.msk.f32.vlgmr.msrb.gmra.mxu2 %vm15276_vm11, %v10642_v9  ;;  %8326 = vmatmul.msk.f32.vlgmr.msrb.gmra.mxu3 %vm15277_vm15, %v10642_v9  ;;  %vm15280_vm15 = vmmov %vm15276_vm11  ;;  %v3543_v0 = vpop.permute.xlu1 %3542 }
 0x296   : > { %8342 = vmatpush.msk.msrb.mxu2 %vm15278_vm14, %v3304_v50  ;;  %8345 = vmatpush.msk.msrb.mxu3 %vm15279_vm2, %v3305_v51  ;;  %v10738_v58 = vpop.f32.mrf.mxu0  ;;  %vm15282_vm14 = vmmov %vm15281_vm1  ;;  %vm15070_vm2 = vcmask 793600   ;;  %v10768_v42 = vpop.permute.xlu2 %3577 }
 0x297   : > { %v10740_v40 = vpop.f32.mrf.mxu1  ;;  %v3553_v25 = vsel %vm15070_vm2, %v3535_v34, %v3537_v60  ;;  %v3554_v11 = vsel %vm15070_vm2, %v3537_v60, %v3539_v45  ;;  %vm15287_vm2 = vmmov %vm15281_vm1 }
 0x298   : > { %v2230_v15 = vpop.f32.mrf.mxu2  ;;  %v2253_v3 = vpop.f32.mrf.mxu3 }
 0x299   : > { %8329 = vmatmul.msk.f32.gmra.mxu0 %vm15276_vm11, %v10656_v10  ;;  %vm15283_vm11 = vmmov %vm15281_vm1 }
 0x29a   : > { %8331 = vmatmul.msk.f32.gmra.mxu1 %vm15280_vm15, %v10656_v10  ;;  %vm15285_vm15 = vcmask 1039360  }
 0x29b   : > { %v3308_v14 = vsel %vm15285_vm15, %v3296_v17, %v3298_v46  ;;  %vm15286_vm4 = vmmov %vm15285_vm15 }
 0x29c   : > { %v3309_v54 = vsel %vm15286_vm4, %v3298_v46, %v3300_v4  ;;  %vm15292_vm4 = vmmov %vm15287_vm2 }
 0x29d   : > { %8325 = vmatmul.msk.f32.gmra.mxu2 %vm15281_vm1, %v10656_v10  ;;  %8327 = vmatmul.msk.f32.gmra.mxu3 %vm15282_vm14, %v10656_v10  ;;  %vm15284_vm14 = vnez %v15205_v37  ;;  %vm15293_vm15 = vmmov %vm15287_vm2  ;;  %v3547_v38 = vpop.permute.xlu1 %3546 }
 0x29e   : > { %v10750_v49 = vpop.f32.mrf.mxu0  ;;  %v10796_v12 = vpop.permute.xlu2 %3579 }
 0x29f   : > { %v10752_v47 = vpop.f32.mrf.mxu1 }
 0x2a0   : > { %v10754_v23 = vpop.f32.mrf.mxu2  ;;  %v10756_v43 = vpop.f32.mrf.mxu3 }
 0x2a1   : > { %8337 = vmatmul.msk.f32.vlgmr.msrb.gmra.mxu0 %vm15283_vm11, %v10670_v48  ;;  %vm15288_vm11 = vmmov %vm15281_vm1 }
 0x2a2   : > { %8340 = vmatmul.msk.f32.vlgmr.msrb.gmra.mxu1 %vm15281_vm1, %v10670_v48  ;;  %8360 = vmatpush.msk.msrb.mxu0 %vm15284_vm14, %v3553_v25  ;;  %vm15289_vm1 = vnez %v15231_v24  ;;  %vm15290_vm14 = vnez %v15233_v27 }
 0x2a3   : > { %8363 = vmatpush.msk.msrb.mxu1 %vm10336_vm5, %v3554_v11  ;;  %vm15291_vm5 = vmmov %vm15287_vm2 }
 0x2a5   : > { %8332 = vmatmul.msk.f32.vlgmr.msra.gmra.mxu2 %vm15287_vm2, %v10642_v9  ;;  %8334 = vmatmul.msk.f32.vlgmr.msra.gmra.mxu3 %vm15288_vm11, %v10642_v9  ;;  %v3545_v9 = vpop.permute.xlu0 %3544  ;;  %vm15294_vm11 = vcmask 793600   ;;  %v8631_v34 = vpop.permute.xlu1 %8630 }
 0x2a6   : > { %8354 = vmatpush.msk.msra.mxu2 %vm15289_vm1, %v3308_v14  ;;  %8357 = vmatpush.msk.msra.mxu3 %vm15290_vm14, %v3309_v54  ;;  %v10780_v37 = vpop.f32.mrf.mxu0  ;;  %v3557_v19 = vsel %vm15294_vm11, %v3543_v0, %v3545_v9  ;;  %v3549_v50 = vpop.permute.xlu2 %3548  ;;  %v8633_v6 = vunpack.i.h.bf16 %v8631_v34  ;;  %v8632_v35 = vunpack.i.l.bf16 %v8631_v34 }
 0x2a7   : > { %v10782_v1 = vpop.f32.mrf.mxu1 }
 0x2a8   : > { %v10784_v28 = vpop.f32.mrf.mxu2  ;;  %v10786_v20 = vpop.f32.mrf.mxu3 }
 0x2a9   : > { %8338 = vmatmul.msk.f32.gmra.mxu0 %vm15291_vm5, %v10680_v5  ;;  %vm15295_vm5 = vmmov %vm15294_vm11 }
 0x2aa   : > { %8341 = vmatmul.msk.f32.gmra.mxu1 %vm15292_vm4, %v10680_v5  ;;  %v3558_v46 = vsel %vm15295_vm5, %v3545_v9, %v3547_v38  ;;  %vm15296_vm4 = vmmov %vm15287_vm2 }
 0x2ab   : > { %vm15298_vm14 = vmmov %vm15295_vm5 }
 0x2ac   : > { %v3556_v17 = vsel %vm15298_vm14, %v3541_v29, %v3543_v0  ;;  %vm15299_vm11 = vmmov %vm15287_vm2  ;;  %vm3807_vm14 = vcmask 785408  }
 0x2ad   : > { %8333 = vmatmul.msk.f32.gmra.mxu2 %vm15287_vm2, %v10656_v10  ;;  %8335 = vmatmul.msk.f32.gmra.mxu3 %vm15293_vm15, %v10656_v10  ;;  %vm15297_vm15 = vmmov %vm15295_vm5  ;;  %v3551_v4 = vpop.permute.xlu0 %3550  ;;  %v3808_v14 = vsel %vm3807_vm14, %v8632_v35, %v8633_v6 }
 0x2ae   : > { %v10798_v26 = vpop.f32.mrf.mxu0  ;;  %v3555_v10 = vsel %vm15297_vm15, %v3539_v45, %v3541_v29  ;;  %vm15300_vm5 = vmmov %vm15287_vm2  ;;  %v10858_v9 = vpop.permute.xlu2 %3785 }
 0x2af   : > { %v10800_v13 = vpop.f32.mrf.mxu1 }
 0x2b0   : > { %v10802_v57 = vpop.f32.mrf.mxu2  ;;  %v10804_v55 = vpop.f32.mrf.mxu3 }
 0x2b1   : > { %8349 = vmatmul.msk.f32.vlgmr.msra.gmra.mxu0 %vm15296_vm4, %v10670_v48  ;;  %vm15305_vm4 = vmmov %vm15287_vm2 }
 0x2b2   : > { %8352 = vmatmul.msk.f32.vlgmr.msra.gmra.mxu1 %vm15287_vm2, %v10670_v48  ;;  %8372 = vmatpush.msk.msra.mxu0 %vm10381_vm8, %v3557_v19  ;;  %vm15304_vm8 = vmmov %vm15287_vm2  ;;  %v10860_v19 = vpop.permute.xlu1 %3787 }
 0x2b3   : > { %8375 = vmatpush.msk.msra.mxu1 %vm10349_vm6, %v3558_v46  ;;  %vm15301_vm6 = vmmov %vm15287_vm2 }
 0x2b5   : > { %8343 = vmatmul.msk.f32.vlgmr.msrb.gmra.mxu2 %vm15299_vm11, %v10670_v48  ;;  %8346 = vmatmul.msk.f32.vlgmr.msrb.gmra.mxu3 %vm15300_vm5, %v10670_v48  ;;  %v3794_v29 = vpop.permute.xlu0 %3793  ;;  %vm15306_vm11 = vmmov %vm15297_vm15 }
 0x2b6   : > { %8366 = vmatpush.msk.msrb.mxu2 %vm10317_vm3, %v3555_v10  ;;  %8369 = vmatpush.msk.msrb.mxu3 %vm10375_vm7, %v3556_v17  ;;  %v10826_v30 = vpop.f32.mrf.mxu0  ;;  %vm15302_vm3 = vmmov %vm15287_vm2  ;;  %v3809_v54 = vsel %vm3807_vm14, %v8633_v6, %v3794_v29  ;;  %v8636_v22 = vpop.permute.xlu2 %8635 }
 0x2b7   : > { %v10828_v44 = vpop.f32.mrf.mxu1  ;;  %vm15303_vm7 = vmmov %vm15287_vm2  ;;  %v8638_v34 = vunpack.i.h.bf16 %v8636_v22 }
 0x2b8   : > { %v2418_v21 = vpop.f32.mrf.mxu2  ;;  %v2441_v16 = vpop.f32.mrf.mxu3  ;;  %vm15307_vm5 = vmmov %vm15287_vm2 }
 0x2b9   : > { %v10830_v51 = vadd.f32 %v2418_v21, %v2230_v15  ;;  %v10832_v60 = vadd.f32 %v2441_v16, %v2253_v3  ;;  %8350 = vmatmul.msk.f32.gmra.mxu0 %vm15301_vm6, %v10680_v5  ;;  %vm15308_vm6 = vmmov %vm15287_vm2 }
 0x2ba   : > { %8353 = vmatmul.msk.f32.gmra.mxu1 %vm15302_vm3, %v10680_v5  ;;  %vm15309_vm3 = vmmov %vm15287_vm2  ;;  %v8646_v16 = vpop.permute.xlu1 %8645 }
 0x2bd   : > { %8344 = vmatmul.msk.f32.gmra.mxu2 %vm15303_vm7, %v10680_v5  ;;  %8347 = vmatmul.msk.f32.gmra.mxu3 %vm15304_vm8, %v10680_v5  ;;  %v8641_v62 = vpop.permute.xlu0 %8640  ;;  %vm15312_vm7 = vmmov %vm15287_vm2 }
 0x2be   : > { %v10842_v45 = vpop.f32.mrf.mxu0  ;;  %vm15313_vm8 = vmmov %vm15287_vm2 }
 0x2bf   : > { %v10844_v15 = vpop.f32.mrf.mxu1 }
 0x2c0   : > { %v2421_v3 = vpop.f32.mrf.mxu2  ;;  %v2444_v25 = vpop.f32.mrf.mxu3 }
 0x2c1   : > { %v10847_v11 = vadd.f32 %v2421_v3, %v10754_v23  ;;  %v10850_v0 = vadd.f32 %v2444_v25, %v10756_v43  ;;  %8361 = vmatmul.msk.f32.vlgmr.msrb.gmra.mxu0 %vm15305_vm4, %v10768_v42  ;;  %v3560_v23 = vsel %vm15297_vm15, %v3549_v50, %v3551_v4  ;;  %v3559_v43 = vsel %vm15306_vm11, %v3547_v38, %v3549_v50  ;;  %vm15314_vm4 = vmmov %vm15287_vm2 }
 0x2c2   : > { %8364 = vmatmul.msk.f32.vlgmr.msrb.gmra.mxu1 %vm15287_vm2, %v10768_v42  ;;  %3843 = vmatpush.msrb.mxu0 %v3808_v14  ;;  %v8637_v3 = vunpack.i.l.bf16 %v8636_v22  ;;  %vm15315_vm15 = vmmov %vm15287_vm2  ;;  %v10922_v22 = vpop.permute.xlu1 %4032 }
 0x2c3   : > { %3866 = vmatpush.msrb.mxu1 %v3809_v54  ;;  %vm15316_vm11 = vmmov %vm15287_vm2 }
 0x2c5   : > { %8355 = vmatmul.msk.f32.vlgmr.msra.gmra.mxu2 %vm15307_vm5, %v10670_v48  ;;  %8358 = vmatmul.msk.f32.vlgmr.msra.gmra.mxu3 %vm15308_vm6, %v10670_v48  ;;  %v8643_v48 = vunpack.i.h.bf16 %v8641_v62  ;;  %vm15317_vm5 = vmmov %vm15287_vm2 }
 0x2c6   : > { %8378 = vmatpush.msk.msra.mxu2 %vm10415_vm9, %v3559_v43  ;;  %8381 = vmatpush.msk.msra.mxu3 %vm10421_vm10, %v3560_v23  ;;  %v10872_v46 = vpop.f32.mrf.mxu0  ;;  %vm15310_vm9 = vmmov %vm15287_vm2  ;;  %v3810_v23 = vsel %vm3807_vm14, %v3794_v29, %v8637_v3 }
 0x2c7   : > { %v10874_v10 = vpop.f32.mrf.mxu1  ;;  %vm15311_vm10 = vmmov %vm15287_vm2 }
 0x2c8   : > { %v2510_v17 = vpop.f32.mrf.mxu2  ;;  %v2533_v4 = vpop.f32.mrf.mxu3  ;;  %vm15318_vm6 = vmmov %vm15287_vm2 }
 0x2c9   : > { %v10877_v38 = vadd.f32 %v2510_v17, %v10784_v28  ;;  %v10880_v21 = vadd.f32 %v2533_v4, %v10786_v20  ;;  %8362 = vmatmul.msk.f32.gmra.mxu0 %vm15309_vm3, %v10796_v12  ;;  %v8642_v28 = vunpack.i.l.bf16 %v8641_v62  ;;  %vm15319_vm3 = vmmov %vm15287_vm2 }
 0x2ca   : > { %8365 = vmatmul.msk.f32.gmra.mxu1 %vm15310_vm9, %v10796_v12  ;;  %vm4046_vm9 = vcmask 777216  }
 0x2cb   : > { %v3813_v54 = vsel %vm3807_vm14, %v8642_v28, %v8643_v48 }
 0x2cd   : > { %8356 = vmatmul.msk.f32.gmra.mxu2 %vm15311_vm10, %v10680_v5  ;;  %8359 = vmatmul.msk.f32.gmra.mxu3 %vm15312_vm7, %v10680_v5  ;;  %v3812_v5 = vsel %vm3807_vm14, %v8638_v34, %v8642_v28  ;;  %v4031_v28 = vpop.permute.xlu0 %4030  ;;  %vm15322_vm10 = vmmov %vm15287_vm2 }
 0x2ce   : > { %v10890_v50 = vpop.f32.mrf.mxu0  ;;  %vm15323_vm7 = vmmov %vm15287_vm2 }
 0x2cf   : > { %v10892_v20 = vpop.f32.mrf.mxu1 }
 0x2d0   : > { %v2513_v6 = vpop.f32.mrf.mxu2  ;;  %v2536_v35 = vpop.f32.mrf.mxu3 }
 0x2d1   : > { %v10895_v25 = vadd.f32 %v2513_v6, %v10802_v57  ;;  %v10898_v14 = vadd.f32 %v2536_v35, %v10804_v55  ;;  %8373 = vmatmul.msk.f32.vlgmr.msra.gmra.mxu0 %vm15313_vm8, %v10768_v42  ;;  %v3811_v57 = vsel %vm3807_vm14, %v8637_v3, %v8638_v34  ;;  %v4029_v35 = vpop.permute.xlu2 %4028  ;;  %v8648_v3 = vunpack.i.h.bf16 %v8646_v16  ;;  %vm15324_vm8 = vmmov %vm15287_vm2 }
 0x2d2   : > { %8376 = vmatmul.msk.f32.vlgmr.msra.gmra.mxu1 %vm15314_vm4, %v10768_v42  ;;  %3935 = vmatpush.msra.mxu0 %v3812_v5  ;;  %v8647_v5 = vunpack.i.l.bf16 %v8646_v16  ;;  %vm15325_vm4 = vmmov %vm15287_vm2 }
 0x2d3   : > { %3958 = vmatpush.msra.mxu1 %v3813_v54 }
 0x2d4   : > { %v3815_v16 = vsel %vm3807_vm14, %v8647_v5, %v8648_v3 }
 0x2d5   : > { %8367 = vmatmul.msk.f32.vlgmr.msrb.gmra.mxu2 %vm15287_vm2, %v10768_v42  ;;  %8370 = vmatmul.msk.f32.vlgmr.msrb.gmra.mxu3 %vm15315_vm15, %v10768_v42  ;;  %vm15331_vm15 = vmmov %vm15287_vm2 }
 0x2d6   : > { %3889 = vmatpush.msrb.mxu2 %v3810_v23  ;;  %3912 = vmatpush.msrb.mxu3 %v3811_v57  ;;  %v10912_v55 = vpop.f32.mrf.mxu0  ;;  %v4047_v57 = vsel %vm4046_vm9, %v4029_v35, %v4031_v28 }
 0x2d7   : > { %v10914_v43 = vpop.f32.mrf.mxu1 }
 0x2d8   : > { %v2669_v17 = vpop.f32.mrf.mxu2  ;;  %v2692_v4 = vpop.f32.mrf.mxu3 }
 0x2d9   : > { %v10917_v62 = vadd.f32 %v2669_v17, %v10830_v51  ;;  %v10920_v29 = vadd.f32 %v2692_v4, %v10832_v60  ;;  %8374 = vmatmul.msk.f32.gmra.mxu0 %vm15316_vm11, %v10796_v12  ;;  %v4048_v17 = vsel %vm4046_vm9, %v4031_v28, %v10922_v22  ;;  %v4035_v4 = vpop.permute.xlu0 %4034  ;;  %vm15334_vm11 = vmmov %vm15287_vm2 }
 0x2da   : > { %8377 = vmatmul.msk.f32.gmra.mxu1 %vm15317_vm5, %v10796_v12  ;;  %vm15335_vm5 = vmmov %vm15287_vm2 }
 0x2dd   : > { %8368 = vmatmul.msk.f32.gmra.mxu2 %vm15318_vm6, %v10796_v12  ;;  %8371 = vmatmul.msk.f32.gmra.mxu3 %vm15319_vm3, %v10796_v12  ;;  %vm15336_vm6 = vnez %v15229_v39  ;;  %vm15337_vm3 = vmmov %vm15287_vm2 }
 0x2de   : > { %v10932_v51 = vpop.f32.mrf.mxu0 }
 0x2df   : > { %v10934_v60 = vpop.f32.mrf.mxu1 }
 0x2e0   : > { %v2672_v34 = vpop.f32.mrf.mxu2  ;;  %v2695_v6 = vpop.f32.mrf.mxu3 }
 0x2e1   : > { %v10937_v54 = vadd.f32 %v2672_v34, %v10847_v11  ;;  %v10940_v23 = vadd.f32 %v2695_v6, %v10850_v0  ;;  %8384 = vmatmul.msk.f32.vlgmr.msrb.gmra.mxu0 %vm15322_vm10, %v10858_v9  ;;  %v4037_v11 = vpop.permute.xlu1 %4036  ;;  %v3814_v0 = vsel %vm3807_vm14, %v8643_v48, %v8647_v5  ;;  %vm15338_vm10 = vmmov %vm15287_vm2 }
 0x2e2   : > { %8386 = vmatmul.msk.f32.vlgmr.msrb.gmra.mxu1 %vm15323_vm7, %v10858_v9  ;;  %8400 = vmatpush.msk.msrb.mxu0 %vm10449_vm12, %v4047_v57  ;;  %vm15328_vm12 = vmmov %vm15287_vm2  ;;  %vm15339_vm7 = vnez %v15223_v18  ;;  %v15345_v18 = vmov 2  }
 0x2e3   : > { %15320 = vst [vmem:[#allocation18_spill] sm:$0xff] %v10937_v54  ;;  %8403 = vmatpush.msk.msrb.mxu1 %vm10455_vm13, %v4048_v17  ;;  %vm15329_vm13 = vmmov %vm15287_vm2  ;;  %v4039_v17 = vpop.permute.xlu0 %4038 }
 0x2e4   : > { %15321 = vst [vmem:[#allocation10_spill] sm:$0xff] %v10940_v23 }
 0x2e5   : > { %8379 = vmatmul.msk.f32.vlgmr.msra.gmra.mxu2 %vm15324_vm8, %v10768_v42  ;;  %8382 = vmatmul.msk.f32.vlgmr.msra.gmra.mxu3 %vm15325_vm4, %v10768_v42  ;;  %v2040_v42 = vld [vmem:[%s15330_s4] sm:$0xff]  ;;  %vm15343_vm8 = vmmov %vm15287_vm2 }
 0x2e6   : > { %3981 = vmatpush.msra.mxu2 %v3814_v0  ;;  %4004 = vmatpush.msra.mxu3 %v3815_v16  ;;  %v10959_v28 = vpop.f32.mrf.mxu0  ;;  %vm15344_vm4 = vmmov %vm15287_vm2 }
 0x2e7   : > { %v10961_v61 = vpop.f32.mrf.mxu1  ;;  %4281 = vperm.xlu1 %8649, %v2040_v42   ;;  %4346 = vperm.xlu0 %8651, %v2040_v42  }
 0x2e8   : > { %v2761_v63 = vpop.f32.mrf.mxu2  ;;  %v2784_v34 = vpop.f32.mrf.mxu3  ;;  %4322 = vperm.xlu2 %8650, %v2040_v42   ;;  %v15341_v42 = vmov 3  }
 0x2e9   : > { %v10964_v6 = vadd.f32 %v2761_v63, %v10877_v38  ;;  %v10967_v35 = vadd.f32 %v2784_v34, %v10880_v21  ;;  %8385 = vmatmul.msk.f32.gmra.mxu0 %vm15328_vm12, %v10860_v19  ;;  %v10980_v38 = vpop.permute.xlu2 %4071  ;;  %v4041_v21 = vpop.permute.xlu1 %4040  ;;  %v4051_v63 = vsel %vm4046_vm9, %v4037_v11, %v4039_v17  ;;  %v2041_v34 = vld [vmem:[%s15330_s4 + $0x8] sm:$0xff]  ;;  %vm15346_vm12 = vmmov %vm15287_vm2 }
 0x2ea   : > { %8387 = vmatmul.msk.f32.gmra.mxu1 %vm15329_vm13, %v10860_v19  ;;  %vm15347_vm13 = vmmov %vm15287_vm2 }
 0x2eb   : > { %15326 = vst [vmem:[#allocation22_spill] sm:$0xff] %v10964_v6 }
 0x2ec   : > { %15327 = vst [vmem:[#allocation13_spill] sm:$0xff] %v10967_v35 }
 0x2ed   : > { %8380 = vmatmul.msk.f32.gmra.mxu2 %vm15287_vm2, %v10796_v12  ;;  %8383 = vmatmul.msk.f32.gmra.mxu3 %vm15331_vm15, %v10796_v12  ;;  %v4052_v12 = vsel %vm4046_vm9, %v4039_v17, %v4041_v21  ;;  %vm15350_vm15 = vmmov %vm15287_vm2 }
 0x2ee   : > { %v10982_v48 = vpop.f32.mrf.mxu0 }
 0x2ef   : > { %v10984_v3 = vpop.f32.mrf.mxu1  ;;  %4286 = vperm.xlu1 %8649, %v2041_v34   ;;  %8744 = vset.pattern.permute.xlu0 %v15341_v42 }
 0x2f0   : > { %v2764_v5 = vpop.f32.mrf.mxu2  ;;  %v2787_v57 = vpop.f32.mrf.mxu3  ;;  %4326 = vperm.xlu2 %8650, %v2041_v34  }
 0x2f1   : > { %v10987_v0 = vadd.f32 %v2764_v5, %v10895_v25  ;;  %v10990_v16 = vadd.f32 %v2787_v57, %v10898_v14  ;;  %8392 = vmatmul.msk.f32.vlgmr.msra.gmra.mxu0 %vm15334_vm11, %v10858_v9  ;;  %v4049_v25 = vsel %vm4046_vm9, %v10922_v22, %v4035_v4  ;;  %v4050_v14 = vsel %vm4046_vm9, %v4035_v4, %v4037_v11  ;;  %v4074_v4 = vpop.permute.xlu2 %4073  ;;  %vm15351_vm11 = vmmov %vm15287_vm2 }
 0x2f2   : > { %8394 = vmatmul.msk.f32.vlgmr.msra.gmra.mxu1 %vm15335_vm5, %v10858_v9  ;;  %8412 = vmatpush.msk.msra.mxu0 %vm10516_vm0, %v4051_v63  ;;  %vm15340_vm0 = vnez %v15225_v31  ;;  %v4045_v63 = vpop.permute.xlu0 %4044  ;;  %vm15352_vm5 = vmmov %vm15287_vm2 }
 0x2f3   : > { %15332 = vst [vmem:[#allocation20_spill] sm:$0xff] %v10987_v0  ;;  %8415 = vmatpush.msk.msra.mxu1 %vm15336_vm6, %v4052_v12  ;;  %vm15353_vm6 = vnez %v15233_v27 }
 0x2f4   : > { %15333 = vst [vmem:[#allocation15_spill] sm:$0xff] %v10990_v16 }
 0x2f5   : > { %8388 = vmatmul.msk.f32.vlgmr.msrb.gmra.mxu2 %vm15337_vm3, %v10858_v9  ;;  %8390 = vmatmul.msk.f32.vlgmr.msrb.gmra.mxu3 %vm15338_vm10, %v10858_v9  ;;  %vm15358_vm3 = vmmov %vm15287_vm2 }
 0x2f6   : > { %8406 = vmatpush.msk.msrb.mxu2 %vm15339_vm7, %v4049_v25  ;;  %8409 = vmatpush.msk.msrb.mxu3 %vm15340_vm0, %v4050_v14  ;;  %v11016_v36 = vpop.f32.mrf.mxu0  ;;  %vm15359_vm10 = vmmov %vm15287_vm2 }
 0x2f7   : > { %v11018_v39 = vpop.f32.mrf.mxu1  ;;  %8652 = vset.pattern.permute.xlu1 %v15345_v18 }
 0x2f8   : > { %v11021_v22 = vpop.f32.mrf.mxu2  ;;  %v11023_v11 = vpop.f32.mrf.mxu3  ;;  %8743 = vset.pattern.permute.xlu2 %v15341_v42  ;;  %4350 = vperm.xlu1 %8652, %v2041_v34  }
 0x2f9   : > { %15342 = vst [vmem:[#allocation21_spill] sm:$0xff] %v11023_v11  ;;  %8393 = vmatmul.msk.f32.gmra.mxu0 %vm15343_vm8, %v10860_v19  ;;  %v4043_v12 = vpop.permute.xlu2 %4042 }
 0x2fa   : > { %8395 = vmatmul.msk.f32.gmra.mxu1 %vm15344_vm4, %v10860_v19  ;;  %v4054_v25 = vsel %vm4046_vm9, %v4043_v12, %v4045_v63  ;;  %v4053_v34 = vsel %vm4046_vm9, %v4041_v21, %v4043_v12  ;;  %vm15357_vm9 = vmmov %vm15287_vm2 }
 0x2fd   : > { %8389 = vmatmul.msk.f32.gmra.mxu2 %vm15346_vm12, %v10860_v19  ;;  %8391 = vmatmul.msk.f32.gmra.mxu3 %vm15347_vm13, %v10860_v19 }
 0x2fe   : > { %v11035_v31 = vpop.f32.mrf.mxu0 }
 0x2ff   : > { %v11037_v5 = vpop.f32.mrf.mxu1 }
 0x300   : > { %v11039_v57 = vpop.f32.mrf.mxu2  ;;  %v11041_v17 = vpop.f32.mrf.mxu3  ;;  %8745 = vset.pattern.permute.xlu1 %v15354_v41 }
 0x301   : > { %15348 = vst [vmem:[#allocation17_spill] sm:$0xff] %v11039_v57  ;;  %8401 = vmatmul.msk.f32.vlgmr.msrb.gmra.mxu0 %vm15287_vm2, %v10980_v38 }
 0x302   : > { %15349 = vst [vmem:[#allocation12_spill] sm:$0xff] %v11041_v17  ;;  %8404 = vmatmul.msk.f32.vlgmr.msrb.gmra.mxu1 %vm15350_vm15, %v10980_v38 }
 0x305   : > { %8396 = vmatmul.msk.f32.vlgmr.msra.gmra.mxu2 %vm15351_vm11, %v10858_v9  ;;  %8398 = vmatmul.msk.f32.vlgmr.msra.gmra.mxu3 %vm15352_vm5, %v10858_v9 }
 0x306   : > { %8418 = vmatpush.msk.msra.mxu2 %vm15289_vm1, %v4053_v34  ;;  %8421 = vmatpush.msk.msra.mxu3 %vm15353_vm6, %v4054_v25  ;;  %v11057_v14 = vpop.f32.mrf.mxu0  ;;  %vm15360_vm1 = vmmov %vm15287_vm2 }
 0x307   : > { %v11059_v32 = vpop.f32.mrf.mxu1  ;;  %vm15363_vm7 = vmmov %vm15360_vm1 }
 0x308   : > { %v11062_v63 = vpop.f32.mrf.mxu2  ;;  %v11064_v21 = vpop.f32.mrf.mxu3  ;;  %vm15364_vm0 = vmmov %vm15360_vm1 }
 0x309   : > { %15355 = vst [vmem:[#allocation11_spill] sm:$0xff] %v11062_v63  ;;  %8402 = vmatmul.msk.f32.gmra.mxu0 %vm15357_vm9, %v4074_v4  ;;  %vm15365_vm8 = vmmov %vm15364_vm0 }
 0x30a   : > { %15356 = vst [vmem:[#allocation19_spill] sm:$0xff] %v11064_v21  ;;  %8405 = vmatmul.msk.f32.gmra.mxu1 %vm15358_vm3, %v4074_v4  ;;  %vm15366_vm4 = vmmov %vm15364_vm0  ;;  %vm15469_vm3 = vcmask 1039360  }
 0x30b   : > { %vm15371_vm12 = vmmov %vm15364_vm0 }
 0x30c   : > { %vm15372_vm13 = vmmov %vm15364_vm0 }
 0x30d   : > { %8397 = vmatmul.msk.f32.gmra.mxu2 %vm15359_vm10, %v10860_v19  ;;  %8399 = vmatmul.msk.f32.gmra.mxu3 %vm15360_vm1, %v10860_v19  ;;  %vm15373_vm2 = vmmov %vm15364_vm0 }
 0x30e   : > { %v11072_v24 = vpop.f32.mrf.mxu0  ;;  %vm15374_vm15 = vmmov %vm15364_vm0 }
 0x30f   : > { %v11074_v27 = vpop.f32.mrf.mxu1  ;;  %vm15377_vm11 = vmmov %vm15364_vm0 }
 0x310   : > { %v11076_v9 = vpop.f32.mrf.mxu2  ;;  %v11078_v12 = vpop.f32.mrf.mxu3  ;;  %vm15378_vm5 = vmmov %vm15364_vm0 }
 0x311   : > { %15361 = vst [vmem:[#allocation23_spill] sm:$0xff] %v11076_v9  ;;  %8413 = vmatmul.msk.f32.vlgmr.msra.gmra.mxu0 %vm15363_vm7, %v10980_v38  ;;  %vm15381_vm6 = vmmov %vm15364_vm0 }
 0x312   : > { %15362 = vst [vmem:[#allocation24_spill] sm:$0xff] %v11078_v12  ;;  %8416 = vmatmul.msk.f32.vlgmr.msra.gmra.mxu1 %vm15364_vm0, %v10980_v38  ;;  %vm15382_vm9 = vmmov %vm15364_vm0 }
 0x313   : > { %vm15470_vm10 = vmmov %vm15469_vm3 }
 0x314   : > { %vm15471_vm1 = vmmov %vm15469_vm3 }
 0x315   : > { %8407 = vmatmul.msk.f32.vlgmr.msrb.gmra.mxu2 %vm15365_vm8, %v10980_v38  ;;  %8410 = vmatmul.msk.f32.vlgmr.msrb.gmra.mxu3 %vm15366_vm4, %v10980_v38  ;;  %vm15472_vm7 = vmmov %vm15471_vm1 }
 0x316   : > { %v11088_v19 = vpop.f32.mrf.mxu0  ;;  %vm15473_vm0 = vmmov %vm15471_vm1 }
 0x317   : > { %15367 = vst [vmem:[#allocation25_spill] sm:$0xff] %v11088_v19  ;;  %v11090_v25 = vpop.f32.mrf.mxu1  ;;  %vm15474_vm8 = vmmov %vm15473_vm0 }
 0x318   : > { %15368 = vst [vmem:[#allocation26_spill] sm:$0xff] %v11090_v25  ;;  %v11092_v34 = vpop.f32.mrf.mxu2  ;;  %v11094_v42 = vpop.f32.mrf.mxu3  ;;  %vm15475_vm4 = vmmov %vm15473_vm0 }
 0x319   : > { %15369 = vst [vmem:[#allocation27_spill] sm:$0xff] %v11092_v34  ;;  %8414 = vmatmul.msk.f32.gmra.mxu0 %vm15371_vm12, %v4074_v4  ;;  %vm15476_vm12 = vmmov %vm15473_vm0 }
 0x31a   : > { %15370 = vst [vmem:[#allocation28_spill] sm:$0xff] %v11094_v42  ;;  %8417 = vmatmul.msk.f32.gmra.mxu1 %vm15372_vm13, %v4074_v4  ;;  %vm15477_vm13 = vmmov %vm15473_vm0 }
 0x31d   : > { %8408 = vmatmul.msk.f32.gmra.mxu2 %vm15373_vm2, %v4074_v4  ;;  %8411 = vmatmul.msk.f32.gmra.mxu3 %vm15374_vm15, %v4074_v4  ;;  %vm15478_vm2 = vmmov %vm15473_vm0 }
 0x31e   : > { %v11100_v53 = vpop.f32.mrf.mxu0  ;;  %vm15479_vm15 = vmmov %vm15473_vm0 }
 0x31f   : > { %v11102_v7 = vpop.f32.mrf.mxu1 }
 0x320   : > { %v11104_v18 = vpop.f32.mrf.mxu2  ;;  %v11106_v41 = vpop.f32.mrf.mxu3 }
 0x321   : > { %15375 = vst [vmem:[#allocation29_spill] sm:$0xff] %v11104_v18 }
 0x322   : > { %15376 = vst [vmem:[#allocation30_spill] sm:$0xff] %v11106_v41 }
 0x325   : > { %8419 = vmatmul.msk.f32.vlgmr.msra.gmra.mxu2 %vm15377_vm11, %v10980_v38  ;;  %8422 = vmatmul.msk.f32.vlgmr.msra.gmra.mxu3 %vm15378_vm5, %v10980_v38  ;;  %vm15480_vm11 = vmmov %vm15473_vm0 }
 0x326   : > { %v11112_v12 = vpop.f32.mrf.mxu0  ;;  %vm15481_vm5 = vmmov %vm15473_vm0 }
 0x327   : > { %v11114_v16 = vpop.f32.mrf.mxu1 }
 0x328   : > { %v11116_v9 = vpop.f32.mrf.mxu2  ;;  %v11118_v0 = vpop.f32.mrf.mxu3 }
 0x329   : > { %15379 = vst [vmem:[#allocation31_spill] sm:$0xff] %v11116_v9 }
 0x32a   : > { %15380 = vst [vmem:[#allocation32_spill] sm:$0xff] %v11118_v0 }
 0x32d   : > { %8420 = vmatmul.msk.f32.gmra.mxu2 %vm15381_vm6, %v4074_v4  ;;  %8423 = vmatmul.msk.f32.gmra.mxu3 %vm15382_vm9, %v4074_v4  ;;  %vm15482_vm6 = vmmov %vm15473_vm0 }
 0x32e   : > { %v11122_v18 = vpop.f32.mrf.mxu0  ;;  %vm15483_vm9 = vmmov %vm15473_vm0 }
 0x32f   : > { %v11124_v41 = vpop.f32.mrf.mxu1 }
 0x330   : > { %v11126_v21 = vpop.f32.mrf.mxu2  ;;  %v11128_v35 = vpop.f32.mrf.mxu3 }
 0x331   : > { %15383 = vst [vmem:[#allocation33_spill] sm:$0xff] %v11126_v21 }
 0x332   : > { %15384 = vst [vmem:[#allocation34_spill] sm:$0xff] %v11128_v35 }
 0x336   : > { %v11130_v38 = vpop.f32.mrf.mxu0 }
 0x337   : > { %15385 = vst [vmem:[#allocation35_spill] sm:$0xff] %v11130_v38  ;;  %v11132_v63 = vpop.f32.mrf.mxu1 }
 0x338   : > { %15386 = vst [vmem:[#allocation36_spill] sm:$0xff] %v11132_v63  ;;  %v11134_v6 = vpop.f32.mrf.mxu2  ;;  %v11136_v9 = vpop.f32.mrf.mxu3 }
 0x339   : > { %15387 = vst [vmem:[#allocation37_spill] sm:$0xff] %v11134_v6 }
 0x33a   : > { %15388 = vst [vmem:[#allocation38_spill] sm:$0xff] %v11136_v9 }
 0x33e   : > { %v3602_v0 = vpop.f32.mrf.mxu0 }
 0x33f   : > { %v3625_v17 = vpop.f32.mrf.mxu1 }
 0x340   : > { %v11138_v23 = vpop.f32.mrf.mxu2  ;;  %v11140_v4 = vpop.f32.mrf.mxu3 }
 0x341   : > { %15389 = vst [vmem:[#allocation39_spill] sm:$0xff] %v11138_v23 }
 0x342   : > { %15390 = vst [vmem:[#allocation40_spill] sm:$0xff] %v11140_v4 }
 0x346   : > { %v11142_v57 = vpop.f32.mrf.mxu0 }
 0x347   : > { %v11144_v54 = vpop.f32.mrf.mxu1 }
 0x348   : > { %v11146_v21 = vpop.f32.mrf.mxu2  ;;  %v11148_v35 = vpop.f32.mrf.mxu3 }
 0x349   : > { %15391 = vst [vmem:[#allocation41_spill] sm:$0xff] %v11146_v21 }
 0x34a   : > { %15392 = vst [vmem:[#allocation42_spill] sm:$0xff] %v11148_v35 }
 0x34e   : > { %v11150_v38 = vpop.f32.mrf.mxu0 }
 0x34f   : > { %15393 = vst [vmem:[#allocation43_spill] sm:$0xff] %v11150_v38  ;;  %v11152_v63 = vpop.f32.mrf.mxu1 }
 0x350   : > { %15394 = vst [vmem:[#allocation44_spill] sm:$0xff] %v11152_v63  ;;  %v11154_v6 = vpop.f32.mrf.mxu2  ;;  %v11156_v9 = vpop.f32.mrf.mxu3 }
 0x351   : > { %15395 = vst [vmem:[#allocation45_spill] sm:$0xff] %v11154_v6 }
 0x352   : > { %15396 = vst [vmem:[#allocation46_spill] sm:$0xff] %v11156_v9 }
 0x356   : > { %v11158_v42 = vpop.f32.mrf.mxu0 }
 0x357   : > { %15397 = vst [vmem:[#allocation47_spill] sm:$0xff] %v11158_v42  ;;  %v11160_v23 = vpop.f32.mrf.mxu1 }
 0x358   : > { %15398 = vst [vmem:[#allocation48_spill] sm:$0xff] %v11160_v23  ;;  %v11162_v4 = vpop.f32.mrf.mxu2  ;;  %v11164_v34 = vpop.f32.mrf.mxu3 }
 0x359   : > { %15399 = vst [vmem:[#allocation49_spill] sm:$0xff] %v11162_v4 }
 0x35a   : > { %15400 = vst [vmem:[#allocation50_spill] sm:$0xff] %v11164_v34 }
 0x35e   : > { %v3845_v25 = vpop.f32.mrf.mxu0 }
 0x35f   : > { %v3868_v21 = vpop.f32.mrf.mxu1 }
 0x360   : > { %v11166_v19 = vpop.f32.mrf.mxu2  ;;  %v11168_v35 = vpop.f32.mrf.mxu3 }
 0x361   : > { %15401 = vst [vmem:[#allocation51_spill] sm:$0xff] %v11166_v19 }
 0x362   : > { %15402 = vst [vmem:[#allocation52_spill] sm:$0xff] %v11168_v35 }
 0x366   : > { %v11170_v38 = vpop.f32.mrf.mxu0 }
 0x367   : > { %15403 = vst [vmem:[#allocation53_spill] sm:$0xff] %v11170_v38  ;;  %v11172_v63 = vpop.f32.mrf.mxu1 }
 0x368   : > { %15404 = vst [vmem:[#allocation54_spill] sm:$0xff] %v11172_v63  ;;  %v11174_v6 = vpop.f32.mrf.mxu2  ;;  %v11176_v9 = vpop.f32.mrf.mxu3 }
 0x369   : > { %15405 = vst [vmem:[#allocation55_spill] sm:$0xff] %v11174_v6  ;;  %v2373_v6 = vadd.f32 %v10750_v49, %v10698_v8  ;;  %v2399_v49 = vadd.f32 %v10782_v1, %v10716_v2 }
 0x36a   : > { %15406 = vst [vmem:[#allocation56_spill] sm:$0xff] %v11176_v9  ;;  %v2396_v9 = vadd.f32 %v10752_v47, %v10700_v59  ;;  %v2376_v59 = vadd.f32 %v10780_v37, %v10714_v33 }
 0x36e   : > { %v11178_v42 = vpop.f32.mrf.mxu0 }
 0x36f   : > { %15407 = vst [vmem:[#allocation57_spill] sm:$0xff] %v11178_v42  ;;  %v11180_v23 = vpop.f32.mrf.mxu1 }
 0x370   : > { %15408 = vst [vmem:[#allocation58_spill] sm:$0xff] %v11180_v23  ;;  %v11182_v4 = vpop.f32.mrf.mxu2  ;;  %v11184_v34 = vpop.f32.mrf.mxu3  ;;  %v2790_v23 = vadd.f32 %v10842_v45, %v2373_v6 }
 0x371   : > { %15409 = vst [vmem:[#allocation59_spill] sm:$0xff] %v11182_v4  ;;  %v2791_v4 = vadd.f32 %v10844_v15, %v2396_v9  ;;  %v2465_v15 = vadd.f32 %v10798_v26, %v10710_v56  ;;  %v2468_v56 = vadd.f32 %v10826_v30, %v10738_v58  ;;  %v15417_v9 = vld [vmem:[#allocation44_spill] sm:$0xff] }
 0x372   : > { %15410 = vst [vmem:[#allocation60_spill] sm:$0xff] %v11184_v34  ;;  %v3041_v34 = vadd.f32 %v10932_v51, %v2790_v23  ;;  %v2488_v51 = vadd.f32 %v10800_v13, %v10712_v52  ;;  %v2799_v23 = vadd.f32 %v10874_v10, %v2399_v49  ;;  %v2491_v52 = vadd.f32 %v10828_v44, %v10740_v40  ;;  %v15423_v49 = vld [vmem:[#allocation28_spill] sm:$0xff] }
 0x373   : > { %v2794_v33 = vadd.f32 %v10890_v50, %v2465_v15  ;;  %v11266_v15 = vpop.permute.xlu2 %4322 }
 0x374   : > { %v2795_v2 = vadd.f32 %v10892_v20, %v2488_v51  ;;  %v2803_v58 = vadd.f32 %v10914_v43, %v2491_v52 }
 0x375   : > { %v3045_v26 = vadd.f32 %v10982_v48, %v2794_v33 }
 0x376   : > { %v11186_v11 = vpop.f32.mrf.mxu0  ;;  %v3046_v13 = vadd.f32 %v10984_v3, %v2795_v2  ;;  %v15426_v2 = vld [vmem:[#allocation35_spill] sm:$0xff] }
 0x377   : > { %15411 = vst [vmem:[#allocation61_spill] sm:$0xff] %v11186_v11  ;;  %v11188_v19 = vpop.f32.mrf.mxu1  ;;  %v3042_v11 = vadd.f32 %v10934_v60, %v2791_v4  ;;  %v2798_v60 = vadd.f32 %v10872_v46, %v2376_v59  ;;  %v11230_v46 = vpop.permute.xlu1 %4281  ;;  %v3253_v40 = vadd.f32 %v11072_v24, %v3045_v26  ;;  %v3043_v24 = vadd.f32 %v11021_v22, %v10917_v62  ;;  %v15422_v4 = vld [vmem:[#allocation27_spill] sm:$0xff]  ;;  %v15424_v62 = vld [vmem:[#allocation57_spill] sm:$0xff] }
 0x378   : > { %15412 = vst [vmem:[#allocation62_spill] sm:$0xff] %v11188_v19  ;;  %v11190_v35 = vpop.f32.mrf.mxu2  ;;  %v11192_v38 = vpop.f32.mrf.mxu3  ;;  %v3249_v19 = vadd.f32 %v11035_v31, %v3041_v34  ;;  %v3254_v30 = vadd.f32 %v11074_v27, %v3046_v13  ;;  %v3054_v31 = vadd.f32 %v11018_v39, %v2803_v58  ;;  %v15416_v27 = vld [vmem:[#allocation43_spill] sm:$0xff]  ;;  %v15421_v34 = vld [vmem:[#allocation54_spill] sm:$0xff] }
 0x379   : > { %15413 = vst [vmem:[#allocation63_spill] sm:$0xff] %v11190_v35  ;;  %v3250_v35 = vadd.f32 %v11037_v5, %v3042_v11  ;;  %v3251_v59 = vadd.f32 %v15422_v4, %v3043_v24  ;;  %v15428_v13 = vld [vmem:[#allocation18_spill] sm:$0xff]  ;;  %v15436_v24 = vld [vmem:[#allocation49_spill] sm:$0xff] }
 0x37a   : > { %15414 = vst [vmem:[#allocation64_spill] sm:$0xff] %v11192_v38  ;;  %v3518_v47 = vadd.f32 %v11100_v53, %v3249_v19  ;;  %v3049_v53 = vadd.f32 %v10959_v28, %v2798_v60  ;;  %v3523_v43 = vadd.f32 %v11124_v41, %v3254_v30  ;;  %v15419_v19 = vld [vmem:[#allocation26_spill] sm:$0xff]  ;;  %v15434_v30 = vld [vmem:[#allocation47_spill] sm:$0xff] }
 0x37b   : > { %v3519_v45 = vadd.f32 %v11102_v7, %v3250_v35  ;;  %v3050_v7 = vadd.f32 %v10961_v61, %v2799_v23  ;;  %v15433_v58 = vld [vmem:[#allocation38_spill] sm:$0xff] }
 0x37c   : > { %v3769_v6 = vadd.f32 %v3602_v0, %v3518_v47  ;;  %v3257_v10 = vadd.f32 %v11057_v14, %v3049_v53  ;;  %v2802_v0 = vadd.f32 %v10912_v55, %v2468_v56  ;;  %v3522_v55 = vadd.f32 %v11122_v18, %v3253_v40 }
 0x37d   : > { %v3770_v11 = vadd.f32 %v3625_v17, %v3519_v45  ;;  %v3258_v50 = vadd.f32 %v11059_v32, %v3050_v7  ;;  %v3774_v18 = vadd.f32 %v15417_v9, %v3523_v43  ;;  %v15425_v45 = vld [vmem:[#allocation58_spill] sm:$0xff]  ;;  %v15427_v7 = vld [vmem:[#allocation36_spill] sm:$0xff] }
 0x37e   : > { %v4096_v42 = vpop.f32.mrf.mxu0  ;;  %v4012_v37 = vadd.f32 %v3845_v25, %v3769_v6  ;;  %v3526_v3 = vadd.f32 %v11112_v12, %v3257_v10  ;;  %v3773_v39 = vadd.f32 %v15416_v27, %v3522_v55  ;;  %v15418_v12 = vld [vmem:[#allocation25_spill] sm:$0xff] }
 0x37f   : > { %v4119_v38 = vpop.f32.mrf.mxu1  ;;  %v4013_v1 = vadd.f32 %v3868_v21, %v3770_v11  ;;  %v3527_v32 = vadd.f32 %v11114_v16, %v3258_v50  ;;  %v15415_v16 = vld [vmem:[#allocation21_spill] sm:$0xff]  ;;  %v15443_v4 = vld [vmem:[#allocation62_spill] sm:$0xff] }
 0x380   : > { %v11204_v63 = vpop.f32.mrf.mxu2  ;;  %v11206_v8 = vpop.f32.mrf.mxu3  ;;  %v4263_v20 = vadd.f32 %v4096_v42, %v4012_v37  ;;  %v3053_v42 = vadd.f32 %v11016_v36, %v2802_v0  ;;  %v3777_v5 = vadd.f32 %v11142_v57, %v3526_v3  ;;  %v3044_v36 = vadd.f32 %v15415_v16, %v10920_v29  ;;  %v15420_v25 = vld [vmem:[#allocation53_spill] sm:$0xff] }
 0x381   : > { %v4264_v28 = vadd.f32 %v4119_v38, %v4013_v1  ;;  %v3778_v17 = vadd.f32 %v11144_v54, %v3527_v32  ;;  %v3262_v57 = vadd.f32 %v15419_v19, %v3054_v31  ;;  %v4016_v22 = vadd.f32 %v15424_v62, %v3773_v39  ;;  %v15429_v10 = vld [vmem:[#allocation17_spill] sm:$0xff]  ;;  %v15435_v32 = vld [vmem:[#allocation48_spill] sm:$0xff]  ;;  %v11282_v31 = vpop.permute.xlu1 %4286  ;;  %v11292_v39 = vpop.permute.xlu0 %4346 }
 0x382   : > { %v4289_v14 = vadd.f32 %v11230_v46, %v4263_v20  ;;  %v3261_v41 = vadd.f32 %v15418_v12, %v3053_v42  ;;  %v4020_v54 = vadd.f32 %v15420_v25, %v3777_v5  ;;  %v3252_v47 = vadd.f32 %v15423_v49, %v3044_v36  ;;  %v15430_v20 = vld [vmem:[#allocation10_spill] sm:$0xff]  ;;  %v15441_v25 = vld [vmem:[#allocation19_spill] sm:$0xff]  ;;  %v15445_v62 = vld [vmem:[#allocation64_spill] sm:$0xff] }
 0x383   : > { %v4290_v21 = vadd.f32 %v11230_v46, %v4264_v28  ;;  %v4021_v38 = vadd.f32 %v15421_v34, %v3778_v17  ;;  %v4017_v29 = vadd.f32 %v15425_v45, %v3774_v18  ;;  %v3531_v37 = vadd.f32 %v15427_v7, %v3262_v57  ;;  %v15431_v28 = vld [vmem:[#allocation12_spill] sm:$0xff]  ;;  %v15437_v36 = vld [vmem:[#allocation50_spill] sm:$0xff]  ;;  %v15440_v57 = vld [vmem:[#allocation13_spill] sm:$0xff] }
 0x384   : > { %v4305_v51 = vmax.f32 %v4289_v14, 0.0  ;;  %v3530_v53 = vadd.f32 %v15426_v2, %v3261_v41  ;;  %v3051_v50 = vadd.f32 %v15429_v10, %v15428_v13  ;;  %v3052_v0 = vadd.f32 %v15431_v28, %v15430_v20  ;;  %v15438_v12 = vld [vmem:[#allocation22_spill] sm:$0xff]  ;;  %v15439_v41 = vld [vmem:[#allocation11_spill] sm:$0xff]  ;;  %v15442_v34 = vld [vmem:[#allocation61_spill] sm:$0xff] }
 0x385   : > { %v4306_v60 = vmax.f32 %v4290_v21, 0.0  ;;  %v3521_v40 = vadd.f32 %v15433_v58, %v3252_v47  ;;  %v3782_v42 = vadd.f32 %v15435_v32, %v3531_v37  ;;  %v3047_v19 = vadd.f32 %v15439_v41, %v15438_v12  ;;  %v15444_v49 = vld [vmem:[#allocation63_spill] sm:$0xff]  ;;  %v15446_v13 = vld [vmem:[#allocation29_spill] sm:$0xff]  ;;  %v15447_v20 = vld [vmem:[#allocation30_spill] sm:$0xff] }
 0x386   : > { %v4099_v61 = vpop.f32.mrf.mxu0  ;;  %v3781_v3 = vadd.f32 %v15434_v30, %v3530_v53  ;;  %v4329_v21 = vmul.f32 %v11266_v15, %v4305_v51  ;;  %v3259_v10 = vadd.f32 %v15446_v13, %v3051_v50  ;;  %v3260_v28 = vadd.f32 %v15447_v20, %v3052_v0  ;;  %v15455_v13 = vld [vmem:[#allocation42_spill] sm:$0xff] }
 0x387   : > { %v4122_v35 = vpop.f32.mrf.mxu1  ;;  %v4271_v23 = vadd.f32 %v4099_v61, %v4020_v54  ;;  %v15432_v61 = vld [vmem:[#allocation37_spill] sm:$0xff]  ;;  %v4330_v14 = vmul.f32 %v11266_v15, %v4306_v60  ;;  %v3772_v27 = vadd.f32 %v15437_v36, %v3521_v40  ;;  %v3048_v54 = vadd.f32 %v15441_v25, %v15440_v57  ;;  %v15452_v57 = vld [vmem:[#allocation31_spill] sm:$0xff] }
 0x388   : > { %v11238_v44 = vpop.f32.mrf.mxu2  ;;  %v11240_v48 = vpop.f32.mrf.mxu3  ;;  %v4272_v6 = vadd.f32 %v4122_v35, %v4021_v38  ;;  %v3520_v35 = vadd.f32 %v15432_v61, %v3251_v59  ;;  %v4024_v38 = vadd.f32 %v15442_v34, %v3781_v3  ;;  %v4025_v59 = vadd.f32 %v15443_v4, %v3782_v42  ;;  %v15448_v42 = vld [vmem:[#allocation39_spill] sm:$0xff]  ;;  %v15453_v34 = vld [vmem:[#allocation32_spill] sm:$0xff] }
 0x389   : > { %v4297_v5 = vadd.f32 %v11282_v31, %v4271_v23  ;;  %v11318_v61 = vpop.permute.xlu2 %4326  ;;  %v3255_v25 = vadd.f32 %v15452_v57, %v3047_v19 }
 0x38a   : > { %v4298_v17 = vadd.f32 %v11282_v31, %v4272_v6  ;;  %v3771_v16 = vadd.f32 %v15436_v24, %v3520_v35 }
 0x38b   : > { %v4313_v51 = vmax.f32 %v4297_v5, 0.0 }
 0x38c   : > { %v4014_v47 = vadd.f32 %v15444_v49, %v3771_v16  ;;  %v4314_v60 = vmax.f32 %v4298_v17, 0.0  ;;  %v15450_v16 = vld [vmem:[#allocation51_spill] sm:$0xff] }
 0x38d   : > { %v4337_v24 = vmul.f32 %v11318_v61, %v4313_v51 }
 0x38e   : > { %v4188_v11 = vpop.f32.mrf.mxu0 }
 0x38f   : > { %v4211_v33 = vpop.f32.mrf.mxu1  ;;  %v4267_v1 = vadd.f32 %v4188_v11, %v4016_v22  ;;  %v4015_v22 = vadd.f32 %v15445_v62, %v3772_v27  ;;  %v11305_v11 = vadd.f32 %v11292_v39, %v4330_v14  ;;  %v15451_v27 = vld [vmem:[#allocation52_spill] sm:$0xff] }
 0x390   : > { %v4268_v56 = vadd.f32 %v4211_v33, %v4017_v29  ;;  %v11270_v52 = vpop.f32.mrf.mxu2  ;;  %v11272_v26 = vpop.f32.mrf.mxu3  ;;  %v11308_v33 = vadd.f32 %v11292_v39, %v4329_v21  ;;  %v4338_v21 = vmul.f32 %v11318_v61, %v4314_v60 }
 0x391   : > { %v4293_v55 = vadd.f32 %v11230_v46, %v4267_v1 }
 0x392   : > { %v4294_v43 = vadd.f32 %v11230_v46, %v4268_v56 }
 0x393   : > { %v4309_v9 = vmax.f32 %v4293_v55, 0.0  ;;  %v3528_v55 = vadd.f32 %v15448_v42, %v3259_v10 }
 0x394   : > { %v4310_v18 = vmax.f32 %v4294_v43, 0.0  ;;  %v15449_v43 = vld [vmem:[#allocation40_spill] sm:$0xff] }
 0x395   : > { %v4333_v45 = vmul.f32 %v11266_v15, %v4309_v9  ;;  %v3529_v50 = vadd.f32 %v15449_v43, %v3260_v28  ;;  %v3779_v36 = vadd.f32 %v15450_v16, %v3528_v55  ;;  %v15458_v55 = vld [vmem:[#allocation20_spill] sm:$0xff]  ;;  %v15459_v43 = vld [vmem:[#allocation23_spill] sm:$0xff] }
 0x396   : > { %v4334_v29 = vmul.f32 %v11266_v15, %v4310_v18  ;;  %v4191_v23 = vpop.f32.mrf.mxu0  ;;  %v11336_v18 = vpop.permute.xlu1 %4350 }
 0x397   : > { %v4214_v6 = vpop.f32.mrf.mxu1  ;;  %v4275_v2 = vadd.f32 %v4191_v23, %v4024_v38  ;;  %v11314_v56 = vadd.f32 %v11292_v39, %v4333_v45  ;;  %v3780_v9 = vadd.f32 %v15451_v27, %v3529_v50  ;;  %v3256_v38 = vadd.f32 %v15453_v34, %v3048_v54 }
 0x398   : > { %v4276_v53 = vadd.f32 %v4214_v6, %v4025_v59  ;;  %v4142_v7 = vpop.f32.mrf.mxu2  ;;  %v4165_v37 = vpop.f32.mrf.mxu3  ;;  %v11311_v1 = vadd.f32 %v11292_v39, %v4334_v29  ;;  %v4022_v49 = vadd.f32 %v11204_v63, %v3779_v36  ;;  %v11347_v51 = vadd.f32 %v11336_v18, %v4338_v21  ;;  %v15462_v36 = vld [vmem:[#allocation33_spill] sm:$0xff] }
 0x399   : > { %v4265_v35 = vadd.f32 %v4142_v7, %v4014_v47  ;;  %v4266_v58 = vadd.f32 %v4165_v37, %v4015_v22  ;;  %v4301_v40 = vadd.f32 %v11282_v31, %v4275_v2  ;;  %v8653_v32 = vpack.i.bf16 %v11308_v33, %v11314_v56  ;;  %v15454_v2 = vld [vmem:[#allocation41_spill] sm:$0xff] }
 0x39a   : > { %v4302_v30 = vadd.f32 %v11282_v31, %v4276_v53  ;;  %v8658_v3 = vpack.i.bf16 %v11311_v1, %v11305_v11  ;;  %v4023_v47 = vadd.f32 %v11206_v8, %v3780_v9  ;;  %v11353_v54 = vadd.f32 %v11336_v18, %v4337_v24  ;;  %v15463_v9 = vld [vmem:[#allocation34_spill] sm:$0xff] }
 0x39b   : > { %v4291_v0 = vadd.f32 %v11230_v46, %v4265_v35  ;;  %v4292_v5 = vadd.f32 %v11230_v46, %v4266_v58  ;;  %v4317_v17 = vmax.f32 %v4301_v40, 0.0  ;;  %8654 = vrot.lane.b32.xlu0 %v8653_v32, %s15081_s30  ;;  %v3524_v53 = vadd.f32 %v15454_v2, %v3255_v25  ;;  %v15456_v58 = vld [vmem:[#allocation55_spill] sm:$0xff] }
 0x39c   : > { %v4318_v14 = vmax.f32 %v4302_v30, 0.0  ;;  %8659 = vrot.lane.b32.xlu1 %v8658_v3, %s15081_s30  ;;  %v3525_v10 = vadd.f32 %v15455_v13, %v3256_v38  ;;  %v15457_v30 = vld [vmem:[#allocation56_spill] sm:$0xff]  ;;  %v3055_v50 = vadd.f32 %v15459_v43, %v15458_v55 }
 0x39d   : > { %v4307_v12 = vmax.f32 %v4291_v0, 0.0  ;;  %v4308_v41 = vmax.f32 %v4292_v5, 0.0  ;;  %v4341_v4 = vmul.f32 %v11318_v61, %v4317_v17  ;;  %v3775_v40 = vadd.f32 %v15456_v58, %v3524_v53  ;;  %v15460_v0 = vld [vmem:[#allocation15_spill] sm:$0xff]  ;;  %v15461_v5 = vld [vmem:[#allocation24_spill] sm:$0xff] }
 0x39e   : > { %v4342_v59 = vmul.f32 %v11318_v61, %v4318_v14  ;;  %v3776_v3 = vadd.f32 %v15457_v30, %v3525_v10  ;;  %v3056_v17 = vadd.f32 %v15461_v5, %v15460_v0  ;;  %v3263_v27 = vadd.f32 %v15462_v36, %v3055_v50 }
 0x39f   : > { %v4331_v62 = vmul.f32 %v11266_v15, %v4307_v12  ;;  %v4332_v22 = vmul.f32 %v11266_v15, %v4308_v41  ;;  %v11356_v60 = vadd.f32 %v11336_v18, %v4341_v4  ;;  %v4018_v14 = vadd.f32 %v11238_v44, %v3775_v40  ;;  %v15464_v44 = vld [vmem:[#allocation45_spill] sm:$0xff] }
 0x3a0   : > { %v4145_v45 = vpop.f32.mrf.mxu2  ;;  %v4168_v29 = vpop.f32.mrf.mxu3  ;;  %v11350_v19 = vadd.f32 %v11336_v18, %v4342_v59  ;;  %v4019_v21 = vadd.f32 %v11240_v48, %v3776_v3  ;;  %v3264_v12 = vadd.f32 %v15463_v9, %v3056_v17  ;;  %v3532_v59 = vadd.f32 %v15464_v44, %v3263_v27  ;;  %v15465_v48 = vld [vmem:[#allocation46_spill] sm:$0xff] }
 0x3a1   : > { %v4273_v63 = vadd.f32 %v4145_v45, %v4022_v49  ;;  %v4274_v8 = vadd.f32 %v4168_v29, %v4023_v47  ;;  %v11359_v23 = vadd.f32 %v11292_v39, %v4331_v62  ;;  %v11362_v6 = vadd.f32 %v11292_v39, %v4332_v22  ;;  %v15466_v45 = vld [vmem:[#allocation59_spill] sm:$0xff] }
 0x3a2   : > { %v8668_v7 = vpack.i.bf16 %v11350_v19, %v11347_v51  ;;  %v8663_v37 = vpack.i.bf16 %v11353_v54, %v11356_v60  ;;  %v3533_v49 = vadd.f32 %v15465_v48, %v3264_v12  ;;  %v3783_v29 = vadd.f32 %v15466_v45, %v3532_v59 }
 0x3a3   : > { %v4299_v20 = vadd.f32 %v11282_v31, %v4273_v63  ;;  %v4300_v28 = vadd.f32 %v11282_v31, %v4274_v8  ;;  %v8673_v35 = vpack.i.bf16 %v11362_v6, %v11359_v23  ;;  %v15467_v63 = vld [vmem:[#allocation60_spill] sm:$0xff] }
 0x3a4   : > { %8669 = vrot.lane.b32.xlu1 %v8668_v7, %s15081_s30  ;;  %8664 = vrot.lane.b32.xlu0 %v8663_v37, %s15081_s30  ;;  %v3784_v8 = vadd.f32 %v15467_v63, %v3533_v49  ;;  %v4026_v7 = vadd.f32 %v11270_v52, %v3783_v29 }
 0x3a5   : > { %v4315_v32 = vmax.f32 %v4299_v20, 0.0  ;;  %v4316_v42 = vmax.f32 %v4300_v28, 0.0  ;;  %8674 = vrot.lane.b32.xlu2 %v8673_v35, %s15081_s30 }
 0x3a6   : > { %v4027_v37 = vadd.f32 %v11272_v26, %v3784_v8 }
 0x3a7   : > { %v4339_v24 = vmul.f32 %v11318_v61, %v4315_v32  ;;  %v4340_v16 = vmul.f32 %v11318_v61, %v4316_v42 }
 0x3a8   : > { %v4234_v41 = vpop.f32.mrf.mxu2  ;;  %v4257_v57 = vpop.f32.mrf.mxu3 }
 0x3a9   : > { %v4269_v25 = vadd.f32 %v4234_v41, %v4018_v14  ;;  %v4270_v34 = vadd.f32 %v4257_v57, %v4019_v21  ;;  %v4363_v38 = vadd.f32 %v11336_v18, %v4339_v24  ;;  %v11391_v4 = vadd.f32 %v11336_v18, %v4340_v16 }
 0x3ab   : > { %v4295_v47 = vadd.f32 %v11230_v46, %v4269_v25  ;;  %v4296_v62 = vadd.f32 %v11230_v46, %v4270_v34  ;;  %v8678_v22 = vpack.i.bf16 %v11391_v4, %v4363_v38 }
 0x3ad   : > { %v4311_v2 = vmax.f32 %v4295_v47, 0.0  ;;  %v4312_v53 = vmax.f32 %v4296_v62, 0.0  ;;  %8679 = vrot.lane.b32.xlu2 %v8678_v22, %s15081_s30 }
 0x3af   : > { %v4335_v13 = vmul.f32 %v11266_v15, %v4311_v2  ;;  %v4336_v10 = vmul.f32 %v11266_v15, %v4312_v53 }
 0x3b0   : > { %v4237_v20 = vpop.f32.mrf.mxu2  ;;  %v4260_v46 = vpop.f32.mrf.mxu3 }
 0x3b1   : > { %v4277_v28 = vadd.f32 %v4237_v20, %v4026_v7  ;;  %v4278_v35 = vadd.f32 %v4260_v46, %v4027_v37  ;;  %v11406_v58 = vadd.f32 %v11292_v39, %v4335_v13  ;;  %v11409_v40 = vadd.f32 %v11292_v39, %v4336_v10 }
 0x3b3   : > { %v4303_v30 = vadd.f32 %v11282_v31, %v4277_v28  ;;  %v4304_v52 = vadd.f32 %v11282_v31, %v4278_v35  ;;  %v8683_v26 = vpack.i.bf16 %v11409_v40, %v11406_v58  ;;  %v15468_v31 = vmov 0.0   ;;  %v4657_v35 = vld [vmem:[%s15010_s5 + $0xe0] sm:$0xff] }
 0x3b5   : > { %v4319_v3 = vmax.f32 %v4303_v30, 0.0  ;;  %v4320_v32 = vmax.f32 %v4304_v52, 0.0  ;;  %8684 = vrot.lane.b32.xlu2 %v8683_v26, %s15081_s30  ;;  %v4689_v30 = vld [vmem:[%s15010_s5 + $0x1e0] sm:$0xff] }
 0x3b6   : > { %v4721_v52 = vld [vmem:[%s15010_s5 + $0x2e0] sm:$0xff] }
 0x3b7   : > { %v4343_v15 = vmul.f32 %v11318_v61, %v4319_v3  ;;  %v4344_v42 = vmul.f32 %v11318_v61, %v4320_v32  ;;  %v4753_v26 = vld [vmem:[%s15010_s5 + $0x3e0] sm:$0xff]  ;;  %v4655_v3 = vld [vmem:[%s15010_s5 + $0xd0] sm:$0xff] }
 0x3b8   : > { %v4687_v32 = vld [vmem:[%s15010_s5 + $0x1d0] sm:$0xff] }
 0x3b9   : > { %v11419_v55 = vadd.f32 %v11336_v18, %v4344_v42  ;;  %v11422_v39 = vadd.f32 %v11336_v18, %v4343_v15  ;;  %v4719_v15 = vld [vmem:[%s15010_s5 + $0x2d0] sm:$0xff] }
 0x3ba   : > { %v4751_v42 = vld [vmem:[%s15010_s5 + $0x3d0] sm:$0xff] }
 0x3bb   : > { %v8693_v43 = vpack.i.bf16 0.0, %v11419_v55  ;;  %v8688_v50 = vpack.i.bf16 %v11422_v39, %v15468_v31 }
 0x3bd   : > { %8694 = vrot.lane.b32.xlu1 %v8693_v43, %s15081_s30  ;;  %8689 = vrot.lane.b32.xlu0 %v8688_v50, %s15081_s30  ;;  %v4653_v43 = vld [vmem:[%s15010_s5 + $0xc0] sm:$0xff]  ;;  %s15492_s30 = smov 80  }
 0x3be   : > { %v4685_v50 = vld [vmem:[%s15010_s5 + $0x1c0] sm:$0xff] }
 0x3ff   : > { %v8675_v0 = vpop.permute.xlu2 %8674 }
 0x400   : > { %v8677_v17 = vunpack.i.h.bf16 %v8675_v0  ;;  %v8676_v14 = vunpack.i.l.bf16 %v8675_v0  ;;  %v4717_v0 = vld [vmem:[%s15010_s5 + $0x2c0] sm:$0xff] }
 0x402   : > { %v4461_v24 = vsel %vm15469_vm3, %v8676_v14, %v8677_v17  ;;  %vm15484_vm3 = vmmov %vm15473_vm0 }
 0x403   : > { %v11447_v49 = vmax.f32 %v11359_v23, %v4461_v24 }
 0x407   : > { %v8680_v5 = vpop.permute.xlu2 %8679 }
 0x408   : > { %v8682_v61 = vunpack.i.h.bf16 %v8680_v5  ;;  %v8681_v21 = vunpack.i.l.bf16 %v8680_v5  ;;  %v4749_v5 = vld [vmem:[%s15010_s5 + $0x3c0] sm:$0xff] }
 0x40a   : > { %v4469_v18 = vsel %vm15470_vm10, %v8681_v21, %v8682_v61 }
 0x40b   : > { %v11444_v48 = vmax.f32 %v4363_v38, %v4469_v18  ;;  %v4649_v18 = vld [vmem:[%s15010_s5 + $0xa0] sm:$0xff] }
 0x40d   : > { %v8655_v36 = vpop.permute.xlu0 %8654 }
 0x40e   : > { %v11431_v16 = vpop.permute.xlu1 %8659  ;;  %v8657_v12 = vunpack.i.h.bf16 %v8655_v36  ;;  %v8656_v41 = vunpack.i.l.bf16 %v8655_v36  ;;  %v4681_v36 = vld [vmem:[%s15010_s5 + $0x1a0] sm:$0xff] }
 0x40f   : > { %v8662_v27 = vunpack.i.h.bf16 %v11431_v16  ;;  %v8661_v9 = vunpack.i.l.bf16 %v11431_v16  ;;  %v8685_v24 = vpop.permute.xlu2 %8684  ;;  %v4641_v16 = vld [vmem:[%s15010_s5 + $0x60] sm:$0xff] }
 0x410   : > { %v4462_v34 = vsel %vm15473_vm0, %v8677_v17, %v8656_v41  ;;  %v4651_v17 = vld [vmem:[%s15010_s5 + $0xb0] sm:$0xff] }
 0x411   : > { %v4460_v57 = vsel %vm15471_vm1, %v8661_v9, %v8676_v14  ;;  %v4459_v25 = vsel %vm15472_vm7, %v8657_v12, %v8661_v9  ;;  %v4463_v44 = vsel %vm15474_vm8, %v8656_v41, %v8662_v27  ;;  %v11450_v47 = vmax.f32 %v11362_v6, %v4462_v34  ;;  %v4683_v14 = vld [vmem:[%s15010_s5 + $0x1b0] sm:$0xff]  ;;  %v4713_v9 = vld [vmem:[%s15010_s5 + $0x2a0] sm:$0xff] }
 0x412   : > { %v11442_v59 = vmax.f32 %v11314_v56, %v4463_v44  ;;  %v11453_v62 = vmax.f32 %v11308_v33, %v4459_v25  ;;  %v11456_v22 = vmax.f32 %v11305_v11, %v4460_v57  ;;  %v4745_v12 = vld [vmem:[%s15010_s5 + $0x3a0] sm:$0xff]  ;;  %v4647_v41 = vld [vmem:[%s15010_s5 + $0x90] sm:$0xff]  ;;  %v8686_v25 = vunpack.i.l.bf16 %v8685_v24 }
 0x413   : > { %v8698_v56 = vpack.i.bf16 %v11450_v47, %v11447_v49  ;;  %v4679_v57 = vld [vmem:[%s15010_s5 + $0x190] sm:$0xff]  ;;  %vm5364_vm1 = vcmask 130048   ;;  %vm5521_vm7 = vcmask 121856   ;;  %vm15502_vm8 = vcmask 7168  }
 0x414   : > { %v8708_v45 = vpack.i.bf16 %v11444_v48, %v11442_v59  ;;  %v8703_v38 = vpack.i.bf16 %v11456_v22, %v11453_v62  ;;  %v4711_v34 = vld [vmem:[%s15010_s5 + $0x290] sm:$0xff] }
 0x415   : > { %8699 = vrot.lane.b32.xlu2 %v8698_v56, %s15091_s15  ;;  %v4743_v44 = vld [vmem:[%s15010_s5 + $0x390] sm:$0xff]  ;;  %v4677_v56 = vld [vmem:[%s15010_s5 + $0x180] sm:$0xff] }
 0x416   : > { %v11464_v23 = vpop.permute.xlu1 %8669  ;;  %v8665_v29 = vpop.permute.xlu0 %8664  ;;  %8709 = vrot.lane.b32.xlu1 %v8708_v45, %s15091_s15  ;;  %8704 = vrot.lane.b32.xlu0 %v8703_v38, %s15091_s15  ;;  %v4645_v45 = vld [vmem:[%s15010_s5 + $0x80] sm:$0xff]  ;;  %v8687_v38 = vunpack.i.h.bf16 %v8685_v24 }
 0x417   : > { %v8672_v33 = vunpack.i.h.bf16 %v11464_v23  ;;  %v8671_v11 = vunpack.i.l.bf16 %v11464_v23  ;;  %v8667_v6 = vunpack.i.h.bf16 %v8665_v29  ;;  %v8666_v63 = vunpack.i.l.bf16 %v8665_v29  ;;  %v4709_v29 = vld [vmem:[%s15010_s5 + $0x280] sm:$0xff]  ;;  %v4667_v23 = vld [vmem:[%s15010_s5 + $0x130] sm:$0xff] }
 0x419   : > { %v4468_v8 = vsel %vm15475_vm4, %v8671_v11, %v8681_v21  ;;  %v4467_v2 = vsel %vm15476_vm12, %v8667_v6, %v8671_v11  ;;  %v4470_v53 = vsel %vm15477_vm13, %v8682_v61, %v8666_v63  ;;  %v4471_v7 = vsel %vm15478_vm2, %v8666_v63, %v8672_v33  ;;  %v4715_v61 = vld [vmem:[%s15010_s5 + $0x2b0] sm:$0xff]  ;;  %v4741_v11 = vld [vmem:[%s15010_s5 + $0x380] sm:$0xff]  ;;  %vm15507_vm13 = vmmov %vm15502_vm8 }
 0x41a   : > { %v11478_v37 = vmax.f32 %v11353_v54, %v4467_v2  ;;  %v11481_v13 = vmax.f32 %v11391_v4, %v4470_v53  ;;  %v11484_v10 = vmax.f32 %v11347_v51, %v4468_v8  ;;  %v11487_v20 = vmax.f32 %v11356_v60, %v4471_v7  ;;  %v4659_v54 = vld [vmem:[%s15010_s5 + $0xf0] sm:$0xff]  ;;  %vm15508_vm2 = vmmov %vm15502_vm8 }
 0x41b   : > { %v4691_v51 = vld [vmem:[%s15010_s5 + $0x1f0] sm:$0xff]  ;;  %4885 = vmatpush.msrb.mxu0 %v4659_v54  ;;  %v4464_v8 = vsel %vm15479_vm15, %v8662_v27, %v8686_v25  ;;  %v4673_v27 = vld [vmem:[%s15010_s5 + $0x160] sm:$0xff]  ;;  %vm15509_vm15 = vmmov %vm15508_vm2 }
 0x41c   : > { %v8713_v46 = vpack.i.bf16 %v11478_v37, %v11481_v13  ;;  %v8718_v28 = vpack.i.bf16 %v11487_v20, %v11484_v10  ;;  %v4723_v60 = vld [vmem:[%s15010_s5 + $0x2f0] sm:$0xff]  ;;  %4908 = vmatpush.msrb.mxu1 %v4691_v51 }
 0x41d   : > { %v4755_v4 = vld [vmem:[%s15010_s5 + $0x3f0] sm:$0xff]  ;;  %4931 = vmatpush.msrb.mxu2 %v4723_v60  ;;  %4886 = vmatpush.msrb.mxu0 %v4657_v35  ;;  %v4705_v35 = vld [vmem:[%s15010_s5 + $0x260] sm:$0xff] }
 0x41e   : > { %8714 = vrot.lane.b32.xlu2 %v8713_v46, %s15091_s15  ;;  %8719 = vrot.lane.b32.xlu0 %v8718_v28, %s15091_s15  ;;  %v4747_v21 = vld [vmem:[%s15010_s5 + $0x3b0] sm:$0xff]  ;;  %s8961_s15 = smov 15  }
 0x41f   : > { %4954 = vmatpush.msrb.mxu3 %v4755_v4  ;;  %4909 = vmatpush.msrb.mxu1 %v4689_v30  ;;  %v4643_v6 = vld [vmem:[%s15010_s5 + $0x70] sm:$0xff]  ;;  %v4465_v4 = vsel %vm15480_vm11, %v8686_v25, %v8687_v38  ;;  %v4737_v30 = vld [vmem:[%s15010_s5 + $0x360] sm:$0xff]  ;;  %vm15510_vm11 = vmmov %vm15484_vm3 }
 0x420   : > { %4932 = vmatpush.msrb.mxu2 %v4721_v52  ;;  %4887 = vmatpush.msrb.mxu0 %v4655_v3  ;;  %v4675_v63 = vld [vmem:[%s15010_s5 + $0x170] sm:$0xff]  ;;  %v11622_v3 = vmax.f32 %v11311_v1, %v4464_v8  ;;  %v4665_v25 = vld [vmem:[%s15010_s5 + $0x120] sm:$0xff]  ;;  %v15487_v8 = vmov 2  }
 0x421   : > { %4955 = vmatpush.msrb.mxu3 %v4753_v26  ;;  %4910 = vmatpush.msrb.mxu1 %v4687_v32  ;;  %v4707_v7 = vld [vmem:[%s15010_s5 + $0x270] sm:$0xff] }
 0x422   : > { %4933 = vmatpush.msrb.mxu2 %v4719_v15  ;;  %4888 = vmatpush.msrb.mxu0 %v4653_v43  ;;  %v4739_v46 = vld [vmem:[%s15010_s5 + $0x370] sm:$0xff] }
 0x423   : > { %4956 = vmatpush.msrb.mxu3 %v4751_v42  ;;  %4911 = vmatpush.msrb.mxu1 %v4685_v50  ;;  %v4639_v32 = vld [vmem:[%s15010_s5 + $0x50] sm:$0xff] }
 0x424   : > { %4934 = vmatpush.msrb.mxu2 %v4717_v0  ;;  %4889 = vmatpush.msrb.mxu0 %v4651_v17  ;;  %v4671_v15 = vld [vmem:[%s15010_s5 + $0x150] sm:$0xff]  ;;  %v11644_v17 = vmax.f32 %v11406_v58, %v4465_v4  ;;  %v4785_v4 = vld [vmem:[%s15010_s5 + $0x4e0] sm:$0xff] }
 0x425   : > { %4957 = vmatpush.msrb.mxu3 %v4749_v5  ;;  %4912 = vmatpush.msrb.mxu1 %v4683_v14  ;;  %v4703_v1 = vld [vmem:[%s15010_s5 + $0x250] sm:$0xff] }
 0x426   : > { %4935 = vmatpush.msrb.mxu2 %v4715_v61  ;;  %4890 = vmatpush.msrb.mxu0 %v4649_v18  ;;  %v4735_v5 = vld [vmem:[%s15010_s5 + $0x350] sm:$0xff]  ;;  %v4637_v61 = vld [vmem:[%s15010_s5 + $0x40] sm:$0xff] }
 0x427   : > { %4958 = vmatpush.msrb.mxu3 %v4747_v21  ;;  %4913 = vmatpush.msrb.mxu1 %v4681_v36  ;;  %v4701_v21 = vld [vmem:[%s15010_s5 + $0x240] sm:$0xff]  ;;  %v4635_v36 = vld [vmem:[%s15010_s5 + $0x30] sm:$0xff] }
 0x428   : > { %4936 = vmatpush.msrb.mxu2 %v4713_v9  ;;  %4891 = vmatpush.msrb.mxu0 %v4647_v41  ;;  %v4733_v18 = vld [vmem:[%s15010_s5 + $0x340] sm:$0xff]  ;;  %v4731_v9 = vld [vmem:[%s15010_s5 + $0x330] sm:$0xff] }
 0x429   : > { %4959 = vmatpush.msrb.mxu3 %v4745_v12  ;;  %4914 = vmatpush.msrb.mxu1 %v4679_v57  ;;  %v4633_v12 = vld [vmem:[%s15010_s5 + $0x20] sm:$0xff] }
 0x42a   : > { %4937 = vmatpush.msrb.mxu2 %v4711_v34  ;;  %4892 = vmatpush.msrb.mxu0 %v4645_v45  ;;  %v4697_v34 = vld [vmem:[%s15010_s5 + $0x220] sm:$0xff]  ;;  %v4663_v45 = vld [vmem:[%s15010_s5 + $0x110] sm:$0xff] }
 0x42b   : > { %4960 = vmatpush.msrb.mxu3 %v4743_v44  ;;  %4915 = vmatpush.msrb.mxu1 %v4677_v56  ;;  %v4729_v44 = vld [vmem:[%s15010_s5 + $0x320] sm:$0xff]  ;;  %v4695_v56 = vld [vmem:[%s15010_s5 + $0x210] sm:$0xff] }
 0x42c   : > { %4938 = vmatpush.msrb.mxu2 %v4709_v29  ;;  %4893 = vmatpush.msrb.mxu0 %v4643_v6  ;;  %v8868_v6 = vld [vmem:[%s15330_s4 + $0x8] sm:$0xff] }
 0x42d   : > { %4961 = vmatpush.msrb.mxu3 %v4741_v11  ;;  %4916 = vmatpush.msrb.mxu1 %v4675_v63  ;;  %v8867_v11 = vld [vmem:[%s15330_s4] sm:$0xff]  ;;  %v15486_v63 = vmov 4  }
 0x42e   : > { %4939 = vmatpush.msrb.mxu2 %v4707_v7  ;;  %4894 = vmatpush.msrb.mxu0 %v4641_v16  ;;  %v4629_v7 = vld [vmem:[%s15010_s5] sm:$0xff]  ;;  %v4851_v16 = vld [vmem:[%s15010_s5 + $0x6f0] sm:$0xff] }
 0x42f   : > { %v8695_v2 = vpop.permute.xlu1 %8694  ;;  %v8690_v53 = vpop.permute.xlu0 %8689  ;;  %4962 = vmatpush.msrb.mxu3 %v4739_v46  ;;  %4917 = vmatpush.msrb.mxu1 %v4673_v27  ;;  %v4661_v46 = vld [vmem:[%s15010_s5 + $0x100] sm:$0xff]  ;;  %v4883_v27 = vld [vmem:[%s15010_s5 + $0x7f0] sm:$0xff] }
 0x430   : > { %v8697_v28 = vunpack.i.h.bf16 %v8695_v2  ;;  %v8696_v54 = vunpack.i.l.bf16 %v8695_v2  ;;  %v8692_v51 = vunpack.i.h.bf16 %v8690_v53  ;;  %v8691_v60 = vunpack.i.l.bf16 %v8690_v53  ;;  %4940 = vmatpush.msrb.mxu2 %v4705_v35  ;;  %4895 = vmatpush.msrb.mxu0 %v4639_v32  ;;  %v4817_v35 = vld [vmem:[%s15010_s5 + $0x5e0] sm:$0xff]  ;;  %v4815_v32 = vld [vmem:[%s15010_s5 + $0x5d0] sm:$0xff] }
 0x431   : > { %4963 = vmatpush.msrb.mxu3 %v4737_v30  ;;  %4918 = vmatpush.msrb.mxu1 %v4671_v15  ;;  %v15488_v2 = vmov 0   ;;  %v15489_v53 = vmov 1   ;;  %v4849_v30 = vld [vmem:[%s15010_s5 + $0x6e0] sm:$0xff]  ;;  %v4847_v15 = vld [vmem:[%s15010_s5 + $0x6d0] sm:$0xff] }
 0x432   : > { %v4474_v52 = vsel %vm15481_vm5, %v8696_v54, %v8697_v28  ;;  %v4473_v26 = vsel %vm15482_vm6, %v8692_v51, %v8696_v54  ;;  %v4466_v42 = vsel %vm15483_vm9, %v8687_v38, %v8691_v60  ;;  %v4517_v43 = vmax.f32 %v8691_v60, 0.0  ;;  %4941 = vmatpush.msrb.mxu2 %v4703_v1  ;;  %4896 = vmatpush.msrb.mxu0 %v4637_v61  ;;  %v4727_v38 = vld [vmem:[%s15010_s5 + $0x310] sm:$0xff]  ;;  %v4725_v54 = vld [vmem:[%s15010_s5 + $0x300] sm:$0xff]  ;;  %vm15511_vm5 = vmmov %vm15484_vm3 }
 0x433   : > { %v11632_v50 = vmax.f32 %v11422_v39, %v4473_v26  ;;  %v11635_v0 = vmax.f32 %v11419_v55, %v4474_v52  ;;  %v11647_v14 = vmax.f32 %v11409_v40, %v4466_v42  ;;  %4964 = vmatpush.msrb.mxu3 %v4735_v5  ;;  %v4669_v40 = vld [vmem:[%s15010_s5 + $0x140] sm:$0xff]  ;;  %v4472_v24 = vsel %vm15484_vm3, %v8672_v33, %v8692_v51  ;;  %v4699_v33 = vld [vmem:[%s15010_s5 + $0x230] sm:$0xff]  ;;  %vm15512_vm6 = vmmov %vm15484_vm3 }
 0x434   : > { %v8728_v55 = vpack.i.bf16 %v4517_v43, %v11622_v3  ;;  %4919 = vmatpush.msrb.mxu1 %v4669_v40  ;;  %4942 = vmatpush.msrb.mxu2 %v4701_v21  ;;  %v4526_v41 = vmax.f32 %v8697_v28, 0.0  ;;  %v11688_v57 = vmax.f32 %v11350_v19, %v4472_v24  ;;  %v4631_v19 = vld [vmem:[%s15010_s5 + $0x10] sm:$0xff]  ;;  %v4693_v28 = vld [vmem:[%s15010_s5 + $0x200] sm:$0xff]  ;;  %vm15513_vm9 = vmmov %vm15484_vm3  ;;  %vm6049_vm3 = vcmask 916480  }
 0x435   : > { %v8733_v39 = vpack.i.bf16 %v11635_v0, %v11632_v50  ;;  %v8723_v58 = vpack.i.bf16 %v11647_v14, %v11644_v17  ;;  %4965 = vmatpush.msrb.mxu3 %v4733_v18  ;;  %4897 = vmatpush.msrb.mxu0 %v4635_v36  ;;  %v4787_v51 = vld [vmem:[%s15010_s5 + $0x4f0] sm:$0xff]  ;;  %v4881_v52 = vld [vmem:[%s15010_s5 + $0x7e0] sm:$0xff] }
 0x436   : > { %8729 = vrot.lane.b32.xlu2 %v8728_v55, %s15485_s23  ;;  %4920 = vmatpush.msrb.mxu1 %v4667_v23  ;;  %v8738_v29 = vpack.i.bf16 %v4526_v41, %v11688_v57  ;;  %v4819_v60 = vld [vmem:[%s15010_s5 + $0x5f0] sm:$0xff]  ;;  %v4781_v43 = vld [vmem:[%s15010_s5 + $0x4c0] sm:$0xff] }
 0x437   : > { %8734 = vrot.lane.b32.xlu0 %v8733_v39, %s15485_s23  ;;  %8724 = vrot.lane.b32.xlu1 %v8723_v58, %s15485_s23  ;;  %v4783_v26 = vld [vmem:[%s15010_s5 + $0x4d0] sm:$0xff]  ;;  %v4813_v1 = vld [vmem:[%s15010_s5 + $0x5c0] sm:$0xff] }
 0x438   : > { %4943 = vmatpush.msrb.mxu2 %v4699_v33  ;;  %4966 = vmatpush.msrb.mxu3 %v4731_v9  ;;  %v4879_v42 = vld [vmem:[%s15010_s5 + $0x7d0] sm:$0xff]  ;;  %v4845_v5 = vld [vmem:[%s15010_s5 + $0x6c0] sm:$0xff] }
 0x439   : > { %4898 = vmatpush.msrb.mxu0 %v4633_v12  ;;  %4921 = vmatpush.msrb.mxu1 %v4665_v25  ;;  %v4877_v55 = vld [vmem:[%s15010_s5 + $0x7c0] sm:$0xff]  ;;  %v4779_v39 = vld [vmem:[%s15010_s5 + $0x4b0] sm:$0xff] }
 0x43a   : > { %4944 = vmatpush.msrb.mxu2 %v4697_v34  ;;  %4967 = vmatpush.msrb.mxu3 %v4729_v44  ;;  %v4811_v61 = vld [vmem:[%s15010_s5 + $0x5b0] sm:$0xff]  ;;  %v4777_v21 = vld [vmem:[%s15010_s5 + $0x4a0] sm:$0xff] }
 0x43b   : > { %4899 = vmatpush.msrb.mxu0 %v4631_v19  ;;  %4922 = vmatpush.msrb.mxu1 %v4663_v45  ;;  %v4843_v58 = vld [vmem:[%s15010_s5 + $0x6b0] sm:$0xff]  ;;  %v4809_v24 = vld [vmem:[%s15010_s5 + $0x5a0] sm:$0xff] }
 0x43c   : > { %4945 = vmatpush.msrb.mxu2 %v4695_v56  ;;  %4968 = vmatpush.msrb.mxu3 %v4727_v38  ;;  %v4875_v40 = vld [vmem:[%s15010_s5 + $0x7b0] sm:$0xff]  ;;  %v4841_v18 = vld [vmem:[%s15010_s5 + $0x6a0] sm:$0xff] }
 0x43d   : > { %4900 = vmatpush.msrb.mxu0 %v4629_v7  ;;  %4923 = vmatpush.msrb.mxu1 %v4661_v46  ;;  %v4873_v36 = vld [vmem:[%s15010_s5 + $0x7a0] sm:$0xff]  ;;  %v4775_v23 = vld [vmem:[%s15010_s5 + $0x490] sm:$0xff] }
 0x43e   : > { %5258 = vperm.xlu2 %8743, %v8868_v6   ;;  %4946 = vmatpush.msrb.mxu2 %v4693_v28  ;;  %v4807_v33 = vld [vmem:[%s15010_s5 + $0x590] sm:$0xff]  ;;  %v4773_v41 = vld [vmem:[%s15010_s5 + $0x480] sm:$0xff] }
 0x43f   : > { %8739 = vrot.lane.b32.xlu1 %v8738_v29, %s15485_s23  ;;  %5254 = vperm.xlu0 %8744, %v8867_v11   ;;  %v4839_v9 = vld [vmem:[%s15010_s5 + $0x690] sm:$0xff]  ;;  %v4805_v25 = vld [vmem:[%s15010_s5 + $0x580] sm:$0xff] }
 0x440   : > { %4969 = vmatpush.msrb.mxu3 %v4725_v54  ;;  %4977 = vmatpush.msra.mxu0 %v4787_v51  ;;  %v4871_v12 = vld [vmem:[%s15010_s5 + $0x790] sm:$0xff]  ;;  %v4837_v34 = vld [vmem:[%s15010_s5 + $0x680] sm:$0xff] }
 0x441   : > { %5000 = vmatpush.msra.mxu1 %v4819_v60  ;;  %5023 = vmatpush.msra.mxu2 %v4851_v16  ;;  %v4869_v44 = vld [vmem:[%s15010_s5 + $0x780] sm:$0xff]  ;;  %v4771_v19 = vld [vmem:[%s15010_s5 + $0x470] sm:$0xff] }
 0x442   : > { %5046 = vmatpush.msra.mxu3 %v4883_v27  ;;  %4978 = vmatpush.msra.mxu0 %v4785_v4  ;;  %v4803_v45 = vld [vmem:[%s15010_s5 + $0x570] sm:$0xff]  ;;  %v4769_v29 = vld [vmem:[%s15010_s5 + $0x460] sm:$0xff] }
 0x443   : > { %5001 = vmatpush.msra.mxu1 %v4817_v35  ;;  %5024 = vmatpush.msra.mxu2 %v4849_v30  ;;  %v4835_v56 = vld [vmem:[%s15010_s5 + $0x670] sm:$0xff]  ;;  %v4865_v7 = vld [vmem:[%s15010_s5 + $0x760] sm:$0xff] }
 0x444   : > { %5047 = vmatpush.msra.mxu3 %v4881_v52  ;;  %4979 = vmatpush.msra.mxu0 %v4783_v26  ;;  %v4867_v38 = vld [vmem:[%s15010_s5 + $0x770] sm:$0xff]  ;;  %v4765_v60 = vld [vmem:[%s15010_s5 + $0x440] sm:$0xff] }
 0x445   : > { %5002 = vmatpush.msra.mxu1 %v4815_v32  ;;  %5025 = vmatpush.msra.mxu2 %v4847_v15  ;;  %v4767_v46 = vld [vmem:[%s15010_s5 + $0x450] sm:$0xff]  ;;  %v4797_v16 = vld [vmem:[%s15010_s5 + $0x540] sm:$0xff] }
 0x446   : > { %8746 = vset.pattern.permute.xlu2 %v15486_v63  ;;  %5048 = vmatpush.msra.mxu3 %v4879_v42  ;;  %v4799_v28 = vld [vmem:[%s15010_s5 + $0x550] sm:$0xff]  ;;  %v4829_v27 = vld [vmem:[%s15010_s5 + $0x640] sm:$0xff] }
 0x447   : > { %5270 = vperm.xlu1 %8745, %v8868_v6   ;;  %8809 = vset.pattern.permute.xlu0 %v15487_v8  ;;  %v4833_v6 = vld [vmem:[%s15010_s5 + $0x660] sm:$0xff]  ;;  %v4831_v54 = vld [vmem:[%s15010_s5 + $0x650] sm:$0xff] }
 0x448   : > { %5266 = vperm.xlu2 %8746, %v8867_v11   ;;  %4980 = vmatpush.msra.mxu0 %v4781_v43  ;;  %v4801_v11 = vld [vmem:[%s15010_s5 + $0x560] sm:$0xff]  ;;  %v4863_v51 = vld [vmem:[%s15010_s5 + $0x750] sm:$0xff] }
 0x449   : > { %5003 = vmatpush.msra.mxu1 %v4813_v1  ;;  %5026 = vmatpush.msra.mxu2 %v4845_v5  ;;  %v4861_v4 = vld [vmem:[%s15010_s5 + $0x740] sm:$0xff]  ;;  %v4763_v35 = vld [vmem:[%s15010_s5 + $0x430] sm:$0xff] }
 0x44a   : > { %5049 = vmatpush.msra.mxu3 %v4877_v55  ;;  %4981 = vmatpush.msra.mxu0 %v4779_v39  ;;  %v4795_v30 = vld [vmem:[%s15010_s5 + $0x530] sm:$0xff]  ;;  %v4761_v32 = vld [vmem:[%s15010_s5 + $0x420] sm:$0xff] }
 0x44b   : > { %5004 = vmatpush.msra.mxu1 %v4811_v61  ;;  %5027 = vmatpush.msra.mxu2 %v4843_v58  ;;  %v4827_v52 = vld [vmem:[%s15010_s5 + $0x630] sm:$0xff]  ;;  %v4793_v42 = vld [vmem:[%s15010_s5 + $0x520] sm:$0xff] }
 0x44c   : > { %5050 = vmatpush.msra.mxu3 %v4875_v40  ;;  %4982 = vmatpush.msra.mxu0 %v4777_v21  ;;  %v4859_v26 = vld [vmem:[%s15010_s5 + $0x730] sm:$0xff]  ;;  %v4825_v43 = vld [vmem:[%s15010_s5 + $0x620] sm:$0xff] }
 0x44d   : > { %5005 = vmatpush.msra.mxu1 %v4809_v24  ;;  %5028 = vmatpush.msra.mxu2 %v4841_v18  ;;  %v4857_v1 = vld [vmem:[%s15010_s5 + $0x720] sm:$0xff]  ;;  %v4759_v39 = vld [vmem:[%s15010_s5 + $0x410] sm:$0xff] }
 0x44e   : > { %5051 = vmatpush.msra.mxu3 %v4873_v36  ;;  %4983 = vmatpush.msra.mxu0 %v4775_v23  ;;  %v4791_v61 = vld [vmem:[%s15010_s5 + $0x510] sm:$0xff]  ;;  %v4757_v24 = vld [vmem:[%s15010_s5 + $0x400] sm:$0xff] }
 0x44f   : > { %8807 = vset.pattern.permute.xlu1 %v15488_v2  ;;  %5006 = vmatpush.msra.mxu1 %v4807_v33  ;;  %v4823_v58 = vld [vmem:[%s15010_s5 + $0x610] sm:$0xff]  ;;  %v4789_v36 = vld [vmem:[%s15010_s5 + $0x500] sm:$0xff] }
 0x450   : > { %8808 = vset.pattern.permute.xlu2 %v15489_v53  ;;  %5029 = vmatpush.msra.mxu2 %v4839_v9  ;;  %v4855_v40 = vld [vmem:[%s15010_s5 + $0x710] sm:$0xff]  ;;  %v4821_v23 = vld [vmem:[%s15010_s5 + $0x600] sm:$0xff]  ;;  %v4722_v9 = vld [vmem:[%s15010_s5 + $0x2e8] sm:$0xff] }
 0x451   : > { %5052 = vmatpush.msra.mxu3 %v4871_v12  ;;  %4984 = vmatpush.msra.mxu0 %v4773_v41  ;;  %v4853_v33 = vld [vmem:[%s15010_s5 + $0x700] sm:$0xff]  ;;  %v4720_v12 = vld [vmem:[%s15010_s5 + $0x2d8] sm:$0xff]  ;;  %v4718_v41 = vld [vmem:[%s15010_s5 + $0x2c8] sm:$0xff] }
 0x452   : > { %5007 = vmatpush.msra.mxu1 %v4805_v25  ;;  %5030 = vmatpush.msra.mxu2 %v4837_v34  ;;  %v4716_v25 = vld [vmem:[%s15010_s5 + $0x2b8] sm:$0xff]  ;;  %v4714_v34 = vld [vmem:[%s15010_s5 + $0x2a8] sm:$0xff] }
 0x453   : > { %5053 = vmatpush.msra.mxu3 %v4869_v44  ;;  %4985 = vmatpush.msra.mxu0 %v4771_v19  ;;  %v4712_v44 = vld [vmem:[%s15010_s5 + $0x298] sm:$0xff]  ;;  %v4710_v19 = vld [vmem:[%s15010_s5 + $0x288] sm:$0xff] }
 0x454   : > { %5008 = vmatpush.msra.mxu1 %v4803_v45  ;;  %5031 = vmatpush.msra.mxu2 %v4835_v56  ;;  %v4708_v45 = vld [vmem:[%s15010_s5 + $0x278] sm:$0xff] }
 0x455   : > { %5054 = vmatpush.msra.mxu3 %v4867_v38  ;;  %4986 = vmatpush.msra.mxu0 %v4769_v29  ;;  %v4706_v38 = vld [vmem:[%s15010_s5 + $0x268] sm:$0xff] }
 0x456   : > { %5009 = vmatpush.msra.mxu1 %v4801_v11  ;;  %5032 = vmatpush.msra.mxu2 %v4833_v6 }
 0x457   : > { %5055 = vmatpush.msra.mxu3 %v4865_v7  ;;  %4987 = vmatpush.msra.mxu0 %v4767_v46 }
 0x458   : > { %5010 = vmatpush.msra.mxu1 %v4799_v28  ;;  %5033 = vmatpush.msra.mxu2 %v4831_v54  ;;  %v4704_v28 = vld [vmem:[%s15010_s5 + $0x258] sm:$0xff] }
 0x459   : > { %5056 = vmatpush.msra.mxu3 %v4863_v51  ;;  %4988 = vmatpush.msra.mxu0 %v4765_v60 }
 0x45a   : > { %5011 = vmatpush.msra.mxu1 %v4797_v16  ;;  %5034 = vmatpush.msra.mxu2 %v4829_v27 }
 0x45b   : > { %5057 = vmatpush.msra.mxu3 %v4861_v4  ;;  %4989 = vmatpush.msra.mxu0 %v4763_v35 }
 0x45c   : > { %5012 = vmatpush.msra.mxu1 %v4795_v30  ;;  %5035 = vmatpush.msra.mxu2 %v4827_v52 }
 0x45d   : > { %5058 = vmatpush.msra.mxu3 %v4859_v26  ;;  %4990 = vmatpush.msra.mxu0 %v4761_v32  ;;  %v4660_v32 = vld [vmem:[%s15010_s5 + $0xf8] sm:$0xff] }
 0x45e   : > { %5013 = vmatpush.msra.mxu1 %v4793_v42  ;;  %5036 = vmatpush.msra.mxu2 %v4825_v43  ;;  %v4754_v42 = vld [vmem:[%s15010_s5 + $0x3e8] sm:$0xff]  ;;  %v4700_v43 = vld [vmem:[%s15010_s5 + $0x238] sm:$0xff] }
 0x45f   : > { %5059 = vmatpush.msra.mxu3 %v4857_v1  ;;  %4991 = vmatpush.msra.mxu0 %v4759_v39 }
 0x460   : > { %5014 = vmatpush.msra.mxu1 %v4791_v61  ;;  %5037 = vmatpush.msra.mxu2 %v4823_v58  ;;  %v4688_v58 = vld [vmem:[%s15010_s5 + $0x1d8] sm:$0xff] }
 0x461   : > { %5060 = vmatpush.msra.mxu3 %v4855_v40  ;;  %4992 = vmatpush.msra.mxu0 %v4757_v24  ;;  %v4654_v24 = vld [vmem:[%s15010_s5 + $0xc8] sm:$0xff] }
 0x462   : > { %5015 = vmatpush.msra.mxu1 %v4789_v36  ;;  %5038 = vmatpush.msra.mxu2 %v4821_v23 }
 0x463   : > { %5061 = vmatpush.msra.mxu3 %v4853_v33 }
 0x46f   : > { %v11894_v15 = vpop.permute.xlu2 %8699 }
 0x470   : > { %v8702_v5 = vunpack.i.h.bf16 %v11894_v15  ;;  %v8701_v55 = vunpack.i.l.bf16 %v11894_v15  ;;  %v4690_v15 = vld [vmem:[%s15010_s5 + $0x1e8] sm:$0xff] }
 0x472   : > { %v4583_v21 = vsel %vm3807_vm14, %v8701_v55, %v8702_v5 }
 0x473   : > { %v11924_v18 = vmax.f32 %v11447_v49, %v4583_v21  ;;  %v4724_v49 = vld [vmem:[%s15010_s5 + $0x2f8] sm:$0xff] }
 0x474   : > { %v4752_v21 = vld [vmem:[%s15010_s5 + $0x3d8] sm:$0xff] }
 0x475   : > { %4947 = vmatmul.f32.vlgmr.msrb.gmra.mxu2 %v11924_v18 }
 0x476   : > { %5115 = vmatpush.msrb.mxu2 %v4724_v49 }
 0x478   : > { %5116 = vmatpush.msrb.mxu2 %v4722_v9  ;;  %v8715_v56 = vpop.permute.xlu2 %8714 }
 0x479   : > { %v8716_v11 = vunpack.i.l.bf16 %v8715_v56 }
 0x47a   : > { %5117 = vmatpush.msrb.mxu2 %v4720_v12 }
 0x47c   : > { %5118 = vmatpush.msrb.mxu2 %v4718_v41  ;;  %v4686_v41 = vld [vmem:[%s15010_s5 + $0x1c8] sm:$0xff] }
 0x47e   : > { %5119 = vmatpush.msrb.mxu2 %v4716_v25 }
 0x480   : > { %5120 = vmatpush.msrb.mxu2 %v4714_v34  ;;  %v4698_v34 = vld [vmem:[%s15010_s5 + $0x228] sm:$0xff] }
 0x482   : > { %5121 = vmatpush.msrb.mxu2 %v4712_v44  ;;  %v4748_v44 = vld [vmem:[%s15010_s5 + $0x3b8] sm:$0xff] }
 0x484   : > { %5122 = vmatpush.msrb.mxu2 %v4710_v19  ;;  %v4650_v19 = vld [vmem:[%s15010_s5 + $0xa8] sm:$0xff] }
 0x486   : > { %5123 = vmatpush.msrb.mxu2 %v4708_v45  ;;  %v4682_v45 = vld [vmem:[%s15010_s5 + $0x1a8] sm:$0xff] }
 0x488   : > { %v11966_v29 = vpop.permute.xlu1 %8709  ;;  %v8705_v46 = vpop.permute.xlu0 %8704  ;;  %5124 = vmatpush.msrb.mxu2 %v4706_v38 }
 0x489   : > { %v8712_v6 = vunpack.i.h.bf16 %v11966_v29  ;;  %v8711_v7 = vunpack.i.l.bf16 %v11966_v29  ;;  %v8707_v54 = vunpack.i.h.bf16 %v8705_v46  ;;  %v8706_v51 = vunpack.i.l.bf16 %v8705_v46  ;;  %v4680_v46 = vld [vmem:[%s15010_s5 + $0x198] sm:$0xff]  ;;  %v4694_v29 = vld [vmem:[%s15010_s5 + $0x208] sm:$0xff] }
 0x48a   : > { %5125 = vmatpush.msrb.mxu2 %v4704_v28 }
 0x48b   : > { %v4584_v60 = vsel %vm3807_vm14, %v8702_v5, %v8711_v7  ;;  %v4591_v16 = vsel %vm3807_vm14, %v8712_v6, %v8716_v11  ;;  %v4582_v4 = vsel %vm3807_vm14, %v8707_v54, %v8701_v55  ;;  %v4581_v35 = vsel %vm3807_vm14, %v8706_v51, %v8707_v54  ;;  %v4656_v5 = vld [vmem:[%s15010_s5 + $0xd8] sm:$0xff]  ;;  %v4646_v54 = vld [vmem:[%s15010_s5 + $0x88] sm:$0xff] }
 0x48c   : > { %v11978_v27 = vmax.f32 %v11450_v47, %v4584_v60  ;;  %v11983_v30 = vmax.f32 %v11444_v48, %v4591_v16  ;;  %v11986_v52 = vmax.f32 %v11456_v22, %v4582_v4  ;;  %v11989_v26 = vmax.f32 %v11453_v62, %v4581_v35  ;;  %v4692_v47 = vld [vmem:[%s15010_s5 + $0x1f8] sm:$0xff]  ;;  %v4702_v62 = vld [vmem:[%s15010_s5 + $0x248] sm:$0xff] }
 0x48d   : > { %v4756_v48 = vld [vmem:[%s15010_s5 + $0x3f8] sm:$0xff]  ;;  %v4658_v22 = vld [vmem:[%s15010_s5 + $0xe8] sm:$0xff]  ;;  %5126 = vmatpush.msrb.mxu2 %v4702_v62  ;;  %v8717_v55 = vunpack.i.h.bf16 %v8715_v56 }
 0x48e   : > { %4950 = vmatmul.f32.gmra.mxu2 %v11983_v30  ;;  %4970 = vmatmul.f32.vlgmr.msrb.gmra.mxu3 %v11978_v27  ;;  %v4696_v56 = vld [vmem:[%s15010_s5 + $0x218] sm:$0xff]  ;;  %v4678_v51 = vld [vmem:[%s15010_s5 + $0x188] sm:$0xff] }
 0x48f   : > { %4901 = vmatmul.f32.vlgmr.msrb.gmra.mxu0 %v11989_v26  ;;  %4924 = vmatmul.f32.vlgmr.msrb.gmra.mxu1 %v11986_v52  ;;  %v4742_v60 = vld [vmem:[%s15010_s5 + $0x388] sm:$0xff]  ;;  %v4676_v16 = vld [vmem:[%s15010_s5 + $0x178] sm:$0xff] }
 0x490   : > { %5069 = vmatpush.msrb.mxu0 %v4660_v32  ;;  %5092 = vmatpush.msrb.mxu1 %v4692_v47  ;;  %v12019_v1 = vpop.permute.xlu0 %8719  ;;  %v12029_v40 = vpop.permute.xlu2 %8729  ;;  %v4740_v4 = vld [vmem:[%s15010_s5 + $0x378] sm:$0xff]  ;;  %v4642_v35 = vld [vmem:[%s15010_s5 + $0x68] sm:$0xff] }
 0x491   : > { %5138 = vmatpush.msrb.mxu3 %v4756_v48  ;;  %v8722_v39 = vunpack.i.h.bf16 %v12019_v1  ;;  %v8721_v61 = vunpack.i.l.bf16 %v12019_v1  ;;  %5127 = vmatpush.msrb.mxu2 %v4700_v43  ;;  %v8731_v25 = vunpack.i.l.bf16 %v12029_v40  ;;  %v4674_v32 = vld [vmem:[%s15010_s5 + $0x168] sm:$0xff]  ;;  %v4640_v48 = vld [vmem:[%s15010_s5 + $0x58] sm:$0xff] }
 0x492   : > { %5070 = vmatpush.msrb.mxu0 %v4658_v22  ;;  %5093 = vmatpush.msrb.mxu1 %v4690_v15  ;;  %v4738_v47 = vld [vmem:[%s15010_s5 + $0x368] sm:$0xff]  ;;  %v4672_v62 = vld [vmem:[%s15010_s5 + $0x158] sm:$0xff] }
 0x493   : > { %5139 = vmatpush.msrb.mxu3 %v4754_v42  ;;  %v4589_v36 = vsel %vm3807_vm14, %v8717_v55, %v8721_v61  ;;  %v4590_v23 = vsel %vm3807_vm14, %v8721_v61, %v8712_v6  ;;  %v4592_v33 = vsel %vm3807_vm14, %v8716_v11, %v8722_v39  ;;  %v4585_v38 = vsel %vm3807_vm14, %v8711_v7, %v8731_v25  ;;  %v4746_v11 = vld [vmem:[%s15010_s5 + $0x3a8] sm:$0xff]  ;;  %v4648_v6 = vld [vmem:[%s15010_s5 + $0x98] sm:$0xff] }
 0x494   : > { %5071 = vmatpush.msrb.mxu0 %v4656_v5  ;;  %v12043_v49 = vmax.f32 %v11478_v37, %v4589_v36  ;;  %v12046_v9 = vmax.f32 %v11484_v10, %v4590_v23  ;;  %v12049_v12 = vmax.f32 %v11481_v13, %v4592_v33  ;;  %5094 = vmatpush.msrb.mxu1 %v4688_v58  ;;  %v4750_v37 = vld [vmem:[%s15010_s5 + $0x3c8] sm:$0xff]  ;;  %v4652_v10 = vld [vmem:[%s15010_s5 + $0xb8] sm:$0xff]  ;;  %v8732_v23 = vunpack.i.h.bf16 %v12029_v40 }
 0x495   : > { %5140 = vmatpush.msrb.mxu3 %v4752_v21  ;;  %v4684_v13 = vld [vmem:[%s15010_s5 + $0x1b8] sm:$0xff]  ;;  %5128 = vmatpush.msrb.mxu2 %v4698_v34  ;;  %v12103_v28 = vmax.f32 %v11442_v59, %v4585_v38  ;;  %v4638_v15 = vld [vmem:[%s15010_s5 + $0x48] sm:$0xff] }
 0x496   : > { %5072 = vmatpush.msrb.mxu0 %v4654_v24  ;;  %4973 = vmatmul.f32.gmra.mxu3 %v12049_v12  ;;  %v4744_v7 = vld [vmem:[%s15010_s5 + $0x398] sm:$0xff]  ;;  %v4670_v42 = vld [vmem:[%s15010_s5 + $0x148] sm:$0xff] }
 0x497   : > { %4904 = vmatmul.f32.gmra.mxu0 %v12043_v49  ;;  %4927 = vmatmul.f32.gmra.mxu1 %v12046_v9  ;;  %v4644_v59 = vld [vmem:[%s15010_s5 + $0x78] sm:$0xff]  ;;  %v4734_v43 = vld [vmem:[%s15010_s5 + $0x348] sm:$0xff] }
 0x498   : > { %5095 = vmatpush.msrb.mxu1 %v4686_v41  ;;  %5141 = vmatpush.msrb.mxu3 %v4750_v37  ;;  %v4736_v22 = vld [vmem:[%s15010_s5 + $0x358] sm:$0xff]  ;;  %v4634_v58 = vld [vmem:[%s15010_s5 + $0x28] sm:$0xff] }
 0x499   : > { %5073 = vmatpush.msrb.mxu0 %v4652_v10  ;;  %5129 = vmatpush.msrb.mxu2 %v4696_v56  ;;  %v4636_v5 = vld [vmem:[%s15010_s5 + $0x38] sm:$0xff]  ;;  %v4666_v21 = vld [vmem:[%s15010_s5 + $0x128] sm:$0xff] }
 0x49a   : > { %5096 = vmatpush.msrb.mxu1 %v4684_v13  ;;  %5142 = vmatpush.msrb.mxu3 %v4748_v44  ;;  %v4668_v55 = vld [vmem:[%s15010_s5 + $0x138] sm:$0xff]  ;;  %v4730_v36 = vld [vmem:[%s15010_s5 + $0x328] sm:$0xff] }
 0x49b   : > { %5074 = vmatpush.msrb.mxu0 %v4650_v19  ;;  %5130 = vmatpush.msrb.mxu2 %v4694_v29  ;;  %v4732_v61 = vld [vmem:[%s15010_s5 + $0x338] sm:$0xff]  ;;  %v4630_v40 = vld [vmem:[%s15010_s5 + $0x8] sm:$0xff] }
 0x49c   : > { %5097 = vmatpush.msrb.mxu1 %v4682_v45  ;;  %5143 = vmatpush.msrb.mxu3 %v4746_v11  ;;  %v4632_v37 = vld [vmem:[%s15010_s5 + $0x18] sm:$0xff]  ;;  %v4846_v1 = vld [vmem:[%s15010_s5 + $0x6c8] sm:$0xff] }
 0x49d   : > { %5075 = vmatpush.msrb.mxu0 %v4648_v6  ;;  %v4664_v10 = vld [vmem:[%s15010_s5 + $0x118] sm:$0xff] }
 0x49e   : > { %5098 = vmatpush.msrb.mxu1 %v4680_v46  ;;  %5144 = vmatpush.msrb.mxu3 %v4744_v7  ;;  %v4728_v13 = vld [vmem:[%s15010_s5 + $0x318] sm:$0xff]  ;;  %v4786_v7 = vld [vmem:[%s15010_s5 + $0x4e8] sm:$0xff] }
 0x49f   : > { %4993 = vmatmul.f32.vlgmr.msra.gmra.mxu0 %v12103_v28  ;;  %v4820_v11 = vld [vmem:[%s15010_s5 + $0x5f8] sm:$0xff] }
 0x4a0   : > { %5076 = vmatpush.msrb.mxu0 %v4646_v54  ;;  %5099 = vmatpush.msrb.mxu1 %v4678_v51  ;;  %v4852_v6 = vld [vmem:[%s15010_s5 + $0x6f8] sm:$0xff]  ;;  %v4818_v54 = vld [vmem:[%s15010_s5 + $0x5e8] sm:$0xff] }
 0x4a1   : > { %5145 = vmatpush.msrb.mxu3 %v4742_v60  ;;  %v4884_v46 = vld [vmem:[%s15010_s5 + $0x7f8] sm:$0xff] }
 0x4a2   : > { %5077 = vmatpush.msrb.mxu0 %v4644_v59  ;;  %5100 = vmatpush.msrb.mxu1 %v4676_v16 }
 0x4a3   : > { %5146 = vmatpush.msrb.mxu3 %v4740_v4  ;;  %v4850_v4 = vld [vmem:[%s15010_s5 + $0x6e8] sm:$0xff] }
 0x4a4   : > { %5078 = vmatpush.msrb.mxu0 %v4642_v35  ;;  %5101 = vmatpush.msrb.mxu1 %v4674_v32  ;;  %v4882_v35 = vld [vmem:[%s15010_s5 + $0x7e8] sm:$0xff]  ;;  %v4784_v32 = vld [vmem:[%s15010_s5 + $0x4d8] sm:$0xff] }
 0x4a5   : > { %5147 = vmatpush.msrb.mxu3 %v4738_v47  ;;  %v4816_v47 = vld [vmem:[%s15010_s5 + $0x5d8] sm:$0xff] }
 0x4a6   : > { %5079 = vmatpush.msrb.mxu0 %v4640_v48  ;;  %5102 = vmatpush.msrb.mxu1 %v4672_v62  ;;  %v4848_v48 = vld [vmem:[%s15010_s5 + $0x6d8] sm:$0xff] }
 0x4a7   : > { %5148 = vmatpush.msrb.mxu3 %v4736_v22  ;;  %v4880_v62 = vld [vmem:[%s15010_s5 + $0x7d8] sm:$0xff] }
 0x4a8   : > { %5080 = vmatpush.msrb.mxu0 %v4638_v15  ;;  %5103 = vmatpush.msrb.mxu1 %v4670_v42 }
 0x4a9   : > { %5149 = vmatpush.msrb.mxu3 %v4734_v43  ;;  %v8725_v24 = vpop.permute.xlu1 %8724  ;;  %v4782_v43 = vld [vmem:[%s15010_s5 + $0x4c8] sm:$0xff] }
 0x4aa   : > { %5081 = vmatpush.msrb.mxu0 %v4636_v5  ;;  %5104 = vmatpush.msrb.mxu1 %v4668_v55  ;;  %v8727_v33 = vunpack.i.h.bf16 %v8725_v24  ;;  %v8726_v41 = vunpack.i.l.bf16 %v8725_v24  ;;  %v4814_v5 = vld [vmem:[%s15010_s5 + $0x5c8] sm:$0xff] }
 0x4ab   : > { %5150 = vmatpush.msrb.mxu3 %v4732_v61 }
 0x4ac   : > { %5082 = vmatpush.msrb.mxu0 %v4634_v58  ;;  %5105 = vmatpush.msrb.mxu1 %v4666_v21  ;;  %v4586_v34 = vsel %vm3807_vm14, %v8731_v25, %v8726_v41  ;;  %v4587_v44 = vsel %vm3807_vm14, %v8726_v41, %v8727_v33  ;;  %v4588_v19 = vsel %vm3807_vm14, %v8727_v33, %v8732_v23  ;;  %v4662_v25 = vld [vmem:[%s15010_s5 + $0x108] sm:$0xff] }
 0x4ad   : > { %5151 = vmatpush.msrb.mxu3 %v4730_v36  ;;  %v12185_v45 = vmax.f32 %v11622_v3, %v4586_v34  ;;  %v12188_v56 = vmax.f32 %v11644_v17, %v4587_v44  ;;  %v12191_v38 = vmax.f32 %v11647_v14, %v4588_v19  ;;  %v4726_v3 = vld [vmem:[%s15010_s5 + $0x308] sm:$0xff]  ;;  %v8735_v17 = vpop.permute.xlu0 %8734  ;;  %v4788_v14 = vld [vmem:[%s15010_s5 + $0x4f8] sm:$0xff] }
 0x4ae   : > { %5083 = vmatpush.msrb.mxu0 %v4632_v37  ;;  %5106 = vmatpush.msrb.mxu1 %v4664_v10  ;;  %v8737_v51 = vunpack.i.h.bf16 %v8735_v17  ;;  %v8736_v60 = vunpack.i.l.bf16 %v8735_v17  ;;  %v4778_v36 = vld [vmem:[%s15010_s5 + $0x4a8] sm:$0xff]  ;;  %v4776_v37 = vld [vmem:[%s15010_s5 + $0x498] sm:$0xff] }
 0x4af   : > { %5152 = vmatpush.msrb.mxu3 %v4728_v13  ;;  %5016 = vmatmul.f32.vlgmr.msra.gmra.mxu1 %v12185_v45  ;;  %v4810_v23 = vld [vmem:[%s15010_s5 + $0x5a8] sm:$0xff]  ;;  %v4808_v10 = vld [vmem:[%s15010_s5 + $0x598] sm:$0xff] }
 0x4b0   : > { %5039 = vmatmul.f32.vlgmr.msra.gmra.mxu2 %v12188_v56  ;;  %5062 = vmatmul.f32.vlgmr.msra.gmra.mxu3 %v12191_v38  ;;  %v4595_v58 = vsel %vm3807_vm14, %v8736_v60, %v8737_v51  ;;  %v4842_v33 = vld [vmem:[%s15010_s5 + $0x6a8] sm:$0xff]  ;;  %v4840_v13 = vld [vmem:[%s15010_s5 + $0x698] sm:$0xff] }
 0x4b1   : > { %5084 = vmatpush.msrb.mxu0 %v4630_v40  ;;  %5107 = vmatpush.msrb.mxu1 %v4662_v25  ;;  %v8740_v29 = vpop.permute.xlu1 %8739  ;;  %v12269_v24 = vmax.f32 %v11632_v50, %v4595_v58  ;;  %v4876_v50 = vld [vmem:[%s15010_s5 + $0x7b8] sm:$0xff]  ;;  %v4874_v41 = vld [vmem:[%s15010_s5 + $0x7a8] sm:$0xff] }
 0x4b2   : > { %5153 = vmatpush.msrb.mxu3 %v4726_v3  ;;  %v8742_v59 = vunpack.i.h.bf16 %v8740_v29  ;;  %v8741_v16 = vunpack.i.l.bf16 %v8740_v29  ;;  %5207 = vmatpush.msra.mxu2 %v4852_v6  ;;  %v4872_v34 = vld [vmem:[%s15010_s5 + $0x798] sm:$0xff]  ;;  %v4774_v44 = vld [vmem:[%s15010_s5 + $0x488] sm:$0xff] }
 0x4b3   : > { %5161 = vmatpush.msra.mxu0 %v4788_v14  ;;  %5184 = vmatpush.msra.mxu1 %v4820_v11  ;;  %v4806_v19 = vld [vmem:[%s15010_s5 + $0x588] sm:$0xff]  ;;  %v4772_v3 = vld [vmem:[%s15010_s5 + $0x478] sm:$0xff] }
 0x4b4   : > { %5230 = vmatpush.msra.mxu3 %v4884_v46  ;;  %v4593_v22 = vsel %vm3807_vm14, %v8722_v39, %v8741_v16  ;;  %v4594_v15 = vsel %vm3807_vm14, %v8741_v16, %v8736_v60  ;;  %v4596_v42 = vsel %vm3807_vm14, %v8737_v51, %v8742_v59  ;;  %5208 = vmatpush.msra.mxu2 %v4850_v4  ;;  %v4878_v39 = vld [vmem:[%s15010_s5 + $0x7c8] sm:$0xff]  ;;  %v4804_v17 = vld [vmem:[%s15010_s5 + $0x578] sm:$0xff]  ;;  %vm5323_vm14 = vcmask 138240  }
 0x4b5   : > { %5162 = vmatpush.msra.mxu0 %v4786_v7  ;;  %5185 = vmatpush.msra.mxu1 %v4818_v54  ;;  %v12259_v55 = vmax.f32 %v11487_v20, %v4593_v22  ;;  %v12262_v61 = vmax.f32 %v11688_v57, %v4594_v15  ;;  %v12266_v21 = vmax.f32 %v11635_v0, %v4596_v42  ;;  %v4780_v20 = vld [vmem:[%s15010_s5 + $0x4b8] sm:$0xff]  ;;  %v4838_v40 = vld [vmem:[%s15010_s5 + $0x688] sm:$0xff] }
 0x4b6   : > { %5231 = vmatpush.msra.mxu3 %v4882_v35  ;;  %5209 = vmatpush.msra.mxu2 %v4848_v48  ;;  %v4812_v57 = vld [vmem:[%s15010_s5 + $0x5b8] sm:$0xff]  ;;  %v4870_v25 = vld [vmem:[%s15010_s5 + $0x788] sm:$0xff] }
 0x4b7   : > { %5163 = vmatpush.msra.mxu0 %v4784_v32  ;;  %5186 = vmatpush.msra.mxu1 %v4816_v47  ;;  %v4844_v0 = vld [vmem:[%s15010_s5 + $0x6b8] sm:$0xff]  ;;  %v4770_v6 = vld [vmem:[%s15010_s5 + $0x468] sm:$0xff] }
 0x4b8   : > { %5232 = vmatpush.msra.mxu3 %v4880_v62  ;;  %5210 = vmatpush.msra.mxu2 %v4846_v1  ;;  %v4836_v14 = vld [vmem:[%s15010_s5 + $0x678] sm:$0xff]  ;;  %v4766_v54 = vld [vmem:[%s15010_s5 + $0x448] sm:$0xff]  ;;  %v12438_v1 = vld [vmem:[%s15011_s6] sm:$0xff] }
 0x4b9   : > { %5164 = vmatpush.msra.mxu0 %v4782_v43  ;;  %5187 = vmatpush.msra.mxu1 %v4814_v5  ;;  %v4868_v11 = vld [vmem:[%s15010_s5 + $0x778] sm:$0xff]  ;;  %v4798_v51 = vld [vmem:[%s15010_s5 + $0x548] sm:$0xff] }
 0x4ba   : > { %5233 = vmatpush.msra.mxu3 %v4878_v39  ;;  %4996 = vmatmul.f32.gmra.mxu0 %v12259_v55  ;;  %v4800_v46 = vld [vmem:[%s15010_s5 + $0x558] sm:$0xff]  ;;  %v4830_v60 = vld [vmem:[%s15010_s5 + $0x648] sm:$0xff] }
 0x4bb   : > { %5019 = vmatmul.f32.gmra.mxu1 %v12262_v61  ;;  %5042 = vmatmul.f32.gmra.mxu2 %v12269_v24  ;;  %v4832_v29 = vld [vmem:[%s15010_s5 + $0x658] sm:$0xff]  ;;  %v4862_v59 = vld [vmem:[%s15010_s5 + $0x748] sm:$0xff] }
 0x4bc   : > { %5065 = vmatmul.f32.gmra.mxu3 %v12266_v21  ;;  %5165 = vmatpush.msra.mxu0 %v4780_v20  ;;  %v4864_v7 = vld [vmem:[%s15010_s5 + $0x758] sm:$0xff]  ;;  %v4762_v47 = vld [vmem:[%s15010_s5 + $0x428] sm:$0xff]  ;;  %v12451_v20 = vpop.permute.xlu2 %5258 }
 0x4bd   : > { %5188 = vmatpush.msra.mxu1 %v4812_v57  ;;  %5211 = vmatpush.msra.mxu2 %v4844_v0  ;;  %v4764_v16 = vld [vmem:[%s15010_s5 + $0x438] sm:$0xff]  ;;  %v4758_v15 = vld [vmem:[%s15010_s5 + $0x408] sm:$0xff] }
 0x4be   : > { %5234 = vmatpush.msra.mxu3 %v4876_v50  ;;  %5166 = vmatpush.msra.mxu0 %v4778_v36  ;;  %v4796_v4 = vld [vmem:[%s15010_s5 + $0x538] sm:$0xff]  ;;  %v4790_v42 = vld [vmem:[%s15010_s5 + $0x508] sm:$0xff] }
 0x4bf   : > { %5189 = vmatpush.msra.mxu1 %v4810_v23  ;;  %5212 = vmatpush.msra.mxu2 %v4842_v33  ;;  %v4828_v35 = vld [vmem:[%s15010_s5 + $0x638] sm:$0xff]  ;;  %v4822_v43 = vld [vmem:[%s15010_s5 + $0x608] sm:$0xff] }
 0x4c0   : > { %5235 = vmatpush.msra.mxu3 %v4874_v41  ;;  %5167 = vmatpush.msra.mxu0 %v4776_v37  ;;  %v4860_v32 = vld [vmem:[%s15010_s5 + $0x738] sm:$0xff]  ;;  %v4854_v5 = vld [vmem:[%s15010_s5 + $0x708] sm:$0xff] }
 0x4c1   : > { %5190 = vmatpush.msra.mxu1 %v4808_v10  ;;  %5213 = vmatpush.msra.mxu2 %v4840_v13  ;;  %v4792_v48 = vld [vmem:[%s15010_s5 + $0x518] sm:$0xff] }
 0x4c2   : > { %5236 = vmatpush.msra.mxu3 %v4872_v34  ;;  %5168 = vmatpush.msra.mxu0 %v4774_v44  ;;  %v4824_v62 = vld [vmem:[%s15010_s5 + $0x618] sm:$0xff]  ;;  %v5255_v34 = vpop.permute.xlu0 %5254 }
 0x4c3   : > { %5191 = vmatpush.msra.mxu1 %v4806_v19  ;;  %5214 = vmatpush.msra.mxu2 %v4838_v40  ;;  %v4856_v22 = vld [vmem:[%s15010_s5 + $0x718] sm:$0xff] }
 0x4c4   : > { %5237 = vmatpush.msra.mxu3 %v4870_v25  ;;  %5085 = vmatmul.f32.vlgmr.msrb.gmra.mxu0 %v11989_v26  ;;  %v4834_v26 = vld [vmem:[%s15010_s5 + $0x668] sm:$0xff]  ;;  %v5267_v40 = vpop.permute.xlu2 %5266  ;;  %v12456_v25 = vld [vmem:[%s15011_s6 + $0x20] sm:$0xff] }
 0x4c5   : > { %5108 = vmatmul.f32.vlgmr.msrb.gmra.mxu1 %v11986_v52  ;;  %5131 = vmatmul.f32.vlgmr.msrb.gmra.mxu2 %v11924_v18  ;;  %v4802_v52 = vld [vmem:[%s15010_s5 + $0x568] sm:$0xff] }
 0x4c6   : > { %5154 = vmatmul.f32.vlgmr.msrb.gmra.mxu3 %v11978_v27  ;;  %5169 = vmatpush.msra.mxu0 %v4772_v3  ;;  %v4866_v18 = vld [vmem:[%s15010_s5 + $0x768] sm:$0xff]  ;;  %v4768_v27 = vld [vmem:[%s15010_s5 + $0x458] sm:$0xff] }
 0x4c7   : > { %5192 = vmatpush.msra.mxu1 %v4804_v17  ;;  %5215 = vmatpush.msra.mxu2 %v4836_v14 }
 0x4c8   : > { %5238 = vmatpush.msra.mxu3 %v4868_v11  ;;  %5170 = vmatpush.msra.mxu0 %v4770_v6 }
 0x4c9   : > { %5193 = vmatpush.msra.mxu1 %v4802_v52  ;;  %5216 = vmatpush.msra.mxu2 %v4834_v26 }
 0x4ca   : > { %5239 = vmatpush.msra.mxu3 %v4866_v18  ;;  %5171 = vmatpush.msra.mxu0 %v4768_v27 }
 0x4cb   : > { %5194 = vmatpush.msra.mxu1 %v4800_v46  ;;  %5217 = vmatpush.msra.mxu2 %v4832_v29  ;;  %v12467_v46 = vld [vmem:[%s15011_s6 + $0x30] sm:$0xff] }
 0x4cc   : > { %5240 = vmatpush.msra.mxu3 %v4864_v7  ;;  %5172 = vmatpush.msra.mxu0 %v4766_v54 }
 0x4cd   : > { %5195 = vmatpush.msra.mxu1 %v4798_v51  ;;  %5218 = vmatpush.msra.mxu2 %v4830_v60  ;;  %v5271_v51 = vpop.permute.xlu1 %5270 }
 0x4ce   : > { %5241 = vmatpush.msra.mxu3 %v4862_v59  ;;  %5088 = vmatmul.f32.gmra.mxu0 %v12043_v49  ;;  %v4794_v49 = vld [vmem:[%s15010_s5 + $0x528] sm:$0xff] }
 0x4cf   : > { %5111 = vmatmul.f32.gmra.mxu1 %v12046_v9  ;;  %5134 = vmatmul.f32.gmra.mxu2 %v11983_v30  ;;  %v4826_v9 = vld [vmem:[%s15010_s5 + $0x628] sm:$0xff] }
 0x4d0   : > { %5157 = vmatmul.f32.gmra.mxu3 %v12049_v12  ;;  %5173 = vmatpush.msra.mxu0 %v4764_v16  ;;  %v4858_v30 = vld [vmem:[%s15010_s5 + $0x728] sm:$0xff]  ;;  %v4760_v12 = vld [vmem:[%s15010_s5 + $0x418] sm:$0xff] }
 0x4d1   : > { %5196 = vmatpush.msra.mxu1 %v4796_v4  ;;  %5219 = vmatpush.msra.mxu2 %v4828_v35 }
 0x4d2   : > { %5242 = vmatpush.msra.mxu3 %v4860_v32  ;;  %5174 = vmatpush.msra.mxu0 %v4762_v47 }
 0x4d3   : > { %5197 = vmatpush.msra.mxu1 %v4794_v49  ;;  %5220 = vmatpush.msra.mxu2 %v4826_v9 }
 0x4d4   : > { %5243 = vmatpush.msra.mxu3 %v4858_v30  ;;  %5175 = vmatpush.msra.mxu0 %v4760_v12 }
 0x4d5   : > { %5198 = vmatpush.msra.mxu1 %v4792_v48  ;;  %5221 = vmatpush.msra.mxu2 %v4824_v62 }
 0x4d6   : > { %5244 = vmatpush.msra.mxu3 %v4856_v22  ;;  %5176 = vmatpush.msra.mxu0 %v4758_v15 }
 0x4d7   : > { %5199 = vmatpush.msra.mxu1 %v4790_v42  ;;  %5222 = vmatpush.msra.mxu2 %v4822_v43 }
 0x4d8   : > { %5245 = vmatpush.msra.mxu3 %v4854_v5  ;;  %5177 = vmatmul.f32.vlgmr.msra.gmra.mxu0 %v12103_v28 }
 0x4d9   : > { %5200 = vmatmul.f32.vlgmr.msra.gmra.mxu1 %v12185_v45  ;;  %5223 = vmatmul.f32.vlgmr.msra.gmra.mxu2 %v12188_v56 }
 0x4da   : > { %5246 = vmatmul.f32.vlgmr.msra.gmra.mxu3 %v12191_v38  ;;  %5344 = vrot.lane.b32.xlu1 %v12438_v1, %s15490_s21  ;;  %v12447_v38 = vld [vmem:[%s15011_s6 + $0x10] sm:$0xff] }
 0x4db   : > { %5346 = vrot.lane.b32.xlu2 %v12447_v38, %s15490_s21  ;;  %5348 = vrot.lane.b32.xlu0 %v12456_v25, %s15490_s21 }
 0x4e0   : > { %5180 = vmatmul.f32.gmra.mxu0 %v12259_v55 }
 0x4e1   : > { %5203 = vmatmul.f32.gmra.mxu1 %v12262_v61  ;;  %5226 = vmatmul.f32.gmra.mxu2 %v12269_v24 }
 0x4e2   : > { %5249 = vmatmul.f32.gmra.mxu3 %v12266_v21  ;;  %8748 = vrot.lane.b32.xlu1 %v15468_v31, %s8959_s20 }
 0x4e3   : > { %5350 = vrot.lane.b32.xlu0 %v12467_v46, %s15490_s21 }
 0x4f8   : > { %v4948_v56 = vpop.f32.mrf.mxu2 }
 0x50c   : > { %v4902_v28 = vpop.f32.mrf.mxu0  ;;  %v4925_v45 = vpop.f32.mrf.mxu1 }
 0x50d   : > { %v4926_v58 = vadd.f32 %v4925_v45, %v4902_v28 }
 0x50f   : > { %v4949_v24 = vadd.f32 %v4948_v56, %v4926_v58 }
 0x511   : > { %v4971_v39 = vpop.f32.mrf.mxu3  ;;  %v4951_v21 = vpop.f32.mrf.mxu2 }
 0x512   : > { %v4972_v50 = vadd.f32 %v4971_v39, %v4949_v24 }
 0x514   : > { %v4905_v55 = vpop.f32.mrf.mxu0  ;;  %v4928_v61 = vpop.f32.mrf.mxu1 }
 0x515   : > { %v4929_v33 = vadd.f32 %v4928_v61, %v4905_v55 }
 0x517   : > { %v4952_v44 = vadd.f32 %v4951_v21, %v4929_v33 }
 0x519   : > { %v4974_v57 = vpop.f32.mrf.mxu3 }
 0x51a   : > { %v4975_v3 = vadd.f32 %v4974_v57, %v4952_v44 }
 0x51c   : > { %v4994_v0 = vpop.f32.mrf.mxu0 }
 0x51d   : > { %v4995_v23 = vadd.f32 %v4994_v0, %v4972_v50 }
 0x52c   : > { %v5017_v36 = vpop.f32.mrf.mxu1 }
 0x52d   : > { %v5018_v41 = vadd.f32 %v5017_v36, %v4995_v23 }
 0x533   : > { %v5040_v37 = vpop.f32.mrf.mxu2  ;;  %v5063_v13 = vpop.f32.mrf.mxu3 }
 0x534   : > { %v5041_v10 = vadd.f32 %v5040_v37, %v5018_v41 }
 0x535   : > { %v12533_v44 = vpop.permute.xlu2 %5346 }
 0x536   : > { %v5064_v19 = vadd.f32 %v5063_v13, %v5041_v10 }
 0x537   : > { %v4997_v17 = vpop.f32.mrf.mxu0 }
 0x538   : > { %v5261_v14 = vmul.f32 %v5255_v34, %v5064_v19  ;;  %v4998_v11 = vadd.f32 %v4997_v17, %v4975_v3  ;;  %v5020_v52 = vpop.f32.mrf.mxu1 }
 0x53a   : > { %v12460_v6 = vadd.f32 %v5267_v40, %v5261_v14  ;;  %v5021_v26 = vadd.f32 %v5020_v52, %v4998_v11 }
 0x53c   : > { %5313 = vrot.lane.b32.xlu1 %v12460_v6, %s8959_s20 }
 0x53e   : > { %v5043_v18 = vpop.f32.mrf.mxu2 }
 0x53f   : > { %v5066_v27 = vpop.f32.mrf.mxu3  ;;  %v5044_v29 = vadd.f32 %v5043_v18, %v5021_v26 }
 0x541   : > { %v5067_v7 = vadd.f32 %v5066_v27, %v5044_v29  ;;  %v5086_v54 = vpop.f32.mrf.mxu0 }
 0x542   : > { %v5109_v59 = vpop.f32.mrf.mxu1 }
 0x543   : > { %v5263_v60 = vmul.f32 %v12451_v20, %v5067_v7  ;;  %v5110_v9 = vadd.f32 %v5109_v59, %v5086_v54 }
 0x545   : > { %v12472_v16 = vadd.f32 %v5271_v51, %v5263_v60 }
 0x547   : > { %5319 = vrot.lane.b32.xlu2 %v12472_v16, %s8959_s20  ;;  %v8752_v4 = vpack.i.bf16 %v12472_v16, %v15468_v31 }
 0x548   : > { %v5132_v35 = vpop.f32.mrf.mxu2 }
 0x549   : > { %v5155_v32 = vpop.f32.mrf.mxu3  ;;  %8753 = vrot.lane.b32.xlu1 %v8752_v4, %s8960_s1  ;;  %v5133_v30 = vadd.f32 %v5132_v35, %v5110_v9 }
 0x54b   : > { %v5089_v47 = vpop.f32.mrf.mxu0  ;;  %v5156_v62 = vadd.f32 %v5155_v32, %v5133_v30 }
 0x54c   : > { %v5112_v49 = vpop.f32.mrf.mxu1 }
 0x54d   : > { %v5113_v15 = vadd.f32 %v5112_v49, %v5089_v47  ;;  %v12596_v35 = vpop.permute.xlu0 %5348 }
 0x551   : > { %8758 = vrot.lane.b32.xlu1 %v15468_v31, %s8961_s15 }
 0x552   : > { %v5135_v12 = vpop.f32.mrf.mxu2 }
 0x553   : > { %v5158_v48 = vpop.f32.mrf.mxu3  ;;  %v5136_v5 = vadd.f32 %v5135_v12, %v5113_v15 }
 0x555   : > { %v5178_v22 = vpop.f32.mrf.mxu0  ;;  %v5159_v39 = vadd.f32 %v5158_v48, %v5136_v5  ;;  %v12613_v30 = vpop.permute.xlu0 %5350 }
 0x556   : > { %v5179_v42 = vadd.f32 %v5178_v22, %v5156_v62  ;;  %v5201_v43 = vpop.f32.mrf.mxu1  ;;  %v12624_v62 = vld [vmem:[%s15012_s7] sm:$0xff] }
 0x558   : > { %v5202_v28 = vadd.f32 %v5201_v43, %v5179_v42 }
 0x559   : > { %5511 = vrot.lane.b32.xlu1 %v12460_v6, %s8961_s15 }
 0x55c   : > { %v5224_v45 = vpop.f32.mrf.mxu2 }
 0x55d   : > { %v5247_v56 = vpop.f32.mrf.mxu3  ;;  %v5225_v55 = vadd.f32 %v5224_v45, %v5202_v28  ;;  %v5181_v61 = vpop.f32.mrf.mxu0 }
 0x55e   : > { %v5182_v21 = vadd.f32 %v5181_v61, %v5159_v39  ;;  %v5204_v57 = vpop.f32.mrf.mxu1 }
 0x55f   : > { %v5248_v58 = vadd.f32 %v5247_v56, %v5225_v55 }
 0x560   : > { %v5205_v50 = vadd.f32 %v5204_v57, %v5182_v21 }
 0x561   : > { %v5262_v24 = vmul.f32 %v5255_v34, %v5248_v58  ;;  %5536 = vrot.lane.b32.xlu1 %v12447_v38, %s15485_s23 }
 0x563   : > { %v12485_v0 = vadd.f32 %v5267_v40, %v5262_v24  ;;  %v15495_v40 = vld [vmem:[#allocation16_spill] sm:$0xff]  ;;  %v8787_v24 = vpack.i.bf16 %v12460_v6, %v15468_v31 }
 0x564   : > { %v5227_v36 = vpop.f32.mrf.mxu2  ;;  %v5285_v3 = vand.u32 15, %v15495_v40 }
 0x565   : > { %v5228_v23 = vadd.f32 %v5227_v36, %v5205_v50  ;;  %5315 = vrot.lane.b32.xlu2 %v12485_v0, %s8959_s20  ;;  %v8762_v33 = vpack.i.bf16 %v12485_v0, %v12460_v6  ;;  %v5250_v41 = vpop.f32.mrf.mxu3  ;;  %v8792_v58 = vpack.i.bf16 0.0, %v12485_v0 }
 0x566   : > { %vm12544_vm10 = vcmp.ge.s32.totalorder %v5285_v3, 1  ;;  %vm12639_vm0 = vcmp.lt.s32.totalorder %v5285_v3, 15 }
 0x567   : > { %v5251_v37 = vadd.f32 %v5250_v41, %v5228_v23  ;;  %8763 = vrot.lane.b32.xlu0 %v8762_v33, %s8960_s1 }
 0x569   : > { %v5264_v10 = vmul.f32 %v12451_v20, %v5251_v37  ;;  %5624 = vrot.lane.b32.xlu1 %v12472_v16, %s15491_s2  ;;  %v12527_v20 = vpop.permute.xlu1 %5344 }
 0x56b   : > { %v12495_v13 = vadd.f32 %v5271_v51, %v5264_v10 }
 0x56d   : > { %v8767_v34 = vpack.i.bf16 0.0, %v12495_v13  ;;  %v8802_v60 = vpack.i.bf16 %v12495_v13, %v12472_v16 }
 0x56f   : > { %5534 = vrot.lane.b32.xlu0 %v12438_v1, %s15485_s23  ;;  %8768 = vrot.lane.b32.xlu2 %v8767_v34, %s8960_s1  ;;  %v15501_v34 = vld [vmem:[#allocation14_spill] sm:$0xff] }
 0x571   : > { %5620 = vrot.lane.b32.xlu1 %v12485_v0, %s15491_s2  ;;  %v8749_v19 = vpop.permute.xlu1 %8748 }
 0x572   : > { %v8750_v17 = vunpack.i.l.bf16 %v8749_v19  ;;  %v8751_v26 = vunpack.i.h.bf16 %v8749_v19 }
 0x577   : > { %8773 = vrot.lane.b32.xlu0 %v15468_v31, %s15491_s2  ;;  %5517 = vrot.lane.b32.xlu2 %v12472_v16, %s8961_s15 }
 0x579   : > { %5642 = vrot.lane.b32.xlu1 %v12447_v38, %s15492_s30 }
 0x57f   : > { %5321 = vrot.lane.b32.xlu0 %v12495_v13, %s8959_s20  ;;  %5513 = vrot.lane.b32.xlu2 %v12485_v0, %s8961_s15  ;;  %s8962_s20 = smov 48  }
 0x581   : > { %5724 = vrot.lane.b32.xlu1 %v12447_v38, %s15493_s16 }
 0x587   : > { %5519 = vrot.lane.b32.xlu0 %v12495_v13, %s8961_s15  ;;  %5538 = vrot.lane.b32.xlu2 %v12456_v25, %s15485_s23 }
 0x589   : > { %5822 = vrot.lane.b32.xlu1 %v12472_v16, %s15494_s24 }
 0x58f   : > { %5618 = vrot.lane.b32.xlu0 %v12460_v6, %s15491_s2  ;;  %5540 = vrot.lane.b32.xlu2 %v12467_v46, %s15485_s23  ;;  %s8963_s23 = smov 113  }
 0x591   : > { %5816 = vrot.lane.b32.xlu1 %v12460_v6, %s15494_s24 }
 0x597   : > { %5640 = vrot.lane.b32.xlu0 %v12438_v1, %s15492_s30  ;;  %5722 = vrot.lane.b32.xlu2 %v12438_v1, %s15493_s16 }
 0x599   : > { %5840 = vrot.lane.b32.xlu1 %v12438_v1, %s8962_s20 }
 0x59f   : > { %5644 = vrot.lane.b32.xlu0 %v12456_v25, %s15492_s30  ;;  %5646 = vrot.lane.b32.xlu2 %v12467_v46, %s15492_s30 }
 0x5a1   : > { %v12548_v11 = vpop.permute.xlu2 %5319  ;;  %8783 = vrot.lane.b32.xlu1 %v15468_v31, %s8963_s23 }
 0x5a2   : > { %v5326_v52 = vsel %vm5323_vm14, %v8750_v17, %v12548_v11 }
 0x5a3   : > { %8432 = vmatpush.msk.msrb.mxu2 %vm12544_vm10, %v5326_v52 }
 0x5a7   : > { %5726 = vrot.lane.b32.xlu0 %v12456_v25, %s15493_s16  ;;  %5626 = vrot.lane.b32.xlu2 %v12495_v13, %s15491_s2 }
 0x5a9   : > { %5842 = vrot.lane.b32.xlu1 %v12447_v38, %s8962_s20 }
 0x5ae   : > { %v12562_v18 = vpop.permute.xlu1 %5313 }
 0x5af   : > { %v5324_v27 = vsel %vm5323_vm14, %v8751_v26, %v12562_v18  ;;  %8778 = vrot.lane.b32.xlu0 %v15468_v31, %s15494_s24  ;;  %5818 = vrot.lane.b32.xlu2 %v12485_v0, %s15494_s24 }
 0x5b0   : > { %8433 = vmatpush.msk.msrb.mxu2 %vm12544_vm10, %v5324_v27 }
 0x5b1   : > { %5949 = vrot.lane.b32.xlu1 %v12447_v38, %s15498_s0  ;;  %8434 = vmatmul.msk.f32.vlgmr.msrb.gmra.mxu2 %vm5364_vm1, %v12438_v1 }
 0x5b7   : > { %5728 = vrot.lane.b32.xlu0 %v12467_v46, %s15493_s16  ;;  %5928 = vrot.lane.b32.xlu2 %v12472_v16, %s8963_s23 }
 0x5b9   : > { %5953 = vrot.lane.b32.xlu1 %v12467_v46, %s15498_s0  ;;  %8435 = vmatmul.msk.f32.gmra.mxu2 %vm5364_vm1, %v12447_v38 }
 0x5bb   : > { %v8754_v29 = vpop.permute.xlu1 %8753 }
 0x5bc   : > { %v8756_v7 = vunpack.i.h.bf16 %v8754_v29  ;;  %v8755_v54 = vunpack.i.l.bf16 %v8754_v29 }
 0x5be   : > { %v5367_v51 = vsel %vm5364_vm1, %v8755_v54, %v8756_v7 }
 0x5bf   : > { %5924 = vrot.lane.b32.xlu0 %v12485_v0, %s8963_s23  ;;  %5922 = vrot.lane.b32.xlu2 %v12460_v6, %s8963_s23  ;;  %v12591_v59 = vpop.permute.xlu2 %5315 }
 0x5c0   : > { %5395 = vmatpush.msrb.mxu0 %v5367_v51 }
 0x5c1   : > { %8803 = vrot.lane.b32.xlu1 %v8802_v60, %s15490_s21  ;;  %8436 = vmatmul.msk.f32.gmra.mxu2 %vm5364_vm1, %v12456_v25 }
 0x5c3   : > { %v8759_v4 = vpop.permute.xlu1 %8758 }
 0x5c4   : > { %v8760_v43 = vunpack.i.l.bf16 %v8759_v4  ;;  %v8761_v56 = vunpack.i.h.bf16 %v8759_v4 }
 0x5c7   : > { %5930 = vrot.lane.b32.xlu0 %v12495_v13, %s8963_s23  ;;  %5824 = vrot.lane.b32.xlu2 %v12495_v13, %s15494_s24 }
 0x5c9   : > { %v8769_v32 = vpop.permute.xlu2 %8768  ;;  %6140 = vrot.lane.b32.xlu1 %v12495_v13, %s8964_s22  ;;  %8437 = vmatmul.msk.f32.gmra.mxu2 %vm5364_vm1, %v12467_v46 }
 0x5ca   : > { %v8770_v47 = vunpack.i.l.bf16 %v8769_v32  ;;  %v8771_v42 = vunpack.i.h.bf16 %v8769_v32 }
 0x5cb   : > { %v12606_v49 = vpop.permute.xlu1 %5511 }
 0x5cc   : > { %v5368_v9 = vsel %vm5364_vm1, %v8756_v7, %v8770_v47  ;;  %v5522_v57 = vsel %vm5521_vm7, %v8761_v56, %v12606_v49 }
 0x5cd   : > { %5424 = vmatpush.msrb.mxu1 %v5368_v9 }
 0x5cf   : > { %5844 = vrot.lane.b32.xlu0 %v12456_v25, %s8962_s20  ;;  %5947 = vrot.lane.b32.xlu2 %v12438_v1, %s15498_s0 }
 0x5d1   : > { %v12615_v12 = vpop.permute.xlu2 %5517  ;;  %6134 = vrot.lane.b32.xlu1 %v12485_v0, %s8964_s22 }
 0x5d2   : > { %v5524_v21 = vsel %vm5521_vm7, %v8760_v43, %v12615_v12 }
 0x5d3   : > { %v12619_v48 = vpop.permute.xlu1 %5536 }
 0x5d7   : > { %5951 = vrot.lane.b32.xlu0 %v12456_v25, %s15498_s0  ;;  %5846 = vrot.lane.b32.xlu2 %v12467_v46, %s8962_s20  ;;  %s431_s0 = sand.u32 1, %s8924_s26  }
 0x5d9   : > { %v8764_v22 = vpop.permute.xlu0 %8763  ;;  %v12630_v15 = vpop.permute.xlu2 %5513  ;;  %6241 = vperm.xlu1 %8807, %v12624_v62  }
 0x5da   : > { %v8766_v5 = vunpack.i.h.bf16 %v8764_v22  ;;  %v8765_v28 = vunpack.i.l.bf16 %v8764_v22  ;;  %v5523_v27 = vsel %vm5521_vm7, %v12606_v49, %v12630_v15 }
 0x5db   : > { %v12633_v45 = vpop.permute.xlu1 %5624 }
 0x5dc   : > { %v5365_v39 = vsel %vm5364_vm1, %v8771_v42, %v8765_v28  ;;  %v5366_v55 = vsel %vm5364_vm1, %v8765_v28, %v8766_v5 }
 0x5dd   : > { %5396 = vmatpush.msrb.mxu0 %v5365_v39  ;;  %5425 = vmatpush.msrb.mxu1 %v5366_v55 }
 0x5de   : > { %8424 = vmatmul.msk.f32.vlgmr.msrb.gmra.mxu0 %vm5364_vm1, %v12527_v20  ;;  %8428 = vmatmul.msk.f32.vlgmr.msrb.gmra.mxu1 %vm5364_vm1, %v12527_v20  ;;  %v5286_v20 = vand.u32 15, %v15501_v34 }
 0x5df   : > { %8444 = vmatpush.msk.msra.mxu0 %vm12639_vm0, %v5524_v21  ;;  %8793 = vrot.lane.b32.xlu0 %v8792_v58, %s15490_s21 }
 0x5e0   : > { %8788 = vrot.lane.b32.xlu2 %v8787_v24, %s15490_s21  ;;  %vm12694_vm4 = vcmp.ge.s32.totalorder %v5286_v20, 1  ;;  %vm12717_vm12 = vcmp.lt.s32.totalorder %v5286_v20, 15 }
 0x5e1   : > { %8445 = vmatpush.msk.msra.mxu0 %vm12639_vm0, %v5522_v57  ;;  %v5535_v50 = vpop.permute.xlu0 %5534  ;;  %v12660_v36 = vpop.permute.xlu2 %5538  ;;  %6035 = vrot.lane.b32.xlu1 %v12467_v46, %s8960_s1 }
 0x5e2   : > { %8817 = vset.pattern.permute.xlu1 %v15487_v8 }
 0x5e3   : > { %5752 = vmatpush.msrb.mxu0 %v12472_v16  ;;  %v5621_v23 = vpop.permute.xlu1 %5620 }
 0x5e5   : > { %5753 = vmatpush.msrb.mxu0 %v12460_v6 }
 0x5e6   : > { %8425 = vmatmul.msk.f32.gmra.mxu0 %vm5364_vm1, %v12533_v44  ;;  %8429 = vmatmul.msk.f32.gmra.mxu1 %vm5364_vm1, %v12533_v44 }
 0x5e7   : > { %6138 = vrot.lane.b32.xlu0 %v12472_v16, %s8964_s22 }
 0x5e8   : > { %6029 = vrot.lane.b32.xlu2 %v12438_v1, %s8960_s1 }
 0x5e9   : > { %v8774_v33 = vpop.permute.xlu0 %8773  ;;  %v12675_v41 = vpop.permute.xlu2 %5540  ;;  %6363 = vrot.lane.b32.xlu1 %v15468_v31, %s15494_s24 }
 0x5ea   : > { %v8775_v37 = vunpack.i.l.bf16 %v8774_v33  ;;  %v8776_v29 = vunpack.i.h.bf16 %v8774_v33 }
 0x5eb   : > { %v12679_v10 = vpop.permute.xlu1 %5642 }
 0x5ec   : > { %v5630_v44 = vsel %vm15502_vm8, %v8775_v37, %v12633_v45 }
 0x5ed   : > { %8456 = vmatpush.msk.msra.mxu2 %vm12544_vm10, %v5630_v44 }
 0x5ee   : > { %8426 = vmatmul.msk.f32.gmra.mxu0 %vm5364_vm1, %v12596_v35  ;;  %8430 = vmatmul.msk.f32.gmra.mxu1 %vm5364_vm1, %v12596_v35 }
 0x5ef   : > { %6132 = vrot.lane.b32.xlu0 %v12460_v6, %s8964_s22  ;;  %v5325_v6 = vsel %vm5323_vm14, %v12562_v18, %v12591_v59 }
 0x5f0   : > { %8798 = vrot.lane.b32.xlu2 %v15468_v31, %s8964_s22  ;;  %s432_s22 = scalar_lea.vmem [#allocation7], %s431_s0 }
 0x5f1   : > { %v5322_v19 = vpop.permute.xlu0 %5321  ;;  %v5723_v40 = vpop.permute.xlu2 %5722  ;;  %s8099_s15 = sshll.u32 %s432_s22, 4  ;;  %s8100_s15 = int_to_ptr.vmem [resolvable:$true] %s8099_s15 }
 0x5f2   : > { %v5327_v3 = vsel %vm5323_vm14, %v12548_v11, %v5322_v19  ;;  %vm5934_vm14 = vcmask 924672  }
 0x5f3   : > { %8438 = vmatpush.msk.msrb.mxu3 %vm12694_vm4, %v5327_v3  ;;  %v12702_v17 = vpop.permute.xlu1 %5724 }
 0x5f5   : > { %8439 = vmatpush.msk.msrb.mxu3 %vm12694_vm4, %v5325_v6 }
 0x5f6   : > { %8427 = vmatmul.msk.f32.gmra.mxu0 %vm5364_vm1, %v12613_v30  ;;  %8431 = vmatmul.msk.f32.gmra.mxu1 %vm5364_vm1, %v12613_v30 }
 0x5f7   : > { %8440 = vmatmul.msk.f32.vlgmr.msrb.gmra.mxu3 %vm5364_vm1, %v12438_v1  ;;  %6033 = vrot.lane.b32.xlu0 %v12456_v25, %s8960_s1 }
 0x5f8   : > { %6031 = vrot.lane.b32.xlu2 %v12447_v38, %s8960_s1  ;;  %s8089_s1 = scalar_lea.sflag [#allocation8], %s431_s0 }
 0x5f9   : > { %v5520_v52 = vpop.permute.xlu0 %5519  ;;  %v12723_v26 = vpop.permute.xlu2 %5646 }
 0x5fa   : > { %v5525_v18 = vsel %vm5521_vm7, %v12615_v12, %v5520_v52 }
 0x5fb   : > { %8450 = vmatpush.msk.msra.mxu1 %vm12717_vm12, %v5525_v18  ;;  %v5823_v1 = vpop.permute.xlu1 %5822 }
 0x5fd   : > { %8451 = vmatpush.msk.msra.mxu1 %vm12717_vm12, %v5523_v27 }
 0x5fe   : > { %8446 = vmatmul.msk.f32.vlgmr.msra.gmra.mxu0 %vm5364_vm1, %v5535_v50  ;;  %8452 = vmatmul.msk.f32.vlgmr.msra.gmra.mxu1 %vm5364_vm1, %v5535_v50 }
 0x5ff   : > { %8441 = vmatmul.msk.f32.gmra.mxu3 %vm5364_vm1, %v12447_v38  ;;  %5781 = vmatpush.msrb.mxu1 %v12495_v13 }
 0x600   : > { %6300 = vperm.xlu0 %8809, %v12624_v62   ;;  %6276 = vperm.xlu2 %8808, %v12624_v62  }
 0x601   : > { %5782 = vmatpush.msrb.mxu1 %v12485_v0  ;;  %v5619_v7 = vpop.permute.xlu0 %5618  ;;  %v5627_v54 = vpop.permute.xlu2 %5626 }
 0x602   : > { %v5628_v51 = vsel %vm15507_vm13, %v8776_v29, %v5619_v7  ;;  %v5631_v60 = vsel %vm15508_vm2, %v12633_v45, %v5627_v54  ;;  %v5629_v13 = vsel %vm15509_vm15, %v5619_v7, %v5621_v23 }
 0x603   : > { %8457 = vmatpush.msk.msra.mxu2 %vm12544_vm10, %v5628_v51  ;;  %8462 = vmatpush.msk.msra.mxu3 %vm12694_vm4, %v5631_v60  ;;  %v5817_v38 = vpop.permute.xlu1 %5816 }
 0x605   : > { %8463 = vmatpush.msk.msra.mxu3 %vm12694_vm4, %v5629_v13 }
 0x606   : > { %8447 = vmatmul.msk.f32.gmra.mxu0 %vm5364_vm1, %v12619_v48  ;;  %8453 = vmatmul.msk.f32.gmra.mxu1 %vm5364_vm1, %v12619_v48 }
 0x607   : > { %8442 = vmatmul.msk.f32.gmra.mxu3 %vm5364_vm1, %v12456_v25 }
 0x608   : > { %8816 = vset.pattern.permute.xlu0 %v15489_v53  ;;  %8815 = vset.pattern.permute.xlu2 %v15488_v2 }
 0x609   : > { %v5641_v0 = vpop.permute.xlu0 %5640  ;;  %v5819_v59 = vpop.permute.xlu2 %5818 }
 0x60a   : > { %8458 = vmatmul.msk.f32.vlgmr.msra.gmra.mxu2 %vm5364_vm1, %v5641_v0  ;;  %v5828_v15 = vsel %vm15511_vm5, %v5817_v38, %v5819_v59 }
 0x60b   : > { %v5841_v4 = vpop.permute.xlu1 %5840 }
 0x60e   : > { %8448 = vmatmul.msk.f32.gmra.mxu0 %vm5364_vm1, %v12660_v36  ;;  %8454 = vmatmul.msk.f32.gmra.mxu1 %vm5364_vm1, %v12660_v36 }
 0x60f   : > { %8443 = vmatmul.msk.f32.gmra.mxu3 %vm5364_vm1, %v12467_v46 }
 0x611   : > { %v5645_v35 = vpop.permute.xlu0 %5644  ;;  %v5929_v25 = vpop.permute.xlu2 %5928 }
 0x612   : > { %8459 = vmatmul.msk.f32.gmra.mxu2 %vm5364_vm1, %v12679_v10 }
 0x613   : > { %v8784_v32 = vpop.permute.xlu1 %8783 }
 0x614   : > { %v8786_v57 = vunpack.i.h.bf16 %v8784_v32  ;;  %v8785_v50 = vunpack.i.l.bf16 %v8784_v32 }
 0x616   : > { %8449 = vmatmul.msk.f32.gmra.mxu0 %vm5364_vm1, %v12675_v41  ;;  %8455 = vmatmul.msk.f32.gmra.mxu1 %vm5364_vm1, %v12675_v41 }
 0x617   : > { %8464 = vmatmul.msk.f32.vlgmr.msra.gmra.mxu3 %vm5364_vm1, %v5641_v0 }
 0x619   : > { %v5727_v47 = vpop.permute.xlu0 %5726  ;;  %v5923_v49 = vpop.permute.xlu2 %5922 }
 0x61a   : > { %8460 = vmatmul.msk.f32.gmra.mxu2 %vm5364_vm1, %v5645_v35 }
 0x61b   : > { %v5843_v9 = vpop.permute.xlu1 %5842 }
 0x61e   : > { %8468 = vmatmul.msk.f32.vlgmr.msrb.gmra.mxu0 %vm5364_vm1, %v5723_v40  ;;  %8472 = vmatmul.msk.f32.vlgmr.msrb.gmra.mxu1 %vm5364_vm1, %v5723_v40 }
 0x61f   : > { %8465 = vmatmul.msk.f32.gmra.mxu3 %vm5364_vm1, %v12679_v10 }
 0x621   : > { %v8779_v46 = vpop.permute.xlu0 %8778  ;;  %v5825_v30 = vpop.permute.xlu2 %5824 }
 0x622   : > { %v8780_v12 = vunpack.i.l.bf16 %v8779_v46  ;;  %v5830_v48 = vsel %vm15510_vm11, %v5823_v1, %v5825_v30  ;;  %8461 = vmatmul.msk.f32.gmra.mxu2 %vm5364_vm1, %v12723_v26  ;;  %v8781_v62 = vunpack.i.h.bf16 %v8779_v46 }
 0x623   : > { %8476 = vmatpush.msk.msrb.mxu2 %vm12639_vm0, %v5830_v48  ;;  %v5950_v22 = vpop.permute.xlu1 %5949 }
 0x624   : > { %v5831_v42 = vsel %vm15512_vm6, %v5825_v30, %v8780_v12  ;;  %v5829_v43 = vsel %vm15513_vm9, %v5819_v59, %v8781_v62  ;;  %v6158_v12 = vld [vmem:[%s15011_s6 + $0x18] sm:$0xff] }
 0x625   : > { %8477 = vmatpush.msk.msrb.mxu2 %vm12639_vm0, %v5828_v15  ;;  %8482 = vmatpush.msk.msrb.mxu3 %vm12717_vm12, %v5831_v42  ;;  %v12892_v62 = vld [vmem:[%s15012_s7 + $0x18] sm:$0xff]  ;;  %v6159_v42 = vld [vmem:[%s15011_s6 + $0x28] sm:$0xff] }
 0x626   : > { %8469 = vmatmul.msk.f32.gmra.mxu0 %vm5364_vm1, %v12702_v17  ;;  %8473 = vmatmul.msk.f32.gmra.mxu1 %vm5364_vm1, %v12702_v17 }
 0x627   : > { %8466 = vmatmul.msk.f32.gmra.mxu3 %vm5364_vm1, %v5645_v35  ;;  %v6157_v35 = vld [vmem:[%s15011_s6 + $0x8] sm:$0xff] }
 0x628   : > { %8483 = vmatpush.msk.msrb.mxu3 %vm12717_vm12, %v5829_v43 }
 0x629   : > { %v5729_v5 = vpop.permute.xlu0 %5728  ;;  %v5948_v28 = vpop.permute.xlu2 %5947 }
 0x62a   : > { %8478 = vmatmul.msk.f32.vlgmr.msrb.gmra.mxu2 %vm5364_vm1, %v5841_v4 }
 0x62b   : > { %v12799_v45 = vpop.permute.xlu1 %5953 }
 0x62e   : > { %8470 = vmatmul.msk.f32.gmra.mxu0 %vm5364_vm1, %v5727_v47  ;;  %8474 = vmatmul.msk.f32.gmra.mxu1 %vm5364_vm1, %v5727_v47  ;;  %v12873_v47 = vld [vmem:[%s15012_s7 + $0x10] sm:$0xff] }
 0x62f   : > { %8467 = vmatmul.msk.f32.gmra.mxu3 %vm5364_vm1, %v12723_v26  ;;  %v12832_v26 = vld [vmem:[%s15012_s7 + $0x8] sm:$0xff] }
 0x630   : > { %6280 = vperm.xlu0 %8816, %v12832_v26   ;;  %6304 = vperm.xlu1 %8817, %v12832_v26  }
 0x631   : > { %v5925_v56 = vpop.permute.xlu0 %5924  ;;  %v5847_v39 = vpop.permute.xlu2 %5846 }
 0x632   : > { %8479 = vmatmul.msk.f32.gmra.mxu2 %vm5364_vm1, %v5843_v9  ;;  %v5935_v34 = vsel %vm5934_vm14, %v5923_v49, %v5925_v56  ;;  %v5936_v20 = vsel %vm5934_vm14, %v5925_v56, %v8786_v57 }
 0x633   : > { %v8804_v55 = vpop.permute.xlu1 %8803 }
 0x634   : > { %v8806_v58 = vunpack.i.h.bf16 %v8804_v55  ;;  %v8805_v21 = vunpack.i.l.bf16 %v8804_v55  ;;  %v12887_v48 = vpop.f32.mrf.mxu2 }
 0x636   : > { %8471 = vmatmul.msk.f32.gmra.mxu0 %vm5364_vm1, %v5729_v5  ;;  %8475 = vmatmul.msk.f32.gmra.mxu1 %vm5364_vm1, %v5729_v5  ;;  %v6052_v24 = vsel %vm6049_vm3, %v8805_v21, %v8806_v58 }
 0x637   : > { %8484 = vmatmul.msk.f32.vlgmr.msrb.gmra.mxu3 %vm5364_vm1, %v5841_v4  ;;  %6080 = vmatpush.msra.mxu2 %v6052_v24 }
 0x638   : > { %6369 = vrot.lane.b32.xlu0 %v15468_v31, %s15494_s24  ;;  %8828 = vset.pattern.permute.xlu1 %v15488_v2 }
 0x639   : > { %v5931_v36 = vpop.permute.xlu0 %5930  ;;  %8830 = vset.pattern.permute.xlu0 %v15487_v8 }
 0x63a   : > { %v5937_v23 = vsel %vm5934_vm14, %v5929_v25, %v5931_v36  ;;  %v5938_v33 = vsel %vm5934_vm14, %v5931_v36, %v8785_v50  ;;  %v8789_v41 = vpop.permute.xlu2 %8788 }
 0x63b   : > { %v8790_v37 = vunpack.i.l.bf16 %v8789_v41  ;;  %8488 = vmatpush.msk.msra.mxu0 %vm12544_vm10, %v5937_v23  ;;  %8494 = vmatpush.msk.msra.mxu1 %vm12694_vm4, %v5938_v33  ;;  %v6141_v10 = vpop.permute.xlu1 %6140  ;;  %v8791_v29 = vunpack.i.h.bf16 %v8789_v41 }
 0x63c   : > { %v5467_v43 = vpop.f32.mrf.mxu2 }
 0x63d   : > { %8489 = vmatpush.msk.msra.mxu0 %vm12544_vm10, %v5935_v34  ;;  %8495 = vmatpush.msk.msra.mxu1 %vm12694_vm4, %v5936_v20  ;;  %v6053_v44 = vsel %vm6049_vm3, %v8806_v58, %v8790_v37  ;;  %vm6144_vm10 = vcmask 908288  }
 0x63e   : > { %6109 = vmatpush.msra.mxu3 %v6053_v44  ;;  %8490 = vmatmul.msk.f32.vlgmr.msra.gmra.mxu0 %vm5364_vm1, %v5948_v28 }
 0x63f   : > { %8485 = vmatmul.msk.f32.gmra.mxu3 %vm5364_vm1, %v5843_v9  ;;  %8496 = vmatmul.msk.f32.vlgmr.msra.gmra.mxu1 %vm5364_vm1, %v5948_v28  ;;  %v6160_v28 = vld [vmem:[%s15011_s6 + $0x38] sm:$0xff] }
 0x640   : > { %6308 = vperm.xlu0 %8830, %v12873_v47  }
 0x641   : > { %v5845_v19 = vpop.permute.xlu0 %5844 }
 0x642   : > { %v6030_v40 = vpop.permute.xlu2 %6029  ;;  %8480 = vmatmul.msk.f32.gmra.mxu2 %vm5364_vm1, %v5845_v19 }
 0x643   : > { %v6135_v3 = vpop.permute.xlu1 %6134 }
 0x646   : > { %8491 = vmatmul.msk.f32.gmra.mxu0 %vm5364_vm1, %v5950_v22 }
 0x647   : > { %8486 = vmatmul.msk.f32.gmra.mxu3 %vm5364_vm1, %v5845_v19  ;;  %8497 = vmatmul.msk.f32.gmra.mxu1 %vm5364_vm1, %v5950_v22 }
 0x648   : > { %8841 = vset.pattern.permute.xlu0 %v15488_v2 }
 0x649   : > { %v5952_v14 = vpop.permute.xlu0 %5951  ;;  %6256 = vperm.xlu0 %8841, %v12892_v62  }
 0x64a   : > { %v8799_v16 = vpop.permute.xlu2 %8798  ;;  %8481 = vmatmul.msk.f32.gmra.mxu2 %vm5364_vm1, %v5847_v39 }
 0x64b   : > { %v8801_v17 = vunpack.i.h.bf16 %v8799_v16  ;;  %v8800_v6 = vunpack.i.l.bf16 %v8799_v16  ;;  %v12827_v52 = vpop.permute.xlu1 %6241 }
 0x64d   : > { %v6148_v18 = vsel %vm6144_vm10, %v6141_v10, %v8800_v6  ;;  %v6146_v1 = vsel %vm6144_vm10, %v6135_v3, %v8801_v17 }
 0x64e   : > { %8514 = vmatpush.msk.msrb.mxu1 %vm12717_vm12, %v6148_v18  ;;  %8492 = vmatmul.msk.f32.gmra.mxu0 %vm5364_vm1, %v5952_v14 }
 0x64f   : > { %8487 = vmatmul.msk.f32.gmra.mxu3 %vm5364_vm1, %v5847_v39  ;;  %8498 = vmatmul.msk.f32.gmra.mxu1 %vm5364_vm1, %v5952_v14 }
 0x650   : > { %8515 = vmatpush.msk.msrb.mxu1 %vm12717_vm12, %v6146_v1 }
 0x651   : > { %v8794_v27 = vpop.permute.xlu0 %8793  ;;  %8855 = vset.pattern.permute.xlu0 %v15486_v63 }
 0x652   : > { %v8796_v7 = vunpack.i.h.bf16 %v8794_v27  ;;  %v8795_v54 = vunpack.i.l.bf16 %v8794_v27  ;;  %v6032_v0 = vpop.permute.xlu2 %6031 }
 0x653   : > { %v6036_v51 = vpop.permute.xlu1 %6035 }
 0x654   : > { %v6050_v60 = vsel %vm6049_vm3, %v8791_v29, %v8795_v54  ;;  %v6051_v38 = vsel %vm6049_vm3, %v8795_v54, %v8796_v7 }
 0x655   : > { %6081 = vmatpush.msra.mxu2 %v6050_v60  ;;  %6110 = vmatpush.msra.mxu3 %v6051_v38 }
 0x656   : > { %8493 = vmatmul.msk.f32.gmra.mxu0 %vm5364_vm1, %v12799_v45  ;;  %8500 = vmatmul.msk.f32.vlgmr.msra.gmra.mxu2 %vm5364_vm1, %v6030_v40 }
 0x657   : > { %8499 = vmatmul.msk.f32.gmra.mxu1 %vm5364_vm1, %v12799_v45  ;;  %8504 = vmatmul.msk.f32.vlgmr.msra.gmra.mxu3 %vm5364_vm1, %v6030_v40  ;;  %v5470_v45 = vpop.f32.mrf.mxu2 }
 0x659   : > { %v6139_v11 = vpop.permute.xlu0 %6138 }
 0x65a   : > { %v6147_v13 = vsel %vm6144_vm10, %v6139_v11, %v6141_v10 }
 0x65b   : > { %v12858_v59 = vpop.f32.mrf.mxu0  ;;  %v12860_v4 = vpop.f32.mrf.mxu1  ;;  %8508 = vmatpush.msk.msrb.mxu0 %vm12639_vm0, %v6147_v13 }
 0x65c   : > { %v12867_v25 = vpop.permute.xlu1 %6363 }
 0x65d   : > { %v6413_v32 = vmax.f32 %v12867_v25, 0.0 }
 0x65e   : > { %8501 = vmatmul.msk.f32.gmra.mxu2 %vm5364_vm1, %v6032_v0 }
 0x65f   : > { %8505 = vmatmul.msk.f32.gmra.mxu3 %vm5364_vm1, %v6032_v0  ;;  %8516 = vmatmul.msk.f32.vlgmr.msrb.gmra.mxu1 %vm5364_vm1, %v6157_v35  ;;  %v5473_v57 = vpop.f32.mrf.mxu2 }
 0x660   : > { %6439 = vrot.lane.b32.xlu1 %v6413_v32, %s15490_s21 }
 0x661   : > { %v6133_v49 = vpop.permute.xlu0 %6132 }
 0x662   : > { %v6145_v9 = vsel %vm6144_vm10, %v6133_v49, %v6135_v3 }
 0x663   : > { %v5401_v46 = vpop.f32.mrf.mxu0  ;;  %v5430_v30 = vpop.f32.mrf.mxu1  ;;  %8509 = vmatpush.msk.msrb.mxu0 %vm12639_vm0, %v6145_v9 }
 0x664   : > { %8510 = vmatmul.msk.f32.vlgmr.msrb.gmra.mxu0 %vm5364_vm1, %v6157_v35  ;;  %v5468_v41 = vadd.f32 %v5467_v43, %v5401_v46 }
 0x667   : > { %8517 = vmatmul.msk.f32.gmra.mxu1 %vm5364_vm1, %v6158_v12 }
 0x668   : > { %6251 = vperm.xlu1 %8828, %v12873_v47  }
 0x669   : > { %v6034_v61 = vpop.permute.xlu0 %6033 }
 0x66a   : > { %8502 = vmatmul.msk.f32.gmra.mxu2 %vm5364_vm1, %v6034_v61  ;;  %8506 = vmatmul.msk.f32.gmra.mxu3 %vm5364_vm1, %v6034_v61 }
 0x66b   : > { %v5404_v22 = vpop.f32.mrf.mxu0  ;;  %v5433_v15 = vpop.f32.mrf.mxu1 }
 0x66c   : > { %8511 = vmatmul.msk.f32.gmra.mxu0 %vm5364_vm1, %v6158_v12  ;;  %v5471_v40 = vadd.f32 %v5470_v45, %v5404_v22 }
 0x66f   : > { %8518 = vmatmul.msk.f32.gmra.mxu1 %vm5364_vm1, %v6159_v42 }
 0x670   : > { %8842 = vset.pattern.permute.xlu1 %v15489_v53 }
 0x672   : > { %8503 = vmatmul.msk.f32.gmra.mxu2 %vm5364_vm1, %v6036_v51  ;;  %8507 = vmatmul.msk.f32.gmra.mxu3 %vm5364_vm1, %v6036_v51 }
 0x673   : > { %v5407_v2 = vpop.f32.mrf.mxu0  ;;  %v5436_v5 = vpop.f32.mrf.mxu1 }
 0x674   : > { %8512 = vmatmul.msk.f32.gmra.mxu0 %vm5364_vm1, %v6159_v42  ;;  %v5474_v29 = vadd.f32 %v5473_v57, %v5407_v2 }
 0x677   : > { %8519 = vmatmul.msk.f32.gmra.mxu1 %vm5364_vm1, %v6160_v28 }
 0x67a   : > { %v12914_v56 = vpop.f32.mrf.mxu3 }
 0x67b   : > { %v12916_v39 = vpop.f32.mrf.mxu0  ;;  %v12918_v55 = vpop.f32.mrf.mxu1 }
 0x67c   : > { %8513 = vmatmul.msk.f32.gmra.mxu0 %vm5364_vm1, %v6160_v28  ;;  %vm15514_vm1 = vmmov %vm15511_vm5 }
 0x67d   : > { %vm15515_vm7 = vmmov %vm15514_vm1 }
 0x67e   : > { %vm15517_vm0 = vmmov %vm15514_vm1 }
 0x67f   : > { %vm15518_vm8 = vmmov %vm15517_vm0 }
 0x680   : > { %vm15519_vm4 = vmmov %vm15517_vm0 }
 0x681   : > { %vm15520_vm12 = vmmov %vm15517_vm0 }
 0x682   : > { %v5496_v58 = vpop.f32.mrf.mxu3  ;;  %vm15521_vm13 = vmmov %vm15517_vm0 }
 0x683   : > { %v5570_v21 = vpop.f32.mrf.mxu0  ;;  %v5599_v24 = vpop.f32.mrf.mxu1  ;;  %v5497_v6 = vadd.f32 %v5496_v58, %v5430_v30  ;;  %vm15522_vm2 = vmmov %vm15517_vm0 }
 0x684   : > { %v5610_v20 = vadd.f32 %v5570_v21, %v5468_v41 }
 0x685   : > { %v5611_v27 = vadd.f32 %v5599_v24, %v5497_v6 }
 0x68a   : > { %v5499_v50 = vpop.f32.mrf.mxu3 }
 0x68b   : > { %v5573_v36 = vpop.f32.mrf.mxu0  ;;  %v5602_v23 = vpop.f32.mrf.mxu1  ;;  %v5500_v13 = vadd.f32 %v5499_v50, %v5433_v15 }
 0x68c   : > { %v5612_v17 = vadd.f32 %v5573_v36, %v5471_v40 }
 0x68d   : > { %v12921_v33 = vpop.f32.mrf.mxu2  ;;  %v5613_v49 = vadd.f32 %v5602_v23, %v5500_v13 }
 0x692   : > { %v5502_v37 = vpop.f32.mrf.mxu3 }
 0x693   : > { %v5576_v10 = vpop.f32.mrf.mxu0  ;;  %v5605_v34 = vpop.f32.mrf.mxu1  ;;  %v5503_v22 = vadd.f32 %v5502_v37, %v5436_v5 }
 0x694   : > { %v5614_v38 = vadd.f32 %v5576_v10, %v5474_v29 }
 0x695   : > { %v5676_v44 = vpop.f32.mrf.mxu2  ;;  %v5615_v2 = vadd.f32 %v5605_v34, %v5503_v22 }
 0x696   : > { %v5716_v19 = vadd.f32 %v5676_v44, %v5610_v20 }
 0x69a   : > { %v5702_v3 = vpop.f32.mrf.mxu3 }
 0x69b   : > { %v12923_v14 = vpop.f32.mrf.mxu0  ;;  %v5784_v16 = vpop.f32.mrf.mxu1 }
 0x69d   : > { %v5679_v18 = vpop.f32.mrf.mxu2 }
 0x69e   : > { %v5718_v1 = vadd.f32 %v5679_v18, %v5612_v17  ;;  %v5494_v17 = vadd.f32 %v12914_v56, %v12860_v4  ;;  %v5465_v4 = vadd.f32 %v12887_v48, %v12858_v59 }
 0x6a2   : > { %v5705_v7 = vpop.f32.mrf.mxu3 }
 0x6a3   : > { %v5717_v54 = vadd.f32 %v5705_v7, %v5611_v27  ;;  %v5758_v51 = vpop.f32.mrf.mxu0  ;;  %v5787_v60 = vpop.f32.mrf.mxu1  ;;  %v5609_v7 = vadd.f32 %v12918_v55, %v5494_v17  ;;  %v5608_v55 = vadd.f32 %v12916_v39, %v5465_v4 }
 0x6a4   : > { %v5798_v11 = vadd.f32 %v5758_v51, %v5716_v19 }
 0x6a5   : > { %v5799_v0 = vadd.f32 %v5787_v60, %v5717_v54  ;;  %v5682_v35 = vpop.f32.mrf.mxu2 }
 0x6a6   : > { %v5720_v32 = vadd.f32 %v5682_v35, %v5614_v38  ;;  %v5715_v38 = vadd.f32 %v5702_v3, %v5609_v7 }
 0x6a8   : > { %v5797_v13 = vadd.f32 %v5784_v16, %v5715_v38 }
 0x6aa   : > { %v5708_v9 = vpop.f32.mrf.mxu3 }
 0x6ab   : > { %v5719_v46 = vadd.f32 %v5708_v9, %v5613_v49  ;;  %v5761_v12 = vpop.f32.mrf.mxu0  ;;  %v5790_v61 = vpop.f32.mrf.mxu1 }
 0x6ac   : > { %v5800_v30 = vadd.f32 %v5761_v12, %v5718_v1 }
 0x6ad   : > { %v5801_v42 = vadd.f32 %v5790_v61, %v5719_v46  ;;  %v5873_v43 = vpop.f32.mrf.mxu2  ;;  %v5714_v46 = vadd.f32 %v12921_v33, %v5608_v55  ;;  %v6512_v55 = vld [vmem:[%s15013_s8 + $0xe8] sm:$0xff] }
 0x6af   : > { %v5796_v3 = vadd.f32 %v12923_v14, %v5714_v46  ;;  %v6301_v14 = vpop.permute.xlu0 %6300  ;;  %v6305_v46 = vpop.permute.xlu1 %6304 }
 0x6b2   : > { %v5711_v28 = vpop.f32.mrf.mxu3 }
 0x6b3   : > { %v5721_v45 = vadd.f32 %v5711_v28, %v5615_v2  ;;  %v5764_v58 = vpop.f32.mrf.mxu0  ;;  %v5793_v21 = vpop.f32.mrf.mxu1 }
 0x6b4   : > { %v5802_v24 = vadd.f32 %v5764_v58, %v5720_v32 }
 0x6b5   : > { %v5803_v57 = vadd.f32 %v5793_v21, %v5721_v45  ;;  %v5876_v15 = vpop.f32.mrf.mxu2 }
 0x6b6   : > { %v5916_v50 = vadd.f32 %v5876_v15, %v5798_v11 }
 0x6ba   : > { %v5902_v36 = vpop.f32.mrf.mxu3 }
 0x6bb   : > { %v5980_v41 = vpop.f32.mrf.mxu0  ;;  %v5915_v49 = vadd.f32 %v5902_v36, %v5797_v13  ;;  %v6497_v13 = vld [vmem:[%s15013_s8 + $0x70] sm:$0xff] }
 0x6bc   : > { %v6009_v23 = vpop.f32.mrf.mxu1 }
 0x6bd   : > { %v6022_v12 = vadd.f32 %v6009_v23, %v5915_v49  ;;  %v6496_v49 = vld [vmem:[%s15013_s8 + $0x68] sm:$0xff] }
 0x6c2   : > { %v5905_v10 = vpop.f32.mrf.mxu3 }
 0x6c3   : > { %v5917_v20 = vadd.f32 %v5905_v10, %v5799_v0  ;;  %v5983_v44 = vpop.f32.mrf.mxu0 }
 0x6c4   : > { %v12925_v19 = vadd.f32 %v5983_v44, %v5916_v50  ;;  %v6012_v5 = vpop.f32.mrf.mxu1 }
 0x6c5   : > { %v6024_v37 = vadd.f32 %v6012_v5, %v5917_v20  ;;  %v5879_v40 = vpop.f32.mrf.mxu2 }
 0x6c6   : > { %v5918_v34 = vadd.f32 %v5879_v40, %v5800_v30  ;;  %v5914_v30 = vadd.f32 %v5873_v43, %v5796_v3 }
 0x6c8   : > { %v6021_v59 = vadd.f32 %v5980_v41, %v5914_v30 }
 0x6ca   : > { %v5908_v6 = vpop.f32.mrf.mxu3 }
 0x6cb   : > { %v5919_v18 = vadd.f32 %v5908_v6, %v5801_v42  ;;  %v5986_v1 = vpop.f32.mrf.mxu0 }
 0x6cc   : > { %v12929_v27 = vadd.f32 %v5986_v1, %v5918_v34  ;;  %v6015_v29 = vpop.f32.mrf.mxu1 }
 0x6cd   : > { %v12932_v54 = vadd.f32 %v6015_v29, %v5919_v18  ;;  %v5882_v51 = vpop.f32.mrf.mxu2 }
 0x6ce   : > { %v5920_v60 = vadd.f32 %v5882_v51, %v5802_v24  ;;  %v6277_v24 = vpop.permute.xlu2 %6276 }
 0x6d2   : > { %v5911_v11 = vpop.f32.mrf.mxu3 }
 0x6d3   : > { %v5921_v0 = vadd.f32 %v5911_v11, %v5803_v57  ;;  %v5989_v35 = vpop.f32.mrf.mxu0  ;;  %v6498_v11 = vld [vmem:[%s15013_s8 + $0x78] sm:$0xff] }
 0x6d4   : > { %v12936_v56 = vadd.f32 %v5989_v35, %v5920_v60  ;;  %v6018_v32 = vpop.f32.mrf.mxu1  ;;  %6515 = vmatpush.msrb.mxu2 %v6498_v11  ;;  %v6513_v35 = vld [vmem:[%s15013_s8 + $0xf0] sm:$0xff] }
 0x6d5   : > { %v12938_v9 = vadd.f32 %v6018_v32, %v5921_v0  ;;  %v6281_v0 = vpop.permute.xlu0 %6280 }
 0x6d6   : > { %6516 = vmatpush.msrb.mxu2 %v6497_v13 }
 0x6d8   : > { %6517 = vmatpush.msrb.mxu2 %v6496_v49 }
 0x6d9   : > { %v6083_v42 = vpop.f32.mrf.mxu2 }
 0x6da   : > { %v6112_v61 = vpop.f32.mrf.mxu3  ;;  %v6124_v28 = vadd.f32 %v6083_v42, %v6021_v59  ;;  %v6510_v42 = vld [vmem:[%s15013_s8 + $0xd8] sm:$0xff]  ;;  %v6509_v59 = vld [vmem:[%s15013_s8 + $0xd0] sm:$0xff] }
 0x6db   : > { %v6125_v16 = vadd.f32 %v6112_v61, %v6022_v12  ;;  %v6495_v61 = vld [vmem:[%s15013_s8 + $0x60] sm:$0xff] }
 0x6dc   : > { %v6219_v22 = vpop.f32.mrf.mxu1  ;;  %6518 = vmatpush.msrb.mxu2 %v6495_v61 }
 0x6dd   : > { %v6232_v2 = vadd.f32 %v6219_v22, %v6125_v16  ;;  %v6511_v16 = vld [vmem:[%s15013_s8 + $0xe0] sm:$0xff]  ;;  %v6494_v22 = vld [vmem:[%s15013_s8 + $0x58] sm:$0xff] }
 0x6de   : > { %6519 = vmatpush.msrb.mxu2 %v6494_v22 }
 0x6df   : > { %v6260_v48 = vadd.f32 %v12827_v52, %v6232_v2  ;;  %v6493_v2 = vld [vmem:[%s15013_s8 + $0x50] sm:$0xff] }
 0x6e0   : > { %6520 = vmatpush.msrb.mxu2 %v6493_v2 }
 0x6e1   : > { %v6190_v45 = vpop.f32.mrf.mxu0  ;;  %v6268_v58 = vmax.f32 %v6260_v48, 0.0  ;;  %v6086_v44 = vpop.f32.mrf.mxu2  ;;  %v6492_v48 = vld [vmem:[%s15013_s8 + $0x48] sm:$0xff] }
 0x6e2   : > { %v6231_v21 = vadd.f32 %v6190_v45, %v6124_v28  ;;  %v6115_v41 = vpop.f32.mrf.mxu3  ;;  %v6126_v1 = vadd.f32 %v6086_v44, %v12925_v19  ;;  %v6514_v19 = vld [vmem:[%s15013_s8 + $0xf8] sm:$0xff]  ;;  %v6508_v28 = vld [vmem:[%s15013_s8 + $0xc8] sm:$0xff]  ;;  %v6491_v45 = vld [vmem:[%s15013_s8 + $0x40] sm:$0xff]  ;;  %6521 = vmatpush.msrb.mxu2 %v6492_v48 }
 0x6e3   : > { %v6292_v33 = vmul.f32 %v6277_v24, %v6268_v58  ;;  %v6127_v5 = vadd.f32 %v6115_v41, %v6024_v37  ;;  %6544 = vmatpush.msrb.mxu3 %v6514_v19  ;;  %v6507_v58 = vld [vmem:[%s15013_s8 + $0xc0] sm:$0xff]  ;;  %v6486_v41 = vld [vmem:[%s15013_s8 + $0x18] sm:$0xff]  ;;  %v6501_v44 = vld [vmem:[%s15013_s8 + $0x90] sm:$0xff] }
 0x6e4   : > { %v6259_v39 = vadd.f32 %v12827_v52, %v6231_v21  ;;  %v6222_v34 = vpop.f32.mrf.mxu1  ;;  %v6490_v21 = vld [vmem:[%s15013_s8 + $0x38] sm:$0xff]  ;;  %6522 = vmatpush.msrb.mxu2 %v6491_v45 }
 0x6e5   : > { %v6316_v50 = vadd.f32 %v6301_v14, %v6292_v33  ;;  %v6234_v29 = vadd.f32 %v6222_v34, %v6127_v5  ;;  %6545 = vmatpush.msrb.mxu3 %v6513_v35  ;;  %v6505_v33 = vld [vmem:[%s15013_s8 + $0xb0] sm:$0xff]  ;;  %v6500_v5 = vld [vmem:[%s15013_s8 + $0x88] sm:$0xff] }
 0x6e6   : > { %v6267_v57 = vmax.f32 %v6259_v39, 0.0  ;;  %v6489_v39 = vld [vmem:[%s15013_s8 + $0x30] sm:$0xff]  ;;  %6523 = vmatpush.msrb.mxu2 %v6490_v21 }
 0x6e7   : > { %6546 = vmatpush.msrb.mxu3 %v6512_v55 }
 0x6e8   : > { %v6291_v15 = vmul.f32 %v6277_v24, %v6267_v57  ;;  %v6506_v24 = vld [vmem:[%s15013_s8 + $0xb8] sm:$0xff]  ;;  %v6488_v57 = vld [vmem:[%s15013_s8 + $0x28] sm:$0xff]  ;;  %6524 = vmatpush.msrb.mxu2 %v6489_v39 }
 0x6e9   : > { %v6193_v17 = vpop.f32.mrf.mxu0  ;;  %6547 = vmatpush.msrb.mxu3 %v6511_v16 }
 0x6ea   : > { %v6315_v36 = vadd.f32 %v6301_v14, %v6291_v15  ;;  %v6233_v7 = vadd.f32 %v6193_v17, %v6126_v1  ;;  %v6504_v15 = vld [vmem:[%s15013_s8 + $0xa8] sm:$0xff]  ;;  %v6370_v14 = vpop.permute.xlu0 %6369  ;;  %6525 = vmatpush.msrb.mxu2 %v6488_v57  ;;  %v6440_v17 = vpop.permute.xlu1 %6439 }
 0x6eb   : > { %6548 = vmatpush.msrb.mxu3 %v6510_v42 }
 0x6ec   : > { %v8810_v43 = vpack.i.bf16 %v6316_v50, %v6315_v36  ;;  %v6225_v11 = vpop.f32.mrf.mxu1 }
 0x6ed   : > { %6549 = vmatpush.msrb.mxu3 %v6509_v59 }
 0x6ee   : > { %8811 = vrot.lane.b32.xlu2 %v8810_v43, %s15494_s24  ;;  %v6503_v43 = vld [vmem:[%s15013_s8 + $0xa0] sm:$0xff] }
 0x6ef   : > { %6550 = vmatpush.msrb.mxu3 %v6508_v28 }
 0x6f1   : > { %6551 = vmatpush.msrb.mxu3 %v6507_v58  ;;  %v6196_v19 = vpop.f32.mrf.mxu0 }
 0x6f2   : > { %v6309_v48 = vpop.permute.xlu0 %6308 }
 0x6f3   : > { %6552 = vmatpush.msrb.mxu3 %v6506_v24 }
 0x6f5   : > { %6553 = vmatpush.msrb.mxu3 %v6505_v33 }
 0x6f6   : > { %6246 = vperm.xlu2 %8815, %v12832_v26  }
 0x6f7   : > { %6554 = vmatpush.msrb.mxu3 %v6504_v15 }
 0x6f9   : > { %6555 = vmatpush.msrb.mxu3 %v6503_v43 }
 0x6fe   : > { %8829 = vset.pattern.permute.xlu2 %v15489_v53 }
 0x748   : > { %v8812_v23 = vpop.permute.xlu2 %8811 }
 0x749   : > { %v8814_v10 = vunpack.i.h.bf16 %v8812_v23  ;;  %v8813_v20 = vunpack.i.l.bf16 %v8812_v23  ;;  %v6502_v23 = vld [vmem:[%s15013_s8 + $0x98] sm:$0xff] }
 0x74a   : > { %6556 = vmatpush.msrb.mxu3 %v6502_v23  ;;  %v6199_v23 = vpop.f32.mrf.mxu0 }
 0x74b   : > { %v6384_v52 = vsel %vm15514_vm1, %v8814_v10, %v12867_v25  ;;  %v6383_v40 = vsel %vm15515_vm7, %v8813_v20, %v8814_v10  ;;  %v15516_v10 = vmov 3   ;;  %v6485_v20 = vld [vmem:[%s15013_s8 + $0x10] sm:$0xff] }
 0x74c   : > { %v12951_v6 = vmax.f32 %v6316_v50, %v6384_v52  ;;  %v12953_v18 = vmax.f32 %v6315_v36, %v6383_v40  ;;  %v6416_v50 = vmax.f32 %v6370_v14, 0.0  ;;  %v6487_v36 = vld [vmem:[%s15013_s8 + $0x20] sm:$0xff]  ;;  %6557 = vmatpush.msrb.mxu3 %v6501_v44 }
 0x74d   : > { %6526 = vmatpush.msrb.mxu2 %v6487_v36  ;;  %v6483_v52 = vld [vmem:[%s15013_s8] sm:$0xff] }
 0x74e   : > { %v8818_v53 = vpack.i.bf16 %v12951_v6, %v12953_v18  ;;  %6558 = vmatpush.msrb.mxu3 %v6500_v5  ;;  %v6499_v40 = vld [vmem:[%s15013_s8 + $0x80] sm:$0xff] }
 0x74f   : > { %6527 = vmatpush.msrb.mxu2 %v6486_v41  ;;  %v6228_v41 = vpop.f32.mrf.mxu1 }
 0x750   : > { %v6247_v51 = vpop.permute.xlu2 %6246  ;;  %8819 = vrot.lane.b32.xlu2 %v8818_v53, %s15490_s21  ;;  %6559 = vmatpush.msrb.mxu3 %v6499_v40  ;;  %v6257_v40 = vpop.permute.xlu0 %6256 }
 0x751   : > { %v6261_v37 = vadd.f32 %v6247_v51, %v6233_v7  ;;  %v6262_v25 = vadd.f32 %v6247_v51, %v6234_v29  ;;  %6528 = vmatpush.msrb.mxu2 %v6485_v20  ;;  %v6118_v29 = vpop.f32.mrf.mxu3 }
 0x753   : > { %v6269_v60 = vmax.f32 %v6261_v37, 0.0  ;;  %v6270_v38 = vmax.f32 %v6262_v25, 0.0 }
 0x755   : > { %v6293_v4 = vmul.f32 %v6281_v0, %v6269_v60  ;;  %v6294_v32 = vmul.f32 %v6281_v0, %v6270_v38  ;;  %v6089_v60 = vpop.f32.mrf.mxu2  ;;  %v6129_v38 = vadd.f32 %v6118_v29, %v12932_v54 }
 0x756   : > { %v6128_v13 = vadd.f32 %v6089_v60, %v12929_v27 }
 0x757   : > { %v12977_v12 = vadd.f32 %v6305_v46, %v6293_v4  ;;  %v12979_v3 = vadd.f32 %v6305_v46, %v6294_v32  ;;  %v6236_v0 = vadd.f32 %v6225_v11, %v6129_v38  ;;  %v6252_v4 = vpop.permute.xlu1 %6251 }
 0x758   : > { %v6235_v35 = vadd.f32 %v6196_v19, %v6128_v13 }
 0x759   : > { %v8823_v30 = vpack.i.bf16 %v12979_v3, %v12977_v12  ;;  %v6264_v46 = vadd.f32 %v6252_v4, %v6236_v0  ;;  %v6121_v39 = vpop.f32.mrf.mxu3 }
 0x75a   : > { %v6263_v61 = vadd.f32 %v6252_v4, %v6235_v35 }
 0x75b   : > { %8824 = vrot.lane.b32.xlu2 %v8823_v30, %s15494_s24  ;;  %v6272_v22 = vmax.f32 %v6264_v46, 0.0 }
 0x75c   : > { %v6271_v42 = vmax.f32 %v6263_v61, 0.0 }
 0x763   : > { %6284 = vperm.xlu2 %8829, %v12873_v47  }
 0x76b   : > { %6445 = vrot.lane.b32.xlu2 %v6416_v50, %s15490_s21  ;;  %v6131_v50 = vadd.f32 %v6121_v39, %v12938_v9  ;;  %v15523_v39 = vlaneseq }
 0x76c   : > { %8843 = vset.pattern.permute.xlu2 %v15487_v8  ;;  %v6484_v8 = vld [vmem:[%s15013_s8 + $0x8] sm:$0xff] }
 0x76d   : > { %6529 = vmatpush.msrb.mxu2 %v6484_v8  ;;  %v6238_v5 = vadd.f32 %v6228_v41, %v6131_v50  ;;  %vm13108_vm15 = vcmp.lt.s32.totalorder %v15523_v39, 64  ;;  %vm6625_vm11 = vcmp.ge.s32.totalorder %v15523_v39, 64  ;;  %vm6626_vm5 = vcmp.lt.s32.totalorder %v15523_v39, 128  ;;  %v6858_v39 = vld [vmem:[%s15014_s9 + $0x1c0] sm:$0xff]  ;;  %v6897_v41 = vld [vmem:[%s15014_s9 + $0x2f8] sm:$0xff] }
 0x76e   : > { %vm13135_vm6 = vmand %vm6625_vm11, %vm6626_vm5 }
 0x76f   : > { %6530 = vmatpush.msrb.mxu2 %v6483_v52 }
 0x773   : > { %6375 = vrot.lane.b32.xlu2 %v15468_v31, %s15494_s24 }
 0x77b   : > { %6312 = vperm.xlu2 %8843, %v12892_v62  }
 0x783   : > { %8854 = vset.pattern.permute.xlu2 %v15516_v10 }
 0x7aa   : > { %v8820_v34 = vpop.permute.xlu2 %8819 }
 0x7ab   : > { %v8822_v1 = vunpack.i.h.bf16 %v8820_v34  ;;  %v8821_v53 = vunpack.i.l.bf16 %v8820_v34 }
 0x7ad   : > { %v6460_v7 = vsel %vm6049_vm3, %v8822_v1, %v6440_v17  ;;  %v6459_v51 = vsel %vm6049_vm3, %v8821_v53, %v8822_v1  ;;  %v6266_v53 = vadd.f32 %v6257_v40, %v6238_v5 }
 0x7ae   : > { %v6476_v37 = vmax.f32 %v12951_v6, %v6460_v7  ;;  %v6475_v25 = vmax.f32 %v12953_v18, %v6459_v51 }
 0x7af   : > { %v6274_v60 = vmax.f32 %v6266_v53, 0.0 }
 0x7b0   : > { %6531 = vmatmul.f32.vlgmr.msrb.gmra.mxu2 %v6475_v25  ;;  %6560 = vmatmul.f32.vlgmr.msrb.gmra.mxu3 %v6476_v37 }
 0x7b5   : > { %v8825_v32 = vpop.permute.xlu2 %8824 }
 0x7b6   : > { %v8827_v49 = vunpack.i.h.bf16 %v8825_v32  ;;  %v8826_v55 = vunpack.i.l.bf16 %v8825_v32 }
 0x7b8   : > { %v6386_v6 = vsel %vm15517_vm0, %v8827_v49, %v6370_v14  ;;  %v6385_v18 = vsel %vm15518_vm8, %v8826_v55, %v8827_v49  ;;  %v6092_v14 = vpop.f32.mrf.mxu2 }
 0x7b9   : > { %v6402_v54 = vmax.f32 %v12979_v3, %v6386_v6  ;;  %v6401_v16 = vmax.f32 %v12977_v12, %v6385_v18  ;;  %v8869_v12 = vld [vmem:[%s15012_s7] sm:$0xff]  ;;  %v6130_v8 = vadd.f32 %v6092_v14, %v12936_v56 }
 0x7bb   : > { %v8831_v30 = vpack.i.bf16 %v6402_v54, %v6401_v16  ;;  %v6237_v52 = vadd.f32 %v6199_v23, %v6130_v8 }
 0x7bd   : > { %v6285_v27 = vpop.permute.xlu2 %6284  ;;  %8832 = vrot.lane.b32.xlu1 %v8831_v30, %s15490_s21  ;;  %v6265_v9 = vadd.f32 %v6257_v40, %v6237_v52 }
 0x7be   : > { %v6295_v2 = vmul.f32 %v6285_v27, %v6271_v42  ;;  %v6296_v59 = vmul.f32 %v6285_v27, %v6272_v22 }
 0x7bf   : > { %v6273_v38 = vmax.f32 %v6265_v9, 0.0 }
 0x7c0   : > { %v6319_v28 = vadd.f32 %v6309_v48, %v6295_v2  ;;  %v6320_v45 = vadd.f32 %v6309_v48, %v6296_v59 }
 0x7c2   : > { %v8836_v58 = vpack.i.bf16 %v6320_v45, %v6319_v28 }
 0x7c5   : > { %8837 = vrot.lane.b32.xlu1 %v8836_v58, %s15494_s24  ;;  %v6446_v21 = vpop.permute.xlu2 %6445 }
 0x7cd   : > { %6288 = vperm.xlu1 %8842, %v12892_v62   ;;  %v6376_v3 = vpop.permute.xlu2 %6375 }
 0x7ce   : > { %v6419_v24 = vmax.f32 %v6376_v3, 0.0 }
 0x7d0   : > { %6451 = vrot.lane.b32.xlu2 %v6419_v24, %s15490_s21 }
 0x7d5   : > { %8861 = vset.pattern.permute.xlu1 %v15516_v10  ;;  %v6313_v13 = vpop.permute.xlu2 %6312 }
 0x7d8   : > { %6574 = vperm.xlu2 %8854, %v8869_v12  }
 0x7e0   : > { %8862 = vset.pattern.permute.xlu2 %v15486_v63 }
 0x82a   : > { %v6452_v46 = vpop.permute.xlu2 %6451 }
 0x82f   : > { %v8833_v33 = vpop.permute.xlu1 %8832 }
 0x830   : > { %v8835_v57 = vunpack.i.h.bf16 %v8833_v33  ;;  %v8834_v15 = vunpack.i.l.bf16 %v8833_v33 }
 0x832   : > { %v6461_v36 = vsel %vm6049_vm3, %v8834_v15, %v8835_v57  ;;  %v6462_v43 = vsel %vm6049_vm3, %v8835_v57, %v6446_v21 }
 0x833   : > { %v6477_v20 = vmax.f32 %v6401_v16, %v6461_v36  ;;  %v6478_v44 = vmax.f32 %v6402_v54, %v6462_v43  ;;  %v6561_v16 = vpop.f32.mrf.mxu3 }
 0x835   : > { %6534 = vmatmul.f32.gmra.mxu2 %v6477_v20  ;;  %6563 = vmatmul.f32.gmra.mxu3 %v6478_v44 }
 0x837   : > { %v8838_v34 = vpop.permute.xlu1 %8837 }
 0x838   : > { %v8840_v17 = vunpack.i.h.bf16 %v8838_v34  ;;  %v8839_v1 = vunpack.i.l.bf16 %v8838_v34 }
 0x83a   : > { %v6388_v29 = vsel %vm15519_vm4, %v8840_v17, %v6376_v3  ;;  %v6387_v7 = vsel %vm15520_vm12, %v8839_v1, %v8840_v17 }
 0x83b   : > { %v6404_v51 = vmax.f32 %v6320_v45, %v6388_v29  ;;  %v6403_v37 = vmax.f32 %v6319_v28, %v6387_v7  ;;  %v6575_v45 = vpop.permute.xlu2 %6574 }
 0x83d   : > { %v8844_v25 = vpack.i.bf16 %v6404_v51, %v6403_v37 }
 0x83f   : > { %v6289_v56 = vpop.permute.xlu1 %6288  ;;  %8845 = vrot.lane.b32.xlu1 %v8844_v25, %s15490_s21 }
 0x840   : > { %v6297_v11 = vmul.f32 %v6289_v56, %v6273_v38  ;;  %v6298_v19 = vmul.f32 %v6289_v56, %v6274_v60 }
 0x842   : > { %v6321_v0 = vadd.f32 %v6313_v13, %v6297_v11  ;;  %v6322_v35 = vadd.f32 %v6313_v13, %v6298_v19 }
 0x844   : > { %v8849_v4 = vpack.i.bf16 %v6322_v35, %v6321_v0 }
 0x846   : > { %8850 = vrot.lane.b32.xlu0 %v8849_v4, %s15494_s24 }
 0x847   : > { %6381 = vrot.lane.b32.xlu1 %v15468_v31, %s15494_s24  ;;  %v6532_v31 = vpop.f32.mrf.mxu2 }
 0x848   : > { %v6562_v59 = vadd.f32 %v6561_v16, %v6532_v31 }
 0x84a   : > { %v6589_v24 = vmul.f32 %v6575_v45, %v6562_v59  ;;  %v6830_v59 = vld [vmem:[%s15014_s9 + $0xe0] sm:$0xff] }
 0x84b   : > { %v6926_v45 = vld [vmem:[%s15014_s9 + $0x3e0] sm:$0xff] }
 0x84e   : > { %6594 = vperm.xlu0 %8855, %v8869_v12  }
 0x856   : > { %8863 = vset.pattern.permute.xlu0 %v15516_v10 }
 0x857   : > { %6582 = vperm.xlu0 %8863, %v12873_v47  }
 0x85f   : > { %8866 = vset.pattern.permute.xlu0 %v15486_v63 }
 0x8b1   : > { %v8846_v32 = vpop.permute.xlu1 %8845 }
 0x8b2   : > { %v8848_v49 = vunpack.i.h.bf16 %v8846_v32  ;;  %v8847_v55 = vunpack.i.l.bf16 %v8846_v32 }
 0x8b4   : > { %v6463_v61 = vsel %vm6049_vm3, %v8847_v55, %v8848_v49  ;;  %v6464_v6 = vsel %vm6049_vm3, %v8848_v49, %v6452_v46 }
 0x8b5   : > { %v6479_v18 = vmax.f32 %v6403_v37, %v6463_v61  ;;  %v6480_v54 = vmax.f32 %v6404_v51, %v6464_v6 }
 0x8b7   : > { %6537 = vmatmul.f32.gmra.mxu2 %v6479_v18  ;;  %6566 = vmatmul.f32.gmra.mxu3 %v6480_v54 }
 0x8b8   : > { %v8851_v30 = vpop.permute.xlu0 %8850  ;;  %v6535_v44 = vpop.f32.mrf.mxu2 }
 0x8b9   : > { %v6382_v22 = vpop.permute.xlu1 %6381  ;;  %v8853_v42 = vunpack.i.h.bf16 %v8851_v30  ;;  %v8852_v27 = vunpack.i.l.bf16 %v8851_v30  ;;  %v6564_v8 = vpop.f32.mrf.mxu3 }
 0x8ba   : > { %v6422_v2 = vmax.f32 %v6382_v22, 0.0  ;;  %v6565_v53 = vadd.f32 %v6564_v8, %v6535_v44  ;;  %v6852_v44 = vld [vmem:[%s15014_s9 + $0x190] sm:$0xff] }
 0x8bb   : > { %v6389_v48 = vsel %vm15521_vm13, %v8852_v27, %v8853_v42  ;;  %v6390_v28 = vsel %vm15522_vm2, %v8853_v42, %v6382_v22  ;;  %v6832_v22 = vld [vmem:[%s15014_s9 + $0xf0] sm:$0xff] }
 0x8bc   : > { %6457 = vrot.lane.b32.xlu2 %v6422_v2, %s15490_s21  ;;  %v6405_v58 = vmax.f32 %v6321_v0, %v6389_v48  ;;  %v6406_v21 = vmax.f32 %v6322_v35, %v6390_v28  ;;  %v6864_v42 = vld [vmem:[%s15014_s9 + $0x1f0] sm:$0xff]  ;;  %7354 = vmatpush.msra.mxu0 %v6832_v22  ;;  %v6862_v48 = vld [vmem:[%s15014_s9 + $0x1e0] sm:$0xff] }
 0x8bd   : > { %v6896_v27 = vld [vmem:[%s15014_s9 + $0x2f0] sm:$0xff]  ;;  %7374 = vmatpush.msra.mxu1 %v6864_v42  ;;  %v6894_v28 = vld [vmem:[%s15014_s9 + $0x2e0] sm:$0xff] }
 0x8be   : > { %v8856_v3 = vpack.i.bf16 %v6406_v21, %v6405_v58  ;;  %v6928_v2 = vld [vmem:[%s15014_s9 + $0x3f0] sm:$0xff]  ;;  %7394 = vmatpush.msra.mxu2 %v6896_v27  ;;  %7355 = vmatpush.msra.mxu0 %v6830_v59 }
 0x8bf   : > { %7414 = vmatpush.msra.mxu3 %v6928_v2  ;;  %7375 = vmatpush.msra.mxu1 %v6862_v48  ;;  %v6884_v8 = vld [vmem:[%s15014_s9 + $0x290] sm:$0xff] }
 0x8c0   : > { %v6595_v12 = vpop.permute.xlu0 %6594  ;;  %8857 = vrot.lane.b32.xlu1 %v8856_v3, %s15490_s21  ;;  %7395 = vmatpush.msra.mxu2 %v6894_v28  ;;  %v6892_v3 = vld [vmem:[%s15014_s9 + $0x2d0] sm:$0xff] }
 0x8c1   : > { %v6609_v57 = vadd.f32 %v6595_v12, %v6589_v24  ;;  %7415 = vmatpush.msra.mxu3 %v6926_v45  ;;  %v6924_v24 = vld [vmem:[%s15014_s9 + $0x3d0] sm:$0xff]  ;;  %v6826_v12 = vld [vmem:[%s15014_s9 + $0xc0] sm:$0xff] }
 0x8c2   : > { %7396 = vmatpush.msra.mxu2 %v6892_v3  ;;  %v6836_v22 = vld [vmem:[%s15014_s9 + $0x110] sm:$0xff]  ;;  %v6802_v45 = vld [vmem:[%s15014_s9] sm:$0xff] }
 0x8c3   : > { %6619 = vst [vmem:[#allocation1] sm:$0xff] %v6609_v57  ;;  %7416 = vmatpush.msra.mxu3 %v6924_v24  ;;  %v6868_v42 = vld [vmem:[%s15014_s9 + $0x210] sm:$0xff]  ;;  %v6898_v3 = vld [vmem:[%s15014_s9 + $0x300] sm:$0xff] }
 0x8c4   : > { %6598 = vperm.xlu2 %8862, %v12832_v26   ;;  %6617 = vst.msk [vmem:[#allocation6] sm:$0x1] %vm13108_vm15, %v6609_v57  ;;  %v6900_v59 = vld [vmem:[%s15014_s9 + $0x310] sm:$0xff] }
 0x8c5   : > { %v6992_v24 = vld [vmem:[%s15014_s9 + $0x5f0] sm:$0xff] }
 0x8c8   : > { %6578 = vperm.xlu1 %8861, %v12832_v26  }
 0x8c9   : > { %v6583_v60 = vpop.permute.xlu0 %6582 }
 0x8ca   : > { %v6621_v15 = vld [vmem:[#allocation1 + $0x1] ss:$9 sm:$0xff] }
 0x8cb   : > { %6629 = vst [vmem:[#allocation1] sm:$0xff] %v6609_v57 }
 0x8cc   : > { %8865 = vset.pattern.permute.xlu2 %v15516_v10 }
 0x8cd   : > { %6586 = vperm.xlu2 %8865, %v12892_v62  }
 0x8d0   : > { %8864 = vset.pattern.permute.xlu1 %v15486_v63 }
 0x8d1   : > { %6602 = vperm.xlu1 %8864, %v12873_v47  }
 0x8d2   : > { %v6631_v14 = vld [vmem:[#allocation1 + $0x2] ss:$9 sm:$0xff] }
 0x8d3   : > { %6634 = vst [vmem:[#allocation1] sm:$0xff] %v6609_v57 }
 0x8d4   : > { %6633 = vst.msk [vmem:[#allocation6 + $0x1] sm:$0x1] %vm13108_vm15, %v6631_v14  ;;  %v6824_v14 = vld [vmem:[%s15014_s9 + $0xb0] sm:$0xff] }
 0x8d5   : > { %6622 = vrot.lane.b32.xlu2 %v6621_v15, %s15493_s16  ;;  %v6922_v15 = vld [vmem:[%s15014_s9 + $0x3c0] sm:$0xff] }
 0x8d6   : > { %7417 = vmatpush.msra.mxu3 %v6922_v15 }
 0x8d9   : > { %6606 = vperm.xlu1 %8864, %v12892_v62  }
 0x8da   : > { %v6636_v26 = vld [vmem:[#allocation1 + $0x3] ss:$9 sm:$0xff] }
 0x8db   : > { %6641 = vst [vmem:[#allocation1] sm:$0xff] %v6609_v57  ;;  %6637 = vrot.lane.b32.xlu0 %v6636_v26, %s15493_s16 }
 0x8e2   : > { %v6643_v10 = vld [vmem:[#allocation1 + $0x4] ss:$9 sm:$0xff] }
 0x8e3   : > { %6646 = vst [vmem:[#allocation1] sm:$0xff] %v6609_v57 }
 0x8e4   : > { %6645 = vst.msk [vmem:[#allocation6 + $0x2] sm:$0x1] %vm13108_vm15, %v6643_v10  ;;  %v6856_v10 = vld [vmem:[%s15014_s9 + $0x1b0] sm:$0xff] }
 0x8ea   : > { %v6648_v63 = vld [vmem:[#allocation1 + $0x5] ss:$9 sm:$0xff] }
 0x8eb   : > { %6653 = vst [vmem:[#allocation1] sm:$0xff] %v6609_v57  ;;  %6649 = vrot.lane.b32.xlu1 %v6648_v63, %s15493_s16  ;;  %v6888_v63 = vld [vmem:[%s15014_s9 + $0x2b0] sm:$0xff] }
 0x8f2   : > { %v6655_v47 = vld [vmem:[#allocation1 + $0x6] ss:$9 sm:$0xff] }
 0x8f3   : > { %6658 = vst [vmem:[#allocation1] sm:$0xff] %v6609_v57  ;;  %v6890_v57 = vld [vmem:[%s15014_s9 + $0x2c0] sm:$0xff] }
 0x8f4   : > { %6657 = vst.msk [vmem:[#allocation6 + $0x3] sm:$0x1] %vm13108_vm15, %v6655_v47  ;;  %7397 = vmatpush.msra.mxu2 %v6890_v57  ;;  %v6920_v47 = vld [vmem:[%s15014_s9 + $0x3b0] sm:$0xff] }
 0x8f5   : > { %7418 = vmatpush.msra.mxu3 %v6920_v47  ;;  %v7056_v57 = vld [vmem:[%s15014_s9 + $0x7f0] sm:$0xff] }
 0x8f6   : > { %7398 = vmatpush.msra.mxu2 %v6888_v63  ;;  %v6956_v63 = vld [vmem:[%s15014_s9 + $0x4d0] sm:$0xff] }
 0x8f7   : > { %v6988_v47 = vld [vmem:[%s15014_s9 + $0x5d0] sm:$0xff] }
 0x8fa   : > { %v6660_v50 = vld [vmem:[#allocation1 + $0x7] ss:$9 sm:$0xff] }
 0x8fb   : > { %6661 = vrot.lane.b32.xlu2 %v6660_v50, %s15493_s16  ;;  %v6822_v50 = vld [vmem:[%s15014_s9 + $0xa0] sm:$0xff] }
 0x916   : > { %v6458_v62 = vpop.permute.xlu2 %6457 }
 0x91e   : > { %v6599_v36 = vpop.permute.xlu2 %6598 }
 0x927   : > { %v13131_v43 = vpop.permute.xlu2 %6586 }
 0x92f   : > { %v6623_v23 = vpop.permute.xlu2 %6622 }
 0x930   : > { %6628 = vst.msk [vmem:[#allocation6] sm:$0x1] %vm13135_vm6, %v6623_v23  ;;  %v6918_v23 = vld [vmem:[%s15014_s9 + $0x3a0] sm:$0xff] }
 0x931   : > { %7419 = vmatpush.msra.mxu3 %v6918_v23  ;;  %v6986_v23 = vld [vmem:[%s15014_s9 + $0x5c0] sm:$0xff] }
 0x932   : > { %v8858_v20 = vpop.permute.xlu1 %8857 }
 0x933   : > { %v8860_v5 = vunpack.i.h.bf16 %v8858_v20  ;;  %v8859_v52 = vunpack.i.l.bf16 %v8858_v20  ;;  %v6820_v20 = vld [vmem:[%s15014_s9 + $0x90] sm:$0xff] }
 0x935   : > { %v6465_v40 = vsel %vm6049_vm3, %v8859_v52, %v8860_v5  ;;  %v6466_v34 = vsel %vm6049_vm3, %v8860_v5, %v6458_v62  ;;  %v6854_v62 = vld [vmem:[%s15014_s9 + $0x1a0] sm:$0xff]  ;;  %v6916_v5 = vld [vmem:[%s15014_s9 + $0x390] sm:$0xff] }
 0x936   : > { %v6481_v17 = vmax.f32 %v6405_v58, %v6465_v40  ;;  %v6482_v1 = vmax.f32 %v6406_v21, %v6466_v34  ;;  %v6828_v58 = vld [vmem:[%s15014_s9 + $0xd0] sm:$0xff]  ;;  %7420 = vmatpush.msra.mxu3 %v6916_v5  ;;  %v6818_v52 = vld [vmem:[%s15014_s9 + $0x80] sm:$0xff] }
 0x937   : > { %v6860_v21 = vld [vmem:[%s15014_s9 + $0x1d0] sm:$0xff]  ;;  %7356 = vmatpush.msra.mxu0 %v6828_v58  ;;  %v6850_v40 = vld [vmem:[%s15014_s9 + $0x180] sm:$0xff] }
 0x938   : > { %6540 = vmatmul.f32.gmra.mxu2 %v6481_v17  ;;  %6569 = vmatmul.f32.gmra.mxu3 %v6482_v1  ;;  %v6882_v34 = vld [vmem:[%s15014_s9 + $0x280] sm:$0xff]  ;;  %v6984_v5 = vld [vmem:[%s15014_s9 + $0x5b0] sm:$0xff] }
 0x939   : > { %7376 = vmatpush.msra.mxu1 %v6860_v21  ;;  %7357 = vmatpush.msra.mxu0 %v6826_v12  ;;  %v6914_v17 = vld [vmem:[%s15014_s9 + $0x380] sm:$0xff] }
 0x93a   : > { %v6579_v9 = vpop.permute.xlu1 %6578  ;;  %v6538_v29 = vpop.f32.mrf.mxu2  ;;  %7421 = vmatpush.msra.mxu3 %v6914_v17  ;;  %v6834_v58 = vld [vmem:[%s15014_s9 + $0x100] sm:$0xff] }
 0x93b   : > { %v6567_v7 = vpop.f32.mrf.mxu3  ;;  %v6590_v51 = vmul.f32 %v6579_v9, %v6565_v53  ;;  %7377 = vmatpush.msra.mxu1 %v6858_v39  ;;  %7358 = vmatpush.msra.mxu0 %v6824_v14  ;;  %v6816_v53 = vld [vmem:[%s15014_s9 + $0x70] sm:$0xff]  ;;  %v6866_v21 = vld [vmem:[%s15014_s9 + $0x200] sm:$0xff] }
 0x93c   : > { %v6568_v25 = vadd.f32 %v6567_v7, %v6538_v29  ;;  %v6848_v9 = vld [vmem:[%s15014_s9 + $0x170] sm:$0xff]  ;;  %v6958_v14 = vld [vmem:[%s15014_s9 + $0x4e0] sm:$0xff] }
 0x93d   : > { %v6610_v37 = vadd.f32 %v6599_v36, %v6590_v51  ;;  %7378 = vmatpush.msra.mxu1 %v6856_v10  ;;  %v6886_v36 = vld [vmem:[%s15014_s9 + $0x2a0] sm:$0xff]  ;;  %7359 = vmatpush.msra.mxu0 %v6822_v50  ;;  %v6880_v29 = vld [vmem:[%s15014_s9 + $0x270] sm:$0xff] }
 0x93e   : > { %v6591_v38 = vmul.f32 %v6583_v60, %v6568_v25  ;;  %7399 = vmatpush.msra.mxu2 %v6886_v36  ;;  %v6912_v7 = vld [vmem:[%s15014_s9 + $0x370] sm:$0xff]  ;;  %v6814_v51 = vld [vmem:[%s15014_s9 + $0x60] sm:$0xff] }
 0x93f   : > { %6667 = vst [vmem:[#allocation1] sm:$0xff] %v6610_v37  ;;  %7379 = vmatpush.msra.mxu1 %v6854_v62  ;;  %7360 = vmatpush.msra.mxu0 %v6820_v20  ;;  %v6878_v25 = vld [vmem:[%s15014_s9 + $0x260] sm:$0xff]  ;;  %v7024_v39 = vld [vmem:[%s15014_s9 + $0x6f0] sm:$0xff] }
 0x940   : > { %6665 = vst.msk [vmem:[#allocation6 + $0x4] sm:$0x1] %vm13108_vm15, %v6610_v37  ;;  %7400 = vmatpush.msra.mxu2 %v6884_v8  ;;  %7422 = vmatpush.msra.mxu3 %v6912_v7  ;;  %v6910_v60 = vld [vmem:[%s15014_s9 + $0x360] sm:$0xff]  ;;  %v7020_v50 = vld [vmem:[%s15014_s9 + $0x6d0] sm:$0xff] }
 0x941   : > { %7380 = vmatpush.msra.mxu1 %v6852_v44  ;;  %7361 = vmatpush.msra.mxu0 %v6818_v52  ;;  %v7054_v10 = vld [vmem:[%s15014_s9 + $0x7e0] sm:$0xff]  ;;  %v7052_v62 = vld [vmem:[%s15014_s9 + $0x7d0] sm:$0xff] }
 0x942   : > { %7401 = vmatpush.msra.mxu2 %v6882_v34  ;;  %7423 = vmatpush.msra.mxu3 %v6910_v60  ;;  %v6954_v36 = vld [vmem:[%s15014_s9 + $0x4c0] sm:$0xff]  ;;  %v6952_v8 = vld [vmem:[%s15014_s9 + $0x4b0] sm:$0xff] }
 0x943   : > { %v6603_v56 = vpop.permute.xlu1 %6602  ;;  %7381 = vmatpush.msra.mxu1 %v6850_v40  ;;  %7362 = vmatpush.msra.mxu0 %v6816_v53  ;;  %v7018_v20 = vld [vmem:[%s15014_s9 + $0x6c0] sm:$0xff]  ;;  %v7016_v52 = vld [vmem:[%s15014_s9 + $0x6b0] sm:$0xff] }
 0x944   : > { %v13145_v11 = vadd.f32 %v6603_v56, %v6591_v38  ;;  %7402 = vmatpush.msra.mxu2 %v6880_v29  ;;  %v6812_v38 = vld [vmem:[%s15014_s9 + $0x50] sm:$0xff]  ;;  %v7050_v44 = vld [vmem:[%s15014_s9 + $0x7c0] sm:$0xff] }
 0x945   : > { %7382 = vmatpush.msra.mxu1 %v6848_v9  ;;  %7363 = vmatpush.msra.mxu0 %v6814_v51  ;;  %v6844_v56 = vld [vmem:[%s15014_s9 + $0x150] sm:$0xff]  ;;  %v6950_v34 = vld [vmem:[%s15014_s9 + $0x4a0] sm:$0xff] }
 0x946   : > { %v6669_v19 = vld [vmem:[#allocation1 + $0x1] ss:$9 sm:$0xff]  ;;  %6710 = vst.msk [vmem:[#allocation6 + $0x8] sm:$0x1] %vm13108_vm15, %v13145_v11  ;;  %7403 = vmatpush.msra.mxu2 %v6878_v25 }
 0x947   : > { %6674 = vst [vmem:[#allocation1] sm:$0xff] %v6610_v37  ;;  %6670 = vrot.lane.b32.xlu0 %v6669_v19, %s15493_s16  ;;  %7364 = vmatpush.msra.mxu0 %v6812_v38  ;;  %v6908_v19 = vld [vmem:[%s15014_s9 + $0x350] sm:$0xff]  ;;  %v7014_v53 = vld [vmem:[%s15014_s9 + $0x6a0] sm:$0xff] }
 0x948   : > { %7424 = vmatpush.msra.mxu3 %v6908_v19  ;;  %v7048_v40 = vld [vmem:[%s15014_s9 + $0x7b0] sm:$0xff]  ;;  %v7046_v29 = vld [vmem:[%s15014_s9 + $0x7a0] sm:$0xff] }
 0x949   : > { %v6948_v7 = vld [vmem:[%s15014_s9 + $0x490] sm:$0xff]  ;;  %v6946_v60 = vld [vmem:[%s15014_s9 + $0x480] sm:$0xff] }
 0x94a   : > { %v6980_v51 = vld [vmem:[%s15014_s9 + $0x590] sm:$0xff]  ;;  %v6978_v38 = vld [vmem:[%s15014_s9 + $0x580] sm:$0xff] }
 0x94b   : > { %v13155_v35 = vpop.permute.xlu1 %6606  ;;  %v7044_v25 = vld [vmem:[%s15014_s9 + $0x790] sm:$0xff] }
 0x94c   : > { %v6944_v19 = vld [vmem:[%s15014_s9 + $0x470] sm:$0xff] }
 0x94d   : > { %v6638_v13 = vpop.permute.xlu0 %6637 }
 0x94e   : > { %v6676_v0 = vld [vmem:[#allocation1 + $0x2] ss:$9 sm:$0xff]  ;;  %6640 = vst.msk [vmem:[#allocation6 + $0x1] sm:$0x1] %vm13135_vm6, %v6638_v13 }
 0x94f   : > { %6679 = vst [vmem:[#allocation1] sm:$0xff] %v6610_v37  ;;  %v6810_v13 = vld [vmem:[%s15014_s9 + $0x40] sm:$0xff] }
 0x950   : > { %6678 = vst.msk [vmem:[#allocation6 + $0x5] sm:$0x1] %vm13108_vm15, %v6676_v0  ;;  %v6842_v0 = vld [vmem:[%s15014_s9 + $0x140] sm:$0xff]  ;;  %7365 = vmatpush.msra.mxu0 %v6810_v13  ;;  %v6976_v13 = vld [vmem:[%s15014_s9 + $0x570] sm:$0xff] }
 0x955   : > { %v6662_v4 = vpop.permute.xlu2 %6661 }
 0x956   : > { %v6681_v32 = vld [vmem:[#allocation1 + $0x3] ss:$9 sm:$0xff]  ;;  %6664 = vst.msk [vmem:[#allocation6 + $0x3] sm:$0x1] %vm13135_vm6, %v6662_v4 }
 0x957   : > { %6686 = vst [vmem:[#allocation1] sm:$0xff] %v6610_v37  ;;  %6682 = vrot.lane.b32.xlu1 %v6681_v32, %s15493_s16  ;;  %v6874_v4 = vld [vmem:[%s15014_s9 + $0x240] sm:$0xff] }
 0x958   : > { %v6906_v32 = vld [vmem:[%s15014_s9 + $0x340] sm:$0xff] }
 0x959   : > { %7425 = vmatpush.msra.mxu3 %v6906_v32 }
 0x95d   : > { %v6650_v49 = vpop.permute.xlu1 %6649 }
 0x95e   : > { %v6688_v55 = vld [vmem:[#allocation1 + $0x4] ss:$9 sm:$0xff]  ;;  %6652 = vst.msk [vmem:[#allocation6 + $0x2] sm:$0x1] %vm13135_vm6, %v6650_v49 }
 0x95f   : > { %6691 = vst [vmem:[#allocation1] sm:$0xff] %v6610_v37  ;;  %v6808_v49 = vld [vmem:[%s15014_s9 + $0x30] sm:$0xff] }
 0x960   : > { %6690 = vst.msk [vmem:[#allocation6 + $0x6] sm:$0x1] %vm13108_vm15, %v6688_v55  ;;  %v6840_v55 = vld [vmem:[%s15014_s9 + $0x130] sm:$0xff]  ;;  %7366 = vmatpush.msra.mxu0 %v6808_v49  ;;  %v6942_v49 = vld [vmem:[%s15014_s9 + $0x460] sm:$0xff] }
 0x966   : > { %v6693_v46 = vld [vmem:[#allocation1 + $0x5] ss:$9 sm:$0xff] }
 0x967   : > { %6694 = vrot.lane.b32.xlu2 %v6693_v46, %s15493_s16  ;;  %6698 = vst [vmem:[#allocation1] sm:$0xff] %v6610_v37  ;;  %v6872_v46 = vld [vmem:[%s15014_s9 + $0x230] sm:$0xff] }
 0x96e   : > { %v6700_v61 = vld [vmem:[#allocation1 + $0x6] ss:$9 sm:$0xff] }
 0x96f   : > { %6703 = vst [vmem:[#allocation1] sm:$0xff] %v6610_v37  ;;  %v6846_v37 = vld [vmem:[%s15014_s9 + $0x160] sm:$0xff] }
 0x970   : > { %6702 = vst.msk [vmem:[#allocation6 + $0x7] sm:$0x1] %vm13108_vm15, %v6700_v61  ;;  %7383 = vmatpush.msra.mxu1 %v6846_v37  ;;  %v6904_v61 = vld [vmem:[%s15014_s9 + $0x330] sm:$0xff] }
 0x971   : > { %7426 = vmatpush.msra.mxu3 %v6904_v61  ;;  %v7012_v37 = vld [vmem:[%s15014_s9 + $0x690] sm:$0xff]  ;;  %v7038_v61 = vld [vmem:[%s15014_s9 + $0x760] sm:$0xff] }
 0x972   : > { %7384 = vmatpush.msra.mxu1 %v6844_v56  ;;  %v7010_v56 = vld [vmem:[%s15014_s9 + $0x680] sm:$0xff] }
 0x974   : > { %7385 = vmatpush.msra.mxu1 %v6842_v0  ;;  %v7008_v0 = vld [vmem:[%s15014_s9 + $0x670] sm:$0xff] }
 0x976   : > { %v6705_v6 = vld [vmem:[#allocation1 + $0x7] ss:$9 sm:$0xff]  ;;  %7386 = vmatpush.msra.mxu1 %v6840_v55 }
 0x977   : > { %6706 = vrot.lane.b32.xlu0 %v6705_v6, %s15493_s16  ;;  %6712 = vst [vmem:[#allocation1] sm:$0xff] %v13145_v11  ;;  %v6806_v6 = vld [vmem:[%s15014_s9 + $0x20] sm:$0xff] }
 0x978   : > { %7367 = vmatpush.msra.mxu0 %v6806_v6  ;;  %v6974_v55 = vld [vmem:[%s15014_s9 + $0x560] sm:$0xff]  ;;  %v6940_v6 = vld [vmem:[%s15014_s9 + $0x450] sm:$0xff] }
 0x97e   : > { %v6714_v18 = vld [vmem:[#allocation1 + $0x1] ss:$9 sm:$0xff] }
 0x97f   : > { %6715 = vrot.lane.b32.xlu1 %v6714_v18, %s15493_s16  ;;  %6719 = vst [vmem:[#allocation1] sm:$0xff] %v13145_v11  ;;  %v6838_v18 = vld [vmem:[%s15014_s9 + $0x120] sm:$0xff] }
 0x980   : > { %7387 = vmatpush.msra.mxu1 %v6838_v18  ;;  %v6972_v18 = vld [vmem:[%s15014_s9 + $0x550] sm:$0xff] }
 0x982   : > { %7388 = vmatpush.msra.mxu1 %v6836_v22  ;;  %v7002_v22 = vld [vmem:[%s15014_s9 + $0x640] sm:$0xff] }
 0x984   : > { %7389 = vmatpush.msra.mxu1 %v6834_v58  ;;  %v6998_v58 = vld [vmem:[%s15014_s9 + $0x620] sm:$0xff] }
 0x986   : > { %v6721_v54 = vld [vmem:[#allocation1 + $0x2] ss:$9 sm:$0xff]  ;;  %7454 = vmatpush.msrb.mxu1 %v6992_v24 }
 0x987   : > { %6724 = vst [vmem:[#allocation1] sm:$0xff] %v13145_v11  ;;  %v6964_v24 = vld [vmem:[%s15014_s9 + $0x510] sm:$0xff] }
 0x988   : > { %6723 = vst.msk [vmem:[#allocation6 + $0x9] sm:$0x1] %vm13108_vm15, %v6721_v54  ;;  %v6870_v54 = vld [vmem:[%s15014_s9 + $0x220] sm:$0xff] }
 0x98e   : > { %v6726_v31 = vld [vmem:[#allocation1 + $0x3] ss:$9 sm:$0xff] }
 0x98f   : > { %6727 = vrot.lane.b32.xlu2 %v6726_v31, %s15493_s16  ;;  %6731 = vst [vmem:[#allocation1] sm:$0xff] %v13145_v11 }
 0x996   : > { %v6733_v16 = vld [vmem:[#allocation1 + $0x4] ss:$9 sm:$0xff] }
 0x997   : > { %6736 = vst [vmem:[#allocation1] sm:$0xff] %v13145_v11 }
 0x998   : > { %6735 = vst.msk [vmem:[#allocation6 + $0xa] sm:$0x1] %vm13108_vm15, %v6733_v16  ;;  %v6902_v16 = vld [vmem:[%s15014_s9 + $0x320] sm:$0xff] }
 0x999   : > { %7427 = vmatpush.msra.mxu3 %v6902_v16  ;;  %v6938_v16 = vld [vmem:[%s15014_s9 + $0x440] sm:$0xff] }
 0x99b   : > { %7428 = vmatpush.msra.mxu3 %v6900_v59  ;;  %v7000_v59 = vld [vmem:[%s15014_s9 + $0x630] sm:$0xff] }
 0x99d   : > { %7429 = vmatpush.msra.mxu3 %v6898_v3 }
 0x99e   : > { %v6738_v30 = vld [vmem:[#allocation1 + $0x5] ss:$9 sm:$0xff] }
 0x99f   : > { %6739 = vrot.lane.b32.xlu0 %v6738_v30, %s15493_s16  ;;  %6743 = vst [vmem:[#allocation1] sm:$0xff] %v13145_v11  ;;  %v6804_v30 = vld [vmem:[%s15014_s9 + $0x10] sm:$0xff]  ;;  %7494 = vmatpush.msrb.mxu3 %v7056_v57 }
 0x9a0   : > { %7368 = vmatpush.msra.mxu0 %v6804_v30  ;;  %v6970_v30 = vld [vmem:[%s15014_s9 + $0x540] sm:$0xff]  ;;  %v7028_v57 = vld [vmem:[%s15014_s9 + $0x710] sm:$0xff] }
 0x9a1   : > { %7495 = vmatpush.msrb.mxu3 %v7054_v10 }
 0x9a2   : > { %7369 = vmatpush.msra.mxu0 %v6802_v45  ;;  %v6966_v45 = vld [vmem:[%s15014_s9 + $0x520] sm:$0xff] }
 0x9a3   : > { %7496 = vmatpush.msrb.mxu3 %v7052_v62 }
 0x9a5   : > { %7497 = vmatpush.msrb.mxu3 %v7050_v44 }
 0x9a6   : > { %v6745_v26 = vld [vmem:[#allocation1 + $0x6] ss:$9 sm:$0xff] }
 0x9a7   : > { %6747 = vst.msk [vmem:[#allocation6 + $0xb] sm:$0x1] %vm13108_vm15, %v6745_v26  ;;  %v7022_v26 = vld [vmem:[%s15014_s9 + $0x6e0] sm:$0xff]  ;;  %7498 = vmatpush.msrb.mxu3 %v7048_v40 }
 0x9a8   : > { %6748 = vst [vmem:[#allocation1] sm:$0xff] %v13145_v11  ;;  %v6876_v11 = vld [vmem:[%s15014_s9 + $0x250] sm:$0xff] }
 0x9a9   : > { %7404 = vmatpush.msra.mxu2 %v6876_v11  ;;  %7499 = vmatpush.msrb.mxu3 %v7046_v29  ;;  %v7042_v11 = vld [vmem:[%s15014_s9 + $0x780] sm:$0xff] }
 0x9aa   : > { %v7086_v29 = vld [vmem:[%s15014_s9 + $0x8e0] sm:$0xff] }
 0x9ab   : > { %7405 = vmatpush.msra.mxu2 %v6874_v4  ;;  %7500 = vmatpush.msrb.mxu3 %v7044_v25  ;;  %v7040_v4 = vld [vmem:[%s15014_s9 + $0x770] sm:$0xff] }
 0x9ac   : > { %v7084_v25 = vld [vmem:[%s15014_s9 + $0x8d0] sm:$0xff] }
 0x9ad   : > { %7406 = vmatpush.msra.mxu2 %v6872_v46  ;;  %7501 = vmatpush.msrb.mxu3 %v7042_v11  ;;  %v7006_v46 = vld [vmem:[%s15014_s9 + $0x660] sm:$0xff] }
 0x9ae   : > { %v7082_v11 = vld [vmem:[%s15014_s9 + $0x8c0] sm:$0xff] }
 0x9af   : > { %v6750_v1 = vld [vmem:[#allocation1 + $0x7] ss:$9 sm:$0xff]  ;;  %7407 = vmatpush.msra.mxu2 %v6870_v54  ;;  %7502 = vmatpush.msrb.mxu3 %v7040_v4 }
 0x9b0   : > { %6751 = vrot.lane.b32.xlu1 %v6750_v1, %s15493_s16  ;;  %v6982_v1 = vld [vmem:[%s15014_s9 + $0x5a0] sm:$0xff]  ;;  %v7004_v54 = vld [vmem:[%s15014_s9 + $0x650] sm:$0xff] }
 0x9b1   : > { %7408 = vmatpush.msra.mxu2 %v6868_v42  ;;  %7503 = vmatpush.msrb.mxu3 %v7038_v61  ;;  %v7034_v42 = vld [vmem:[%s15014_s9 + $0x740] sm:$0xff]  ;;  %v7080_v4 = vld [vmem:[%s15014_s9 + $0x8b0] sm:$0xff] }
 0x9b2   : > { %v7110_v61 = vld [vmem:[%s15014_s9 + $0x9a0] sm:$0xff] }
 0x9b3   : > { %7409 = vmatpush.msra.mxu2 %v6866_v21  ;;  %v7030_v21 = vld [vmem:[%s15014_s9 + $0x720] sm:$0xff] }
 0x9b5   : > { %7474 = vmatpush.msrb.mxu2 %v7024_v39  ;;  %v6996_v39 = vld [vmem:[%s15014_s9 + $0x610] sm:$0xff] }
 0x9b7   : > { %7475 = vmatpush.msrb.mxu2 %v7022_v26  ;;  %v7026_v26 = vld [vmem:[%s15014_s9 + $0x700] sm:$0xff] }
 0x9b9   : > { %v6671_v31 = vpop.permute.xlu0 %6670  ;;  %7476 = vmatpush.msrb.mxu2 %v7020_v50 }
 0x9ba   : > { %6673 = vst.msk [vmem:[#allocation6 + $0x4] sm:$0x1] %vm13135_vm6, %v6671_v31  ;;  %v7036_v31 = vld [vmem:[%s15014_s9 + $0x750] sm:$0xff] }
 0x9bb   : > { %v6541_v27 = vpop.f32.mrf.mxu2  ;;  %v6570_v2 = vpop.f32.mrf.mxu3  ;;  %7477 = vmatpush.msrb.mxu2 %v7018_v20  ;;  %7504 = vmatpush.msrb.mxu3 %v7036_v31  ;;  %v7108_v31 = vld [vmem:[%s15014_s9 + $0x990] sm:$0xff] }
 0x9bc   : > { %v6571_v48 = vadd.f32 %v6570_v2, %v6541_v27  ;;  %v6936_v27 = vld [vmem:[%s15014_s9 + $0x430] sm:$0xff] }
 0x9bd   : > { %7478 = vmatpush.msrb.mxu2 %v7016_v52  ;;  %v6968_v2 = vld [vmem:[%s15014_s9 + $0x530] sm:$0xff]  ;;  %7505 = vmatpush.msrb.mxu3 %v7034_v42  ;;  %v7074_v42 = vld [vmem:[%s15014_s9 + $0x880] sm:$0xff] }
 0x9be   : > { %v6592_v28 = vmul.f32 %v13131_v43, %v6571_v48  ;;  %v6960_v43 = vld [vmem:[%s15014_s9 + $0x4f0] sm:$0xff] }
 0x9bf   : > { %7434 = vmatpush.msrb.mxu0 %v6960_v43  ;;  %7479 = vmatpush.msrb.mxu2 %v7014_v53  ;;  %v7032_v48 = vld [vmem:[%s15014_s9 + $0x730] sm:$0xff] }
 0x9c0   : > { %v13387_v12 = vadd.f32 %v13155_v35, %v6592_v28  ;;  %v6990_v35 = vld [vmem:[%s15014_s9 + $0x5e0] sm:$0xff]  ;;  %7506 = vmatpush.msrb.mxu3 %v7032_v48  ;;  %v6932_v43 = vld [vmem:[%s15014_s9 + $0x410] sm:$0xff] }
 0x9c1   : > { %v6695_v15 = vpop.permute.xlu2 %6694  ;;  %7435 = vmatpush.msrb.mxu0 %v6958_v14  ;;  %7455 = vmatpush.msrb.mxu1 %v6990_v35  ;;  %v6934_v28 = vld [vmem:[%s15014_s9 + $0x420] sm:$0xff]  ;;  %v7152_v53 = vld [vmem:[%s15014_s9 + $0xaf0] sm:$0xff] }
 0x9c2   : > { %6755 = vst.msk [vmem:[#allocation6 + $0xc] sm:$0x1] %vm13108_vm15, %v13387_v12  ;;  %7480 = vmatpush.msrb.mxu2 %v7012_v37  ;;  %7507 = vmatpush.msrb.mxu3 %v7030_v21  ;;  %v6962_v14 = vld [vmem:[%s15014_s9 + $0x500] sm:$0xff]  ;;  %v7072_v48 = vld [vmem:[%s15014_s9 + $0x870] sm:$0xff] }
 0x9c3   : > { %6757 = vst [vmem:[#allocation1] sm:$0xff] %v13387_v12  ;;  %7436 = vmatpush.msrb.mxu0 %v6956_v63  ;;  %7456 = vmatpush.msrb.mxu1 %v6988_v47  ;;  %v6994_v35 = vld [vmem:[%s15014_s9 + $0x600] sm:$0xff] }
 0x9c4   : > { %6697 = vst.msk [vmem:[#allocation6 + $0x6] sm:$0x1] %vm13135_vm6, %v6695_v15  ;;  %7481 = vmatpush.msrb.mxu2 %v7010_v56  ;;  %v6930_v15 = vld [vmem:[%s15014_s9 + $0x400] sm:$0xff]  ;;  %7508 = vmatpush.msrb.mxu3 %v7028_v57  ;;  %v7180_v56 = vld [vmem:[%s15014_s9 + $0xbd0] sm:$0xff] }
 0x9c5   : > { %7437 = vmatpush.msrb.mxu0 %v6954_v36  ;;  %7457 = vmatpush.msrb.mxu1 %v6986_v23  ;;  %v7182_v37 = vld [vmem:[%s15014_s9 + $0xbe0] sm:$0xff]  ;;  %v7100_v57 = vld [vmem:[%s15014_s9 + $0x950] sm:$0xff] }
 0x9c6   : > { %7482 = vmatpush.msrb.mxu2 %v7008_v0  ;;  %7509 = vmatpush.msrb.mxu3 %v7026_v26  ;;  %v7178_v0 = vld [vmem:[%s15014_s9 + $0xbc0] sm:$0xff] }
 0x9c7   : > { %7438 = vmatpush.msrb.mxu0 %v6952_v8  ;;  %7458 = vmatpush.msrb.mxu1 %v6984_v5  ;;  %v7070_v21 = vld [vmem:[%s15014_s9 + $0x860] sm:$0xff] }
 0x9c8   : > { %7483 = vmatpush.msrb.mxu2 %v7006_v46  ;;  %v7078_v46 = vld [vmem:[%s15014_s9 + $0x8a0] sm:$0xff] }
 0x9c9   : > { %v6683_v17 = vpop.permute.xlu1 %6682  ;;  %7439 = vmatpush.msrb.mxu0 %v6950_v34  ;;  %7459 = vmatpush.msrb.mxu1 %v6982_v1  ;;  %v7120_v1 = vld [vmem:[%s15014_s9 + $0x9f0] sm:$0xff]  ;;  %v7098_v26 = vld [vmem:[%s15014_s9 + $0x940] sm:$0xff] }
 0x9ca   : > { %6685 = vst.msk [vmem:[#allocation6 + $0x5] sm:$0x1] %vm13135_vm6, %v6683_v17  ;;  %v6759_v9 = vld [vmem:[#allocation1 + $0x1] ss:$9 sm:$0xff]  ;;  %7484 = vmatpush.msrb.mxu2 %v7004_v54 }
 0x9cb   : > { %6760 = vrot.lane.b32.xlu2 %v6759_v9, %s15493_s16  ;;  %6764 = vst [vmem:[#allocation1] sm:$0xff] %v13387_v12  ;;  %7440 = vmatpush.msrb.mxu0 %v6948_v7  ;;  %v7184_v9 = vld [vmem:[%s15014_s9 + $0xbf0] sm:$0xff]  ;;  %v7118_v7 = vld [vmem:[%s15014_s9 + $0x9e0] sm:$0xff] }
 0x9cc   : > { %7460 = vmatpush.msrb.mxu1 %v6980_v51  ;;  %7485 = vmatpush.msrb.mxu2 %v7002_v22  ;;  %v7150_v51 = vld [vmem:[%s15014_s9 + $0xae0] sm:$0xff]  ;;  %v7076_v54 = vld [vmem:[%s15014_s9 + $0x890] sm:$0xff] }
 0x9cd   : > { %7441 = vmatpush.msrb.mxu0 %v6946_v60  ;;  %v7116_v60 = vld [vmem:[%s15014_s9 + $0x9d0] sm:$0xff] }
 0x9ce   : > { %7461 = vmatpush.msrb.mxu1 %v6978_v38  ;;  %7486 = vmatpush.msrb.mxu2 %v7000_v59  ;;  %v7148_v38 = vld [vmem:[%s15014_s9 + $0xad0] sm:$0xff]  ;;  %v7170_v59 = vld [vmem:[%s15014_s9 + $0xb80] sm:$0xff] }
 0x9cf   : > { %7442 = vmatpush.msrb.mxu0 %v6944_v19  ;;  %v7114_v19 = vld [vmem:[%s15014_s9 + $0x9c0] sm:$0xff]  ;;  %v7172_v22 = vld [vmem:[%s15014_s9 + $0xb90] sm:$0xff] }
 0x9d0   : > { %7462 = vmatpush.msrb.mxu1 %v6976_v13  ;;  %7487 = vmatpush.msrb.mxu2 %v6998_v58  ;;  %v7146_v13 = vld [vmem:[%s15014_s9 + $0xac0] sm:$0xff]  ;;  %v7168_v58 = vld [vmem:[%s15014_s9 + $0xb70] sm:$0xff] }
 0x9d1   : > { %7443 = vmatpush.msrb.mxu0 %v6942_v49  ;;  %v7144_v49 = vld [vmem:[%s15014_s9 + $0xab0] sm:$0xff] }
 0x9d2   : > { %v6766_v32 = vld [vmem:[#allocation1 + $0x2] ss:$9 sm:$0xff]  ;;  %7463 = vmatpush.msrb.mxu1 %v6974_v55  ;;  %7488 = vmatpush.msrb.mxu2 %v6996_v39 }
 0x9d3   : > { %6768 = vst.msk [vmem:[#allocation6 + $0xd] sm:$0x1] %vm13108_vm15, %v6766_v32  ;;  %7444 = vmatpush.msrb.mxu0 %v6940_v6  ;;  %v7112_v32 = vld [vmem:[%s15014_s9 + $0x9b0] sm:$0xff]  ;;  %v7142_v6 = vld [vmem:[%s15014_s9 + $0xaa0] sm:$0xff] }
 0x9d4   : > { %6769 = vst [vmem:[#allocation1] sm:$0xff] %v13387_v12  ;;  %7464 = vmatpush.msrb.mxu1 %v6972_v18  ;;  %7489 = vmatpush.msrb.mxu2 %v6994_v35  ;;  %v7176_v55 = vld [vmem:[%s15014_s9 + $0xbb0] sm:$0xff]  ;;  %v7174_v18 = vld [vmem:[%s15014_s9 + $0xba0] sm:$0xff] }
 0x9d5   : > { %7445 = vmatpush.msrb.mxu0 %v6938_v16  ;;  %v7068_v39 = vld [vmem:[%s15014_s9 + $0x850] sm:$0xff]  ;;  %v7066_v35 = vld [vmem:[%s15014_s9 + $0x840] sm:$0xff] }
 0x9d6   : > { %7465 = vmatpush.msrb.mxu1 %v6970_v30  ;;  %v7140_v30 = vld [vmem:[%s15014_s9 + $0xa90] sm:$0xff] }
 0x9d7   : > { %7446 = vmatpush.msrb.mxu0 %v6936_v27  ;;  %v7106_v27 = vld [vmem:[%s15014_s9 + $0x980] sm:$0xff] }
 0x9d8   : > { %7466 = vmatpush.msrb.mxu1 %v6968_v2  ;;  %v7138_v2 = vld [vmem:[%s15014_s9 + $0xa80] sm:$0xff] }
 0x9d9   : > { %7447 = vmatpush.msrb.mxu0 %v6934_v28  ;;  %v7104_v28 = vld [vmem:[%s15014_s9 + $0x970] sm:$0xff] }
 0x9da   : > { %7467 = vmatpush.msrb.mxu1 %v6966_v45  ;;  %v7136_v45 = vld [vmem:[%s15014_s9 + $0xa70] sm:$0xff] }
 0x9db   : > { %v6771_v3 = vld [vmem:[#allocation1 + $0x3] ss:$9 sm:$0xff]  ;;  %7448 = vmatpush.msrb.mxu0 %v6932_v43 }
 0x9dc   : > { %6772 = vrot.lane.b32.xlu0 %v6771_v3, %s15493_s16  ;;  %6776 = vst [vmem:[#allocation1] sm:$0xff] %v13387_v12  ;;  %7468 = vmatpush.msrb.mxu1 %v6964_v24  ;;  %v7102_v3 = vld [vmem:[%s15014_s9 + $0x960] sm:$0xff] }
 0x9dd   : > { %7449 = vmatpush.msrb.mxu0 %v6930_v15  ;;  %v7134_v43 = vld [vmem:[%s15014_s9 + $0xa60] sm:$0xff]  ;;  %v7132_v15 = vld [vmem:[%s15014_s9 + $0xa50] sm:$0xff] }
 0x9de   : > { %7469 = vmatpush.msrb.mxu1 %v6962_v14  ;;  %v7166_v24 = vld [vmem:[%s15014_s9 + $0xb60] sm:$0xff]  ;;  %v7164_v14 = vld [vmem:[%s15014_s9 + $0xb50] sm:$0xff] }
 0x9e3   : > { %v6778_v10 = vld [vmem:[#allocation1 + $0x4] ss:$9 sm:$0xff] }
 0x9e4   : > { %6780 = vst.msk [vmem:[#allocation6 + $0xe] sm:$0x1] %vm13108_vm15, %v6778_v10  ;;  %v7130_v10 = vld [vmem:[%s15014_s9 + $0xa40] sm:$0xff] }
 0x9e5   : > { %6781 = vst [vmem:[#allocation1] sm:$0xff] %v13387_v12 }
 0x9e9   : > { %v6707_v63 = vpop.permute.xlu0 %6706  ;;  %v6728_v47 = vpop.permute.xlu2 %6727 }
 0x9ea   : > { %6709 = vst.msk [vmem:[#allocation6 + $0x7] sm:$0x1] %vm13135_vm6, %v6707_v63  ;;  %v7162_v63 = vld [vmem:[%s15014_s9 + $0xb40] sm:$0xff] }
 0x9eb   : > { %6730 = vst.msk [vmem:[#allocation6 + $0x9] sm:$0x1] %vm13135_vm6, %v6728_v47  ;;  %v7064_v47 = vld [vmem:[%s15014_s9 + $0x830] sm:$0xff] }
 0x9ec   : > { %v6783_v50 = vld [vmem:[#allocation1 + $0x5] ss:$9 sm:$0xff] }
 0x9ed   : > { %6784 = vrot.lane.b32.xlu1 %v6783_v50, %s15493_s16  ;;  %6788 = vst [vmem:[#allocation1] sm:$0xff] %v13387_v12  ;;  %v7096_v50 = vld [vmem:[%s15014_s9 + $0x930] sm:$0xff] }
 0x9f1   : > { %v6716_v62 = vpop.permute.xlu1 %6715  ;;  %v13599_v36 = vld [vmem:[#allocation6] sm:$0xff] }
 0x9f2   : > { %6718 = vst.msk [vmem:[#allocation6 + $0x8] sm:$0x1] %vm13135_vm6, %v6716_v62  ;;  %v7317_v23 = vperm.slane %v13599_v36, 0  ;;  %v7318_v20 = vperm.slane %v13599_v36, 1  ;;  %v7319_v44 = vperm.slane %v13599_v36, 2  ;;  %v7320_v8 = vperm.slane %v13599_v36, 3 }
 0x9f3   : > { %v7321_v52 = vperm.slane %v13599_v36, 4  ;;  %v7322_v40 = vperm.slane %v13599_v36, 5  ;;  %v7323_v34 = vperm.slane %v13599_v36, 6  ;;  %v7324_v17 = vperm.slane %v13599_v36, 7  ;;  %v7128_v62 = vld [vmem:[%s15014_s9 + $0xa30] sm:$0xff]  ;;  %v7085_v36 = vld [vmem:[%s15014_s9 + $0x8d8] sm:$0xff] }
 0x9f4   : > { %v6790_v5 = vld [vmem:[#allocation1 + $0x6] ss:$9 sm:$0xff]  ;;  %7370 = vmatmul.f32.vlgmr.msra.gmra.mxu0 %v7317_v23  ;;  %7390 = vmatmul.f32.vlgmr.msra.gmra.mxu1 %v7318_v20 }
 0x9f5   : > { %6792 = vst.msk [vmem:[#allocation6 + $0xf] sm:$0x1] %vm13108_vm15, %v6790_v5  ;;  %7410 = vmatmul.f32.vlgmr.msra.gmra.mxu2 %v7319_v44  ;;  %7430 = vmatmul.f32.vlgmr.msra.gmra.mxu3 %v7320_v8  ;;  %v7160_v5 = vld [vmem:[%s15014_s9 + $0xb30] sm:$0xff] }
 0x9f6   : > { %6793 = vst [vmem:[#allocation1] sm:$0xff] %v13387_v12  ;;  %v7088_v12 = vld [vmem:[%s15014_s9 + $0x8f0] sm:$0xff]  ;;  %7534 = vmatpush.msra.mxu1 %v7120_v1  ;;  %7554 = vmatpush.msra.mxu2 %v7152_v53  ;;  %v7126_v1 = vld [vmem:[%s15014_s9 + $0xa20] sm:$0xff] }
 0x9f7   : > { %7514 = vmatpush.msra.mxu0 %v7088_v12  ;;  %7574 = vmatpush.msra.mxu3 %v7184_v9  ;;  %v7094_v12 = vld [vmem:[%s15014_s9 + $0x920] sm:$0xff]  ;;  %v7060_v9 = vld [vmem:[%s15014_s9 + $0x810] sm:$0xff] }
 0x9f8   : > { %7535 = vmatpush.msra.mxu1 %v7118_v7  ;;  %7555 = vmatpush.msra.mxu2 %v7150_v51  ;;  %v7158_v53 = vld [vmem:[%s15014_s9 + $0xb20] sm:$0xff]  ;;  %v7124_v7 = vld [vmem:[%s15014_s9 + $0xa10] sm:$0xff] }
 0x9f9   : > { %7515 = vmatpush.msra.mxu0 %v7086_v29  ;;  %7575 = vmatpush.msra.mxu3 %v7182_v37  ;;  %v7092_v29 = vld [vmem:[%s15014_s9 + $0x910] sm:$0xff] }
 0x9fa   : > { %7536 = vmatpush.msra.mxu1 %v7116_v60  ;;  %7556 = vmatpush.msra.mxu2 %v7148_v38  ;;  %v7156_v51 = vld [vmem:[%s15014_s9 + $0xb10] sm:$0xff]  ;;  %v7090_v60 = vld [vmem:[%s15014_s9 + $0x900] sm:$0xff] }
 0x9fb   : > { %7516 = vmatpush.msra.mxu0 %v7084_v25  ;;  %7576 = vmatpush.msra.mxu3 %v7180_v56  ;;  %v7058_v25 = vld [vmem:[%s15014_s9 + $0x800] sm:$0xff] }
 0x9fc   : > { %7450 = vmatmul.f32.vlgmr.msrb.gmra.mxu0 %v7321_v52  ;;  %7470 = vmatmul.f32.vlgmr.msrb.gmra.mxu1 %v7322_v40  ;;  %v7122_v38 = vld [vmem:[%s15014_s9 + $0xa00] sm:$0xff] }
 0x9fd   : > { %v6795_v33 = vld [vmem:[#allocation1 + $0x7] ss:$9 sm:$0xff]  ;;  %7490 = vmatmul.f32.vlgmr.msrb.gmra.mxu2 %v7323_v34  ;;  %7510 = vmatmul.f32.vlgmr.msrb.gmra.mxu3 %v7324_v17 }
 0x9fe   : > { %6796 = vrot.lane.b32.xlu2 %v6795_v33, %s15493_s16  ;;  %7517 = vmatpush.msra.mxu0 %v7082_v11  ;;  %v7062_v33 = vld [vmem:[%s15014_s9 + $0x820] sm:$0xff]  ;;  %v7216_v11 = vld [vmem:[%s15014_s9 + $0xcf0] sm:$0xff]  ;;  %s8097_s16 = scalar_lea.hbm %s15018_s13, %s9056_s29 }
 0x9ff   : > { %7537 = vmatpush.msra.mxu1 %v7114_v19  ;;  %7557 = vmatpush.msra.mxu2 %v7146_v13  ;;  %v7154_v56 = vld [vmem:[%s15014_s9 + $0xb00] sm:$0xff]  ;;  %v7248_v19 = vld [vmem:[%s15014_s9 + $0xdf0] sm:$0xff]  ;;  %s8101_s2 = sshll.u32 %s8097_s16, 4  ;;  %s8102_s2 = int_to_ptr.hbm [resolvable:$true] %s8101_s2 }
 0xa00   : > { %7577 = vmatpush.msra.mxu3 %v7178_v0  ;;  %7518 = vmatpush.msra.mxu0 %v7080_v4  ;;  %v7280_v0 = vld [vmem:[%s15014_s9 + $0xef0] sm:$0xff]  ;;  %s8884_s30 = sshra.s32 %s8102_s2, 4  ;;  %s8885_s30 = int_to_ptr.hbm [resolvable:$true] %s8884_s30 }
 0xa01   : > { %7538 = vmatpush.msra.mxu1 %v7112_v32  ;;  %7558 = vmatpush.msra.mxu2 %v7144_v49  ;;  %v7312_v4 = vld [vmem:[%s15014_s9 + $0xff0] sm:$0xff]  ;;  %v7214_v32 = vld [vmem:[%s15014_s9 + $0xce0] sm:$0xff]  ;;  %s8886_s20 = scalar_lea.hbm %s8885_s30, 1  ;;  %p8891_p0 = scmp.lt.s32.totalorder %s8885_s30, %s15018_s13 }
 0xa02   : > { %7578 = vmatpush.msra.mxu3 %v7176_v55  ;;  %7519 = vmatpush.msra.mxu0 %v7078_v46  ;;  %v7246_v49 = vld [vmem:[%s15014_s9 + $0xde0] sm:$0xff]  ;;  %p8887_p11 = scmp.ne.s32.totalorder %s8885_s30, %s8886_s20  ;;  %p8892_p1 = scmp.lt.s32.totalorder %s8890_s3, %s8886_s20 }
 0xa03   : > { %7539 = vmatpush.msra.mxu1 %v7110_v61  ;;  %7559 = vmatpush.msra.mxu2 %v7142_v6  ;;  %v7278_v55 = vld [vmem:[%s15014_s9 + $0xee0] sm:$0xff]  ;;  %v7212_v61 = vld [vmem:[%s15014_s9 + $0xcd0] sm:$0xff] }
 0xa04   : > { %7579 = vmatpush.msra.mxu3 %v7174_v18  ;;  %7520 = vmatpush.msra.mxu0 %v7076_v54  ;;  %v7310_v46 = vld [vmem:[%s15014_s9 + $0xfe0] sm:$0xff]  ;;  %v7244_v6 = vld [vmem:[%s15014_s9 + $0xdd0] sm:$0xff]  ;;  %p8888_p12 = pnand %p8887_p11, %p9073_p5  ;;  %p8893_p2 = por %p8892_p1, %p8891_p0 }
 0xa05   : > { %7540 = vmatpush.msra.mxu1 %v7108_v31  ;;  %7560 = vmatpush.msra.mxu2 %v7140_v30  ;;  %v7276_v18 = vld [vmem:[%s15014_s9 + $0xed0] sm:$0xff]  ;;  %v7210_v31 = vld [vmem:[%s15014_s9 + $0xcc0] sm:$0xff] }
 0xa06   : > { %7580 = vmatpush.msra.mxu3 %v7172_v22  ;;  %7521 = vmatpush.msra.mxu0 %v7074_v42  ;;  %v7308_v54 = vld [vmem:[%s15014_s9 + $0xfd0] sm:$0xff]  ;;  %v7274_v30 = vld [vmem:[%s15014_s9 + $0xec0] sm:$0xff]  ;;  %p8889_p13 = pneg %p8888_p12 }
 0xa07   : > { %7541 = vmatpush.msra.mxu1 %v7106_v27  ;;  %7561 = vmatpush.msra.mxu2 %v7138_v2  ;;  %v7306_v22 = vld [vmem:[%s15014_s9 + $0xfc0] sm:$0xff]  ;;  %v7208_v42 = vld [vmem:[%s15014_s9 + $0xcb0] sm:$0xff] }
 0xa08   : > { %7581 = vmatpush.msra.mxu3 %v7170_v59  ;;  %7522 = vmatpush.msra.mxu0 %v7072_v48  ;;  %v7240_v27 = vld [vmem:[%s15014_s9 + $0xdb0] sm:$0xff]  ;;  %v7206_v48 = vld [vmem:[%s15014_s9 + $0xca0] sm:$0xff]  ;;  %p8894_p3 = pnand %p8893_p2, %p8889_p13 }
 0xa09   : > { %7542 = vmatpush.msra.mxu1 %v7104_v28  ;;  %7562 = vmatpush.msra.mxu2 %v7136_v45  ;;  %v7272_v2 = vld [vmem:[%s15014_s9 + $0xeb0] sm:$0xff]  ;;  %v7238_v28 = vld [vmem:[%s15014_s9 + $0xda0] sm:$0xff] }
 0xa0a   : > { %7582 = vmatpush.msra.mxu3 %v7168_v58  ;;  %7523 = vmatpush.msra.mxu0 %v7070_v21  ;;  %v7304_v59 = vld [vmem:[%s15014_s9 + $0xfb0] sm:$0xff]  ;;  %v7270_v45 = vld [vmem:[%s15014_s9 + $0xea0] sm:$0xff] }
 0xa0b   : > { %7543 = vmatpush.msra.mxu1 %v7102_v3  ;;  %7563 = vmatpush.msra.mxu2 %v7134_v43  ;;  %v7302_v58 = vld [vmem:[%s15014_s9 + $0xfa0] sm:$0xff]  ;;  %v7204_v21 = vld [vmem:[%s15014_s9 + $0xc90] sm:$0xff] }
 0xa0c   : > { %7583 = vmatpush.msra.mxu3 %v7166_v24  ;;  %7524 = vmatpush.msra.mxu0 %v7068_v39  ;;  %v7236_v3 = vld [vmem:[%s15014_s9 + $0xd90] sm:$0xff]  ;;  %v7202_v39 = vld [vmem:[%s15014_s9 + $0xc80] sm:$0xff] }
 0xa0d   : > { %7544 = vmatpush.msra.mxu1 %v7100_v57  ;;  %7564 = vmatpush.msra.mxu2 %v7132_v15  ;;  %v7268_v43 = vld [vmem:[%s15014_s9 + $0xe90] sm:$0xff]  ;;  %v7234_v57 = vld [vmem:[%s15014_s9 + $0xd80] sm:$0xff] }
 0xa0e   : > { %7584 = vmatpush.msra.mxu3 %v7164_v14  ;;  %7525 = vmatpush.msra.mxu0 %v7066_v35  ;;  %v7300_v24 = vld [vmem:[%s15014_s9 + $0xf90] sm:$0xff]  ;;  %v7266_v15 = vld [vmem:[%s15014_s9 + $0xe80] sm:$0xff] }
 0xa0f   : > { %7545 = vmatpush.msra.mxu1 %v7098_v26  ;;  %7565 = vmatpush.msra.mxu2 %v7130_v10  ;;  %v7298_v14 = vld [vmem:[%s15014_s9 + $0xf80] sm:$0xff]  ;;  %v7200_v35 = vld [vmem:[%s15014_s9 + $0xc70] sm:$0xff] }
 0xa10   : > { %7585 = vmatpush.msra.mxu3 %v7162_v63  ;;  %7526 = vmatpush.msra.mxu0 %v7064_v47  ;;  %v7232_v26 = vld [vmem:[%s15014_s9 + $0xd70] sm:$0xff]  ;;  %v7198_v47 = vld [vmem:[%s15014_s9 + $0xc60] sm:$0xff] }
 0xa11   : > { %v6740_v16 = vpop.permute.xlu0 %6739  ;;  %7546 = vmatpush.msra.mxu1 %v7096_v50  ;;  %7566 = vmatpush.msra.mxu2 %v7128_v62  ;;  %v7264_v10 = vld [vmem:[%s15014_s9 + $0xe70] sm:$0xff]  ;;  %v7230_v50 = vld [vmem:[%s15014_s9 + $0xd60] sm:$0xff] }
 0xa12   : > { %6742 = vst.msk [vmem:[#allocation6 + $0xa] sm:$0x1] %vm13135_vm6, %v6740_v16  ;;  %7586 = vmatpush.msra.mxu3 %v7160_v5  ;;  %7527 = vmatpush.msra.mxu0 %v7062_v33  ;;  %v7242_v16 = vld [vmem:[%s15014_s9 + $0xdc0] sm:$0xff]  ;;  %v7296_v63 = vld [vmem:[%s15014_s9 + $0xf70] sm:$0xff] }
 0xa13   : > { %7547 = vmatpush.msra.mxu1 %v7094_v12  ;;  %7567 = vmatpush.msra.mxu2 %v7126_v1  ;;  %v7262_v62 = vld [vmem:[%s15014_s9 + $0xe60] sm:$0xff]  ;;  %v7196_v33 = vld [vmem:[%s15014_s9 + $0xc50] sm:$0xff] }
 0xa14   : > { %7587 = vmatpush.msra.mxu3 %v7158_v53  ;;  %7528 = vmatpush.msra.mxu0 %v7060_v9  ;;  %v7294_v5 = vld [vmem:[%s15014_s9 + $0xf60] sm:$0xff]  ;;  %v7228_v12 = vld [vmem:[%s15014_s9 + $0xd50] sm:$0xff] }
 0xa15   : > { %7548 = vmatpush.msra.mxu1 %v7092_v29  ;;  %7568 = vmatpush.msra.mxu2 %v7124_v7  ;;  %v7260_v1 = vld [vmem:[%s15014_s9 + $0xe50] sm:$0xff]  ;;  %v7194_v9 = vld [vmem:[%s15014_s9 + $0xc40] sm:$0xff] }
 0xa16   : > { %7588 = vmatpush.msra.mxu3 %v7156_v51  ;;  %7529 = vmatpush.msra.mxu0 %v7058_v25  ;;  %v7292_v53 = vld [vmem:[%s15014_s9 + $0xf50] sm:$0xff]  ;;  %v7226_v29 = vld [vmem:[%s15014_s9 + $0xd40] sm:$0xff] }
 0xa17   : > { %7549 = vmatpush.msra.mxu1 %v7090_v60  ;;  %7569 = vmatpush.msra.mxu2 %v7122_v38  ;;  %v7258_v7 = vld [vmem:[%s15014_s9 + $0xe40] sm:$0xff]  ;;  %v7224_v25 = vld [vmem:[%s15014_s9 + $0xd30] sm:$0xff] }
 0xa18   : > { %7589 = vmatpush.msra.mxu3 %v7154_v56  ;;  %7594 = vmatpush.msrb.mxu0 %v7216_v11  ;;  %v7290_v51 = vld [vmem:[%s15014_s9 + $0xf40] sm:$0xff]  ;;  %v7256_v60 = vld [vmem:[%s15014_s9 + $0xe30] sm:$0xff] }
 0xa19   : > { %7614 = vmatpush.msrb.mxu1 %v7248_v19  ;;  %7634 = vmatpush.msrb.mxu2 %v7280_v0  ;;  %v7288_v38 = vld [vmem:[%s15014_s9 + $0xf30] sm:$0xff]  ;;  %v7190_v56 = vld [vmem:[%s15014_s9 + $0xc20] sm:$0xff] }
 0xa1a   : > { %7654 = vmatpush.msrb.mxu3 %v7312_v4  ;;  %7595 = vmatpush.msrb.mxu0 %v7214_v32  ;;  %v7222_v11 = vld [vmem:[%s15014_s9 + $0xd20] sm:$0xff]  ;;  %v7188_v0 = vld [vmem:[%s15014_s9 + $0xc10] sm:$0xff] }
 0xa1b   : > { %7615 = vmatpush.msrb.mxu1 %v7246_v49  ;;  %7635 = vmatpush.msrb.mxu2 %v7278_v55  ;;  %v7254_v19 = vld [vmem:[%s15014_s9 + $0xe20] sm:$0xff]  ;;  %v7220_v4 = vld [vmem:[%s15014_s9 + $0xd10] sm:$0xff] }
 0xa1c   : > { %7655 = vmatpush.msrb.mxu3 %v7310_v46  ;;  %7596 = vmatpush.msrb.mxu0 %v7212_v61  ;;  %v7252_v32 = vld [vmem:[%s15014_s9 + $0xe10] sm:$0xff]  ;;  %v7186_v55 = vld [vmem:[%s15014_s9 + $0xc00] sm:$0xff] }
 0xa1d   : > { %7616 = vmatpush.msrb.mxu1 %v7244_v6  ;;  %7636 = vmatpush.msrb.mxu2 %v7276_v18  ;;  %v7284_v49 = vld [vmem:[%s15014_s9 + $0xf10] sm:$0xff]  ;;  %v7218_v46 = vld [vmem:[%s15014_s9 + $0xd00] sm:$0xff] }
 0xa1e   : > { %7656 = vmatpush.msrb.mxu3 %v7308_v54  ;;  %7597 = vmatpush.msrb.mxu0 %v7210_v31  ;;  %v7250_v61 = vld [vmem:[%s15014_s9 + $0xe00] sm:$0xff] }
 0xa1f   : > { %7617 = vmatpush.msrb.mxu1 %v7242_v16  ;;  %7637 = vmatpush.msrb.mxu2 %v7274_v30  ;;  %v7282_v6 = vld [vmem:[%s15014_s9 + $0xf00] sm:$0xff] }
 0xa20   : > { %7657 = vmatpush.msrb.mxu3 %v7306_v22  ;;  %7598 = vmatpush.msrb.mxu0 %v7208_v42 }
 0xa21   : > { %7618 = vmatpush.msrb.mxu1 %v7240_v27  ;;  %7638 = vmatpush.msrb.mxu2 %v7272_v2  ;;  %v6833_v2 = vld [vmem:[%s15014_s9 + $0xf8] sm:$0xff] }
 0xa22   : > { %v6752_v37 = vpop.permute.xlu1 %6751  ;;  %7658 = vmatpush.msrb.mxu3 %v7304_v59  ;;  %7599 = vmatpush.msrb.mxu0 %v7206_v48  ;;  %v6865_v59 = vld [vmem:[%s15014_s9 + $0x1f8] sm:$0xff] }
 0xa23   : > { %6754 = vst.msk [vmem:[#allocation6 + $0xb] sm:$0x1] %vm13135_vm6, %v6752_v37  ;;  %7619 = vmatpush.msrb.mxu1 %v7238_v28  ;;  %7639 = vmatpush.msrb.mxu2 %v7270_v45  ;;  %v7192_v37 = vld [vmem:[%s15014_s9 + $0xc30] sm:$0xff]  ;;  %v6929_v48 = vld [vmem:[%s15014_s9 + $0x3f8] sm:$0xff]  ;;  %v6831_v28 = vld [vmem:[%s15014_s9 + $0xe8] sm:$0xff] }
 0xa24   : > { %7659 = vmatpush.msrb.mxu3 %v7302_v58  ;;  %7600 = vmatpush.msrb.mxu0 %v7204_v21  ;;  %v6863_v45 = vld [vmem:[%s15014_s9 + $0x1e8] sm:$0xff] }
 0xa25   : > { %v6761_v13 = vpop.permute.xlu2 %6760  ;;  %7620 = vmatpush.msrb.mxu1 %v7236_v3  ;;  %7640 = vmatpush.msrb.mxu2 %v7268_v43  ;;  %v6895_v58 = vld [vmem:[%s15014_s9 + $0x2e8] sm:$0xff]  ;;  %v6829_v3 = vld [vmem:[%s15014_s9 + $0xd8] sm:$0xff] }
 0xa26   : > { %6763 = vst.msk [vmem:[#allocation6 + $0xc] sm:$0x1] %vm13135_vm6, %v6761_v13  ;;  %7660 = vmatpush.msrb.mxu3 %v7300_v24  ;;  %7601 = vmatpush.msrb.mxu0 %v7202_v39  ;;  %v7286_v13 = vld [vmem:[%s15014_s9 + $0xf20] sm:$0xff]  ;;  %v6927_v21 = vld [vmem:[%s15014_s9 + $0x3e8] sm:$0xff]  ;;  %v6861_v43 = vld [vmem:[%s15014_s9 + $0x1d8] sm:$0xff] }
 0xa27   : > { %7621 = vmatpush.msrb.mxu1 %v7234_v57  ;;  %7641 = vmatpush.msrb.mxu2 %v7266_v15  ;;  %v6893_v24 = vld [vmem:[%s15014_s9 + $0x2d8] sm:$0xff]  ;;  %v6827_v57 = vld [vmem:[%s15014_s9 + $0xc8] sm:$0xff] }
 0xa28   : > { %7661 = vmatpush.msrb.mxu3 %v7298_v14  ;;  %7602 = vmatpush.msrb.mxu0 %v7200_v35  ;;  %v6925_v39 = vld [vmem:[%s15014_s9 + $0x3d8] sm:$0xff]  ;;  %v6859_v15 = vld [vmem:[%s15014_s9 + $0x1c8] sm:$0xff] }
 0xa29   : > { %7622 = vmatpush.msrb.mxu1 %v7232_v26  ;;  %7642 = vmatpush.msrb.mxu2 %v7264_v10  ;;  %v6891_v14 = vld [vmem:[%s15014_s9 + $0x2c8] sm:$0xff] }
 0xa2a   : > { %7662 = vmatpush.msrb.mxu3 %v7296_v63  ;;  %7603 = vmatpush.msrb.mxu0 %v7198_v47  ;;  %v6923_v35 = vld [vmem:[%s15014_s9 + $0x3c8] sm:$0xff] }
 0xa2b   : > { %7623 = vmatpush.msrb.mxu1 %v7230_v50  ;;  %7643 = vmatpush.msrb.mxu2 %v7262_v62  ;;  %v6825_v50 = vld [vmem:[%s15014_s9 + $0xb8] sm:$0xff] }
 0xa2c   : > { %7663 = vmatpush.msrb.mxu3 %v7294_v5  ;;  %7604 = vmatpush.msrb.mxu0 %v7196_v33  ;;  %v6857_v62 = vld [vmem:[%s15014_s9 + $0x1b8] sm:$0xff] }
 0xa2d   : > { %7624 = vmatpush.msrb.mxu1 %v7228_v12  ;;  %7644 = vmatpush.msrb.mxu2 %v7260_v1  ;;  %v6889_v5 = vld [vmem:[%s15014_s9 + $0x2b8] sm:$0xff]  ;;  %v6823_v12 = vld [vmem:[%s15014_s9 + $0xa8] sm:$0xff] }
 0xa2e   : > { %7664 = vmatpush.msrb.mxu3 %v7292_v53  ;;  %7605 = vmatpush.msrb.mxu0 %v7194_v9  ;;  %v6921_v33 = vld [vmem:[%s15014_s9 + $0x3b8] sm:$0xff]  ;;  %v6855_v1 = vld [vmem:[%s15014_s9 + $0x1a8] sm:$0xff] }
 0xa2f   : > { %7625 = vmatpush.msrb.mxu1 %v7226_v29  ;;  %7645 = vmatpush.msrb.mxu2 %v7258_v7  ;;  %v6887_v53 = vld [vmem:[%s15014_s9 + $0x2a8] sm:$0xff]  ;;  %v6821_v29 = vld [vmem:[%s15014_s9 + $0x98] sm:$0xff] }
 0xa30   : > { %7665 = vmatpush.msrb.mxu3 %v7290_v51  ;;  %7606 = vmatpush.msrb.mxu0 %v7192_v37  ;;  %v6919_v9 = vld [vmem:[%s15014_s9 + $0x3a8] sm:$0xff]  ;;  %v6853_v7 = vld [vmem:[%s15014_s9 + $0x198] sm:$0xff] }
 0xa31   : > { %7626 = vmatpush.msrb.mxu1 %v7224_v25  ;;  %7646 = vmatpush.msrb.mxu2 %v7256_v60  ;;  %v6885_v51 = vld [vmem:[%s15014_s9 + $0x298] sm:$0xff]  ;;  %v6819_v25 = vld [vmem:[%s15014_s9 + $0x88] sm:$0xff] }
 0xa32   : > { %7666 = vmatpush.msrb.mxu3 %v7288_v38  ;;  %7607 = vmatpush.msrb.mxu0 %v7190_v56  ;;  %v6917_v37 = vld [vmem:[%s15014_s9 + $0x398] sm:$0xff]  ;;  %v6851_v60 = vld [vmem:[%s15014_s9 + $0x188] sm:$0xff] }
 0xa33   : > { %7627 = vmatpush.msrb.mxu1 %v7222_v11  ;;  %7647 = vmatpush.msrb.mxu2 %v7254_v19  ;;  %v6883_v38 = vld [vmem:[%s15014_s9 + $0x288] sm:$0xff]  ;;  %v6817_v11 = vld [vmem:[%s15014_s9 + $0x78] sm:$0xff] }
 0xa34   : > { %7667 = vmatpush.msrb.mxu3 %v7286_v13  ;;  %7608 = vmatpush.msrb.mxu0 %v7188_v0  ;;  %v6915_v56 = vld [vmem:[%s15014_s9 + $0x388] sm:$0xff]  ;;  %v6849_v19 = vld [vmem:[%s15014_s9 + $0x178] sm:$0xff] }
 0xa35   : > { %7628 = vmatpush.msrb.mxu1 %v7220_v4  ;;  %7648 = vmatpush.msrb.mxu2 %v7252_v32  ;;  %v6881_v13 = vld [vmem:[%s15014_s9 + $0x278] sm:$0xff]  ;;  %v6815_v4 = vld [vmem:[%s15014_s9 + $0x68] sm:$0xff] }
 0xa36   : > { %7668 = vmatpush.msrb.mxu3 %v7284_v49  ;;  %7609 = vmatpush.msrb.mxu0 %v7186_v55  ;;  %v6913_v0 = vld [vmem:[%s15014_s9 + $0x378] sm:$0xff]  ;;  %v6847_v32 = vld [vmem:[%s15014_s9 + $0x168] sm:$0xff] }
 0xa37   : > { %7629 = vmatpush.msrb.mxu1 %v7218_v46  ;;  %7649 = vmatpush.msrb.mxu2 %v7250_v61  ;;  %v6879_v49 = vld [vmem:[%s15014_s9 + $0x268] sm:$0xff]  ;;  %v6813_v46 = vld [vmem:[%s15014_s9 + $0x58] sm:$0xff] }
 0xa38   : > { %7669 = vmatpush.msrb.mxu3 %v7282_v6  ;;  %v6911_v55 = vld [vmem:[%s15014_s9 + $0x368] sm:$0xff]  ;;  %v6845_v61 = vld [vmem:[%s15014_s9 + $0x158] sm:$0xff] }
 0xa39   : > { %v6877_v6 = vld [vmem:[%s15014_s9 + $0x258] sm:$0xff] }
 0xa4e   : > { %v6773_v18 = vpop.permute.xlu0 %6772 }
 0xa4f   : > { %6775 = vst.msk [vmem:[#allocation6 + $0xd] sm:$0x1] %vm13135_vm6, %v6773_v18  ;;  %v6909_v18 = vld [vmem:[%s15014_s9 + $0x358] sm:$0xff] }
 0xa58   : > { %v6797_v54 = vpop.permute.xlu2 %6796 }
 0xa59   : > { %6799 = vst.msk [vmem:[#allocation6 + $0xf] sm:$0x1] %vm13135_vm6, %v6797_v54  ;;  %v6811_v54 = vld [vmem:[%s15014_s9 + $0x48] sm:$0xff] }
 0xa5f   : > { %v6785_v31 = vpop.permute.xlu1 %6784 }
 0xa60   : > { %6787 = vst.msk [vmem:[#allocation6 + $0xe] sm:$0x1] %vm13135_vm6, %v6785_v31  ;;  %v6843_v31 = vld [vmem:[%s15014_s9 + $0x148] sm:$0xff] }
 0xa67   : > { %v14027_v16 = vld [vmem:[#allocation6 + $0x8] sm:$0xff] }
 0xa68   : > { %v7325_v30 = vperm.slane %v14027_v16, 0  ;;  %v7326_v22 = vperm.slane %v14027_v16, 1  ;;  %v7327_v42 = vperm.slane %v14027_v16, 2  ;;  %v7328_v27 = vperm.slane %v14027_v16, 3 }
 0xa69   : > { %v7329_v26 = vperm.slane %v14027_v16, 4  ;;  %v7330_v10 = vperm.slane %v14027_v16, 5  ;;  %v7331_v63 = vperm.slane %v14027_v16, 6  ;;  %v7332_v47 = vperm.slane %v14027_v16, 7  ;;  %v8025_v16 = vld [vmem:[%s15016_s11 + $0x58] sm:$0xff] }
 0xa6a   : > { %7530 = vmatmul.f32.vlgmr.msra.gmra.mxu0 %v7325_v30  ;;  %7550 = vmatmul.f32.vlgmr.msra.gmra.mxu1 %v7326_v22 }
 0xa6b   : > { %7570 = vmatmul.f32.vlgmr.msra.gmra.mxu2 %v7327_v42  ;;  %7590 = vmatmul.f32.vlgmr.msra.gmra.mxu3 %v7328_v27 }
 0xa6c   : > { %7674 = vmatpush.msra.mxu0 %v6833_v2  ;;  %7694 = vmatpush.msra.mxu1 %v6865_v59  ;;  %v6875_v2 = vld [vmem:[%s15014_s9 + $0x248] sm:$0xff] }
 0xa6d   : > { %7714 = vmatpush.msra.mxu2 %v6897_v41  ;;  %7734 = vmatpush.msra.mxu3 %v6929_v48  ;;  %v6907_v59 = vld [vmem:[%s15014_s9 + $0x348] sm:$0xff]  ;;  %v6809_v41 = vld [vmem:[%s15014_s9 + $0x38] sm:$0xff] }
 0xa6e   : > { %7675 = vmatpush.msra.mxu0 %v6831_v28  ;;  %7695 = vmatpush.msra.mxu1 %v6863_v45  ;;  %v6841_v48 = vld [vmem:[%s15014_s9 + $0x138] sm:$0xff] }
 0xa6f   : > { %7715 = vmatpush.msra.mxu2 %v6895_v58  ;;  %7735 = vmatpush.msra.mxu3 %v6927_v21  ;;  %v6873_v28 = vld [vmem:[%s15014_s9 + $0x238] sm:$0xff]  ;;  %v6807_v58 = vld [vmem:[%s15014_s9 + $0x28] sm:$0xff] }
 0xa70   : > { %7676 = vmatpush.msra.mxu0 %v6829_v3  ;;  %7696 = vmatpush.msra.mxu1 %v6861_v43  ;;  %v6905_v45 = vld [vmem:[%s15014_s9 + $0x338] sm:$0xff]  ;;  %v6839_v21 = vld [vmem:[%s15014_s9 + $0x128] sm:$0xff] }
 0xa71   : > { %7716 = vmatpush.msra.mxu2 %v6893_v24  ;;  %7736 = vmatpush.msra.mxu3 %v6925_v39  ;;  %v6871_v3 = vld [vmem:[%s15014_s9 + $0x228] sm:$0xff]  ;;  %v6805_v24 = vld [vmem:[%s15014_s9 + $0x18] sm:$0xff] }
 0xa72   : > { %7677 = vmatpush.msra.mxu0 %v6827_v57  ;;  %7697 = vmatpush.msra.mxu1 %v6859_v15  ;;  %v6903_v43 = vld [vmem:[%s15014_s9 + $0x328] sm:$0xff]  ;;  %v6837_v39 = vld [vmem:[%s15014_s9 + $0x118] sm:$0xff] }
 0xa73   : > { %7717 = vmatpush.msra.mxu2 %v6891_v14  ;;  %7737 = vmatpush.msra.mxu3 %v6923_v35  ;;  %v6869_v57 = vld [vmem:[%s15014_s9 + $0x218] sm:$0xff]  ;;  %v6803_v14 = vld [vmem:[%s15014_s9 + $0x8] sm:$0xff] }
 0xa74   : > { %7610 = vmatmul.f32.vlgmr.msrb.gmra.mxu0 %v7329_v26  ;;  %7630 = vmatmul.f32.vlgmr.msrb.gmra.mxu1 %v7330_v10  ;;  %v6901_v15 = vld [vmem:[%s15014_s9 + $0x318] sm:$0xff]  ;;  %v6835_v35 = vld [vmem:[%s15014_s9 + $0x108] sm:$0xff] }
 0xa75   : > { %7650 = vmatmul.f32.vlgmr.msrb.gmra.mxu2 %v7331_v63  ;;  %7670 = vmatmul.f32.vlgmr.msrb.gmra.mxu3 %v7332_v47 }
 0xa76   : > { %7678 = vmatpush.msra.mxu0 %v6825_v50  ;;  %7698 = vmatpush.msra.mxu1 %v6857_v62  ;;  %v6867_v50 = vld [vmem:[%s15014_s9 + $0x208] sm:$0xff] }
 0xa77   : > { %7718 = vmatpush.msra.mxu2 %v6889_v5  ;;  %7738 = vmatpush.msra.mxu3 %v6921_v33  ;;  %v6899_v62 = vld [vmem:[%s15014_s9 + $0x308] sm:$0xff]  ;;  %v6961_v5 = vld [vmem:[%s15014_s9 + $0x4f8] sm:$0xff] }
 0xa78   : > { %7679 = vmatpush.msra.mxu0 %v6823_v12  ;;  %7699 = vmatpush.msra.mxu1 %v6855_v1  ;;  %v6993_v33 = vld [vmem:[%s15014_s9 + $0x5f8] sm:$0xff] }
 0xa79   : > { %7719 = vmatpush.msra.mxu2 %v6887_v53  ;;  %7739 = vmatpush.msra.mxu3 %v6919_v9  ;;  %v7025_v12 = vld [vmem:[%s15014_s9 + $0x6f8] sm:$0xff]  ;;  %v7023_v53 = vld [vmem:[%s15014_s9 + $0x6e8] sm:$0xff] }
 0xa7a   : > { %7680 = vmatpush.msra.mxu0 %v6821_v29  ;;  %7700 = vmatpush.msra.mxu1 %v6853_v7  ;;  %v7057_v1 = vld [vmem:[%s15014_s9 + $0x7f8] sm:$0xff] }
 0xa7b   : > { %7720 = vmatpush.msra.mxu2 %v6885_v51  ;;  %7740 = vmatpush.msra.mxu3 %v6917_v37  ;;  %v6989_v9 = vld [vmem:[%s15014_s9 + $0x5d8] sm:$0xff]  ;;  %v6955_v51 = vld [vmem:[%s15014_s9 + $0x4c8] sm:$0xff] }
 0xa7c   : > { %7681 = vmatpush.msra.mxu0 %v6819_v25  ;;  %7701 = vmatpush.msra.mxu1 %v6851_v60  ;;  %v7021_v29 = vld [vmem:[%s15014_s9 + $0x6d8] sm:$0xff]  ;;  %v6987_v37 = vld [vmem:[%s15014_s9 + $0x5c8] sm:$0xff] }
 0xa7d   : > { %7721 = vmatpush.msra.mxu2 %v6883_v38  ;;  %7741 = vmatpush.msra.mxu3 %v6915_v56  ;;  %v7053_v7 = vld [vmem:[%s15014_s9 + $0x7d8] sm:$0xff]  ;;  %v7019_v25 = vld [vmem:[%s15014_s9 + $0x6c8] sm:$0xff] }
 0xa7e   : > { %7682 = vmatpush.msra.mxu0 %v6817_v11  ;;  %7702 = vmatpush.msra.mxu1 %v6849_v19  ;;  %v7051_v60 = vld [vmem:[%s15014_s9 + $0x7c8] sm:$0xff]  ;;  %v6953_v38 = vld [vmem:[%s15014_s9 + $0x4b8] sm:$0xff] }
 0xa7f   : > { %7722 = vmatpush.msra.mxu2 %v6881_v13  ;;  %7742 = vmatpush.msra.mxu3 %v6913_v0  ;;  %v6985_v56 = vld [vmem:[%s15014_s9 + $0x5b8] sm:$0xff]  ;;  %v6951_v13 = vld [vmem:[%s15014_s9 + $0x4a8] sm:$0xff] }
 0xa80   : > { %7683 = vmatpush.msra.mxu0 %v6815_v4  ;;  %7703 = vmatpush.msra.mxu1 %v6847_v32  ;;  %v7017_v11 = vld [vmem:[%s15014_s9 + $0x6b8] sm:$0xff]  ;;  %v6983_v0 = vld [vmem:[%s15014_s9 + $0x5a8] sm:$0xff] }
 0xa81   : > { %7723 = vmatpush.msra.mxu2 %v6879_v49  ;;  %7743 = vmatpush.msra.mxu3 %v6911_v55  ;;  %v7049_v19 = vld [vmem:[%s15014_s9 + $0x7b8] sm:$0xff]  ;;  %v7015_v4 = vld [vmem:[%s15014_s9 + $0x6a8] sm:$0xff] }
 0xa82   : > { %7684 = vmatpush.msra.mxu0 %v6813_v46  ;;  %7704 = vmatpush.msra.mxu1 %v6845_v61  ;;  %v7047_v32 = vld [vmem:[%s15014_s9 + $0x7a8] sm:$0xff]  ;;  %v6949_v49 = vld [vmem:[%s15014_s9 + $0x498] sm:$0xff] }
 0xa83   : > { %7724 = vmatpush.msra.mxu2 %v6877_v6  ;;  %7744 = vmatpush.msra.mxu3 %v6909_v18  ;;  %v6981_v55 = vld [vmem:[%s15014_s9 + $0x598] sm:$0xff]  ;;  %v6947_v6 = vld [vmem:[%s15014_s9 + $0x488] sm:$0xff] }
 0xa84   : > { %7685 = vmatpush.msra.mxu0 %v6811_v54  ;;  %7705 = vmatpush.msra.mxu1 %v6843_v31  ;;  %v7013_v46 = vld [vmem:[%s15014_s9 + $0x698] sm:$0xff]  ;;  %v6979_v18 = vld [vmem:[%s15014_s9 + $0x588] sm:$0xff] }
 0xa85   : > { %7725 = vmatpush.msra.mxu2 %v6875_v2  ;;  %7745 = vmatpush.msra.mxu3 %v6907_v59  ;;  %v7045_v61 = vld [vmem:[%s15014_s9 + $0x798] sm:$0xff]  ;;  %v7011_v54 = vld [vmem:[%s15014_s9 + $0x688] sm:$0xff] }
 0xa86   : > { %7686 = vmatpush.msra.mxu0 %v6809_v41  ;;  %7706 = vmatpush.msra.mxu1 %v6841_v48  ;;  %v7043_v31 = vld [vmem:[%s15014_s9 + $0x788] sm:$0xff]  ;;  %v6945_v2 = vld [vmem:[%s15014_s9 + $0x478] sm:$0xff] }
 0xa87   : > { %7726 = vmatpush.msra.mxu2 %v6873_v28  ;;  %7746 = vmatpush.msra.mxu3 %v6905_v45  ;;  %v6977_v59 = vld [vmem:[%s15014_s9 + $0x578] sm:$0xff]  ;;  %v6943_v28 = vld [vmem:[%s15014_s9 + $0x468] sm:$0xff] }
 0xa88   : > { %7687 = vmatpush.msra.mxu0 %v6807_v58  ;;  %7707 = vmatpush.msra.mxu1 %v6839_v21  ;;  %v7009_v41 = vld [vmem:[%s15014_s9 + $0x678] sm:$0xff]  ;;  %v6975_v45 = vld [vmem:[%s15014_s9 + $0x568] sm:$0xff] }
 0xa89   : > { %7727 = vmatpush.msra.mxu2 %v6871_v3  ;;  %7747 = vmatpush.msra.mxu3 %v6903_v43  ;;  %v7041_v48 = vld [vmem:[%s15014_s9 + $0x778] sm:$0xff]  ;;  %v7007_v58 = vld [vmem:[%s15014_s9 + $0x668] sm:$0xff] }
 0xa8a   : > { %7688 = vmatpush.msra.mxu0 %v6805_v24  ;;  %7708 = vmatpush.msra.mxu1 %v6837_v39  ;;  %v7039_v21 = vld [vmem:[%s15014_s9 + $0x768] sm:$0xff]  ;;  %v6941_v3 = vld [vmem:[%s15014_s9 + $0x458] sm:$0xff] }
 0xa8b   : > { %7728 = vmatpush.msra.mxu2 %v6869_v57  ;;  %7748 = vmatpush.msra.mxu3 %v6901_v15  ;;  %v6973_v43 = vld [vmem:[%s15014_s9 + $0x558] sm:$0xff]  ;;  %v6939_v57 = vld [vmem:[%s15014_s9 + $0x448] sm:$0xff] }
 0xa8c   : > { %7689 = vmatpush.msra.mxu0 %v6803_v14  ;;  %7709 = vmatpush.msra.mxu1 %v6835_v35  ;;  %v7005_v24 = vld [vmem:[%s15014_s9 + $0x658] sm:$0xff]  ;;  %v6971_v15 = vld [vmem:[%s15014_s9 + $0x548] sm:$0xff] }
 0xa8d   : > { %7729 = vmatpush.msra.mxu2 %v6867_v50  ;;  %7749 = vmatpush.msra.mxu3 %v6899_v62  ;;  %v7037_v39 = vld [vmem:[%s15014_s9 + $0x758] sm:$0xff]  ;;  %v7003_v14 = vld [vmem:[%s15014_s9 + $0x648] sm:$0xff] }
 0xa8e   : > { %7690 = vmatmul.f32.vlgmr.msra.gmra.mxu0 %v7317_v23  ;;  %7710 = vmatmul.f32.vlgmr.msra.gmra.mxu1 %v7318_v20  ;;  %v6959_v23 = vld [vmem:[%s15014_s9 + $0x4e8] sm:$0xff]  ;;  %v6937_v50 = vld [vmem:[%s15014_s9 + $0x438] sm:$0xff] }
 0xa8f   : > { %7730 = vmatmul.f32.vlgmr.msra.gmra.mxu2 %v7319_v44  ;;  %7750 = vmatmul.f32.vlgmr.msra.gmra.mxu3 %v7320_v8  ;;  %v6991_v20 = vld [vmem:[%s15014_s9 + $0x5e8] sm:$0xff]  ;;  %v6957_v8 = vld [vmem:[%s15014_s9 + $0x4d8] sm:$0xff] }
 0xa90   : > { %7754 = vmatpush.msrb.mxu0 %v6961_v5  ;;  %7774 = vmatpush.msrb.mxu1 %v6993_v33  ;;  %v7055_v44 = vld [vmem:[%s15014_s9 + $0x7e8] sm:$0xff]  ;;  %v6969_v62 = vld [vmem:[%s15014_s9 + $0x538] sm:$0xff] }
 0xa91   : > { %7794 = vmatpush.msrb.mxu2 %v7025_v12  ;;  %7814 = vmatpush.msrb.mxu3 %v7057_v1  ;;  %v7035_v35 = vld [vmem:[%s15014_s9 + $0x748] sm:$0xff]  ;;  %v7001_v5 = vld [vmem:[%s15014_s9 + $0x638] sm:$0xff] }
 0xa92   : > { %7755 = vmatpush.msrb.mxu0 %v6959_v23  ;;  %7775 = vmatpush.msrb.mxu1 %v6991_v20  ;;  %v7033_v33 = vld [vmem:[%s15014_s9 + $0x738] sm:$0xff]  ;;  %v6935_v12 = vld [vmem:[%s15014_s9 + $0x428] sm:$0xff] }
 0xa93   : > { %7795 = vmatpush.msrb.mxu2 %v7023_v53  ;;  %7815 = vmatpush.msrb.mxu3 %v7055_v44  ;;  %v6967_v1 = vld [vmem:[%s15014_s9 + $0x528] sm:$0xff]  ;;  %v6933_v53 = vld [vmem:[%s15014_s9 + $0x418] sm:$0xff] }
 0xa94   : > { %7756 = vmatpush.msrb.mxu0 %v6957_v8  ;;  %7776 = vmatpush.msrb.mxu1 %v6989_v9  ;;  %v6999_v23 = vld [vmem:[%s15014_s9 + $0x628] sm:$0xff]  ;;  %v6965_v44 = vld [vmem:[%s15014_s9 + $0x518] sm:$0xff] }
 0xa95   : > { %7796 = vmatpush.msrb.mxu2 %v7021_v29  ;;  %7816 = vmatpush.msrb.mxu3 %v7053_v7  ;;  %v7031_v20 = vld [vmem:[%s15014_s9 + $0x728] sm:$0xff]  ;;  %v6997_v8 = vld [vmem:[%s15014_s9 + $0x618] sm:$0xff] }
 0xa96   : > { %7757 = vmatpush.msrb.mxu0 %v6955_v51  ;;  %7777 = vmatpush.msrb.mxu1 %v6987_v37  ;;  %v7029_v9 = vld [vmem:[%s15014_s9 + $0x718] sm:$0xff]  ;;  %v6931_v29 = vld [vmem:[%s15014_s9 + $0x408] sm:$0xff] }
 0xa97   : > { %7797 = vmatpush.msrb.mxu2 %v7019_v25  ;;  %7817 = vmatpush.msrb.mxu3 %v7051_v60  ;;  %v6963_v7 = vld [vmem:[%s15014_s9 + $0x508] sm:$0xff]  ;;  %v7089_v25 = vld [vmem:[%s15014_s9 + $0x8f8] sm:$0xff] }
 0xa98   : > { %7758 = vmatpush.msrb.mxu0 %v6953_v38  ;;  %7778 = vmatpush.msrb.mxu1 %v6985_v56  ;;  %v6995_v51 = vld [vmem:[%s15014_s9 + $0x608] sm:$0xff]  ;;  %v7121_v60 = vld [vmem:[%s15014_s9 + $0x9f8] sm:$0xff] }
 0xa99   : > { %7798 = vmatpush.msrb.mxu2 %v7017_v11  ;;  %7818 = vmatpush.msrb.mxu3 %v7049_v19  ;;  %v7027_v37 = vld [vmem:[%s15014_s9 + $0x708] sm:$0xff]  ;;  %v7153_v38 = vld [vmem:[%s15014_s9 + $0xaf8] sm:$0xff] }
 0xa9a   : > { %7759 = vmatpush.msrb.mxu0 %v6951_v13  ;;  %7779 = vmatpush.msrb.mxu1 %v6983_v0  ;;  %v7185_v56 = vld [vmem:[%s15014_s9 + $0xbf8] sm:$0xff]  ;;  %v7151_v11 = vld [vmem:[%s15014_s9 + $0xae8] sm:$0xff] }
 0xa9b   : > { %7799 = vmatpush.msrb.mxu2 %v7015_v4  ;;  %7819 = vmatpush.msrb.mxu3 %v7047_v32  ;;  %v7149_v19 = vld [vmem:[%s15014_s9 + $0xad8] sm:$0xff]  ;;  %v7083_v0 = vld [vmem:[%s15014_s9 + $0x8c8] sm:$0xff] }
 0xa9c   : > { %7760 = vmatpush.msrb.mxu0 %v6949_v49  ;;  %7780 = vmatpush.msrb.mxu1 %v6981_v55  ;;  %v7181_v13 = vld [vmem:[%s15014_s9 + $0xbd8] sm:$0xff]  ;;  %v7115_v4 = vld [vmem:[%s15014_s9 + $0x9c8] sm:$0xff] }
 0xa9d   : > { %7800 = vmatpush.msrb.mxu2 %v7013_v46  ;;  %7820 = vmatpush.msrb.mxu3 %v7045_v61  ;;  %v7147_v32 = vld [vmem:[%s15014_s9 + $0xac8] sm:$0xff]  ;;  %v7081_v55 = vld [vmem:[%s15014_s9 + $0x8b8] sm:$0xff] }
 0xa9e   : > { %7761 = vmatpush.msrb.mxu0 %v6947_v6  ;;  %7781 = vmatpush.msrb.mxu1 %v6979_v18  ;;  %v7179_v49 = vld [vmem:[%s15014_s9 + $0xbc8] sm:$0xff]  ;;  %v7113_v46 = vld [vmem:[%s15014_s9 + $0x9b8] sm:$0xff] }
 0xa9f   : > { %7801 = vmatpush.msrb.mxu2 %v7011_v54  ;;  %7821 = vmatpush.msrb.mxu3 %v7043_v31  ;;  %v7145_v61 = vld [vmem:[%s15014_s9 + $0xab8] sm:$0xff]  ;;  %v7079_v18 = vld [vmem:[%s15014_s9 + $0x8a8] sm:$0xff] }
 0xaa0   : > { %7762 = vmatpush.msrb.mxu0 %v6945_v2  ;;  %7782 = vmatpush.msrb.mxu1 %v6977_v59  ;;  %v7177_v6 = vld [vmem:[%s15014_s9 + $0xbb8] sm:$0xff]  ;;  %v7111_v54 = vld [vmem:[%s15014_s9 + $0x9a8] sm:$0xff] }
 0xaa1   : > { %7802 = vmatpush.msrb.mxu2 %v7009_v41  ;;  %7822 = vmatpush.msrb.mxu3 %v7041_v48  ;;  %v7143_v31 = vld [vmem:[%s15014_s9 + $0xaa8] sm:$0xff]  ;;  %v7077_v59 = vld [vmem:[%s15014_s9 + $0x898] sm:$0xff] }
 0xaa2   : > { %7763 = vmatpush.msrb.mxu0 %v6943_v28  ;;  %7783 = vmatpush.msrb.mxu1 %v6975_v45  ;;  %v7175_v2 = vld [vmem:[%s15014_s9 + $0xba8] sm:$0xff]  ;;  %v7109_v41 = vld [vmem:[%s15014_s9 + $0x998] sm:$0xff] }
 0xaa3   : > { %7803 = vmatpush.msrb.mxu2 %v7007_v58  ;;  %7823 = vmatpush.msrb.mxu3 %v7039_v21  ;;  %v7141_v48 = vld [vmem:[%s15014_s9 + $0xa98] sm:$0xff]  ;;  %v7075_v45 = vld [vmem:[%s15014_s9 + $0x888] sm:$0xff] }
 0xaa4   : > { %7764 = vmatpush.msrb.mxu0 %v6941_v3  ;;  %7784 = vmatpush.msrb.mxu1 %v6973_v43  ;;  %v7173_v28 = vld [vmem:[%s15014_s9 + $0xb98] sm:$0xff]  ;;  %v7107_v58 = vld [vmem:[%s15014_s9 + $0x988] sm:$0xff] }
 0xaa5   : > { %7804 = vmatpush.msrb.mxu2 %v7005_v24  ;;  %7824 = vmatpush.msrb.mxu3 %v7037_v39  ;;  %v7139_v21 = vld [vmem:[%s15014_s9 + $0xa88] sm:$0xff]  ;;  %v7073_v43 = vld [vmem:[%s15014_s9 + $0x878] sm:$0xff] }
 0xaa6   : > { %7765 = vmatpush.msrb.mxu0 %v6939_v57  ;;  %7785 = vmatpush.msrb.mxu1 %v6971_v15  ;;  %v7171_v3 = vld [vmem:[%s15014_s9 + $0xb88] sm:$0xff]  ;;  %v7105_v24 = vld [vmem:[%s15014_s9 + $0x978] sm:$0xff] }
 0xaa7   : > { %7805 = vmatpush.msrb.mxu2 %v7003_v14  ;;  %7825 = vmatpush.msrb.mxu3 %v7035_v35  ;;  %v7137_v39 = vld [vmem:[%s15014_s9 + $0xa78] sm:$0xff]  ;;  %v7071_v15 = vld [vmem:[%s15014_s9 + $0x868] sm:$0xff] }
 0xaa8   : > { %7766 = vmatpush.msrb.mxu0 %v6937_v50  ;;  %7786 = vmatpush.msrb.mxu1 %v6969_v62  ;;  %v7169_v57 = vld [vmem:[%s15014_s9 + $0xb78] sm:$0xff]  ;;  %v7103_v14 = vld [vmem:[%s15014_s9 + $0x968] sm:$0xff] }
 0xaa9   : > { %7806 = vmatpush.msrb.mxu2 %v7001_v5  ;;  %7826 = vmatpush.msrb.mxu3 %v7033_v33  ;;  %v7135_v35 = vld [vmem:[%s15014_s9 + $0xa68] sm:$0xff]  ;;  %v7069_v62 = vld [vmem:[%s15014_s9 + $0x858] sm:$0xff] }
 0xaaa   : > { %7767 = vmatpush.msrb.mxu0 %v6935_v12  ;;  %7787 = vmatpush.msrb.mxu1 %v6967_v1  ;;  %v7167_v50 = vld [vmem:[%s15014_s9 + $0xb68] sm:$0xff]  ;;  %v7101_v5 = vld [vmem:[%s15014_s9 + $0x958] sm:$0xff] }
 0xaab   : > { %7807 = vmatpush.msrb.mxu2 %v6999_v23  ;;  %7827 = vmatpush.msrb.mxu3 %v7031_v20  ;;  %v7133_v33 = vld [vmem:[%s15014_s9 + $0xa58] sm:$0xff]  ;;  %v7067_v1 = vld [vmem:[%s15014_s9 + $0x848] sm:$0xff] }
 0xaac   : > { %7768 = vmatpush.msrb.mxu0 %v6933_v53  ;;  %7788 = vmatpush.msrb.mxu1 %v6965_v44  ;;  %v7165_v12 = vld [vmem:[%s15014_s9 + $0xb58] sm:$0xff]  ;;  %v7099_v23 = vld [vmem:[%s15014_s9 + $0x948] sm:$0xff] }
 0xaad   : > { %7808 = vmatpush.msrb.mxu2 %v6997_v8  ;;  %7828 = vmatpush.msrb.mxu3 %v7029_v9  ;;  %v7131_v20 = vld [vmem:[%s15014_s9 + $0xa48] sm:$0xff]  ;;  %v7065_v44 = vld [vmem:[%s15014_s9 + $0x838] sm:$0xff] }
 0xaae   : > { %7769 = vmatpush.msrb.mxu0 %v6931_v29  ;;  %7789 = vmatpush.msrb.mxu1 %v6963_v7  ;;  %v7163_v53 = vld [vmem:[%s15014_s9 + $0xb48] sm:$0xff]  ;;  %v7097_v8 = vld [vmem:[%s15014_s9 + $0x938] sm:$0xff] }
 0xaaf   : > { %7809 = vmatpush.msrb.mxu2 %v6995_v51  ;;  %7829 = vmatpush.msrb.mxu3 %v7027_v37  ;;  %v7129_v9 = vld [vmem:[%s15014_s9 + $0xa38] sm:$0xff]  ;;  %v7063_v7 = vld [vmem:[%s15014_s9 + $0x828] sm:$0xff]  ;;  %v14618_v37 = vld [vmem:[%s15015_s10] ss:$4 sm:$0x3] }
 0xab0   : > { %7770 = vmatmul.f32.vlgmr.msrb.gmra.mxu0 %v7321_v52  ;;  %7790 = vmatmul.f32.vlgmr.msrb.gmra.mxu1 %v7322_v40  ;;  %v7087_v52 = vld [vmem:[%s15014_s9 + $0x8e8] sm:$0xff]  ;;  %v7161_v29 = vld [vmem:[%s15014_s9 + $0xb38] sm:$0xff] }
 0xab1   : > { %7810 = vmatmul.f32.vlgmr.msrb.gmra.mxu2 %v7323_v34  ;;  %7830 = vmatmul.f32.vlgmr.msrb.gmra.mxu3 %v7324_v17  ;;  %v7119_v40 = vld [vmem:[%s15014_s9 + $0x9e8] sm:$0xff]  ;;  %v7117_v17 = vld [vmem:[%s15014_s9 + $0x9d8] sm:$0xff] }
 0xab2   : > { %7834 = vmatpush.msra.mxu0 %v7089_v25  ;;  %7854 = vmatpush.msra.mxu1 %v7121_v60  ;;  %v7183_v34 = vld [vmem:[%s15014_s9 + $0xbe8] sm:$0xff] }
 0xab3   : > { %7874 = vmatpush.msra.mxu2 %v7153_v38  ;;  %7894 = vmatpush.msra.mxu3 %v7185_v56  ;;  %v7095_v51 = vld [vmem:[%s15014_s9 + $0x928] sm:$0xff]  ;;  %v7061_v38 = vld [vmem:[%s15014_s9 + $0x818] sm:$0xff] }
 0xab4   : > { %7835 = vmatpush.msra.mxu0 %v7087_v52  ;;  %7855 = vmatpush.msra.mxu1 %v7119_v40  ;;  %v7127_v25 = vld [vmem:[%s15014_s9 + $0xa28] sm:$0xff]  ;;  %v7093_v56 = vld [vmem:[%s15014_s9 + $0x918] sm:$0xff] }
 0xab5   : > { %7875 = vmatpush.msra.mxu2 %v7151_v11  ;;  %7895 = vmatpush.msra.mxu3 %v7183_v34  ;;  %v7159_v60 = vld [vmem:[%s15014_s9 + $0xb28] sm:$0xff]  ;;  %v7125_v52 = vld [vmem:[%s15014_s9 + $0xa18] sm:$0xff]  ;;  %v7350_v11 = vperm.slane %v14618_v37, 0 }
 0xab6   : > { %7836 = vmatpush.msra.mxu0 %v7085_v36  ;;  %7856 = vmatpush.msra.mxu1 %v7117_v17  ;;  %v7157_v40 = vld [vmem:[%s15014_s9 + $0xb18] sm:$0xff]  ;;  %v7059_v34 = vld [vmem:[%s15014_s9 + $0x808] sm:$0xff]  ;;  %v7371_v17 = vpop.f32.mrf.mxu0 }
 0xab7   : > { %7876 = vmatpush.msra.mxu2 %v7149_v19  ;;  %7896 = vmatpush.msra.mxu3 %v7181_v13  ;;  %v7091_v36 = vld [vmem:[%s15014_s9 + $0x908] sm:$0xff] }
 0xab8   : > { %7837 = vmatpush.msra.mxu0 %v7083_v0  ;;  %7857 = vmatpush.msra.mxu1 %v7115_v4  ;;  %v7123_v19 = vld [vmem:[%s15014_s9 + $0xa08] sm:$0xff]  ;;  %v7372_v0 = vadd.f32 %v7371_v17, %v7350_v11  ;;  %v7217_v4 = vld [vmem:[%s15014_s9 + $0xcf8] sm:$0xff] }
 0xab9   : > { %7877 = vmatpush.msra.mxu2 %v7147_v32  ;;  %7897 = vmatpush.msra.mxu3 %v7179_v49  ;;  %v7155_v13 = vld [vmem:[%s15014_s9 + $0xb08] sm:$0xff]  ;;  %v7249_v32 = vld [vmem:[%s15014_s9 + $0xdf8] sm:$0xff] }
 0xaba   : > { %7838 = vmatpush.msra.mxu0 %v7081_v55  ;;  %7858 = vmatpush.msra.mxu1 %v7113_v46  ;;  %v7281_v49 = vld [vmem:[%s15014_s9 + $0xef8] sm:$0xff]  ;;  %v7391_v46 = vpop.f32.mrf.mxu1 }
 0xabb   : > { %7878 = vmatpush.msra.mxu2 %v7145_v61  ;;  %7898 = vmatpush.msra.mxu3 %v7177_v6  ;;  %v7313_v55 = vld [vmem:[%s15014_s9 + $0xff8] sm:$0xff]  ;;  %v7411_v61 = vpop.f32.mrf.mxu2  ;;  %v7279_v6 = vld [vmem:[%s15014_s9 + $0xee8] sm:$0xff] }
 0xabc   : > { %7839 = vmatpush.msra.mxu0 %v7079_v18  ;;  %7859 = vmatpush.msra.mxu1 %v7111_v54  ;;  %v7213_v18 = vld [vmem:[%s15014_s9 + $0xcd8] sm:$0xff] }
 0xabd   : > { %7879 = vmatpush.msra.mxu2 %v7143_v31  ;;  %7899 = vmatpush.msra.mxu3 %v7175_v2  ;;  %v7245_v54 = vld [vmem:[%s15014_s9 + $0xdd8] sm:$0xff] }
 0xabe   : > { %7840 = vmatpush.msra.mxu0 %v7077_v59  ;;  %7860 = vmatpush.msra.mxu1 %v7109_v41  ;;  %v7277_v31 = vld [vmem:[%s15014_s9 + $0xed8] sm:$0xff]  ;;  %v7211_v41 = vld [vmem:[%s15014_s9 + $0xcc8] sm:$0xff] }
 0xabf   : > { %7880 = vmatpush.msra.mxu2 %v7141_v48  ;;  %7900 = vmatpush.msra.mxu3 %v7173_v28  ;;  %v7309_v2 = vld [vmem:[%s15014_s9 + $0xfd8] sm:$0xff]  ;;  %v7243_v48 = vld [vmem:[%s15014_s9 + $0xdc8] sm:$0xff] }
 0xac0   : > { %7841 = vmatpush.msra.mxu0 %v7075_v45  ;;  %7861 = vmatpush.msra.mxu1 %v7107_v58  ;;  %v7275_v28 = vld [vmem:[%s15014_s9 + $0xec8] sm:$0xff]  ;;  %v7209_v58 = vld [vmem:[%s15014_s9 + $0xcb8] sm:$0xff] }
 0xac1   : > { %7881 = vmatpush.msra.mxu2 %v7139_v21  ;;  %7901 = vmatpush.msra.mxu3 %v7171_v3  ;;  %v7307_v45 = vld [vmem:[%s15014_s9 + $0xfc8] sm:$0xff]  ;;  %v7241_v21 = vld [vmem:[%s15014_s9 + $0xdb8] sm:$0xff]  ;;  %v7431_v3 = vpop.f32.mrf.mxu3 }
 0xac2   : > { %7842 = vmatpush.msra.mxu0 %v7073_v43  ;;  %7862 = vmatpush.msra.mxu1 %v7105_v24  ;;  %v7273_v43 = vld [vmem:[%s15014_s9 + $0xeb8] sm:$0xff] }
 0xac3   : > { %7882 = vmatpush.msra.mxu2 %v7137_v39  ;;  %7902 = vmatpush.msra.mxu3 %v7169_v57  ;;  %v7305_v24 = vld [vmem:[%s15014_s9 + $0xfb8] sm:$0xff]  ;;  %v7207_v57 = vld [vmem:[%s15014_s9 + $0xca8] sm:$0xff] }
 0xac4   : > { %7843 = vmatpush.msra.mxu0 %v7071_v15  ;;  %7863 = vmatpush.msra.mxu1 %v7103_v14  ;;  %v7239_v15 = vld [vmem:[%s15014_s9 + $0xda8] sm:$0xff]  ;;  %v7197_v11 = vld [vmem:[%s15014_s9 + $0xc58] sm:$0xff] }
 0xac5   : > { %7883 = vmatpush.msra.mxu2 %v7135_v35  ;;  %7903 = vmatpush.msra.mxu3 %v7167_v50  ;;  %v7271_v14 = vld [vmem:[%s15014_s9 + $0xea8] sm:$0xff]  ;;  %v7205_v50 = vld [vmem:[%s15014_s9 + $0xc98] sm:$0xff] }
 0xac6   : > { %7844 = vmatpush.msra.mxu0 %v7069_v62  ;;  %7864 = vmatpush.msra.mxu1 %v7101_v5  ;;  %v7303_v35 = vld [vmem:[%s15014_s9 + $0xfa8] sm:$0xff]  ;;  %v7237_v62 = vld [vmem:[%s15014_s9 + $0xd98] sm:$0xff]  ;;  %v7451_v5 = vpop.f32.mrf.mxu0 }
 0xac7   : > { %7884 = vmatpush.msra.mxu2 %v7133_v33  ;;  %7904 = vmatpush.msra.mxu3 %v7165_v12  ;;  %v7269_v33 = vld [vmem:[%s15014_s9 + $0xe98] sm:$0xff] }
 0xac8   : > { %7845 = vmatpush.msra.mxu0 %v7067_v1  ;;  %7865 = vmatpush.msra.mxu1 %v7099_v23  ;;  %v7301_v12 = vld [vmem:[%s15014_s9 + $0xf98] sm:$0xff]  ;;  %v7203_v23 = vld [vmem:[%s15014_s9 + $0xc88] sm:$0xff] }
 0xac9   : > { %7885 = vmatpush.msra.mxu2 %v7131_v20  ;;  %7905 = vmatpush.msra.mxu3 %v7163_v53  ;;  %v7235_v20 = vld [vmem:[%s15014_s9 + $0xd88] sm:$0xff]  ;;  %v7293_v17 = vld [vmem:[%s15014_s9 + $0xf58] sm:$0xff] }
 0xaca   : > { %7846 = vmatpush.msra.mxu0 %v7065_v44  ;;  %7866 = vmatpush.msra.mxu1 %v7097_v8  ;;  %v7267_v53 = vld [vmem:[%s15014_s9 + $0xe88] sm:$0xff]  ;;  %v7201_v8 = vld [vmem:[%s15014_s9 + $0xc78] sm:$0xff] }
 0xacb   : > { %7886 = vmatpush.msra.mxu2 %v7129_v9  ;;  %7906 = vmatpush.msra.mxu3 %v7161_v29  ;;  %v7299_v44 = vld [vmem:[%s15014_s9 + $0xf88] sm:$0xff]  ;;  %v7233_v9 = vld [vmem:[%s15014_s9 + $0xd78] sm:$0xff]  ;;  %v7471_v29 = vpop.f32.mrf.mxu1 }
 0xacc   : > { %7847 = vmatpush.msra.mxu0 %v7063_v7  ;;  %7867 = vmatpush.msra.mxu1 %v7095_v51  ;;  %v7265_v7 = vld [vmem:[%s15014_s9 + $0xe78] sm:$0xff] }
 0xacd   : > { %7887 = vmatpush.msra.mxu2 %v7127_v25  ;;  %7907 = vmatpush.msra.mxu3 %v7159_v60  ;;  %v7297_v51 = vld [vmem:[%s15014_s9 + $0xf78] sm:$0xff]  ;;  %v7199_v60 = vld [vmem:[%s15014_s9 + $0xc68] sm:$0xff] }
 0xace   : > { %7848 = vmatpush.msra.mxu0 %v7061_v38  ;;  %7868 = vmatpush.msra.mxu1 %v7093_v56  ;;  %v7231_v38 = vld [vmem:[%s15014_s9 + $0xd68] sm:$0xff]  ;;  %v7491_v56 = vpop.f32.mrf.mxu2 }
 0xacf   : > { %7888 = vmatpush.msra.mxu2 %v7125_v52  ;;  %7908 = vmatpush.msra.mxu3 %v7157_v40  ;;  %v7263_v52 = vld [vmem:[%s15014_s9 + $0xe68] sm:$0xff] }
 0xad0   : > { %7849 = vmatpush.msra.mxu0 %v7059_v34  ;;  %7869 = vmatpush.msra.mxu1 %v7091_v36  ;;  %v7295_v40 = vld [vmem:[%s15014_s9 + $0xf68] sm:$0xff]  ;;  %v7229_v34 = vld [vmem:[%s15014_s9 + $0xd58] sm:$0xff] }
 0xad1   : > { %7889 = vmatpush.msra.mxu2 %v7123_v19  ;;  %7909 = vmatpush.msra.mxu3 %v7155_v13  ;;  %v7261_v36 = vld [vmem:[%s15014_s9 + $0xe58] sm:$0xff]  ;;  %v7195_v13 = vld [vmem:[%s15014_s9 + $0xc48] sm:$0xff] }
 0xad2   : > { %7850 = vmatmul.f32.vlgmr.msra.gmra.mxu0 %v7325_v30  ;;  %7870 = vmatmul.f32.vlgmr.msra.gmra.mxu1 %v7326_v22  ;;  %v7215_v30 = vld [vmem:[%s15014_s9 + $0xce8] sm:$0xff] }
 0xad3   : > { %7890 = vmatmul.f32.vlgmr.msra.gmra.mxu2 %v7327_v42  ;;  %7910 = vmatmul.f32.vlgmr.msra.gmra.mxu3 %v7328_v27  ;;  %v7247_v22 = vld [vmem:[%s15014_s9 + $0xde8] sm:$0xff]  ;;  %v7392_v27 = vadd.f32 %v7391_v46, %v7372_v0  ;;  %v7289_v46 = vld [vmem:[%s15014_s9 + $0xf38] sm:$0xff] }
 0xad4   : > { %7914 = vmatpush.msrb.mxu0 %v7217_v4  ;;  %7934 = vmatpush.msrb.mxu1 %v7249_v32  ;;  %v7311_v42 = vld [vmem:[%s15014_s9 + $0xfe8] sm:$0xff] }
 0xad5   : > { %7954 = vmatpush.msrb.mxu2 %v7281_v49  ;;  %7974 = vmatpush.msrb.mxu3 %v7313_v55  ;;  %v7412_v59 = vadd.f32 %v7411_v61, %v7392_v27  ;;  %v7227_v0 = vld [vmem:[%s15014_s9 + $0xd48] sm:$0xff]  ;;  %v7193_v49 = vld [vmem:[%s15014_s9 + $0xc38] sm:$0xff] }
 0xad6   : > { %7915 = vmatpush.msrb.mxu0 %v7215_v30  ;;  %7935 = vmatpush.msrb.mxu1 %v7247_v22  ;;  %v7259_v4 = vld [vmem:[%s15014_s9 + $0xe48] sm:$0xff]  ;;  %v7225_v55 = vld [vmem:[%s15014_s9 + $0xd38] sm:$0xff]  ;;  %v7511_v30 = vpop.f32.mrf.mxu3 }
 0xad7   : > { %7955 = vmatpush.msrb.mxu2 %v7279_v6  ;;  %7975 = vmatpush.msrb.mxu3 %v7311_v42  ;;  %v7432_v39 = vadd.f32 %v7431_v3, %v7412_v59  ;;  %v7291_v32 = vld [vmem:[%s15014_s9 + $0xf48] sm:$0xff]  ;;  %v7257_v22 = vld [vmem:[%s15014_s9 + $0xe38] sm:$0xff] }
 0xad8   : > { %7916 = vmatpush.msrb.mxu0 %v7213_v18  ;;  %7936 = vmatpush.msrb.mxu1 %v7245_v54  ;;  %v7191_v42 = vld [vmem:[%s15014_s9 + $0xc28] sm:$0xff] }
 0xad9   : > { %7956 = vmatpush.msrb.mxu2 %v7277_v31  ;;  %7976 = vmatpush.msrb.mxu3 %v7309_v2  ;;  %v7452_v1 = vadd.f32 %v7451_v5, %v7432_v39  ;;  %v7223_v27 = vld [vmem:[%s15014_s9 + $0xd28] sm:$0xff]  ;;  %v7189_v31 = vld [vmem:[%s15014_s9 + $0xc18] sm:$0xff] }
 0xada   : > { %7917 = vmatpush.msrb.mxu0 %v7211_v41  ;;  %7937 = vmatpush.msrb.mxu1 %v7243_v48  ;;  %v7255_v18 = vld [vmem:[%s15014_s9 + $0xe28] sm:$0xff]  ;;  %v7221_v2 = vld [vmem:[%s15014_s9 + $0xd18] sm:$0xff] }
 0xadb   : > { %7957 = vmatpush.msrb.mxu2 %v7275_v28  ;;  %7977 = vmatpush.msrb.mxu3 %v7307_v45  ;;  %v7472_v25 = vadd.f32 %v7471_v29, %v7452_v1  ;;  %v7287_v54 = vld [vmem:[%s15014_s9 + $0xf28] sm:$0xff]  ;;  %v7253_v41 = vld [vmem:[%s15014_s9 + $0xe18] sm:$0xff]  ;;  %v8022_v1 = vld [vmem:[%s15016_s11 + $0x40] sm:$0xff] }
 0xadc   : > { %7918 = vmatpush.msrb.mxu0 %v7209_v58  ;;  %7938 = vmatpush.msrb.mxu1 %v7241_v21  ;;  %v7285_v48 = vld [vmem:[%s15014_s9 + $0xf18] sm:$0xff]  ;;  %v7187_v28 = vld [vmem:[%s15014_s9 + $0xc08] sm:$0xff]  ;;  %v14895_v29 = vld [vmem:[%s15015_s10 + $0x1] ss:$4 sm:$0x3] }
 0xadd   : > { %7958 = vmatpush.msrb.mxu2 %v7273_v43  ;;  %7978 = vmatpush.msrb.mxu3 %v7305_v24  ;;  %v7492_v19 = vadd.f32 %v7491_v56, %v7472_v25  ;;  %v7219_v45 = vld [vmem:[%s15014_s9 + $0xd08] sm:$0xff]  ;;  %v8029_v39 = vld [vmem:[%s15016_s11 + $0x78] sm:$0xff]  ;;  %v7999_v25 = vperm.slane %v14895_v29, 0  ;;  %v8016_v56 = vld [vmem:[%s15016_s11 + $0x10] sm:$0xff] }
 0xade   : > { %7919 = vmatpush.msrb.mxu0 %v7207_v57  ;;  %7939 = vmatpush.msrb.mxu1 %v7239_v15  ;;  %v7251_v58 = vld [vmem:[%s15014_s9 + $0xe08] sm:$0xff]  ;;  %v8028_v15 = vld [vmem:[%s15016_s11 + $0x70] sm:$0xff] }
 0xadf   : > { %7959 = vmatpush.msrb.mxu2 %v7271_v14  ;;  %7979 = vmatpush.msrb.mxu3 %v7303_v35  ;;  %v7512_v6 = vadd.f32 %v7511_v30, %v7492_v19  ;;  %v7283_v21 = vld [vmem:[%s15014_s9 + $0xf08] sm:$0xff]  ;;  %v8044_v19 = vld [vmem:[%s15016_s11 + $0xf0] sm:$0xff] }
 0xae0   : > { %7920 = vmatpush.msrb.mxu0 %v7205_v50  ;;  %7940 = vmatpush.msrb.mxu1 %v7237_v62  ;;  %v8027_v35 = vld [vmem:[%s15016_s11 + $0x68] sm:$0xff]  ;;  %v8024_v50 = vld [vmem:[%s15016_s11 + $0x50] sm:$0xff] }
 0xae1   : > { %7960 = vmatpush.msrb.mxu2 %v7269_v33  ;;  %7980 = vmatpush.msrb.mxu3 %v7301_v12  ;;  %v8023_v33 = vld [vmem:[%s15016_s11 + $0x48] sm:$0xff] }
 0xae2   : > { %7921 = vmatpush.msrb.mxu0 %v7203_v23  ;;  %7941 = vmatpush.msrb.mxu1 %v7235_v20  ;;  %v8021_v20 = vld [vmem:[%s15016_s11 + $0x38] sm:$0xff] }
 0xae3   : > { %7961 = vmatpush.msrb.mxu2 %v7267_v53  ;;  %7981 = vmatpush.msrb.mxu3 %v7299_v44  ;;  %v8020_v53 = vld [vmem:[%s15016_s11 + $0x30] sm:$0xff] }
 0xae4   : > { %7922 = vmatpush.msrb.mxu0 %v7201_v8  ;;  %7942 = vmatpush.msrb.mxu1 %v7233_v9  ;;  %v8019_v9 = vld [vmem:[%s15016_s11 + $0x28] sm:$0xff] }
 0xae5   : > { %7962 = vmatpush.msrb.mxu2 %v7265_v7  ;;  %7982 = vmatpush.msrb.mxu3 %v7297_v51  ;;  %v8018_v7 = vld [vmem:[%s15016_s11 + $0x20] sm:$0xff] }
 0xae6   : > { %7923 = vmatpush.msrb.mxu0 %v7199_v60  ;;  %7943 = vmatpush.msrb.mxu1 %v7231_v38  ;;  %v8017_v60 = vld [vmem:[%s15016_s11 + $0x18] sm:$0xff]  ;;  %v14907_v38 = vld [vmem:[%s15015_s10 + $0x2] ss:$4 sm:$0x3] }
 0xae7   : > { %7963 = vmatpush.msrb.mxu2 %v7263_v52  ;;  %7983 = vmatpush.msrb.mxu3 %v7295_v40  ;;  %v7531_v61 = vpop.f32.mrf.mxu0  ;;  %v7551_v3 = vpop.f32.mrf.mxu1  ;;  %v8008_v40 = vperm.slane %v14907_v38, 0 }
 0xae8   : > { %7924 = vmatpush.msrb.mxu0 %v7197_v11  ;;  %7944 = vmatpush.msrb.mxu1 %v7229_v34  ;;  %v7532_v59 = vadd.f32 %v7531_v61, %v7512_v6  ;;  %v8015_v11 = vld [vmem:[%s15016_s11 + $0x8] sm:$0xff]  ;;  %v8014_v34 = vld [vmem:[%s15016_s11] sm:$0xff] }
 0xae9   : > { %7964 = vmatpush.msrb.mxu2 %v7261_v36  ;;  %7984 = vmatpush.msrb.mxu3 %v7293_v17  ;;  %v8045_v17 = vld [vmem:[%s15016_s11 + $0xf8] sm:$0xff]  ;;  %v8038_v6 = vld [vmem:[%s15016_s11 + $0xc0] sm:$0xff] }
 0xaea   : > { %7925 = vmatpush.msrb.mxu0 %v7195_v13  ;;  %7945 = vmatpush.msrb.mxu1 %v7227_v0  ;;  %v7552_v24 = vadd.f32 %v7551_v3, %v7532_v59  ;;  %v8043_v13 = vld [vmem:[%s15016_s11 + $0xe8] sm:$0xff]  ;;  %v8042_v0 = vld [vmem:[%s15016_s11 + $0xe0] sm:$0xff] }
 0xaeb   : > { %7965 = vmatpush.msrb.mxu2 %v7259_v4  ;;  %7985 = vmatpush.msrb.mxu3 %v7291_v32  ;;  %v8041_v4 = vld [vmem:[%s15016_s11 + $0xd8] sm:$0xff]  ;;  %v8040_v32 = vld [vmem:[%s15016_s11 + $0xd0] sm:$0xff] }
 0xaec   : > { %7926 = vmatpush.msrb.mxu0 %v7193_v49  ;;  %7946 = vmatpush.msrb.mxu1 %v7225_v55  ;;  %v8039_v49 = vld [vmem:[%s15016_s11 + $0xc8] sm:$0xff]  ;;  %v7351_v55 = vperm.slane %v14618_v37, 1 }
 0xaed   : > { %7966 = vmatpush.msrb.mxu2 %v7257_v22  ;;  %7986 = vmatpush.msrb.mxu3 %v7289_v46 }
 0xaee   : > { %7927 = vmatpush.msrb.mxu0 %v7191_v42  ;;  %7947 = vmatpush.msrb.mxu1 %v7223_v27  ;;  %v7571_v43 = vpop.f32.mrf.mxu2  ;;  %v7591_v14 = vpop.f32.mrf.mxu3  ;;  %v8037_v27 = vld [vmem:[%s15016_s11 + $0xb8] sm:$0xff] }
 0xaef   : > { %7967 = vmatpush.msrb.mxu2 %v7255_v18  ;;  %7987 = vmatpush.msrb.mxu3 %v7287_v54  ;;  %v7572_v57 = vadd.f32 %v7571_v43, %v7552_v24  ;;  %v8036_v18 = vld [vmem:[%s15016_s11 + $0xb0] sm:$0xff]  ;;  %v8031_v43 = vld [vmem:[%s15016_s11 + $0x88] sm:$0xff] }
 0xaf0   : > { %7928 = vmatpush.msrb.mxu0 %v7189_v31  ;;  %7948 = vmatpush.msrb.mxu1 %v7221_v2  ;;  %v8035_v2 = vld [vmem:[%s15016_s11 + $0xa8] sm:$0xff] }
 0xaf1   : > { %7968 = vmatpush.msrb.mxu2 %v7253_v41  ;;  %7988 = vmatpush.msrb.mxu3 %v7285_v48  ;;  %v7631_v62 = vpop.f32.mrf.mxu1  ;;  %v8034_v41 = vld [vmem:[%s15016_s11 + $0xa0] sm:$0xff] }
 0xaf2   : > { %7929 = vmatpush.msrb.mxu0 %v7187_v28  ;;  %7949 = vmatpush.msrb.mxu1 %v7219_v45  ;;  %v8033_v28 = vld [vmem:[%s15016_s11 + $0x98] sm:$0xff] }
 0xaf3   : > { %7969 = vmatpush.msrb.mxu2 %v7251_v58  ;;  %7989 = vmatpush.msrb.mxu3 %v7283_v21  ;;  %v8032_v21 = vld [vmem:[%s15016_s11 + $0x90] sm:$0xff] }
 0xaf4   : > { %7930 = vmatmul.f32.vlgmr.msrb.gmra.mxu0 %v7329_v26  ;;  %7950 = vmatmul.f32.vlgmr.msrb.gmra.mxu1 %v7330_v10  ;;  %v7592_v26 = vadd.f32 %v7591_v14, %v7572_v57  ;;  %v8026_v10 = vld [vmem:[%s15016_s11 + $0x60] sm:$0xff] }
 0xaf5   : > { %7970 = vmatmul.f32.vlgmr.msrb.gmra.mxu2 %v7331_v63  ;;  %7990 = vmatmul.f32.vlgmr.msrb.gmra.mxu3 %v7332_v47  ;;  %v7611_v63 = vpop.f32.mrf.mxu0 }
 0xaf6   : > { %8047 = vmatpush.msra.mxu0 %v8029_v39  ;;  %v7612_v47 = vadd.f32 %v7611_v63, %v7592_v26  ;;  %8067 = vmatpush.msra.mxu1 %v8045_v17  ;;  %v8030_v39 = vld [vmem:[%s15016_s11 + $0x80] sm:$0xff] }
 0xaf8   : > { %8048 = vmatpush.msra.mxu0 %v8028_v15  ;;  %v7632_v5 = vadd.f32 %v7631_v62, %v7612_v47  ;;  %v7651_v12 = vpop.f32.mrf.mxu2  ;;  %v7671_v44 = vpop.f32.mrf.mxu3  ;;  %8068 = vmatpush.msra.mxu1 %v8044_v19 }
 0xafa   : > { %8049 = vmatpush.msra.mxu0 %v8027_v35  ;;  %v7652_v23 = vadd.f32 %v7651_v12, %v7632_v5  ;;  %8069 = vmatpush.msra.mxu1 %v8043_v13 }
 0xafc   : > { %8050 = vmatpush.msra.mxu0 %v8026_v10  ;;  %v7672_v8 = vadd.f32 %v7671_v44, %v7652_v23  ;;  %8070 = vmatpush.msra.mxu1 %v8042_v0  ;;  %v8000_v44 = vperm.slane %v14895_v29, 1 }
 0xafe   : > { %8051 = vmatpush.msra.mxu0 %v8025_v16  ;;  %v7994_v51 = vmax.f32 %v7672_v8, 0.0  ;;  %8071 = vmatpush.msra.mxu1 %v8041_v4 }
 0xb00   : > { %8052 = vmatpush.msra.mxu0 %v8024_v50  ;;  %v8003_v52 = vmul.f32 %v7999_v25, %v7994_v51  ;;  %8072 = vmatpush.msra.mxu1 %v8040_v32  ;;  %v8046_v25 = vld [vmem:[%s15017_s12] sm:$0x1] }
 0xb02   : > { %8053 = vmatpush.msra.mxu0 %v8023_v33  ;;  %v8012_v36 = vadd.f32 %v8008_v40, %v8003_v52  ;;  %8073 = vmatpush.msra.mxu1 %v8039_v49 }
 0xb04   : > { %8054 = vmatpush.msra.mxu0 %v8022_v1  ;;  %8074 = vmatpush.msra.mxu1 %v8038_v6 }
 0xb06   : > { %8055 = vmatpush.msra.mxu0 %v8021_v20  ;;  %8075 = vmatpush.msra.mxu1 %v8037_v27 }
 0xb08   : > { %8056 = vmatpush.msra.mxu0 %v8020_v53  ;;  %8076 = vmatpush.msra.mxu1 %v8036_v18 }
 0xb0a   : > { %8057 = vmatpush.msra.mxu0 %v8019_v9  ;;  %8077 = vmatpush.msra.mxu1 %v8035_v2  ;;  %v8009_v9 = vperm.slane %v14907_v38, 1 }
 0xb0b   : > { %v7691_v30 = vpop.f32.mrf.mxu0  ;;  %v7711_v46 = vpop.f32.mrf.mxu1 }
 0xb0c   : > { %8058 = vmatpush.msra.mxu0 %v8018_v7  ;;  %v7692_v22 = vadd.f32 %v7691_v30, %v7351_v55  ;;  %8078 = vmatpush.msra.mxu1 %v8034_v41 }
 0xb0e   : > { %8059 = vmatpush.msra.mxu0 %v8017_v60  ;;  %v7712_v42 = vadd.f32 %v7711_v46, %v7692_v22  ;;  %8079 = vmatpush.msra.mxu1 %v8033_v28 }
 0xb10   : > { %8060 = vmatpush.msra.mxu0 %v8016_v56  ;;  %8080 = vmatpush.msra.mxu1 %v8032_v21 }
 0xb12   : > { %8061 = vmatpush.msra.mxu0 %v8015_v11  ;;  %v7731_v61 = vpop.f32.mrf.mxu2  ;;  %v7751_v37 = vpop.f32.mrf.mxu3  ;;  %8081 = vmatpush.msra.mxu1 %v8031_v43 }
 0xb13   : > { %v7732_v54 = vadd.f32 %v7731_v61, %v7712_v42 }
 0xb14   : > { %8062 = vmatpush.msra.mxu0 %v8014_v34  ;;  %8082 = vmatpush.msra.mxu1 %v8030_v39 }
 0xb15   : > { %8063 = vmatmul.f32.vlgmr.msra.gmra.mxu0 %v8012_v36  ;;  %v7752_v59 = vadd.f32 %v7751_v37, %v7732_v54 }
 0xb2d   : > { %v7771_v31 = vpop.f32.mrf.mxu0  ;;  %v7791_v45 = vpop.f32.mrf.mxu1 }
 0xb2e   : > { %v7772_v48 = vadd.f32 %v7771_v31, %v7752_v59 }
 0xb30   : > { %v7792_v3 = vadd.f32 %v7791_v45, %v7772_v48 }
 0xb34   : > { %v7811_v58 = vpop.f32.mrf.mxu2  ;;  %v7831_v57 = vpop.f32.mrf.mxu3 }
 0xb35   : > { %v7812_v24 = vadd.f32 %v7811_v58, %v7792_v3 }
 0xb37   : > { %v7832_v14 = vadd.f32 %v7831_v57, %v7812_v24 }
 0xb4f   : > { %v7851_v15 = vpop.f32.mrf.mxu0  ;;  %v7871_v26 = vpop.f32.mrf.mxu1 }
 0xb50   : > { %v7852_v35 = vadd.f32 %v7851_v15, %v7832_v14 }
 0xb52   : > { %v7872_v63 = vadd.f32 %v7871_v26, %v7852_v35 }
 0xb56   : > { %v7891_v10 = vpop.f32.mrf.mxu2  ;;  %v7911_v47 = vpop.f32.mrf.mxu3 }
 0xb57   : > { %v7892_v16 = vadd.f32 %v7891_v10, %v7872_v63 }
 0xb59   : > { %v7912_v50 = vadd.f32 %v7911_v47, %v7892_v16 }
 0xb71   : > { %v7931_v62 = vpop.f32.mrf.mxu0  ;;  %v7951_v33 = vpop.f32.mrf.mxu1 }
 0xb72   : > { %v7932_v5 = vadd.f32 %v7931_v62, %v7912_v50 }
 0xb74   : > { %v7952_v12 = vadd.f32 %v7951_v33, %v7932_v5 }
 0xb78   : > { %v7971_v1 = vpop.f32.mrf.mxu2  ;;  %v7991_v20 = vpop.f32.mrf.mxu3 }
 0xb79   : > { %v7972_v23 = vadd.f32 %v7971_v1, %v7952_v12 }
 0xb7b   : > { %v7992_v53 = vadd.f32 %v7991_v20, %v7972_v23 }
 0xb7d   : > { %v7995_v8 = vmax.f32 %v7992_v53, 0.0 }
 0xb7f   : > { %v8004_v7 = vmul.f32 %v8000_v44, %v7995_v8 }
 0xb81   : > { %v8013_v51 = vadd.f32 %v8009_v9, %v8004_v7 }
 0xb83   : > { %8083 = vmatmul.f32.vlgmr.msra.gmra.mxu1 %v8013_v51 }
 0xb92   : > { %v8064_v60 = vpop.f32.mrf.mxu0 }
 0xb93   : > { %v8065_v29 = vadd.f32 %v8064_v60, %v8046_v25 }
 0xc00   : > { %v8084_v56 = vpop.f32.mrf.mxu1 }
 0xc01   : > { %v8085_v38 = vadd.f32 %v8084_v56, %v8065_v29 }
 0xc03   : > { %8087 = vst [vmem:[%s432_s22] sm:$0x1] %v8085_v38 }
 0xc04   : > { %8897 = shalt.err (!%p8894_p3)
}
 0xc05   : > { %8525 = dma.vmem_to_hbm [thread:$0]  (%p9073_p5), %s8100_s15, 16, %s8102_s2, %s8089_s1  }
 0xc06 PF: > { %p8531_p4 = scmp.ge.s32.totalorder %s8932_s28, 2  ;;  %s8113_s0 = sand.u32 1, %s8920_s25  }
 0xc07   : > { %s8114_s24 = scalar_lea.sflag [#allocation8], %s8113_s0 }
 0xc08   : > { %p8528_p7 = pnand %p8531_p4, %p9077_p6 }
 0xc0a   : > { %p8529_p8 = pneg %p8528_p7 }
 0xc0c   : > { %8915 = dma.done.wait (%p8529_p8), %s8114_s24, 16  }
 0xc0d   : > { %8917 = vsyncadd (%p8529_p8), %s8114_s24, 4294967280  ;;  %p23_p9 = scmp.ge.s32.totalorder %s9060_s14, 4   ;;  %s15528_s25 = smov %s8924_s26 }
 0xc0e   : > { %s15529_s26 = smov %s8928_s27  ;;  %s15530_s27 = smov %s9071_s17 }
 0xc0f   : > { %s15531_s28 = smov %s9060_s14  ;;  %25 = sbr.rel (!%p23_p9) target bundleno = 9 (0x9), region = 172 }
 0xc14   :  { %8119 = vsyncpa [#allocation8], 1 }
 0xc15   :  { %8121 = vsyncpa [#allocation8 + $0x1], 1 }

</bundles_post_ra>
